<compile_context>
chip_gen: v7x
topology: tpu7x:2x2x1
jax: 0.10.0
libtpu: 0.0.40
codegen_flags: <defaults>
</compile_context>

<pallas_src>
import functools

import jax
import jax.numpy as jnp
from jax import lax
from jax.experimental import pallas as pl
from jax.experimental.pallas import tpu as pltpu

GEN_KERNEL = 3
BN_EPS = 1e-5
LANE = 128


def _round_up(x, m):
    return (x + m - 1) // m * m


def _pick_tile(dim, candidates):
    for c in candidates:
        if c <= dim and dim % c == 0:
            return c
    return dim


# ----------------------------------------------------------------------------
# Pallas kernels
# ----------------------------------------------------------------------------
def _matmul_stats_kernel(a_ref, b_ref, o_ref, sum_ref, ssq_ref):
    """o = A @ B (bf16 x bf16 -> f32) accumulated directly in the resident output
    block; epilogue emits per-channel sum / sum-of-squares for BatchNorm."""
    k = pl.program_id(2)

    @pl.when(k == 0)
    def _():
        o_ref[...] = jnp.zeros_like(o_ref)

    o_ref[...] += jnp.dot(a_ref[...], b_ref[...],
                          preferred_element_type=jnp.float32)

    @pl.when(k == pl.num_programs(2) - 1)
    def _():
        y = o_ref[...]
        cs = jnp.sum(y, axis=0, keepdims=True)
        cq = jnp.sum(y * y, axis=0, keepdims=True)
        sum_ref[...] = jnp.broadcast_to(cs, sum_ref.shape)
        ssq_ref[...] = jnp.broadcast_to(cq, ssq_ref.shape)


@functools.lru_cache(maxsize=None)
def _matmul_call(Mp, Kp, Np):
    tm = _pick_tile(Mp, (256, 128, 64, 32, 16, 8))   # capped M tile -> bounded VMEM + M grid
    tk = _pick_tile(Kp, (512, 384, 256, 128))
    tn = _pick_tile(Np, (512, 256, 128))
    mt = Mp // tm
    return pl.pallas_call(
        _matmul_stats_kernel,
        out_shape=(jax.ShapeDtypeStruct((Mp, Np), jnp.float32),
                   jax.ShapeDtypeStruct((mt * 8, Np), jnp.float32),
                   jax.ShapeDtypeStruct((mt * 8, Np), jnp.float32)),
        grid_spec=pltpu.PrefetchScalarGridSpec(
            num_scalar_prefetch=0,
            grid=(mt, Np // tn, Kp // tk),
            in_specs=[pl.BlockSpec((tm, tk), lambda i, j, k: (i, k)),
                      pl.BlockSpec((tk, tn), lambda i, j, k: (k, j))],
            out_specs=(pl.BlockSpec((tm, tn), lambda i, j, k: (i, j)),
                       pl.BlockSpec((8, tn), lambda i, j, k: (i, j)),
                       pl.BlockSpec((8, tn), lambda i, j, k: (i, j)))),
        compiler_params=pltpu.CompilerParams(
            dimension_semantics=("parallel", "parallel", "arbitrary"),
            vmem_limit_bytes=32 * 1024 * 1024),
    )


def pallas_matmul_stats(a, b_mat):
    """a: (M, K) float; b_mat: (Kp, Np) bf16 built once at init (K/N pre-padded).
    Returns (y (Mp, Np) f32, per-channel sum (Np,), per-channel sum-of-squares (Np,))."""
    M, K = a.shape
    Kp, Np = b_mat.shape
    Mp = _round_up(M, 8)
    if (M, K) != (Mp, Kp):
        a = jnp.pad(a, ((0, Mp - M), (0, Kp - K)))   # only needed on fresh patch tensors
    y, s8, q8 = _matmul_call(Mp, Kp, Np)(a.astype(jnp.bfloat16), b_mat)
    colsum = jnp.sum(s8.reshape(-1, 8, Np)[:, 0, :], axis=0)
    colssq = jnp.sum(q8.reshape(-1, 8, Np)[:, 0, :], axis=0)
    return y, colsum, colssq


def _sba_kernel(y_ref, s_ref, b_ref, o_ref, *, relu):
    v = y_ref[...] * s_ref[...] + b_ref[...]
    if relu:
        v = jnp.maximum(v, 0.0)
    o_ref[...] = v


def _sba_res_kernel(y_ref, s_ref, b_ref, r_ref, o_ref, *, relu):
    v = y_ref[...] * s_ref[...] + b_ref[...] + r_ref[...]
    if relu:
        v = jnp.maximum(v, 0.0)
    o_ref[...] = v


@functools.lru_cache(maxsize=None)
def _sba_call(Mp, Cp, relu, has_res):
    bm = _pick_tile(Mp, (256, 128, 64, 32, 16, 8))
    bc = _pick_tile(Cp, (512, 256, 128))
    io_spec = pl.BlockSpec((bm, bc), lambda i, j: (i, j))
    vec_spec = pl.BlockSpec((1, bc), lambda i, j: (0, j))
    in_specs = [io_spec, vec_spec, vec_spec] + ([io_spec] if has_res else [])
    kern = functools.partial(_sba_res_kernel if has_res else _sba_kernel, relu=relu)
    return pl.pallas_call(
        kern,
        out_shape=jax.ShapeDtypeStruct((Mp, Cp), jnp.float32),
        grid_spec=pltpu.PrefetchScalarGridSpec(
            num_scalar_prefetch=0,
            grid=(Mp // bm, Cp // bc),
            in_specs=in_specs,
            out_specs=io_spec),
        compiler_params=pltpu.CompilerParams(
            dimension_semantics=("parallel", "parallel")),
    )


def bn_apply(y2d, scale, bias, *, relu, residual=None):
    Mp, Cp = y2d.shape
    if residual is not None:
        return _sba_call(Mp, Cp, bool(relu), True)(
            y2d, scale.reshape(1, Cp), bias.reshape(1, Cp), residual)
    return _sba_call(Mp, Cp, bool(relu), False)(
        y2d, scale.reshape(1, Cp), bias.reshape(1, Cp))


def _bn_scale_bias(colsum, colssq, m_real, gamma, beta):
    """Training-mode BatchNorm (biased batch variance) folded to per-channel
    scale/bias.  Zero-padded rows contribute 0 to the sums; divide by the real M."""
    mean = colsum / m_real
    var = jnp.maximum(colssq / m_real - mean * mean, 0.0)
    scale = gamma * lax.rsqrt(var + BN_EPS)
    bias = beta - mean * scale
    return scale, bias


def _combine_kernel(c_ref, t_ref, o_ref):
    # weights = (templates * coefficients).sum(0), on matmul-layout templates.
    o_ref[...] = jnp.sum(t_ref[...] * c_ref[...][:, :, None], axis=0)


@functools.lru_cache(maxsize=None)
def _combine_call(T, Kp, Np):
    bk = _pick_tile(Kp, (512, 384, 256, 128, 8))
    bn = _pick_tile(Np, (512, 256, 128))
    return pl.pallas_call(
        _combine_kernel,
        out_shape=jax.ShapeDtypeStruct((Kp, Np), jnp.float32),
        grid_spec=pltpu.PrefetchScalarGridSpec(
            num_scalar_prefetch=0,
            grid=(Kp // bk, Np // bn),
            in_specs=[pl.BlockSpec((T, 1), lambda i, j: (0, 0)),
                      pl.BlockSpec((T, bk, bn), lambda i, j: (0, i, j))],
            out_specs=pl.BlockSpec((bk, bn), lambda i, j: (i, j))),
        compiler_params=pltpu.CompilerParams(
            dimension_semantics=("parallel", "parallel")),
    )


def combine_templates(tmpl_mats, coef):
    """TemplateBank.forward on pre-reshaped (T, Kp, Np) f32 template matrices."""
    T, Kp, Np = tmpl_mats.shape
    c = coef.reshape(T)
    if T == 1:
        # Single template (this config): the bank is a scalar multiply; XLA fuses it.
        w = tmpl_mats[0] * c[0]
    else:
        w = _combine_call(T, Kp, Np)(c.reshape(T, 1), tmpl_mats)
    return w.astype(jnp.bfloat16)


# ----------------------------------------------------------------------------
# Conv glue: im2col (bf16) feeding the Pallas matmul kernel
# ----------------------------------------------------------------------------
def _im2col(x4, kh, kw, stride, padding):
    # TODO(synk): a halo-aware shifted-window conv kernel would avoid materializing the
    # kh*kw-replicated patch tensor in HBM; at these activation sizes the bf16 im2col +
    # one large MXU matmul is the simpler robust choice.
    B, H, W, C = x4.shape
    Ho = (H + 2 * padding - kh) // stride + 1
    Wo = (W + 2 * padding - kw) // stride + 1
    xp = jnp.pad(x4, ((0, 0), (padding, padding), (padding, padding), (0, 0)))
    cols = [xp[:, i:i + (Ho - 1) * stride + 1:stride,
               j:j + (Wo - 1) * stride + 1:stride, :]
            for i in range(kh) for j in range(kw)]
    patches = jnp.concatenate(cols, axis=-1).reshape(B * Ho * Wo, kh * kw * C)
    return patches, B, Ho, Wo


def conv_matmul(x4, wmat, kh, kw, stride, padding):
    """Conv as (im2col +) Pallas matmul.  1x1 convs skip im2col entirely."""
    if kh == 1 and kw == 1:
        xs = x4[:, ::stride, ::stride, :]
        B, Ho, Wo, C = xs.shape
        patches = xs.reshape(B * Ho * Wo, C).astype(jnp.bfloat16)
    else:
        patches, B, Ho, Wo = _im2col(x4.astype(jnp.bfloat16), kh, kw, stride, padding)
    y, colsum, colssq = pallas_matmul_stats(patches, wmat)
    return y, colsum, colssq, (B, Ho, Wo), B * Ho * Wo


def _unpad_nhwc(y2d, shape_bhw, cp):
    B, Ho, Wo = shape_bhw
    return y2d[:B * Ho * Wo].reshape(B, Ho, Wo, cp)


def _pad_rows(a2d, mp):
    m = a2d.shape[0]
    return a2d if m == mp else jnp.pad(a2d, ((0, mp - m), (0, 0)))


# ----------------------------------------------------------------------------
# Parameter initialization (deterministic, mirrors the PyTorch module shapes;
# conv weights converted once to padded im2col matmul matrices)
# ----------------------------------------------------------------------------
class KeyGen:
    def __init__(self, key):
        self.key = key

    def __call__(self):
        self.key, sub = jax.random.split(self.key)
        return sub


def _kaiming(key, shape):
    fan_in = shape[1] * shape[2] * shape[3]
    return jax.random.normal(key, shape, jnp.float32) * (2.0 / fan_in) ** 0.5


def _conv_wmat(w_oihw, cin_pad, cout_pad, k_pad=None, dtype=jnp.bfloat16):
    """OIHW conv weight -> zero-padded (kh*kw*cin_pad, cout_pad) matmul matrix (once)."""
    O, I, kh, kw = w_oihw.shape
    w = jnp.pad(w_oihw, ((0, cout_pad - O), (0, cin_pad - I), (0, 0), (0, 0)))
    m = jnp.transpose(w, (2, 3, 1, 0)).reshape(kh * kw * cin_pad, cout_pad)
    if k_pad is not None and k_pad > m.shape[0]:
        m = jnp.pad(m, ((0, k_pad - m.shape[0]), (0, 0)))
    return m.astype(dtype)


def _make_bn(c):
    cp = _round_up(c, LANE)
    gamma = jnp.zeros((cp,), jnp.float32).at[:c].set(1.0)   # padded channels -> output 0
    beta = jnp.zeros((cp,), jnp.float32)
    return (gamma, beta)


def init_params(key, layers=(2, 2, 2, 2), num_classes=10):
    kg = KeyGen(key)
    inplanes = 64
    cp_in = _round_up(inplanes, LANE)

    conv1 = _kaiming(kg(), (inplanes, 3, 7, 7))
    params = {
        'conv1_wmat': _conv_wmat(conv1, 3, cp_in, k_pad=_round_up(3 * 49, LANE)),
        'bn1': _make_bn(inplanes),
        'layers': [],
    }
    for planes, blocks, stride in zip((64, 128, 256, 512), layers, (1, 2, 2, 2)):
        cp_out = _round_up(planes, LANE)
        lp = {'blocks': []}
        b0 = {
            'type': 'std', 'stride': stride,
            'w1mat': _conv_wmat(_kaiming(kg(), (planes, inplanes, 3, 3)), cp_in, cp_out),
            'bn1': _make_bn(planes),
            'w2mat': _conv_wmat(_kaiming(kg(), (planes, planes, 3, 3)), cp_out, cp_out),
            'bn2': _make_bn(planes),
            'ds': None,
        }
        if stride != 1 or inplanes != planes:
            b0['ds'] = {
                'wmat': _conv_wmat(_kaiming(kg(), (planes, inplanes, 1, 1)), cp_in, cp_out),
                'bn': _make_bn(planes),
            }
        lp['blocks'].append(b0)
        # num_templates1 = num_templates2 = max(1, blocks - 1) (params ratio == 1)
        T = max(1, blocks - 1)
        lp['bank1'] = jnp.stack([_conv_wmat(_kaiming(kg(), (planes, planes, 3, 3)),
                                            cp_out, cp_out, dtype=jnp.float32)
                                 for _ in range(T)])
        lp['bank2'] = jnp.stack([_conv_wmat(_kaiming(kg(), (planes, planes, 3, 3)),
                                            cp_out, cp_out, dtype=jnp.float32)
                                 for _ in range(T)])
        inplanes, cp_in = planes, cp_out
        for _ in range(1, blocks):
            lp['blocks'].append({
                'type': 'tpl',
                'coef1': jax.random.normal(kg(), (T, 1, 1, 1, 1), jnp.float32) / T,
                'coef2': jax.random.normal(kg(), (T, 1, 1, 1, 1), jnp.float32) / T,
                'bn1': _make_bn(planes),
                'bn2': _make_bn(planes),
            })
        params['layers'].append(lp)
    fc_w = jax.random.normal(kg(), (num_classes, 512), jnp.float32) * (1.0 / 512) ** 0.5
    params['fc_wmat'] = jnp.pad(
        fc_w.T, ((0, 0), (0, _round_up(num_classes, LANE) - num_classes))
    ).astype(jnp.bfloat16)
    params['fc_b'] = jnp.zeros((num_classes,), jnp.float32)
    params['num_classes'] = num_classes
    return params


# ----------------------------------------------------------------------------
# Forward pass
# ----------------------------------------------------------------------------
def std_block_forward(x4, bp):
    cp_out = bp['bn1'][0].shape[0]
    y1, cs1, cq1, shp, m = conv_matmul(x4, bp['w1mat'], 3, 3, bp['stride'], 1)
    s1, b1 = _bn_scale_bias(cs1, cq1, m, *bp['bn1'])
    h4 = _unpad_nhwc(bn_apply(y1, s1, b1, relu=True), shp, cp_out)

    y2, cs2, cq2, shp2, m2 = conv_matmul(h4, bp['w2mat'], 3, 3, 1, 1)

    if bp['ds'] is not None:
        yd, csd, cqd, _, md = conv_matmul(x4, bp['ds']['wmat'], 1, 1, bp['stride'], 0)
        sd, bd = _bn_scale_bias(csd, cqd, md, *bp['ds']['bn'])
        idn = bn_apply(yd, sd, bd, relu=False)
    else:
        idn = _pad_rows(x4.reshape(-1, x4.shape[-1]), y2.shape[0])

    s2, b2 = _bn_scale_bias(cs2, cq2, m2, *bp['bn2'])
    out = bn_apply(y2, s2, b2, relu=True, residual=idn)
    return _unpad_nhwc(out, shp2, cp_out)


def tpl_block_forward(x4, bp, bank1_mats, bank2_mats):
    cp = bp['bn1'][0].shape[0]
    w1 = combine_templates(bank1_mats, bp['coef1'])
    w2 = combine_templates(bank2_mats, bp['coef2'])

    y1, cs1, cq1, shp, m = conv_matmul(x4, w1, 3, 3, 1, 1)
    s1, b1 = _bn_scale_bias(cs1, cq1, m, *bp['bn1'])
    h4 = _unpad_nhwc(bn_apply(y1, s1, b1, relu=True), shp, cp)

    y2, cs2, cq2, shp2, m2 = conv_matmul(h4, w2, 3, 3, 1, 1)
    s2, b2 = _bn_scale_bias(cs2, cq2, m2, *bp['bn2'])
    idn = _pad_rows(x4.reshape(-1, cp), y2.shape[0])
    out = bn_apply(y2, s2, b2, relu=True, residual=idn)
    return _unpad_nhwc(out, shp2, cp)


def resnet_tpb_forward(params, x_nchw):
    x = jnp.transpose(x_nchw.astype(jnp.float32), (0, 2, 3, 1))       # NCHW -> NHWC
    cp = params['bn1'][0].shape[0]
    y, cs, cq, shp, m = conv_matmul(x, params['conv1_wmat'], 7, 7, 2, 3)
    s, b = _bn_scale_bias(cs, cq, m, *params['bn1'])
    x = _unpad_nhwc(bn_apply(y, s, b, relu=True), shp, cp)
    # nn.MaxPool2d(kernel_size=3, stride=2, padding=1) -- plain JAX glue.
    x = lax.reduce_window(x, -jnp.inf, lax.max, (1, 3, 3, 1), (1, 2, 2, 1),
                          ((0, 0), (1, 1), (1, 1), (0, 0)))
    for lp in params['layers']:
        for bp in lp['blocks']:
            if bp['type'] == 'std':
                x = std_block_forward(x, bp)
            else:
                x = tpl_block_forward(x, bp, lp['bank1'], lp['bank2'])
    # AdaptiveAvgPool2d((1,1)) + flatten -- plain JAX glue (tiny reduction).
    feat = jnp.mean(x, axis=(1, 2))                                    # (B, 512)
    logits, _, _ = pallas_matmul_stats(feat, params['fc_wmat'])
    B = x.shape[0]
    nc = params['num_classes']
    return logits[:B, :nc] + params['fc_b'][None, :]


if __name__ == "__main__":
    root = jax.random.PRNGKey(0)
    k_params, k_input = jax.random.split(root)
    params = init_params(k_params, layers=(2, 2, 2, 2), num_classes=10)
    x = jax.random.normal(k_input, (2, 3, 32, 32), jnp.float32)        # NCHW, CIFAR-like

    fwd = jax.jit(functools.partial(resnet_tpb_forward, params))
    logits = jax.block_until_ready(fwd(x))
    assert logits.shape == (2, 10)
    assert bool(jnp.all(jnp.isfinite(logits)))
    print("KERNEL_OK")
</pallas_src>

<mosaic_0001>
module attributes {stable_mosaic.version = 11 : i64} {
  func.func @_matmul_stats_kernel(%arg0: i32, %arg1: i32, %arg2: i32, %arg3: memref<256x256xbf16, #tpu.memory_space<vmem>>, %arg4: memref<256x128xbf16, #tpu.memory_space<vmem>>, %arg5: memref<256x128xf32, #tpu.memory_space<vmem>>, %arg6: memref<8x128xf32, #tpu.memory_space<vmem>>, %arg7: memref<8x128xf32, #tpu.memory_space<vmem>>) attributes {dimension_semantics = [#tpu.dimension_semantics<parallel>, #tpu.dimension_semantics<parallel>, #tpu.dimension_semantics<arbitrary>], iteration_bounds = array<i64: 2, 1, 1>, scalar_prefetch = 0 : i64, scratch_operands = 0 : i64, tpu.core_type = #tpu.core_type<tc>, window_params = [{transform_indices = @transform_0, window_bounds = array<i64: 256, 256>}, {transform_indices = @transform_1, window_bounds = array<i64: 256, 128>}, {transform_indices = @transform_2, window_bounds = array<i64: 256, 128>}, {transform_indices = @transform_3, window_bounds = array<i64: 8, 128>}, {transform_indices = @transform_4, window_bounds = array<i64: 8, 128>}]} {
    %c0_i32 = arith.constant 0 : i32
    %0 = arith.cmpi eq, %arg2, %c0_i32 : i32
    %1 = arith.extui %0 : i1 to i32
    %c0_i32_0 = arith.constant 0 : i32
    %2 = arith.cmpi ne, %1, %c0_i32_0 : i32
    scf.if %2 {
      %cst_10 = arith.constant 0.000000e+00 : f32
      %12 = vector.broadcast %cst_10 : f32 to vector<256x128xf32>
      %c0_11 = arith.constant 0 : index
      %c0_12 = arith.constant 0 : index
      %13 = vector.load %arg5[%c0_11, %c0_12] : memref<256x128xf32, #tpu.memory_space<vmem>>, vector<256x128xf32>
      tpu.vector_store %arg5[%c0_11, %c0_12], %12 {strides = array<i32>} : memref<256x128xf32, #tpu.memory_space<vmem>>, vector<256x128xf32>,
    } else {
    }
    %c0 = arith.constant 0 : index
    %c0_1 = arith.constant 0 : index
    %3 = vector.load %arg5[%c0, %c0_1] : memref<256x128xf32, #tpu.memory_space<vmem>>, vector<256x128xf32>
    %c0_2 = arith.constant 0 : index
    %c0_3 = arith.constant 0 : index
    %4 = vector.load %arg3[%c0_2, %c0_3] : memref<256x256xbf16, #tpu.memory_space<vmem>>, vector<256x256xbf16>
    %c0_4 = arith.constant 0 : index
    %c0_5 = arith.constant 0 : index
    %5 = vector.load %arg4[%c0_4, %c0_5] : memref<256x128xbf16, #tpu.memory_space<vmem>>, vector<256x128xbf16>
    %cst = arith.constant dense<0.000000e+00> : vector<256x128xf32>
    %6 = tpu.matmul %4, %5, %cst {dimension_numbers = #tpu.dot_dimension_numbers<[1], [0], [0], [1], [0, 0, 1, 1], [], []>} : vector<256x256xbf16>, vector<256x128xbf16>, vector<256x128xf32> -> vector<256x128xf32>
    %7 = arith.addf %3, %6 : vector<256x128xf32>
    %c0_6 = arith.constant 0 : index
    %c0_7 = arith.constant 0 : index
    %8 = vector.load %arg5[%c0_6, %c0_7] : memref<256x128xf32, #tpu.memory_space<vmem>>, vector<256x128xf32>
    tpu.vector_store %arg5[%c0_6, %c0_7], %7 {strides = array<i32>} : memref<256x128xf32, #tpu.memory_space<vmem>>, vector<256x128xf32>,
    %c0_i32_8 = arith.constant 0 : i32
    %9 = arith.cmpi eq, %arg2, %c0_i32_8 : i32
    %10 = arith.extui %9 : i1 to i32
    %c0_i32_9 = arith.constant 0 : i32
    %11 = arith.cmpi ne, %10, %c0_i32_9 : i32
    scf.if %11 {
      %c0_10 = arith.constant 0 : index
      %c0_11 = arith.constant 0 : index
      %12 = vector.load %arg5[%c0_10, %c0_11] : memref<256x128xf32, #tpu.memory_space<vmem>>, vector<256x128xf32>
      %cst_12 = arith.constant dense<0.000000e+00> : vector<128xf32>
      %13 = vector.multi_reduction <add>, %12, %cst_12 [0] : vector<256x128xf32> to vector<128xf32>
      %14 = vector.shape_cast %13 : vector<128xf32> to vector<1x128xf32>
      %15 = arith.mulf %12, %12 : vector<256x128xf32>
      %cst_13 = arith.constant dense<0.000000e+00> : vector<128xf32>
      %16 = vector.multi_reduction <add>, %15, %cst_13 [0] : vector<256x128xf32> to vector<128xf32>
      %17 = vector.shape_cast %16 : vector<128xf32> to vector<1x128xf32>
      %18 = vector.shape_cast %14 : vector<1x128xf32> to vector<1x128xf32>
      %19 = vector.broadcast %18 : vector<1x128xf32> to vector<8x128xf32>
      %c0_14 = arith.constant 0 : index
      %c0_15 = arith.constant 0 : index
      %20 = vector.load %arg6[%c0_14, %c0_15] : memref<8x128xf32, #tpu.memory_space<vmem>>, vector<8x128xf32>
      tpu.vector_store %arg6[%c0_14, %c0_15], %19 {strides = array<i32>} : memref<8x128xf32, #tpu.memory_space<vmem>>, vector<8x128xf32>,
      %21 = vector.shape_cast %17 : vector<1x128xf32> to vector<1x128xf32>
      %22 = vector.broadcast %21 : vector<1x128xf32> to vector<8x128xf32>
      %c0_16 = arith.constant 0 : index
      %c0_17 = arith.constant 0 : index
      %23 = vector.load %arg7[%c0_16, %c0_17] : memref<8x128xf32, #tpu.memory_space<vmem>>, vector<8x128xf32>
      tpu.vector_store %arg7[%c0_16, %c0_17], %22 {strides = array<i32>} : memref<8x128xf32, #tpu.memory_space<vmem>>, vector<8x128xf32>,
    } else {
    }
    return
  }
  func.func @transform_0(%arg0: i32, %arg1: i32, %arg2: i32) -> (i32, i32) {
    %c0_i32 = arith.constant 0 : i32
    return %arg0, %arg2 : i32, i32
  }
  func.func @transform_1(%arg0: i32, %arg1: i32, %arg2: i32) -> (i32, i32) {
    %c0_i32 = arith.constant 0 : i32
    return %arg2, %arg1 : i32, i32
  }
  func.func @transform_2(%arg0: i32, %arg1: i32, %arg2: i32) -> (i32, i32) {
    %c0_i32 = arith.constant 0 : i32
    return %arg0, %arg1 : i32, i32
  }
  func.func @transform_3(%arg0: i32, %arg1: i32, %arg2: i32) -> (i32, i32) {
    %c0_i32 = arith.constant 0 : i32
    return %arg0, %arg1 : i32, i32
  }
  func.func @transform_4(%arg0: i32, %arg1: i32, %arg2: i32) -> (i32, i32) {
    %c0_i32 = arith.constant 0 : i32
    return %arg0, %arg1 : i32, i32
  }
}

module attributes {stable_mosaic.version = 11 : i64} {
  func.func @_sba_kernel(%arg0: i32, %arg1: i32, %arg2: memref<256x128xf32, #tpu.memory_space<vmem>>, %arg3: memref<1x128xf32, #tpu.memory_space<vmem>>, %arg4: memref<1x128xf32, #tpu.memory_space<vmem>>, %arg5: memref<256x128xf32, #tpu.memory_space<vmem>>) attributes {dimension_semantics = [#tpu.dimension_semantics<parallel>, #tpu.dimension_semantics<parallel>], iteration_bounds = array<i64: 2, 1>, scalar_prefetch = 0 : i64, scratch_operands = 0 : i64, tpu.core_type = #tpu.core_type<tc>, window_params = [{transform_indices = @transform_0, window_bounds = array<i64: 256, 128>}, {transform_indices = @transform_1, window_bounds = array<i64: 1, 128>}, {transform_indices = @transform_2, window_bounds = array<i64: 1, 128>}, {transform_indices = @transform_3, window_bounds = array<i64: 256, 128>}]} {
    %c0 = arith.constant 0 : index
    %c0_0 = arith.constant 0 : index
    %0 = vector.load %arg2[%c0, %c0_0] : memref<256x128xf32, #tpu.memory_space<vmem>>, vector<256x128xf32>
    %c0_1 = arith.constant 0 : index
    %c0_2 = arith.constant 0 : index
    %1 = vector.load %arg3[%c0_1, %c0_2] : memref<1x128xf32, #tpu.memory_space<vmem>>, vector<1x128xf32>
    %2 = vector.broadcast %1 : vector<1x128xf32> to vector<256x128xf32>
    %3 = arith.mulf %0, %2 : vector<256x128xf32>
    %c0_3 = arith.constant 0 : index
    %c0_4 = arith.constant 0 : index
    %4 = vector.load %arg4[%c0_3, %c0_4] : memref<1x128xf32, #tpu.memory_space<vmem>>, vector<1x128xf32>
    %5 = vector.broadcast %4 : vector<1x128xf32> to vector<256x128xf32>
    %6 = arith.addf %3, %5 : vector<256x128xf32>
    %cst = arith.constant 0.000000e+00 : f32
    %7 = vector.broadcast %cst : f32 to vector<256x128xf32>
    %8 = arith.maximumf %6, %7 : vector<256x128xf32>
    %c0_5 = arith.constant 0 : index
    %c0_6 = arith.constant 0 : index
    %9 = vector.load %arg5[%c0_5, %c0_6] : memref<256x128xf32, #tpu.memory_space<vmem>>, vector<256x128xf32>
    tpu.vector_store %arg5[%c0_5, %c0_6], %8 {strides = array<i32>} : memref<256x128xf32, #tpu.memory_space<vmem>>, vector<256x128xf32>,
    return
  }
  func.func @transform_0(%arg0: i32, %arg1: i32) -> (i32, i32) {
    %c0_i32 = arith.constant 0 : i32
    return %arg0, %arg1 : i32, i32
  }
  func.func @transform_1(%arg0: i32, %arg1: i32) -> (i32, i32) {
    %c0_i32 = arith.constant 0 : i32
    %c0_i32_0 = arith.constant 0 : i32
    return %c0_i32, %arg1 : i32, i32
  }
  func.func @transform_2(%arg0: i32, %arg1: i32) -> (i32, i32) {
    %c0_i32 = arith.constant 0 : i32
    %c0_i32_0 = arith.constant 0 : i32
    return %c0_i32, %arg1 : i32, i32
  }
  func.func @transform_3(%arg0: i32, %arg1: i32) -> (i32, i32) {
    %c0_i32 = arith.constant 0 : i32
    return %arg0, %arg1 : i32, i32
  }
}

module attributes {stable_mosaic.version = 11 : i64} {
  func.func @_matmul_stats_kernel(%arg0: i32, %arg1: i32, %arg2: i32, %arg3: memref<128x384xbf16, #tpu.memory_space<vmem>>, %arg4: memref<384x128xbf16, #tpu.memory_space<vmem>>, %arg5: memref<128x128xf32, #tpu.memory_space<vmem>>, %arg6: memref<8x128xf32, #tpu.memory_space<vmem>>, %arg7: memref<8x128xf32, #tpu.memory_space<vmem>>) attributes {dimension_semantics = [#tpu.dimension_semantics<parallel>, #tpu.dimension_semantics<parallel>, #tpu.dimension_semantics<arbitrary>], iteration_bounds = array<i64: 1, 1, 3>, scalar_prefetch = 0 : i64, scratch_operands = 0 : i64, tpu.core_type = #tpu.core_type<tc>, window_params = [{transform_indices = @transform_0, window_bounds = array<i64: 128, 384>}, {transform_indices = @transform_1, window_bounds = array<i64: 384, 128>}, {transform_indices = @transform_2, window_bounds = array<i64: 128, 128>}, {transform_indices = @transform_3, window_bounds = array<i64: 8, 128>}, {transform_indices = @transform_4, window_bounds = array<i64: 8, 128>}]} {
    %c0_i32 = arith.constant 0 : i32
    %0 = arith.cmpi eq, %arg2, %c0_i32 : i32
    %1 = arith.extui %0 : i1 to i32
    %c0_i32_0 = arith.constant 0 : i32
    %2 = arith.cmpi ne, %1, %c0_i32_0 : i32
    scf.if %2 {
      %cst_9 = arith.constant 0.000000e+00 : f32
      %12 = vector.broadcast %cst_9 : f32 to vector<128x128xf32>
      %c0_10 = arith.constant 0 : index
      %c0_11 = arith.constant 0 : index
      %13 = vector.load %arg5[%c0_10, %c0_11] : memref<128x128xf32, #tpu.memory_space<vmem>>, vector<128x128xf32>
      tpu.vector_store %arg5[%c0_10, %c0_11], %12 {strides = array<i32>} : memref<128x128xf32, #tpu.memory_space<vmem>>, vector<128x128xf32>,
    } else {
    }
    %c0 = arith.constant 0 : index
    %c0_1 = arith.constant 0 : index
    %3 = vector.load %arg5[%c0, %c0_1] : memref<128x128xf32, #tpu.memory_space<vmem>>, vector<128x128xf32>
    %c0_2 = arith.constant 0 : index
    %c0_3 = arith.constant 0 : index
    %4 = vector.load %arg3[%c0_2, %c0_3] : memref<128x384xbf16, #tpu.memory_space<vmem>>, vector<128x384xbf16>
    %c0_4 = arith.constant 0 : index
    %c0_5 = arith.constant 0 : index
    %5 = vector.load %arg4[%c0_4, %c0_5] : memref<384x128xbf16, #tpu.memory_space<vmem>>, vector<384x128xbf16>
    %cst = arith.constant dense<0.000000e+00> : vector<128x128xf32>
    %6 = tpu.matmul %4, %5, %cst {dimension_numbers = #tpu.dot_dimension_numbers<[1], [0], [0], [1], [0, 0, 1, 1], [], []>} : vector<128x384xbf16>, vector<384x128xbf16>, vector<128x128xf32> -> vector<128x128xf32>
    %7 = arith.addf %3, %6 : vector<128x128xf32>
    %c0_6 = arith.constant 0 : index
    %c0_7 = arith.constant 0 : index
    %8 = vector.load %arg5[%c0_6, %c0_7] : memref<128x128xf32, #tpu.memory_space<vmem>>, vector<128x128xf32>
    tpu.vector_store %arg5[%c0_6, %c0_7], %7 {strides = array<i32>} : memref<128x128xf32, #tpu.memory_space<vmem>>, vector<128x128xf32>,
    %c2_i32 = arith.constant 2 : i32
    %9 = arith.cmpi eq, %arg2, %c2_i32 : i32
    %10 = arith.extui %9 : i1 to i32
    %c0_i32_8 = arith.constant 0 : i32
    %11 = arith.cmpi ne, %10, %c0_i32_8 : i32
    scf.if %11 {
      %c0_9 = arith.constant 0 : index
      %c0_10 = arith.constant 0 : index
      %12 = vector.load %arg5[%c0_9, %c0_10] : memref<128x128xf32, #tpu.memory_space<vmem>>, vector<128x128xf32>
      %cst_11 = arith.constant dense<0.000000e+00> : vector<128xf32>
      %13 = vector.multi_reduction <add>, %12, %cst_11 [0] : vector<128x128xf32> to vector<128xf32>
      %14 = vector.shape_cast %13 : vector<128xf32> to vector<1x128xf32>
      %15 = arith.mulf %12, %12 : vector<128x128xf32>
      %cst_12 = arith.constant dense<0.000000e+00> : vector<128xf32>
      %16 = vector.multi_reduction <add>, %15, %cst_12 [0] : vector<128x128xf32> to vector<128xf32>
      %17 = vector.shape_cast %16 : vector<128xf32> to vector<1x128xf32>
      %18 = vector.shape_cast %14 : vector<1x128xf32> to vector<1x128xf32>
      %19 = vector.broadcast %18 : vector<1x128xf32> to vector<8x128xf32>
      %c0_13 = arith.constant 0 : index
      %c0_14 = arith.constant 0 : index
      %20 = vector.load %arg6[%c0_13, %c0_14] : memref<8x128xf32, #tpu.memory_space<vmem>>, vector<8x128xf32>
      tpu.vector_store %arg6[%c0_13, %c0_14], %19 {strides = array<i32>} : memref<8x128xf32, #tpu.memory_space<vmem>>, vector<8x128xf32>,
      %21 = vector.shape_cast %17 : vector<1x128xf32> to vector<1x128xf32>
      %22 = vector.broadcast %21 : vector<1x128xf32> to vector<8x128xf32>
      %c0_15 = arith.constant 0 : index
      %c0_16 = arith.constant 0 : index
      %23 = vector.load %arg7[%c0_15, %c0_16] : memref<8x128xf32, #tpu.memory_space<vmem>>, vector<8x128xf32>
      tpu.vector_store %arg7[%c0_15, %c0_16], %22 {strides = array<i32>} : memref<8x128xf32, #tpu.memory_space<vmem>>, vector<8x128xf32>,
    } else {
    }
    return
  }
  func.func @transform_0(%arg0: i32, %arg1: i32, %arg2: i32) -> (i32, i32) {
    %c0_i32 = arith.constant 0 : i32
    return %arg0, %arg2 : i32, i32
  }
  func.func @transform_1(%arg0: i32, %arg1: i32, %arg2: i32) -> (i32, i32) {
    %c0_i32 = arith.constant 0 : i32
    return %arg2, %arg1 : i32, i32
  }
  func.func @transform_2(%arg0: i32, %arg1: i32, %arg2: i32) -> (i32, i32) {
    %c0_i32 = arith.constant 0 : i32
    return %arg0, %arg1 : i32, i32
  }
  func.func @transform_3(%arg0: i32, %arg1: i32, %arg2: i32) -> (i32, i32) {
    %c0_i32 = arith.constant 0 : i32
    return %arg0, %arg1 : i32, i32
  }
  func.func @transform_4(%arg0: i32, %arg1: i32, %arg2: i32) -> (i32, i32) {
    %c0_i32 = arith.constant 0 : i32
    return %arg0, %arg1 : i32, i32
  }
}

module attributes {stable_mosaic.version = 11 : i64} {
  func.func @_sba_kernel(%arg0: i32, %arg1: i32, %arg2: memref<128x128xf32, #tpu.memory_space<vmem>>, %arg3: memref<1x128xf32, #tpu.memory_space<vmem>>, %arg4: memref<1x128xf32, #tpu.memory_space<vmem>>, %arg5: memref<128x128xf32, #tpu.memory_space<vmem>>) attributes {dimension_semantics = [#tpu.dimension_semantics<parallel>, #tpu.dimension_semantics<parallel>], iteration_bounds = array<i64: 1, 1>, scalar_prefetch = 0 : i64, scratch_operands = 0 : i64, tpu.core_type = #tpu.core_type<tc>, window_params = [{transform_indices = @transform_0, window_bounds = array<i64: 128, 128>}, {transform_indices = @transform_1, window_bounds = array<i64: 1, 128>}, {transform_indices = @transform_2, window_bounds = array<i64: 1, 128>}, {transform_indices = @transform_3, window_bounds = array<i64: 128, 128>}]} {
    %c0 = arith.constant 0 : index
    %c0_0 = arith.constant 0 : index
    %0 = vector.load %arg2[%c0, %c0_0] : memref<128x128xf32, #tpu.memory_space<vmem>>, vector<128x128xf32>
    %c0_1 = arith.constant 0 : index
    %c0_2 = arith.constant 0 : index
    %1 = vector.load %arg3[%c0_1, %c0_2] : memref<1x128xf32, #tpu.memory_space<vmem>>, vector<1x128xf32>
    %2 = vector.broadcast %1 : vector<1x128xf32> to vector<128x128xf32>
    %3 = arith.mulf %0, %2 : vector<128x128xf32>
    %c0_3 = arith.constant 0 : index
    %c0_4 = arith.constant 0 : index
    %4 = vector.load %arg4[%c0_3, %c0_4] : memref<1x128xf32, #tpu.memory_space<vmem>>, vector<1x128xf32>
    %5 = vector.broadcast %4 : vector<1x128xf32> to vector<128x128xf32>
    %6 = arith.addf %3, %5 : vector<128x128xf32>
    %cst = arith.constant 0.000000e+00 : f32
    %7 = vector.broadcast %cst : f32 to vector<128x128xf32>
    %8 = arith.maximumf %6, %7 : vector<128x128xf32>
    %c0_5 = arith.constant 0 : index
    %c0_6 = arith.constant 0 : index
    %9 = vector.load %arg5[%c0_5, %c0_6] : memref<128x128xf32, #tpu.memory_space<vmem>>, vector<128x128xf32>
    tpu.vector_store %arg5[%c0_5, %c0_6], %8 {strides = array<i32>} : memref<128x128xf32, #tpu.memory_space<vmem>>, vector<128x128xf32>,
    return
  }
  func.func @transform_0(%arg0: i32, %arg1: i32) -> (i32, i32) {
    %c0_i32 = arith.constant 0 : i32
    return %arg0, %arg1 : i32, i32
  }
  func.func @transform_1(%arg0: i32, %arg1: i32) -> (i32, i32) {
    %c0_i32 = arith.constant 0 : i32
    %c0_i32_0 = arith.constant 0 : i32
    return %c0_i32, %arg1 : i32, i32
  }
  func.func @transform_2(%arg0: i32, %arg1: i32) -> (i32, i32) {
    %c0_i32 = arith.constant 0 : i32
    %c0_i32_0 = arith.constant 0 : i32
    return %c0_i32, %arg1 : i32, i32
  }
  func.func @transform_3(%arg0: i32, %arg1: i32) -> (i32, i32) {
    %c0_i32 = arith.constant 0 : i32
    return %arg0, %arg1 : i32, i32
  }
}

module attributes {stable_mosaic.version = 11 : i64} {
  func.func @_sba_res_kernel(%arg0: i32, %arg1: i32, %arg2: memref<128x128xf32, #tpu.memory_space<vmem>>, %arg3: memref<1x128xf32, #tpu.memory_space<vmem>>, %arg4: memref<1x128xf32, #tpu.memory_space<vmem>>, %arg5: memref<128x128xf32, #tpu.memory_space<vmem>>, %arg6: memref<128x128xf32, #tpu.memory_space<vmem>>) attributes {dimension_semantics = [#tpu.dimension_semantics<parallel>, #tpu.dimension_semantics<parallel>], iteration_bounds = array<i64: 1, 1>, scalar_prefetch = 0 : i64, scratch_operands = 0 : i64, tpu.core_type = #tpu.core_type<tc>, window_params = [{transform_indices = @transform_0, window_bounds = array<i64: 128, 128>}, {transform_indices = @transform_1, window_bounds = array<i64: 1, 128>}, {transform_indices = @transform_2, window_bounds = array<i64: 1, 128>}, {transform_indices = @transform_3, window_bounds = array<i64: 128, 128>}, {transform_indices = @transform_4, window_bounds = array<i64: 128, 128>}]} {
    %c0 = arith.constant 0 : index
    %c0_0 = arith.constant 0 : index
    %0 = vector.load %arg2[%c0, %c0_0] : memref<128x128xf32, #tpu.memory_space<vmem>>, vector<128x128xf32>
    %c0_1 = arith.constant 0 : index
    %c0_2 = arith.constant 0 : index
    %1 = vector.load %arg3[%c0_1, %c0_2] : memref<1x128xf32, #tpu.memory_space<vmem>>, vector<1x128xf32>
    %2 = vector.broadcast %1 : vector<1x128xf32> to vector<128x128xf32>
    %3 = arith.mulf %0, %2 : vector<128x128xf32>
    %c0_3 = arith.constant 0 : index
    %c0_4 = arith.constant 0 : index
    %4 = vector.load %arg4[%c0_3, %c0_4] : memref<1x128xf32, #tpu.memory_space<vmem>>, vector<1x128xf32>
    %5 = vector.broadcast %4 : vector<1x128xf32> to vector<128x128xf32>
    %6 = arith.addf %3, %5 : vector<128x128xf32>
    %c0_5 = arith.constant 0 : index
    %c0_6 = arith.constant 0 : index
    %7 = vector.load %arg5[%c0_5, %c0_6] : memref<128x128xf32, #tpu.memory_space<vmem>>, vector<128x128xf32>
    %8 = arith.addf %6, %7 : vector<128x128xf32>
    %cst = arith.constant 0.000000e+00 : f32
    %9 = vector.broadcast %cst : f32 to vector<128x128xf32>
    %10 = arith.maximumf %8, %9 : vector<128x128xf32>
    %c0_7 = arith.constant 0 : index
    %c0_8 = arith.constant 0 : index
    %11 = vector.load %arg6[%c0_7, %c0_8] : memref<128x128xf32, #tpu.memory_space<vmem>>, vector<128x128xf32>
    tpu.vector_store %arg6[%c0_7, %c0_8], %10 {strides = array<i32>} : memref<128x128xf32, #tpu.memory_space<vmem>>, vector<128x128xf32>,
    return
  }
  func.func @transform_0(%arg0: i32, %arg1: i32) -> (i32, i32) {
    %c0_i32 = arith.constant 0 : i32
    return %arg0, %arg1 : i32, i32
  }
  func.func @transform_1(%arg0: i32, %arg1: i32) -> (i32, i32) {
    %c0_i32 = arith.constant 0 : i32
    %c0_i32_0 = arith.constant 0 : i32
    return %c0_i32, %arg1 : i32, i32
  }
  func.func @transform_2(%arg0: i32, %arg1: i32) -> (i32, i32) {
    %c0_i32 = arith.constant 0 : i32
    %c0_i32_0 = arith.constant 0 : i32
    return %c0_i32, %arg1 : i32, i32
  }
  func.func @transform_3(%arg0: i32, %arg1: i32) -> (i32, i32) {
    %c0_i32 = arith.constant 0 : i32
    return %arg0, %arg1 : i32, i32
  }
  func.func @transform_4(%arg0: i32, %arg1: i32) -> (i32, i32) {
    %c0_i32 = arith.constant 0 : i32
    return %arg0, %arg1 : i32, i32
  }
}

module attributes {stable_mosaic.version = 11 : i64} {
  func.func @_matmul_stats_kernel(%arg0: i32, %arg1: i32, %arg2: i32, %arg3: memref<32x128xbf16, #tpu.memory_space<vmem>>, %arg4: memref<128x128xbf16, #tpu.memory_space<vmem>>, %arg5: memref<32x128xf32, #tpu.memory_space<vmem>>, %arg6: memref<8x128xf32, #tpu.memory_space<vmem>>, %arg7: memref<8x128xf32, #tpu.memory_space<vmem>>) attributes {dimension_semantics = [#tpu.dimension_semantics<parallel>, #tpu.dimension_semantics<parallel>, #tpu.dimension_semantics<arbitrary>], iteration_bounds = array<i64: 1, 1, 1>, scalar_prefetch = 0 : i64, scratch_operands = 0 : i64, tpu.core_type = #tpu.core_type<tc>, window_params = [{transform_indices = @transform_0, window_bounds = array<i64: 32, 128>}, {transform_indices = @transform_1, window_bounds = array<i64: 128, 128>}, {transform_indices = @transform_2, window_bounds = array<i64: 32, 128>}, {transform_indices = @transform_3, window_bounds = array<i64: 8, 128>}, {transform_indices = @transform_4, window_bounds = array<i64: 8, 128>}]} {
    %c0_i32 = arith.constant 0 : i32
    %0 = arith.cmpi eq, %arg2, %c0_i32 : i32
    %1 = arith.extui %0 : i1 to i32
    %c0_i32_0 = arith.constant 0 : i32
    %2 = arith.cmpi ne, %1, %c0_i32_0 : i32
    scf.if %2 {
      %cst_10 = arith.constant 0.000000e+00 : f32
      %12 = vector.broadcast %cst_10 : f32 to vector<32x128xf32>
      %c0_11 = arith.constant 0 : index
      %c0_12 = arith.constant 0 : index
      %13 = vector.load %arg5[%c0_11, %c0_12] : memref<32x128xf32, #tpu.memory_space<vmem>>, vector<32x128xf32>
      tpu.vector_store %arg5[%c0_11, %c0_12], %12 {strides = array<i32>} : memref<32x128xf32, #tpu.memory_space<vmem>>, vector<32x128xf32>,
    } else {
    }
    %c0 = arith.constant 0 : index
    %c0_1 = arith.constant 0 : index
    %3 = vector.load %arg5[%c0, %c0_1] : memref<32x128xf32, #tpu.memory_space<vmem>>, vector<32x128xf32>
    %c0_2 = arith.constant 0 : index
    %c0_3 = arith.constant 0 : index
    %4 = vector.load %arg3[%c0_2, %c0_3] : memref<32x128xbf16, #tpu.memory_space<vmem>>, vector<32x128xbf16>
    %c0_4 = arith.constant 0 : index
    %c0_5 = arith.constant 0 : index
    %5 = vector.load %arg4[%c0_4, %c0_5] : memref<128x128xbf16, #tpu.memory_space<vmem>>, vector<128x128xbf16>
    %cst = arith.constant dense<0.000000e+00> : vector<32x128xf32>
    %6 = tpu.matmul %4, %5, %cst {dimension_numbers = #tpu.dot_dimension_numbers<[1], [0], [0], [1], [0, 0, 1, 1], [], []>} : vector<32x128xbf16>, vector<128x128xbf16>, vector<32x128xf32> -> vector<32x128xf32>
    %7 = arith.addf %3, %6 : vector<32x128xf32>
    %c0_6 = arith.constant 0 : index
    %c0_7 = arith.constant 0 : index
    %8 = vector.load %arg5[%c0_6, %c0_7] : memref<32x128xf32, #tpu.memory_space<vmem>>, vector<32x128xf32>
    tpu.vector_store %arg5[%c0_6, %c0_7], %7 {strides = array<i32>} : memref<32x128xf32, #tpu.memory_space<vmem>>, vector<32x128xf32>,
    %c0_i32_8 = arith.constant 0 : i32
    %9 = arith.cmpi eq, %arg2, %c0_i32_8 : i32
    %10 = arith.extui %9 : i1 to i32
    %c0_i32_9 = arith.constant 0 : i32
    %11 = arith.cmpi ne, %10, %c0_i32_9 : i32
    scf.if %11 {
      %c0_10 = arith.constant 0 : index
      %c0_11 = arith.constant 0 : index
      %12 = vector.load %arg5[%c0_10, %c0_11] : memref<32x128xf32, #tpu.memory_space<vmem>>, vector<32x128xf32>
      %cst_12 = arith.constant dense<0.000000e+00> : vector<128xf32>
      %13 = vector.multi_reduction <add>, %12, %cst_12 [0] : vector<32x128xf32> to vector<128xf32>
      %14 = vector.shape_cast %13 : vector<128xf32> to vector<1x128xf32>
      %15 = arith.mulf %12, %12 : vector<32x128xf32>
      %cst_13 = arith.constant dense<0.000000e+00> : vector<128xf32>
      %16 = vector.multi_reduction <add>, %15, %cst_13 [0] : vector<32x128xf32> to vector<128xf32>
      %17 = vector.shape_cast %16 : vector<128xf32> to vector<1x128xf32>
      %18 = vector.shape_cast %14 : vector<1x128xf32> to vector<1x128xf32>
      %19 = vector.broadcast %18 : vector<1x128xf32> to vector<8x128xf32>
      %c0_14 = arith.constant 0 : index
      %c0_15 = arith.constant 0 : index
      %20 = vector.load %arg6[%c0_14, %c0_15] : memref<8x128xf32, #tpu.memory_space<vmem>>, vector<8x128xf32>
      tpu.vector_store %arg6[%c0_14, %c0_15], %19 {strides = array<i32>} : memref<8x128xf32, #tpu.memory_space<vmem>>, vector<8x128xf32>,
      %21 = vector.shape_cast %17 : vector<1x128xf32> to vector<1x128xf32>
      %22 = vector.broadcast %21 : vector<1x128xf32> to vector<8x128xf32>
      %c0_16 = arith.constant 0 : index
      %c0_17 = arith.constant 0 : index
      %23 = vector.load %arg7[%c0_16, %c0_17] : memref<8x128xf32, #tpu.memory_space<vmem>>, vector<8x128xf32>
      tpu.vector_store %arg7[%c0_16, %c0_17], %22 {strides = array<i32>} : memref<8x128xf32, #tpu.memory_space<vmem>>, vector<8x128xf32>,
    } else {
    }
    return
  }
  func.func @transform_0(%arg0: i32, %arg1: i32, %arg2: i32) -> (i32, i32) {
    %c0_i32 = arith.constant 0 : i32
    return %arg0, %arg2 : i32, i32
  }
  func.func @transform_1(%arg0: i32, %arg1: i32, %arg2: i32) -> (i32, i32) {
    %c0_i32 = arith.constant 0 : i32
    return %arg2, %arg1 : i32, i32
  }
  func.func @transform_2(%arg0: i32, %arg1: i32, %arg2: i32) -> (i32, i32) {
    %c0_i32 = arith.constant 0 : i32
    return %arg0, %arg1 : i32, i32
  }
  func.func @transform_3(%arg0: i32, %arg1: i32, %arg2: i32) -> (i32, i32) {
    %c0_i32 = arith.constant 0 : i32
    return %arg0, %arg1 : i32, i32
  }
  func.func @transform_4(%arg0: i32, %arg1: i32, %arg2: i32) -> (i32, i32) {
    %c0_i32 = arith.constant 0 : i32
    return %arg0, %arg1 : i32, i32
  }
}

module attributes {stable_mosaic.version = 11 : i64} {
  func.func @_sba_kernel(%arg0: i32, %arg1: i32, %arg2: memref<32x128xf32, #tpu.memory_space<vmem>>, %arg3: memref<1x128xf32, #tpu.memory_space<vmem>>, %arg4: memref<1x128xf32, #tpu.memory_space<vmem>>, %arg5: memref<32x128xf32, #tpu.memory_space<vmem>>) attributes {dimension_semantics = [#tpu.dimension_semantics<parallel>, #tpu.dimension_semantics<parallel>], iteration_bounds = array<i64: 1, 1>, scalar_prefetch = 0 : i64, scratch_operands = 0 : i64, tpu.core_type = #tpu.core_type<tc>, window_params = [{transform_indices = @transform_0, window_bounds = array<i64: 32, 128>}, {transform_indices = @transform_1, window_bounds = array<i64: 1, 128>}, {transform_indices = @transform_2, window_bounds = array<i64: 1, 128>}, {transform_indices = @transform_3, window_bounds = array<i64: 32, 128>}]} {
    %c0 = arith.constant 0 : index
    %c0_0 = arith.constant 0 : index
    %0 = vector.load %arg2[%c0, %c0_0] : memref<32x128xf32, #tpu.memory_space<vmem>>, vector<32x128xf32>
    %c0_1 = arith.constant 0 : index
    %c0_2 = arith.constant 0 : index
    %1 = vector.load %arg3[%c0_1, %c0_2] : memref<1x128xf32, #tpu.memory_space<vmem>>, vector<1x128xf32>
    %2 = vector.broadcast %1 : vector<1x128xf32> to vector<32x128xf32>
    %3 = arith.mulf %0, %2 : vector<32x128xf32>
    %c0_3 = arith.constant 0 : index
    %c0_4 = arith.constant 0 : index
    %4 = vector.load %arg4[%c0_3, %c0_4] : memref<1x128xf32, #tpu.memory_space<vmem>>, vector<1x128xf32>
    %5 = vector.broadcast %4 : vector<1x128xf32> to vector<32x128xf32>
    %6 = arith.addf %3, %5 : vector<32x128xf32>
    %c0_5 = arith.constant 0 : index
    %c0_6 = arith.constant 0 : index
    %7 = vector.load %arg5[%c0_5, %c0_6] : memref<32x128xf32, #tpu.memory_space<vmem>>, vector<32x128xf32>
    tpu.vector_store %arg5[%c0_5, %c0_6], %6 {strides = array<i32>} : memref<32x128xf32, #tpu.memory_space<vmem>>, vector<32x128xf32>,
    return
  }
  func.func @transform_0(%arg0: i32, %arg1: i32) -> (i32, i32) {
    %c0_i32 = arith.constant 0 : i32
    return %arg0, %arg1 : i32, i32
  }
  func.func @transform_1(%arg0: i32, %arg1: i32) -> (i32, i32) {
    %c0_i32 = arith.constant 0 : i32
    %c0_i32_0 = arith.constant 0 : i32
    return %c0_i32, %arg1 : i32, i32
  }
  func.func @transform_2(%arg0: i32, %arg1: i32) -> (i32, i32) {
    %c0_i32 = arith.constant 0 : i32
    %c0_i32_0 = arith.constant 0 : i32
    return %c0_i32, %arg1 : i32, i32
  }
  func.func @transform_3(%arg0: i32, %arg1: i32) -> (i32, i32) {
    %c0_i32 = arith.constant 0 : i32
    return %arg0, %arg1 : i32, i32
  }
}

module attributes {stable_mosaic.version = 11 : i64} {
  func.func @_matmul_stats_kernel(%arg0: i32, %arg1: i32, %arg2: i32, %arg3: memref<32x384xbf16, #tpu.memory_space<vmem>>, %arg4: memref<384x128xbf16, #tpu.memory_space<vmem>>, %arg5: memref<32x128xf32, #tpu.memory_space<vmem>>, %arg6: memref<8x128xf32, #tpu.memory_space<vmem>>, %arg7: memref<8x128xf32, #tpu.memory_space<vmem>>) attributes {dimension_semantics = [#tpu.dimension_semantics<parallel>, #tpu.dimension_semantics<parallel>, #tpu.dimension_semantics<arbitrary>], iteration_bounds = array<i64: 1, 1, 3>, scalar_prefetch = 0 : i64, scratch_operands = 0 : i64, tpu.core_type = #tpu.core_type<tc>, window_params = [{transform_indices = @transform_0, window_bounds = array<i64: 32, 384>}, {transform_indices = @transform_1, window_bounds = array<i64: 384, 128>}, {transform_indices = @transform_2, window_bounds = array<i64: 32, 128>}, {transform_indices = @transform_3, window_bounds = array<i64: 8, 128>}, {transform_indices = @transform_4, window_bounds = array<i64: 8, 128>}]} {
    %c0_i32 = arith.constant 0 : i32
    %0 = arith.cmpi eq, %arg2, %c0_i32 : i32
    %1 = arith.extui %0 : i1 to i32
    %c0_i32_0 = arith.constant 0 : i32
    %2 = arith.cmpi ne, %1, %c0_i32_0 : i32
    scf.if %2 {
      %cst_9 = arith.constant 0.000000e+00 : f32
      %12 = vector.broadcast %cst_9 : f32 to vector<32x128xf32>
      %c0_10 = arith.constant 0 : index
      %c0_11 = arith.constant 0 : index
      %13 = vector.load %arg5[%c0_10, %c0_11] : memref<32x128xf32, #tpu.memory_space<vmem>>, vector<32x128xf32>
      tpu.vector_store %arg5[%c0_10, %c0_11], %12 {strides = array<i32>} : memref<32x128xf32, #tpu.memory_space<vmem>>, vector<32x128xf32>,
    } else {
    }
    %c0 = arith.constant 0 : index
    %c0_1 = arith.constant 0 : index
    %3 = vector.load %arg5[%c0, %c0_1] : memref<32x128xf32, #tpu.memory_space<vmem>>, vector<32x128xf32>
    %c0_2 = arith.constant 0 : index
    %c0_3 = arith.constant 0 : index
    %4 = vector.load %arg3[%c0_2, %c0_3] : memref<32x384xbf16, #tpu.memory_space<vmem>>, vector<32x384xbf16>
    %c0_4 = arith.constant 0 : index
    %c0_5 = arith.constant 0 : index
    %5 = vector.load %arg4[%c0_4, %c0_5] : memref<384x128xbf16, #tpu.memory_space<vmem>>, vector<384x128xbf16>
    %cst = arith.constant dense<0.000000e+00> : vector<32x128xf32>
    %6 = tpu.matmul %4, %5, %cst {dimension_numbers = #tpu.dot_dimension_numbers<[1], [0], [0], [1], [0, 0, 1, 1], [], []>} : vector<32x384xbf16>, vector<384x128xbf16>, vector<32x128xf32> -> vector<32x128xf32>
    %7 = arith.addf %3, %6 : vector<32x128xf32>
    %c0_6 = arith.constant 0 : index
    %c0_7 = arith.constant 0 : index
    %8 = vector.load %arg5[%c0_6, %c0_7] : memref<32x128xf32, #tpu.memory_space<vmem>>, vector<32x128xf32>
    tpu.vector_store %arg5[%c0_6, %c0_7], %7 {strides = array<i32>} : memref<32x128xf32, #tpu.memory_space<vmem>>, vector<32x128xf32>,
    %c2_i32 = arith.constant 2 : i32
    %9 = arith.cmpi eq, %arg2, %c2_i32 : i32
    %10 = arith.extui %9 : i1 to i32
    %c0_i32_8 = arith.constant 0 : i32
    %11 = arith.cmpi ne, %10, %c0_i32_8 : i32
    scf.if %11 {
      %c0_9 = arith.constant 0 : index
      %c0_10 = arith.constant 0 : index
      %12 = vector.load %arg5[%c0_9, %c0_10] : memref<32x128xf32, #tpu.memory_space<vmem>>, vector<32x128xf32>
      %cst_11 = arith.constant dense<0.000000e+00> : vector<128xf32>
      %13 = vector.multi_reduction <add>, %12, %cst_11 [0] : vector<32x128xf32> to vector<128xf32>
      %14 = vector.shape_cast %13 : vector<128xf32> to vector<1x128xf32>
      %15 = arith.mulf %12, %12 : vector<32x128xf32>
      %cst_12 = arith.constant dense<0.000000e+00> : vector<128xf32>
      %16 = vector.multi_reduction <add>, %15, %cst_12 [0] : vector<32x128xf32> to vector<128xf32>
      %17 = vector.shape_cast %16 : vector<128xf32> to vector<1x128xf32>
      %18 = vector.shape_cast %14 : vector<1x128xf32> to vector<1x128xf32>
      %19 = vector.broadcast %18 : vector<1x128xf32> to vector<8x128xf32>
      %c0_13 = arith.constant 0 : index
      %c0_14 = arith.constant 0 : index
      %20 = vector.load %arg6[%c0_13, %c0_14] : memref<8x128xf32, #tpu.memory_space<vmem>>, vector<8x128xf32>
      tpu.vector_store %arg6[%c0_13, %c0_14], %19 {strides = array<i32>} : memref<8x128xf32, #tpu.memory_space<vmem>>, vector<8x128xf32>,
      %21 = vector.shape_cast %17 : vector<1x128xf32> to vector<1x128xf32>
      %22 = vector.broadcast %21 : vector<1x128xf32> to vector<8x128xf32>
      %c0_15 = arith.constant 0 : index
      %c0_16 = arith.constant 0 : index
      %23 = vector.load %arg7[%c0_15, %c0_16] : memref<8x128xf32, #tpu.memory_space<vmem>>, vector<8x128xf32>
      tpu.vector_store %arg7[%c0_15, %c0_16], %22 {strides = array<i32>} : memref<8x128xf32, #tpu.memory_space<vmem>>, vector<8x128xf32>,
    } else {
    }
    return
  }
  func.func @transform_0(%arg0: i32, %arg1: i32, %arg2: i32) -> (i32, i32) {
    %c0_i32 = arith.constant 0 : i32
    return %arg0, %arg2 : i32, i32
  }
  func.func @transform_1(%arg0: i32, %arg1: i32, %arg2: i32) -> (i32, i32) {
    %c0_i32 = arith.constant 0 : i32
    return %arg2, %arg1 : i32, i32
  }
  func.func @transform_2(%arg0: i32, %arg1: i32, %arg2: i32) -> (i32, i32) {
    %c0_i32 = arith.constant 0 : i32
    return %arg0, %arg1 : i32, i32
  }
  func.func @transform_3(%arg0: i32, %arg1: i32, %arg2: i32) -> (i32, i32) {
    %c0_i32 = arith.constant 0 : i32
    return %arg0, %arg1 : i32, i32
  }
  func.func @transform_4(%arg0: i32, %arg1: i32, %arg2: i32) -> (i32, i32) {
    %c0_i32 = arith.constant 0 : i32
    return %arg0, %arg1 : i32, i32
  }
}

module attributes {stable_mosaic.version = 11 : i64} {
  func.func @_sba_kernel(%arg0: i32, %arg1: i32, %arg2: memref<32x128xf32, #tpu.memory_space<vmem>>, %arg3: memref<1x128xf32, #tpu.memory_space<vmem>>, %arg4: memref<1x128xf32, #tpu.memory_space<vmem>>, %arg5: memref<32x128xf32, #tpu.memory_space<vmem>>) attributes {dimension_semantics = [#tpu.dimension_semantics<parallel>, #tpu.dimension_semantics<parallel>], iteration_bounds = array<i64: 1, 1>, scalar_prefetch = 0 : i64, scratch_operands = 0 : i64, tpu.core_type = #tpu.core_type<tc>, window_params = [{transform_indices = @transform_0, window_bounds = array<i64: 32, 128>}, {transform_indices = @transform_1, window_bounds = array<i64: 1, 128>}, {transform_indices = @transform_2, window_bounds = array<i64: 1, 128>}, {transform_indices = @transform_3, window_bounds = array<i64: 32, 128>}]} {
    %c0 = arith.constant 0 : index
    %c0_0 = arith.constant 0 : index
    %0 = vector.load %arg2[%c0, %c0_0] : memref<32x128xf32, #tpu.memory_space<vmem>>, vector<32x128xf32>
    %c0_1 = arith.constant 0 : index
    %c0_2 = arith.constant 0 : index
    %1 = vector.load %arg3[%c0_1, %c0_2] : memref<1x128xf32, #tpu.memory_space<vmem>>, vector<1x128xf32>
    %2 = vector.broadcast %1 : vector<1x128xf32> to vector<32x128xf32>
    %3 = arith.mulf %0, %2 : vector<32x128xf32>
    %c0_3 = arith.constant 0 : index
    %c0_4 = arith.constant 0 : index
    %4 = vector.load %arg4[%c0_3, %c0_4] : memref<1x128xf32, #tpu.memory_space<vmem>>, vector<1x128xf32>
    %5 = vector.broadcast %4 : vector<1x128xf32> to vector<32x128xf32>
    %6 = arith.addf %3, %5 : vector<32x128xf32>
    %cst = arith.constant 0.000000e+00 : f32
    %7 = vector.broadcast %cst : f32 to vector<32x128xf32>
    %8 = arith.maximumf %6, %7 : vector<32x128xf32>
    %c0_5 = arith.constant 0 : index
    %c0_6 = arith.constant 0 : index
    %9 = vector.load %arg5[%c0_5, %c0_6] : memref<32x128xf32, #tpu.memory_space<vmem>>, vector<32x128xf32>
    tpu.vector_store %arg5[%c0_5, %c0_6], %8 {strides = array<i32>} : memref<32x128xf32, #tpu.memory_space<vmem>>, vector<32x128xf32>,
    return
  }
  func.func @transform_0(%arg0: i32, %arg1: i32) -> (i32, i32) {
    %c0_i32 = arith.constant 0 : i32
    return %arg0, %arg1 : i32, i32
  }
  func.func @transform_1(%arg0: i32, %arg1: i32) -> (i32, i32) {
    %c0_i32 = arith.constant 0 : i32
    %c0_i32_0 = arith.constant 0 : i32
    return %c0_i32, %arg1 : i32, i32
  }
  func.func @transform_2(%arg0: i32, %arg1: i32) -> (i32, i32) {
    %c0_i32 = arith.constant 0 : i32
    %c0_i32_0 = arith.constant 0 : i32
    return %c0_i32, %arg1 : i32, i32
  }
  func.func @transform_3(%arg0: i32, %arg1: i32) -> (i32, i32) {
    %c0_i32 = arith.constant 0 : i32
    return %arg0, %arg1 : i32, i32
  }
}

module attributes {stable_mosaic.version = 11 : i64} {
  func.func @_sba_res_kernel(%arg0: i32, %arg1: i32, %arg2: memref<32x128xf32, #tpu.memory_space<vmem>>, %arg3: memref<1x128xf32, #tpu.memory_space<vmem>>, %arg4: memref<1x128xf32, #tpu.memory_space<vmem>>, %arg5: memref<32x128xf32, #tpu.memory_space<vmem>>, %arg6: memref<32x128xf32, #tpu.memory_space<vmem>>) attributes {dimension_semantics = [#tpu.dimension_semantics<parallel>, #tpu.dimension_semantics<parallel>], iteration_bounds = array<i64: 1, 1>, scalar_prefetch = 0 : i64, scratch_operands = 0 : i64, tpu.core_type = #tpu.core_type<tc>, window_params = [{transform_indices = @transform_0, window_bounds = array<i64: 32, 128>}, {transform_indices = @transform_1, window_bounds = array<i64: 1, 128>}, {transform_indices = @transform_2, window_bounds = array<i64: 1, 128>}, {transform_indices = @transform_3, window_bounds = array<i64: 32, 128>}, {transform_indices = @transform_4, window_bounds = array<i64: 32, 128>}]} {
    %c0 = arith.constant 0 : index
    %c0_0 = arith.constant 0 : index
    %0 = vector.load %arg2[%c0, %c0_0] : memref<32x128xf32, #tpu.memory_space<vmem>>, vector<32x128xf32>
    %c0_1 = arith.constant 0 : index
    %c0_2 = arith.constant 0 : index
    %1 = vector.load %arg3[%c0_1, %c0_2] : memref<1x128xf32, #tpu.memory_space<vmem>>, vector<1x128xf32>
    %2 = vector.broadcast %1 : vector<1x128xf32> to vector<32x128xf32>
    %3 = arith.mulf %0, %2 : vector<32x128xf32>
    %c0_3 = arith.constant 0 : index
    %c0_4 = arith.constant 0 : index
    %4 = vector.load %arg4[%c0_3, %c0_4] : memref<1x128xf32, #tpu.memory_space<vmem>>, vector<1x128xf32>
    %5 = vector.broadcast %4 : vector<1x128xf32> to vector<32x128xf32>
    %6 = arith.addf %3, %5 : vector<32x128xf32>
    %c0_5 = arith.constant 0 : index
    %c0_6 = arith.constant 0 : index
    %7 = vector.load %arg5[%c0_5, %c0_6] : memref<32x128xf32, #tpu.memory_space<vmem>>, vector<32x128xf32>
    %8 = arith.addf %6, %7 : vector<32x128xf32>
    %cst = arith.constant 0.000000e+00 : f32
    %9 = vector.broadcast %cst : f32 to vector<32x128xf32>
    %10 = arith.maximumf %8, %9 : vector<32x128xf32>
    %c0_7 = arith.constant 0 : index
    %c0_8 = arith.constant 0 : index
    %11 = vector.load %arg6[%c0_7, %c0_8] : memref<32x128xf32, #tpu.memory_space<vmem>>, vector<32x128xf32>
    tpu.vector_store %arg6[%c0_7, %c0_8], %10 {strides = array<i32>} : memref<32x128xf32, #tpu.memory_space<vmem>>, vector<32x128xf32>,
    return
  }
  func.func @transform_0(%arg0: i32, %arg1: i32) -> (i32, i32) {
    %c0_i32 = arith.constant 0 : i32
    return %arg0, %arg1 : i32, i32
  }
  func.func @transform_1(%arg0: i32, %arg1: i32) -> (i32, i32) {
    %c0_i32 = arith.constant 0 : i32
    %c0_i32_0 = arith.constant 0 : i32
    return %c0_i32, %arg1 : i32, i32
  }
  func.func @transform_2(%arg0: i32, %arg1: i32) -> (i32, i32) {
    %c0_i32 = arith.constant 0 : i32
    %c0_i32_0 = arith.constant 0 : i32
    return %c0_i32, %arg1 : i32, i32
  }
  func.func @transform_3(%arg0: i32, %arg1: i32) -> (i32, i32) {
    %c0_i32 = arith.constant 0 : i32
    return %arg0, %arg1 : i32, i32
  }
  func.func @transform_4(%arg0: i32, %arg1: i32) -> (i32, i32) {
    %c0_i32 = arith.constant 0 : i32
    return %arg0, %arg1 : i32, i32
  }
}

module attributes {stable_mosaic.version = 11 : i64} {
  func.func @_matmul_stats_kernel(%arg0: i32, %arg1: i32, %arg2: i32, %arg3: memref<8x128xbf16, #tpu.memory_space<vmem>>, %arg4: memref<128x256xbf16, #tpu.memory_space<vmem>>, %arg5: memref<8x256xf32, #tpu.memory_space<vmem>>, %arg6: memref<8x256xf32, #tpu.memory_space<vmem>>, %arg7: memref<8x256xf32, #tpu.memory_space<vmem>>) attributes {dimension_semantics = [#tpu.dimension_semantics<parallel>, #tpu.dimension_semantics<parallel>, #tpu.dimension_semantics<arbitrary>], iteration_bounds = array<i64: 1, 1, 1>, scalar_prefetch = 0 : i64, scratch_operands = 0 : i64, tpu.core_type = #tpu.core_type<tc>, window_params = [{transform_indices = @transform_0, window_bounds = array<i64: 8, 128>}, {transform_indices = @transform_1, window_bounds = array<i64: 128, 256>}, {transform_indices = @transform_2, window_bounds = array<i64: 8, 256>}, {transform_indices = @transform_3, window_bounds = array<i64: 8, 256>}, {transform_indices = @transform_4, window_bounds = array<i64: 8, 256>}]} {
    %c0_i32 = arith.constant 0 : i32
    %0 = arith.cmpi eq, %arg2, %c0_i32 : i32
    %1 = arith.extui %0 : i1 to i32
    %c0_i32_0 = arith.constant 0 : i32
    %2 = arith.cmpi ne, %1, %c0_i32_0 : i32
    scf.if %2 {
      %cst_10 = arith.constant 0.000000e+00 : f32
      %12 = vector.broadcast %cst_10 : f32 to vector<8x256xf32>
      %c0_11 = arith.constant 0 : index
      %c0_12 = arith.constant 0 : index
      %13 = vector.load %arg5[%c0_11, %c0_12] : memref<8x256xf32, #tpu.memory_space<vmem>>, vector<8x256xf32>
      tpu.vector_store %arg5[%c0_11, %c0_12], %12 {strides = array<i32>} : memref<8x256xf32, #tpu.memory_space<vmem>>, vector<8x256xf32>,
    } else {
    }
    %c0 = arith.constant 0 : index
    %c0_1 = arith.constant 0 : index
    %3 = vector.load %arg5[%c0, %c0_1] : memref<8x256xf32, #tpu.memory_space<vmem>>, vector<8x256xf32>
    %c0_2 = arith.constant 0 : index
    %c0_3 = arith.constant 0 : index
    %4 = vector.load %arg3[%c0_2, %c0_3] : memref<8x128xbf16, #tpu.memory_space<vmem>>, vector<8x128xbf16>
    %c0_4 = arith.constant 0 : index
    %c0_5 = arith.constant 0 : index
    %5 = vector.load %arg4[%c0_4, %c0_5] : memref<128x256xbf16, #tpu.memory_space<vmem>>, vector<128x256xbf16>
    %cst = arith.constant dense<0.000000e+00> : vector<8x256xf32>
    %6 = tpu.matmul %4, %5, %cst {dimension_numbers = #tpu.dot_dimension_numbers<[1], [0], [0], [1], [0, 0, 1, 1], [], []>} : vector<8x128xbf16>, vector<128x256xbf16>, vector<8x256xf32> -> vector<8x256xf32>
    %7 = arith.addf %3, %6 : vector<8x256xf32>
    %c0_6 = arith.constant 0 : index
    %c0_7 = arith.constant 0 : index
    %8 = vector.load %arg5[%c0_6, %c0_7] : memref<8x256xf32, #tpu.memory_space<vmem>>, vector<8x256xf32>
    tpu.vector_store %arg5[%c0_6, %c0_7], %7 {strides = array<i32>} : memref<8x256xf32, #tpu.memory_space<vmem>>, vector<8x256xf32>,
    %c0_i32_8 = arith.constant 0 : i32
    %9 = arith.cmpi eq, %arg2, %c0_i32_8 : i32
    %10 = arith.extui %9 : i1 to i32
    %c0_i32_9 = arith.constant 0 : i32
    %11 = arith.cmpi ne, %10, %c0_i32_9 : i32
    scf.if %11 {
      %c0_10 = arith.constant 0 : index
      %c0_11 = arith.constant 0 : index
      %12 = vector.load %arg5[%c0_10, %c0_11] : memref<8x256xf32, #tpu.memory_space<vmem>>, vector<8x256xf32>
      %cst_12 = arith.constant dense<0.000000e+00> : vector<256xf32>
      %13 = vector.multi_reduction <add>, %12, %cst_12 [0] : vector<8x256xf32> to vector<256xf32>
      %14 = vector.shape_cast %13 : vector<256xf32> to vector<1x256xf32>
      %15 = arith.mulf %12, %12 : vector<8x256xf32>
      %cst_13 = arith.constant dense<0.000000e+00> : vector<256xf32>
      %16 = vector.multi_reduction <add>, %15, %cst_13 [0] : vector<8x256xf32> to vector<256xf32>
      %17 = vector.shape_cast %16 : vector<256xf32> to vector<1x256xf32>
      %18 = vector.shape_cast %14 : vector<1x256xf32> to vector<1x256xf32>
      %19 = vector.broadcast %18 : vector<1x256xf32> to vector<8x256xf32>
      %c0_14 = arith.constant 0 : index
      %c0_15 = arith.constant 0 : index
      %20 = vector.load %arg6[%c0_14, %c0_15] : memref<8x256xf32, #tpu.memory_space<vmem>>, vector<8x256xf32>
      tpu.vector_store %arg6[%c0_14, %c0_15], %19 {strides = array<i32>} : memref<8x256xf32, #tpu.memory_space<vmem>>, vector<8x256xf32>,
      %21 = vector.shape_cast %17 : vector<1x256xf32> to vector<1x256xf32>
      %22 = vector.broadcast %21 : vector<1x256xf32> to vector<8x256xf32>
      %c0_16 = arith.constant 0 : index
      %c0_17 = arith.constant 0 : index
      %23 = vector.load %arg7[%c0_16, %c0_17] : memref<8x256xf32, #tpu.memory_space<vmem>>, vector<8x256xf32>
      tpu.vector_store %arg7[%c0_16, %c0_17], %22 {strides = array<i32>} : memref<8x256xf32, #tpu.memory_space<vmem>>, vector<8x256xf32>,
    } else {
    }
    return
  }
  func.func @transform_0(%arg0: i32, %arg1: i32, %arg2: i32) -> (i32, i32) {
    %c0_i32 = arith.constant 0 : i32
    return %arg0, %arg2 : i32, i32
  }
  func.func @transform_1(%arg0: i32, %arg1: i32, %arg2: i32) -> (i32, i32) {
    %c0_i32 = arith.constant 0 : i32
    return %arg2, %arg1 : i32, i32
  }
  func.func @transform_2(%arg0: i32, %arg1: i32, %arg2: i32) -> (i32, i32) {
    %c0_i32 = arith.constant 0 : i32
    return %arg0, %arg1 : i32, i32
  }
  func.func @transform_3(%arg0: i32, %arg1: i32, %arg2: i32) -> (i32, i32) {
    %c0_i32 = arith.constant 0 : i32
    return %arg0, %arg1 : i32, i32
  }
  func.func @transform_4(%arg0: i32, %arg1: i32, %arg2: i32) -> (i32, i32) {
    %c0_i32 = arith.constant 0 : i32
    return %arg0, %arg1 : i32, i32
  }
}

module attributes {stable_mosaic.version = 11 : i64} {
  func.func @_sba_kernel(%arg0: i32, %arg1: i32, %arg2: memref<8x256xf32, #tpu.memory_space<vmem>>, %arg3: memref<1x256xf32, #tpu.memory_space<vmem>>, %arg4: memref<1x256xf32, #tpu.memory_space<vmem>>, %arg5: memref<8x256xf32, #tpu.memory_space<vmem>>) attributes {dimension_semantics = [#tpu.dimension_semantics<parallel>, #tpu.dimension_semantics<parallel>], iteration_bounds = array<i64: 1, 1>, scalar_prefetch = 0 : i64, scratch_operands = 0 : i64, tpu.core_type = #tpu.core_type<tc>, window_params = [{transform_indices = @transform_0, window_bounds = array<i64: 8, 256>}, {transform_indices = @transform_1, window_bounds = array<i64: 1, 256>}, {transform_indices = @transform_2, window_bounds = array<i64: 1, 256>}, {transform_indices = @transform_3, window_bounds = array<i64: 8, 256>}]} {
    %c0 = arith.constant 0 : index
    %c0_0 = arith.constant 0 : index
    %0 = vector.load %arg2[%c0, %c0_0] : memref<8x256xf32, #tpu.memory_space<vmem>>, vector<8x256xf32>
    %c0_1 = arith.constant 0 : index
    %c0_2 = arith.constant 0 : index
    %1 = vector.load %arg3[%c0_1, %c0_2] : memref<1x256xf32, #tpu.memory_space<vmem>>, vector<1x256xf32>
    %2 = vector.broadcast %1 : vector<1x256xf32> to vector<8x256xf32>
    %3 = arith.mulf %0, %2 : vector<8x256xf32>
    %c0_3 = arith.constant 0 : index
    %c0_4 = arith.constant 0 : index
    %4 = vector.load %arg4[%c0_3, %c0_4] : memref<1x256xf32, #tpu.memory_space<vmem>>, vector<1x256xf32>
    %5 = vector.broadcast %4 : vector<1x256xf32> to vector<8x256xf32>
    %6 = arith.addf %3, %5 : vector<8x256xf32>
    %c0_5 = arith.constant 0 : index
    %c0_6 = arith.constant 0 : index
    %7 = vector.load %arg5[%c0_5, %c0_6] : memref<8x256xf32, #tpu.memory_space<vmem>>, vector<8x256xf32>
    tpu.vector_store %arg5[%c0_5, %c0_6], %6 {strides = array<i32>} : memref<8x256xf32, #tpu.memory_space<vmem>>, vector<8x256xf32>,
    return
  }
  func.func @transform_0(%arg0: i32, %arg1: i32) -> (i32, i32) {
    %c0_i32 = arith.constant 0 : i32
    return %arg0, %arg1 : i32, i32
  }
  func.func @transform_1(%arg0: i32, %arg1: i32) -> (i32, i32) {
    %c0_i32 = arith.constant 0 : i32
    %c0_i32_0 = arith.constant 0 : i32
    return %c0_i32, %arg1 : i32, i32
  }
  func.func @transform_2(%arg0: i32, %arg1: i32) -> (i32, i32) {
    %c0_i32 = arith.constant 0 : i32
    %c0_i32_0 = arith.constant 0 : i32
    return %c0_i32, %arg1 : i32, i32
  }
  func.func @transform_3(%arg0: i32, %arg1: i32) -> (i32, i32) {
    %c0_i32 = arith.constant 0 : i32
    return %arg0, %arg1 : i32, i32
  }
}

module attributes {stable_mosaic.version = 11 : i64} {
  func.func @_matmul_stats_kernel(%arg0: i32, %arg1: i32, %arg2: i32, %arg3: memref<8x384xbf16, #tpu.memory_space<vmem>>, %arg4: memref<384x256xbf16, #tpu.memory_space<vmem>>, %arg5: memref<8x256xf32, #tpu.memory_space<vmem>>, %arg6: memref<8x256xf32, #tpu.memory_space<vmem>>, %arg7: memref<8x256xf32, #tpu.memory_space<vmem>>) attributes {dimension_semantics = [#tpu.dimension_semantics<parallel>, #tpu.dimension_semantics<parallel>, #tpu.dimension_semantics<arbitrary>], iteration_bounds = array<i64: 1, 1, 3>, scalar_prefetch = 0 : i64, scratch_operands = 0 : i64, tpu.core_type = #tpu.core_type<tc>, window_params = [{transform_indices = @transform_0, window_bounds = array<i64: 8, 384>}, {transform_indices = @transform_1, window_bounds = array<i64: 384, 256>}, {transform_indices = @transform_2, window_bounds = array<i64: 8, 256>}, {transform_indices = @transform_3, window_bounds = array<i64: 8, 256>}, {transform_indices = @transform_4, window_bounds = array<i64: 8, 256>}]} {
    %c0_i32 = arith.constant 0 : i32
    %0 = arith.cmpi eq, %arg2, %c0_i32 : i32
    %1 = arith.extui %0 : i1 to i32
    %c0_i32_0 = arith.constant 0 : i32
    %2 = arith.cmpi ne, %1, %c0_i32_0 : i32
    scf.if %2 {
      %cst_9 = arith.constant 0.000000e+00 : f32
      %12 = vector.broadcast %cst_9 : f32 to vector<8x256xf32>
      %c0_10 = arith.constant 0 : index
      %c0_11 = arith.constant 0 : index
      %13 = vector.load %arg5[%c0_10, %c0_11] : memref<8x256xf32, #tpu.memory_space<vmem>>, vector<8x256xf32>
      tpu.vector_store %arg5[%c0_10, %c0_11], %12 {strides = array<i32>} : memref<8x256xf32, #tpu.memory_space<vmem>>, vector<8x256xf32>,
    } else {
    }
    %c0 = arith.constant 0 : index
    %c0_1 = arith.constant 0 : index
    %3 = vector.load %arg5[%c0, %c0_1] : memref<8x256xf32, #tpu.memory_space<vmem>>, vector<8x256xf32>
    %c0_2 = arith.constant 0 : index
    %c0_3 = arith.constant 0 : index
    %4 = vector.load %arg3[%c0_2, %c0_3] : memref<8x384xbf16, #tpu.memory_space<vmem>>, vector<8x384xbf16>
    %c0_4 = arith.constant 0 : index
    %c0_5 = arith.constant 0 : index
    %5 = vector.load %arg4[%c0_4, %c0_5] : memref<384x256xbf16, #tpu.memory_space<vmem>>, vector<384x256xbf16>
    %cst = arith.constant dense<0.000000e+00> : vector<8x256xf32>
    %6 = tpu.matmul %4, %5, %cst {dimension_numbers = #tpu.dot_dimension_numbers<[1], [0], [0], [1], [0, 0, 1, 1], [], []>} : vector<8x384xbf16>, vector<384x256xbf16>, vector<8x256xf32> -> vector<8x256xf32>
    %7 = arith.addf %3, %6 : vector<8x256xf32>
    %c0_6 = arith.constant 0 : index
    %c0_7 = arith.constant 0 : index
    %8 = vector.load %arg5[%c0_6, %c0_7] : memref<8x256xf32, #tpu.memory_space<vmem>>, vector<8x256xf32>
    tpu.vector_store %arg5[%c0_6, %c0_7], %7 {strides = array<i32>} : memref<8x256xf32, #tpu.memory_space<vmem>>, vector<8x256xf32>,
    %c2_i32 = arith.constant 2 : i32
    %9 = arith.cmpi eq, %arg2, %c2_i32 : i32
    %10 = arith.extui %9 : i1 to i32
    %c0_i32_8 = arith.constant 0 : i32
    %11 = arith.cmpi ne, %10, %c0_i32_8 : i32
    scf.if %11 {
      %c0_9 = arith.constant 0 : index
      %c0_10 = arith.constant 0 : index
      %12 = vector.load %arg5[%c0_9, %c0_10] : memref<8x256xf32, #tpu.memory_space<vmem>>, vector<8x256xf32>
      %cst_11 = arith.constant dense<0.000000e+00> : vector<256xf32>
      %13 = vector.multi_reduction <add>, %12, %cst_11 [0] : vector<8x256xf32> to vector<256xf32>
      %14 = vector.shape_cast %13 : vector<256xf32> to vector<1x256xf32>
      %15 = arith.mulf %12, %12 : vector<8x256xf32>
      %cst_12 = arith.constant dense<0.000000e+00> : vector<256xf32>
      %16 = vector.multi_reduction <add>, %15, %cst_12 [0] : vector<8x256xf32> to vector<256xf32>
      %17 = vector.shape_cast %16 : vector<256xf32> to vector<1x256xf32>
      %18 = vector.shape_cast %14 : vector<1x256xf32> to vector<1x256xf32>
      %19 = vector.broadcast %18 : vector<1x256xf32> to vector<8x256xf32>
      %c0_13 = arith.constant 0 : index
      %c0_14 = arith.constant 0 : index
      %20 = vector.load %arg6[%c0_13, %c0_14] : memref<8x256xf32, #tpu.memory_space<vmem>>, vector<8x256xf32>
      tpu.vector_store %arg6[%c0_13, %c0_14], %19 {strides = array<i32>} : memref<8x256xf32, #tpu.memory_space<vmem>>, vector<8x256xf32>,
      %21 = vector.shape_cast %17 : vector<1x256xf32> to vector<1x256xf32>
      %22 = vector.broadcast %21 : vector<1x256xf32> to vector<8x256xf32>
      %c0_15 = arith.constant 0 : index
      %c0_16 = arith.constant 0 : index
      %23 = vector.load %arg7[%c0_15, %c0_16] : memref<8x256xf32, #tpu.memory_space<vmem>>, vector<8x256xf32>
      tpu.vector_store %arg7[%c0_15, %c0_16], %22 {strides = array<i32>} : memref<8x256xf32, #tpu.memory_space<vmem>>, vector<8x256xf32>,
    } else {
    }
    return
  }
  func.func @transform_0(%arg0: i32, %arg1: i32, %arg2: i32) -> (i32, i32) {
    %c0_i32 = arith.constant 0 : i32
    return %arg0, %arg2 : i32, i32
  }
  func.func @transform_1(%arg0: i32, %arg1: i32, %arg2: i32) -> (i32, i32) {
    %c0_i32 = arith.constant 0 : i32
    return %arg2, %arg1 : i32, i32
  }
  func.func @transform_2(%arg0: i32, %arg1: i32, %arg2: i32) -> (i32, i32) {
    %c0_i32 = arith.constant 0 : i32
    return %arg0, %arg1 : i32, i32
  }
  func.func @transform_3(%arg0: i32, %arg1: i32, %arg2: i32) -> (i32, i32) {
    %c0_i32 = arith.constant 0 : i32
    return %arg0, %arg1 : i32, i32
  }
  func.func @transform_4(%arg0: i32, %arg1: i32, %arg2: i32) -> (i32, i32) {
    %c0_i32 = arith.constant 0 : i32
    return %arg0, %arg1 : i32, i32
  }
}

module attributes {stable_mosaic.version = 11 : i64} {
  func.func @_sba_kernel(%arg0: i32, %arg1: i32, %arg2: memref<8x256xf32, #tpu.memory_space<vmem>>, %arg3: memref<1x256xf32, #tpu.memory_space<vmem>>, %arg4: memref<1x256xf32, #tpu.memory_space<vmem>>, %arg5: memref<8x256xf32, #tpu.memory_space<vmem>>) attributes {dimension_semantics = [#tpu.dimension_semantics<parallel>, #tpu.dimension_semantics<parallel>], iteration_bounds = array<i64: 1, 1>, scalar_prefetch = 0 : i64, scratch_operands = 0 : i64, tpu.core_type = #tpu.core_type<tc>, window_params = [{transform_indices = @transform_0, window_bounds = array<i64: 8, 256>}, {transform_indices = @transform_1, window_bounds = array<i64: 1, 256>}, {transform_indices = @transform_2, window_bounds = array<i64: 1, 256>}, {transform_indices = @transform_3, window_bounds = array<i64: 8, 256>}]} {
    %c0 = arith.constant 0 : index
    %c0_0 = arith.constant 0 : index
    %0 = vector.load %arg2[%c0, %c0_0] : memref<8x256xf32, #tpu.memory_space<vmem>>, vector<8x256xf32>
    %c0_1 = arith.constant 0 : index
    %c0_2 = arith.constant 0 : index
    %1 = vector.load %arg3[%c0_1, %c0_2] : memref<1x256xf32, #tpu.memory_space<vmem>>, vector<1x256xf32>
    %2 = vector.broadcast %1 : vector<1x256xf32> to vector<8x256xf32>
    %3 = arith.mulf %0, %2 : vector<8x256xf32>
    %c0_3 = arith.constant 0 : index
    %c0_4 = arith.constant 0 : index
    %4 = vector.load %arg4[%c0_3, %c0_4] : memref<1x256xf32, #tpu.memory_space<vmem>>, vector<1x256xf32>
    %5 = vector.broadcast %4 : vector<1x256xf32> to vector<8x256xf32>
    %6 = arith.addf %3, %5 : vector<8x256xf32>
    %cst = arith.constant 0.000000e+00 : f32
    %7 = vector.broadcast %cst : f32 to vector<8x256xf32>
    %8 = arith.maximumf %6, %7 : vector<8x256xf32>
    %c0_5 = arith.constant 0 : index
    %c0_6 = arith.constant 0 : index
    %9 = vector.load %arg5[%c0_5, %c0_6] : memref<8x256xf32, #tpu.memory_space<vmem>>, vector<8x256xf32>
    tpu.vector_store %arg5[%c0_5, %c0_6], %8 {strides = array<i32>} : memref<8x256xf32, #tpu.memory_space<vmem>>, vector<8x256xf32>,
    return
  }
  func.func @transform_0(%arg0: i32, %arg1: i32) -> (i32, i32) {
    %c0_i32 = arith.constant 0 : i32
    return %arg0, %arg1 : i32, i32
  }
  func.func @transform_1(%arg0: i32, %arg1: i32) -> (i32, i32) {
    %c0_i32 = arith.constant 0 : i32
    %c0_i32_0 = arith.constant 0 : i32
    return %c0_i32, %arg1 : i32, i32
  }
  func.func @transform_2(%arg0: i32, %arg1: i32) -> (i32, i32) {
    %c0_i32 = arith.constant 0 : i32
    %c0_i32_0 = arith.constant 0 : i32
    return %c0_i32, %arg1 : i32, i32
  }
  func.func @transform_3(%arg0: i32, %arg1: i32) -> (i32, i32) {
    %c0_i32 = arith.constant 0 : i32
    return %arg0, %arg1 : i32, i32
  }
}

module attributes {stable_mosaic.version = 11 : i64} {
  func.func @_sba_res_kernel(%arg0: i32, %arg1: i32, %arg2: memref<8x256xf32, #tpu.memory_space<vmem>>, %arg3: memref<1x256xf32, #tpu.memory_space<vmem>>, %arg4: memref<1x256xf32, #tpu.memory_space<vmem>>, %arg5: memref<8x256xf32, #tpu.memory_space<vmem>>, %arg6: memref<8x256xf32, #tpu.memory_space<vmem>>) attributes {dimension_semantics = [#tpu.dimension_semantics<parallel>, #tpu.dimension_semantics<parallel>], iteration_bounds = array<i64: 1, 1>, scalar_prefetch = 0 : i64, scratch_operands = 0 : i64, tpu.core_type = #tpu.core_type<tc>, window_params = [{transform_indices = @transform_0, window_bounds = array<i64: 8, 256>}, {transform_indices = @transform_1, window_bounds = array<i64: 1, 256>}, {transform_indices = @transform_2, window_bounds = array<i64: 1, 256>}, {transform_indices = @transform_3, window_bounds = array<i64: 8, 256>}, {transform_indices = @transform_4, window_bounds = array<i64: 8, 256>}]} {
    %c0 = arith.constant 0 : index
    %c0_0 = arith.constant 0 : index
    %0 = vector.load %arg2[%c0, %c0_0] : memref<8x256xf32, #tpu.memory_space<vmem>>, vector<8x256xf32>
    %c0_1 = arith.constant 0 : index
    %c0_2 = arith.constant 0 : index
    %1 = vector.load %arg3[%c0_1, %c0_2] : memref<1x256xf32, #tpu.memory_space<vmem>>, vector<1x256xf32>
    %2 = vector.broadcast %1 : vector<1x256xf32> to vector<8x256xf32>
    %3 = arith.mulf %0, %2 : vector<8x256xf32>
    %c0_3 = arith.constant 0 : index
    %c0_4 = arith.constant 0 : index
    %4 = vector.load %arg4[%c0_3, %c0_4] : memref<1x256xf32, #tpu.memory_space<vmem>>, vector<1x256xf32>
    %5 = vector.broadcast %4 : vector<1x256xf32> to vector<8x256xf32>
    %6 = arith.addf %3, %5 : vector<8x256xf32>
    %c0_5 = arith.constant 0 : index
    %c0_6 = arith.constant 0 : index
    %7 = vector.load %arg5[%c0_5, %c0_6] : memref<8x256xf32, #tpu.memory_space<vmem>>, vector<8x256xf32>
    %8 = arith.addf %6, %7 : vector<8x256xf32>
    %cst = arith.constant 0.000000e+00 : f32
    %9 = vector.broadcast %cst : f32 to vector<8x256xf32>
    %10 = arith.maximumf %8, %9 : vector<8x256xf32>
    %c0_7 = arith.constant 0 : index
    %c0_8 = arith.constant 0 : index
    %11 = vector.load %arg6[%c0_7, %c0_8] : memref<8x256xf32, #tpu.memory_space<vmem>>, vector<8x256xf32>
    tpu.vector_store %arg6[%c0_7, %c0_8], %10 {strides = array<i32>} : memref<8x256xf32, #tpu.memory_space<vmem>>, vector<8x256xf32>,
    return
  }
  func.func @transform_0(%arg0: i32, %arg1: i32) -> (i32, i32) {
    %c0_i32 = arith.constant 0 : i32
    return %arg0, %arg1 : i32, i32
  }
  func.func @transform_1(%arg0: i32, %arg1: i32) -> (i32, i32) {
    %c0_i32 = arith.constant 0 : i32
    %c0_i32_0 = arith.constant 0 : i32
    return %c0_i32, %arg1 : i32, i32
  }
  func.func @transform_2(%arg0: i32, %arg1: i32) -> (i32, i32) {
    %c0_i32 = arith.constant 0 : i32
    %c0_i32_0 = arith.constant 0 : i32
    return %c0_i32, %arg1 : i32, i32
  }
  func.func @transform_3(%arg0: i32, %arg1: i32) -> (i32, i32) {
    %c0_i32 = arith.constant 0 : i32
    return %arg0, %arg1 : i32, i32
  }
  func.func @transform_4(%arg0: i32, %arg1: i32) -> (i32, i32) {
    %c0_i32 = arith.constant 0 : i32
    return %arg0, %arg1 : i32, i32
  }
}

module attributes {stable_mosaic.version = 11 : i64} {
  func.func @_matmul_stats_kernel(%arg0: i32, %arg1: i32, %arg2: i32, %arg3: memref<8x384xbf16, #tpu.memory_space<vmem>>, %arg4: memref<384x256xbf16, #tpu.memory_space<vmem>>, %arg5: memref<8x256xf32, #tpu.memory_space<vmem>>, %arg6: memref<8x256xf32, #tpu.memory_space<vmem>>, %arg7: memref<8x256xf32, #tpu.memory_space<vmem>>) attributes {dimension_semantics = [#tpu.dimension_semantics<parallel>, #tpu.dimension_semantics<parallel>, #tpu.dimension_semantics<arbitrary>], iteration_bounds = array<i64: 1, 1, 6>, scalar_prefetch = 0 : i64, scratch_operands = 0 : i64, tpu.core_type = #tpu.core_type<tc>, window_params = [{transform_indices = @transform_0, window_bounds = array<i64: 8, 384>}, {transform_indices = @transform_1, window_bounds = array<i64: 384, 256>}, {transform_indices = @transform_2, window_bounds = array<i64: 8, 256>}, {transform_indices = @transform_3, window_bounds = array<i64: 8, 256>}, {transform_indices = @transform_4, window_bounds = array<i64: 8, 256>}]} {
    %c0_i32 = arith.constant 0 : i32
    %0 = arith.cmpi eq, %arg2, %c0_i32 : i32
    %1 = arith.extui %0 : i1 to i32
    %c0_i32_0 = arith.constant 0 : i32
    %2 = arith.cmpi ne, %1, %c0_i32_0 : i32
    scf.if %2 {
      %cst_9 = arith.constant 0.000000e+00 : f32
      %12 = vector.broadcast %cst_9 : f32 to vector<8x256xf32>
      %c0_10 = arith.constant 0 : index
      %c0_11 = arith.constant 0 : index
      %13 = vector.load %arg5[%c0_10, %c0_11] : memref<8x256xf32, #tpu.memory_space<vmem>>, vector<8x256xf32>
      tpu.vector_store %arg5[%c0_10, %c0_11], %12 {strides = array<i32>} : memref<8x256xf32, #tpu.memory_space<vmem>>, vector<8x256xf32>,
    } else {
    }
    %c0 = arith.constant 0 : index
    %c0_1 = arith.constant 0 : index
    %3 = vector.load %arg5[%c0, %c0_1] : memref<8x256xf32, #tpu.memory_space<vmem>>, vector<8x256xf32>
    %c0_2 = arith.constant 0 : index
    %c0_3 = arith.constant 0 : index
    %4 = vector.load %arg3[%c0_2, %c0_3] : memref<8x384xbf16, #tpu.memory_space<vmem>>, vector<8x384xbf16>
    %c0_4 = arith.constant 0 : index
    %c0_5 = arith.constant 0 : index
    %5 = vector.load %arg4[%c0_4, %c0_5] : memref<384x256xbf16, #tpu.memory_space<vmem>>, vector<384x256xbf16>
    %cst = arith.constant dense<0.000000e+00> : vector<8x256xf32>
    %6 = tpu.matmul %4, %5, %cst {dimension_numbers = #tpu.dot_dimension_numbers<[1], [0], [0], [1], [0, 0, 1, 1], [], []>} : vector<8x384xbf16>, vector<384x256xbf16>, vector<8x256xf32> -> vector<8x256xf32>
    %7 = arith.addf %3, %6 : vector<8x256xf32>
    %c0_6 = arith.constant 0 : index
    %c0_7 = arith.constant 0 : index
    %8 = vector.load %arg5[%c0_6, %c0_7] : memref<8x256xf32, #tpu.memory_space<vmem>>, vector<8x256xf32>
    tpu.vector_store %arg5[%c0_6, %c0_7], %7 {strides = array<i32>} : memref<8x256xf32, #tpu.memory_space<vmem>>, vector<8x256xf32>,
    %c5_i32 = arith.constant 5 : i32
    %9 = arith.cmpi eq, %arg2, %c5_i32 : i32
    %10 = arith.extui %9 : i1 to i32
    %c0_i32_8 = arith.constant 0 : i32
    %11 = arith.cmpi ne, %10, %c0_i32_8 : i32
    scf.if %11 {
      %c0_9 = arith.constant 0 : index
      %c0_10 = arith.constant 0 : index
      %12 = vector.load %arg5[%c0_9, %c0_10] : memref<8x256xf32, #tpu.memory_space<vmem>>, vector<8x256xf32>
      %cst_11 = arith.constant dense<0.000000e+00> : vector<256xf32>
      %13 = vector.multi_reduction <add>, %12, %cst_11 [0] : vector<8x256xf32> to vector<256xf32>
      %14 = vector.shape_cast %13 : vector<256xf32> to vector<1x256xf32>
      %15 = arith.mulf %12, %12 : vector<8x256xf32>
      %cst_12 = arith.constant dense<0.000000e+00> : vector<256xf32>
      %16 = vector.multi_reduction <add>, %15, %cst_12 [0] : vector<8x256xf32> to vector<256xf32>
      %17 = vector.shape_cast %16 : vector<256xf32> to vector<1x256xf32>
      %18 = vector.shape_cast %14 : vector<1x256xf32> to vector<1x256xf32>
      %19 = vector.broadcast %18 : vector<1x256xf32> to vector<8x256xf32>
      %c0_13 = arith.constant 0 : index
      %c0_14 = arith.constant 0 : index
      %20 = vector.load %arg6[%c0_13, %c0_14] : memref<8x256xf32, #tpu.memory_space<vmem>>, vector<8x256xf32>
      tpu.vector_store %arg6[%c0_13, %c0_14], %19 {strides = array<i32>} : memref<8x256xf32, #tpu.memory_space<vmem>>, vector<8x256xf32>,
      %21 = vector.shape_cast %17 : vector<1x256xf32> to vector<1x256xf32>
      %22 = vector.broadcast %21 : vector<1x256xf32> to vector<8x256xf32>
      %c0_15 = arith.constant 0 : index
      %c0_16 = arith.constant 0 : index
      %23 = vector.load %arg7[%c0_15, %c0_16] : memref<8x256xf32, #tpu.memory_space<vmem>>, vector<8x256xf32>
      tpu.vector_store %arg7[%c0_15, %c0_16], %22 {strides = array<i32>} : memref<8x256xf32, #tpu.memory_space<vmem>>, vector<8x256xf32>,
    } else {
    }
    return
  }
  func.func @transform_0(%arg0: i32, %arg1: i32, %arg2: i32) -> (i32, i32) {
    %c0_i32 = arith.constant 0 : i32
    return %arg0, %arg2 : i32, i32
  }
  func.func @transform_1(%arg0: i32, %arg1: i32, %arg2: i32) -> (i32, i32) {
    %c0_i32 = arith.constant 0 : i32
    return %arg2, %arg1 : i32, i32
  }
  func.func @transform_2(%arg0: i32, %arg1: i32, %arg2: i32) -> (i32, i32) {
    %c0_i32 = arith.constant 0 : i32
    return %arg0, %arg1 : i32, i32
  }
  func.func @transform_3(%arg0: i32, %arg1: i32, %arg2: i32) -> (i32, i32) {
    %c0_i32 = arith.constant 0 : i32
    return %arg0, %arg1 : i32, i32
  }
  func.func @transform_4(%arg0: i32, %arg1: i32, %arg2: i32) -> (i32, i32) {
    %c0_i32 = arith.constant 0 : i32
    return %arg0, %arg1 : i32, i32
  }
}

module attributes {stable_mosaic.version = 11 : i64} {
  func.func @_matmul_stats_kernel(%arg0: i32, %arg1: i32, %arg2: i32, %arg3: memref<8x256xbf16, #tpu.memory_space<vmem>>, %arg4: memref<256x512xbf16, #tpu.memory_space<vmem>>, %arg5: memref<8x512xf32, #tpu.memory_space<vmem>>, %arg6: memref<8x512xf32, #tpu.memory_space<vmem>>, %arg7: memref<8x512xf32, #tpu.memory_space<vmem>>) attributes {dimension_semantics = [#tpu.dimension_semantics<parallel>, #tpu.dimension_semantics<parallel>, #tpu.dimension_semantics<arbitrary>], iteration_bounds = array<i64: 1, 1, 1>, scalar_prefetch = 0 : i64, scratch_operands = 0 : i64, tpu.core_type = #tpu.core_type<tc>, window_params = [{transform_indices = @transform_0, window_bounds = array<i64: 8, 256>}, {transform_indices = @transform_1, window_bounds = array<i64: 256, 512>}, {transform_indices = @transform_2, window_bounds = array<i64: 8, 512>}, {transform_indices = @transform_3, window_bounds = array<i64: 8, 512>}, {transform_indices = @transform_4, window_bounds = array<i64: 8, 512>}]} {
    %c0_i32 = arith.constant 0 : i32
    %0 = arith.cmpi eq, %arg2, %c0_i32 : i32
    %1 = arith.extui %0 : i1 to i32
    %c0_i32_0 = arith.constant 0 : i32
    %2 = arith.cmpi ne, %1, %c0_i32_0 : i32
    scf.if %2 {
      %cst_10 = arith.constant 0.000000e+00 : f32
      %12 = vector.broadcast %cst_10 : f32 to vector<8x512xf32>
      %c0_11 = arith.constant 0 : index
      %c0_12 = arith.constant 0 : index
      %13 = vector.load %arg5[%c0_11, %c0_12] : memref<8x512xf32, #tpu.memory_space<vmem>>, vector<8x512xf32>
      tpu.vector_store %arg5[%c0_11, %c0_12], %12 {strides = array<i32>} : memref<8x512xf32, #tpu.memory_space<vmem>>, vector<8x512xf32>,
    } else {
    }
    %c0 = arith.constant 0 : index
    %c0_1 = arith.constant 0 : index
    %3 = vector.load %arg5[%c0, %c0_1] : memref<8x512xf32, #tpu.memory_space<vmem>>, vector<8x512xf32>
    %c0_2 = arith.constant 0 : index
    %c0_3 = arith.constant 0 : index
    %4 = vector.load %arg3[%c0_2, %c0_3] : memref<8x256xbf16, #tpu.memory_space<vmem>>, vector<8x256xbf16>
    %c0_4 = arith.constant 0 : index
    %c0_5 = arith.constant 0 : index
    %5 = vector.load %arg4[%c0_4, %c0_5] : memref<256x512xbf16, #tpu.memory_space<vmem>>, vector<256x512xbf16>
    %cst = arith.constant dense<0.000000e+00> : vector<8x512xf32>
    %6 = tpu.matmul %4, %5, %cst {dimension_numbers = #tpu.dot_dimension_numbers<[1], [0], [0], [1], [0, 0, 1, 1], [], []>} : vector<8x256xbf16>, vector<256x512xbf16>, vector<8x512xf32> -> vector<8x512xf32>
    %7 = arith.addf %3, %6 : vector<8x512xf32>
    %c0_6 = arith.constant 0 : index
    %c0_7 = arith.constant 0 : index
    %8 = vector.load %arg5[%c0_6, %c0_7] : memref<8x512xf32, #tpu.memory_space<vmem>>, vector<8x512xf32>
    tpu.vector_store %arg5[%c0_6, %c0_7], %7 {strides = array<i32>} : memref<8x512xf32, #tpu.memory_space<vmem>>, vector<8x512xf32>,
    %c0_i32_8 = arith.constant 0 : i32
    %9 = arith.cmpi eq, %arg2, %c0_i32_8 : i32
    %10 = arith.extui %9 : i1 to i32
    %c0_i32_9 = arith.constant 0 : i32
    %11 = arith.cmpi ne, %10, %c0_i32_9 : i32
    scf.if %11 {
      %c0_10 = arith.constant 0 : index
      %c0_11 = arith.constant 0 : index
      %12 = vector.load %arg5[%c0_10, %c0_11] : memref<8x512xf32, #tpu.memory_space<vmem>>, vector<8x512xf32>
      %cst_12 = arith.constant dense<0.000000e+00> : vector<512xf32>
      %13 = vector.multi_reduction <add>, %12, %cst_12 [0] : vector<8x512xf32> to vector<512xf32>
      %14 = vector.shape_cast %13 : vector<512xf32> to vector<1x512xf32>
      %15 = arith.mulf %12, %12 : vector<8x512xf32>
      %cst_13 = arith.constant dense<0.000000e+00> : vector<512xf32>
      %16 = vector.multi_reduction <add>, %15, %cst_13 [0] : vector<8x512xf32> to vector<512xf32>
      %17 = vector.shape_cast %16 : vector<512xf32> to vector<1x512xf32>
      %18 = vector.shape_cast %14 : vector<1x512xf32> to vector<1x512xf32>
      %19 = vector.broadcast %18 : vector<1x512xf32> to vector<8x512xf32>
      %c0_14 = arith.constant 0 : index
      %c0_15 = arith.constant 0 : index
      %20 = vector.load %arg6[%c0_14, %c0_15] : memref<8x512xf32, #tpu.memory_space<vmem>>, vector<8x512xf32>
      tpu.vector_store %arg6[%c0_14, %c0_15], %19 {strides = array<i32>} : memref<8x512xf32, #tpu.memory_space<vmem>>, vector<8x512xf32>,
      %21 = vector.shape_cast %17 : vector<1x512xf32> to vector<1x512xf32>
      %22 = vector.broadcast %21 : vector<1x512xf32> to vector<8x512xf32>
      %c0_16 = arith.constant 0 : index
      %c0_17 = arith.constant 0 : index
      %23 = vector.load %arg7[%c0_16, %c0_17] : memref<8x512xf32, #tpu.memory_space<vmem>>, vector<8x512xf32>
      tpu.vector_store %arg7[%c0_16, %c0_17], %22 {strides = array<i32>} : memref<8x512xf32, #tpu.memory_space<vmem>>, vector<8x512xf32>,
    } else {
    }
    return
  }
  func.func @transform_0(%arg0: i32, %arg1: i32, %arg2: i32) -> (i32, i32) {
    %c0_i32 = arith.constant 0 : i32
    return %arg0, %arg2 : i32, i32
  }
  func.func @transform_1(%arg0: i32, %arg1: i32, %arg2: i32) -> (i32, i32) {
    %c0_i32 = arith.constant 0 : i32
    return %arg2, %arg1 : i32, i32
  }
  func.func @transform_2(%arg0: i32, %arg1: i32, %arg2: i32) -> (i32, i32) {
    %c0_i32 = arith.constant 0 : i32
    return %arg0, %arg1 : i32, i32
  }
  func.func @transform_3(%arg0: i32, %arg1: i32, %arg2: i32) -> (i32, i32) {
    %c0_i32 = arith.constant 0 : i32
    return %arg0, %arg1 : i32, i32
  }
  func.func @transform_4(%arg0: i32, %arg1: i32, %arg2: i32) -> (i32, i32) {
    %c0_i32 = arith.constant 0 : i32
    return %arg0, %arg1 : i32, i32
  }
}

module attributes {stable_mosaic.version = 11 : i64} {
  func.func @_sba_kernel(%arg0: i32, %arg1: i32, %arg2: memref<8x512xf32, #tpu.memory_space<vmem>>, %arg3: memref<1x512xf32, #tpu.memory_space<vmem>>, %arg4: memref<1x512xf32, #tpu.memory_space<vmem>>, %arg5: memref<8x512xf32, #tpu.memory_space<vmem>>) attributes {dimension_semantics = [#tpu.dimension_semantics<parallel>, #tpu.dimension_semantics<parallel>], iteration_bounds = array<i64: 1, 1>, scalar_prefetch = 0 : i64, scratch_operands = 0 : i64, tpu.core_type = #tpu.core_type<tc>, window_params = [{transform_indices = @transform_0, window_bounds = array<i64: 8, 512>}, {transform_indices = @transform_1, window_bounds = array<i64: 1, 512>}, {transform_indices = @transform_2, window_bounds = array<i64: 1, 512>}, {transform_indices = @transform_3, window_bounds = array<i64: 8, 512>}]} {
    %c0 = arith.constant 0 : index
    %c0_0 = arith.constant 0 : index
    %0 = vector.load %arg2[%c0, %c0_0] : memref<8x512xf32, #tpu.memory_space<vmem>>, vector<8x512xf32>
    %c0_1 = arith.constant 0 : index
    %c0_2 = arith.constant 0 : index
    %1 = vector.load %arg3[%c0_1, %c0_2] : memref<1x512xf32, #tpu.memory_space<vmem>>, vector<1x512xf32>
    %2 = vector.broadcast %1 : vector<1x512xf32> to vector<8x512xf32>
    %3 = arith.mulf %0, %2 : vector<8x512xf32>
    %c0_3 = arith.constant 0 : index
    %c0_4 = arith.constant 0 : index
    %4 = vector.load %arg4[%c0_3, %c0_4] : memref<1x512xf32, #tpu.memory_space<vmem>>, vector<1x512xf32>
    %5 = vector.broadcast %4 : vector<1x512xf32> to vector<8x512xf32>
    %6 = arith.addf %3, %5 : vector<8x512xf32>
    %c0_5 = arith.constant 0 : index
    %c0_6 = arith.constant 0 : index
    %7 = vector.load %arg5[%c0_5, %c0_6] : memref<8x512xf32, #tpu.memory_space<vmem>>, vector<8x512xf32>
    tpu.vector_store %arg5[%c0_5, %c0_6], %6 {strides = array<i32>} : memref<8x512xf32, #tpu.memory_space<vmem>>, vector<8x512xf32>,
    return
  }
  func.func @transform_0(%arg0: i32, %arg1: i32) -> (i32, i32) {
    %c0_i32 = arith.constant 0 : i32
    return %arg0, %arg1 : i32, i32
  }
  func.func @transform_1(%arg0: i32, %arg1: i32) -> (i32, i32) {
    %c0_i32 = arith.constant 0 : i32
    %c0_i32_0 = arith.constant 0 : i32
    return %c0_i32, %arg1 : i32, i32
  }
  func.func @transform_2(%arg0: i32, %arg1: i32) -> (i32, i32) {
    %c0_i32 = arith.constant 0 : i32
    %c0_i32_0 = arith.constant 0 : i32
    return %c0_i32, %arg1 : i32, i32
  }
  func.func @transform_3(%arg0: i32, %arg1: i32) -> (i32, i32) {
    %c0_i32 = arith.constant 0 : i32
    return %arg0, %arg1 : i32, i32
  }
}

module attributes {stable_mosaic.version = 11 : i64} {
  func.func @_sba_kernel(%arg0: i32, %arg1: i32, %arg2: memref<8x512xf32, #tpu.memory_space<vmem>>, %arg3: memref<1x512xf32, #tpu.memory_space<vmem>>, %arg4: memref<1x512xf32, #tpu.memory_space<vmem>>, %arg5: memref<8x512xf32, #tpu.memory_space<vmem>>) attributes {dimension_semantics = [#tpu.dimension_semantics<parallel>, #tpu.dimension_semantics<parallel>], iteration_bounds = array<i64: 1, 1>, scalar_prefetch = 0 : i64, scratch_operands = 0 : i64, tpu.core_type = #tpu.core_type<tc>, window_params = [{transform_indices = @transform_0, window_bounds = array<i64: 8, 512>}, {transform_indices = @transform_1, window_bounds = array<i64: 1, 512>}, {transform_indices = @transform_2, window_bounds = array<i64: 1, 512>}, {transform_indices = @transform_3, window_bounds = array<i64: 8, 512>}]} {
    %c0 = arith.constant 0 : index
    %c0_0 = arith.constant 0 : index
    %0 = vector.load %arg2[%c0, %c0_0] : memref<8x512xf32, #tpu.memory_space<vmem>>, vector<8x512xf32>
    %c0_1 = arith.constant 0 : index
    %c0_2 = arith.constant 0 : index
    %1 = vector.load %arg3[%c0_1, %c0_2] : memref<1x512xf32, #tpu.memory_space<vmem>>, vector<1x512xf32>
    %2 = vector.broadcast %1 : vector<1x512xf32> to vector<8x512xf32>
    %3 = arith.mulf %0, %2 : vector<8x512xf32>
    %c0_3 = arith.constant 0 : index
    %c0_4 = arith.constant 0 : index
    %4 = vector.load %arg4[%c0_3, %c0_4] : memref<1x512xf32, #tpu.memory_space<vmem>>, vector<1x512xf32>
    %5 = vector.broadcast %4 : vector<1x512xf32> to vector<8x512xf32>
    %6 = arith.addf %3, %5 : vector<8x512xf32>
    %cst = arith.constant 0.000000e+00 : f32
    %7 = vector.broadcast %cst : f32 to vector<8x512xf32>
    %8 = arith.maximumf %6, %7 : vector<8x512xf32>
    %c0_5 = arith.constant 0 : index
    %c0_6 = arith.constant 0 : index
    %9 = vector.load %arg5[%c0_5, %c0_6] : memref<8x512xf32, #tpu.memory_space<vmem>>, vector<8x512xf32>
    tpu.vector_store %arg5[%c0_5, %c0_6], %8 {strides = array<i32>} : memref<8x512xf32, #tpu.memory_space<vmem>>, vector<8x512xf32>,
    return
  }
  func.func @transform_0(%arg0: i32, %arg1: i32) -> (i32, i32) {
    %c0_i32 = arith.constant 0 : i32
    return %arg0, %arg1 : i32, i32
  }
  func.func @transform_1(%arg0: i32, %arg1: i32) -> (i32, i32) {
    %c0_i32 = arith.constant 0 : i32
    %c0_i32_0 = arith.constant 0 : i32
    return %c0_i32, %arg1 : i32, i32
  }
  func.func @transform_2(%arg0: i32, %arg1: i32) -> (i32, i32) {
    %c0_i32 = arith.constant 0 : i32
    %c0_i32_0 = arith.constant 0 : i32
    return %c0_i32, %arg1 : i32, i32
  }
  func.func @transform_3(%arg0: i32, %arg1: i32) -> (i32, i32) {
    %c0_i32 = arith.constant 0 : i32
    return %arg0, %arg1 : i32, i32
  }
}

module attributes {stable_mosaic.version = 11 : i64} {
  func.func @_matmul_stats_kernel(%arg0: i32, %arg1: i32, %arg2: i32, %arg3: memref<8x384xbf16, #tpu.memory_space<vmem>>, %arg4: memref<384x512xbf16, #tpu.memory_space<vmem>>, %arg5: memref<8x512xf32, #tpu.memory_space<vmem>>, %arg6: memref<8x512xf32, #tpu.memory_space<vmem>>, %arg7: memref<8x512xf32, #tpu.memory_space<vmem>>) attributes {dimension_semantics = [#tpu.dimension_semantics<parallel>, #tpu.dimension_semantics<parallel>, #tpu.dimension_semantics<arbitrary>], iteration_bounds = array<i64: 1, 1, 6>, scalar_prefetch = 0 : i64, scratch_operands = 0 : i64, tpu.core_type = #tpu.core_type<tc>, window_params = [{transform_indices = @transform_0, window_bounds = array<i64: 8, 384>}, {transform_indices = @transform_1, window_bounds = array<i64: 384, 512>}, {transform_indices = @transform_2, window_bounds = array<i64: 8, 512>}, {transform_indices = @transform_3, window_bounds = array<i64: 8, 512>}, {transform_indices = @transform_4, window_bounds = array<i64: 8, 512>}]} {
    %c0_i32 = arith.constant 0 : i32
    %0 = arith.cmpi eq, %arg2, %c0_i32 : i32
    %1 = arith.extui %0 : i1 to i32
    %c0_i32_0 = arith.constant 0 : i32
    %2 = arith.cmpi ne, %1, %c0_i32_0 : i32
    scf.if %2 {
      %cst_9 = arith.constant 0.000000e+00 : f32
      %12 = vector.broadcast %cst_9 : f32 to vector<8x512xf32>
      %c0_10 = arith.constant 0 : index
      %c0_11 = arith.constant 0 : index
      %13 = vector.load %arg5[%c0_10, %c0_11] : memref<8x512xf32, #tpu.memory_space<vmem>>, vector<8x512xf32>
      tpu.vector_store %arg5[%c0_10, %c0_11], %12 {strides = array<i32>} : memref<8x512xf32, #tpu.memory_space<vmem>>, vector<8x512xf32>,
    } else {
    }
    %c0 = arith.constant 0 : index
    %c0_1 = arith.constant 0 : index
    %3 = vector.load %arg5[%c0, %c0_1] : memref<8x512xf32, #tpu.memory_space<vmem>>, vector<8x512xf32>
    %c0_2 = arith.constant 0 : index
    %c0_3 = arith.constant 0 : index
    %4 = vector.load %arg3[%c0_2, %c0_3] : memref<8x384xbf16, #tpu.memory_space<vmem>>, vector<8x384xbf16>
    %c0_4 = arith.constant 0 : index
    %c0_5 = arith.constant 0 : index
    %5 = vector.load %arg4[%c0_4, %c0_5] : memref<384x512xbf16, #tpu.memory_space<vmem>>, vector<384x512xbf16>
    %cst = arith.constant dense<0.000000e+00> : vector<8x512xf32>
    %6 = tpu.matmul %4, %5, %cst {dimension_numbers = #tpu.dot_dimension_numbers<[1], [0], [0], [1], [0, 0, 1, 1], [], []>} : vector<8x384xbf16>, vector<384x512xbf16>, vector<8x512xf32> -> vector<8x512xf32>
    %7 = arith.addf %3, %6 : vector<8x512xf32>
    %c0_6 = arith.constant 0 : index
    %c0_7 = arith.constant 0 : index
    %8 = vector.load %arg5[%c0_6, %c0_7] : memref<8x512xf32, #tpu.memory_space<vmem>>, vector<8x512xf32>
    tpu.vector_store %arg5[%c0_6, %c0_7], %7 {strides = array<i32>} : memref<8x512xf32, #tpu.memory_space<vmem>>, vector<8x512xf32>,
    %c5_i32 = arith.constant 5 : i32
    %9 = arith.cmpi eq, %arg2, %c5_i32 : i32
    %10 = arith.extui %9 : i1 to i32
    %c0_i32_8 = arith.constant 0 : i32
    %11 = arith.cmpi ne, %10, %c0_i32_8 : i32
    scf.if %11 {
      %c0_9 = arith.constant 0 : index
      %c0_10 = arith.constant 0 : index
      %12 = vector.load %arg5[%c0_9, %c0_10] : memref<8x512xf32, #tpu.memory_space<vmem>>, vector<8x512xf32>
      %cst_11 = arith.constant dense<0.000000e+00> : vector<512xf32>
      %13 = vector.multi_reduction <add>, %12, %cst_11 [0] : vector<8x512xf32> to vector<512xf32>
      %14 = vector.shape_cast %13 : vector<512xf32> to vector<1x512xf32>
      %15 = arith.mulf %12, %12 : vector<8x512xf32>
      %cst_12 = arith.constant dense<0.000000e+00> : vector<512xf32>
      %16 = vector.multi_reduction <add>, %15, %cst_12 [0] : vector<8x512xf32> to vector<512xf32>
      %17 = vector.shape_cast %16 : vector<512xf32> to vector<1x512xf32>
      %18 = vector.shape_cast %14 : vector<1x512xf32> to vector<1x512xf32>
      %19 = vector.broadcast %18 : vector<1x512xf32> to vector<8x512xf32>
      %c0_13 = arith.constant 0 : index
      %c0_14 = arith.constant 0 : index
      %20 = vector.load %arg6[%c0_13, %c0_14] : memref<8x512xf32, #tpu.memory_space<vmem>>, vector<8x512xf32>
      tpu.vector_store %arg6[%c0_13, %c0_14], %19 {strides = array<i32>} : memref<8x512xf32, #tpu.memory_space<vmem>>, vector<8x512xf32>,
      %21 = vector.shape_cast %17 : vector<1x512xf32> to vector<1x512xf32>
      %22 = vector.broadcast %21 : vector<1x512xf32> to vector<8x512xf32>
      %c0_15 = arith.constant 0 : index
      %c0_16 = arith.constant 0 : index
      %23 = vector.load %arg7[%c0_15, %c0_16] : memref<8x512xf32, #tpu.memory_space<vmem>>, vector<8x512xf32>
      tpu.vector_store %arg7[%c0_15, %c0_16], %22 {strides = array<i32>} : memref<8x512xf32, #tpu.memory_space<vmem>>, vector<8x512xf32>,
    } else {
    }
    return
  }
  func.func @transform_0(%arg0: i32, %arg1: i32, %arg2: i32) -> (i32, i32) {
    %c0_i32 = arith.constant 0 : i32
    return %arg0, %arg2 : i32, i32
  }
  func.func @transform_1(%arg0: i32, %arg1: i32, %arg2: i32) -> (i32, i32) {
    %c0_i32 = arith.constant 0 : i32
    return %arg2, %arg1 : i32, i32
  }
  func.func @transform_2(%arg0: i32, %arg1: i32, %arg2: i32) -> (i32, i32) {
    %c0_i32 = arith.constant 0 : i32
    return %arg0, %arg1 : i32, i32
  }
  func.func @transform_3(%arg0: i32, %arg1: i32, %arg2: i32) -> (i32, i32) {
    %c0_i32 = arith.constant 0 : i32
    return %arg0, %arg1 : i32, i32
  }
  func.func @transform_4(%arg0: i32, %arg1: i32, %arg2: i32) -> (i32, i32) {
    %c0_i32 = arith.constant 0 : i32
    return %arg0, %arg1 : i32, i32
  }
}

module attributes {stable_mosaic.version = 11 : i64} {
  func.func @_matmul_stats_kernel(%arg0: i32, %arg1: i32, %arg2: i32, %arg3: memref<8x512xbf16, #tpu.memory_space<vmem>>, %arg4: memref<512x512xbf16, #tpu.memory_space<vmem>>, %arg5: memref<8x512xf32, #tpu.memory_space<vmem>>, %arg6: memref<8x512xf32, #tpu.memory_space<vmem>>, %arg7: memref<8x512xf32, #tpu.memory_space<vmem>>) attributes {dimension_semantics = [#tpu.dimension_semantics<parallel>, #tpu.dimension_semantics<parallel>, #tpu.dimension_semantics<arbitrary>], iteration_bounds = array<i64: 1, 1, 9>, scalar_prefetch = 0 : i64, scratch_operands = 0 : i64, tpu.core_type = #tpu.core_type<tc>, window_params = [{transform_indices = @transform_0, window_bounds = array<i64: 8, 512>}, {transform_indices = @transform_1, window_bounds = array<i64: 512, 512>}, {transform_indices = @transform_2, window_bounds = array<i64: 8, 512>}, {transform_indices = @transform_3, window_bounds = array<i64: 8, 512>}, {transform_indices = @transform_4, window_bounds = array<i64: 8, 512>}]} {
    %c0_i32 = arith.constant 0 : i32
    %0 = arith.cmpi eq, %arg2, %c0_i32 : i32
    %1 = arith.extui %0 : i1 to i32
    %c0_i32_0 = arith.constant 0 : i32
    %2 = arith.cmpi ne, %1, %c0_i32_0 : i32
    scf.if %2 {
      %cst_9 = arith.constant 0.000000e+00 : f32
      %12 = vector.broadcast %cst_9 : f32 to vector<8x512xf32>
      %c0_10 = arith.constant 0 : index
      %c0_11 = arith.constant 0 : index
      %13 = vector.load %arg5[%c0_10, %c0_11] : memref<8x512xf32, #tpu.memory_space<vmem>>, vector<8x512xf32>
      tpu.vector_store %arg5[%c0_10, %c0_11], %12 {strides = array<i32>} : memref<8x512xf32, #tpu.memory_space<vmem>>, vector<8x512xf32>,
    } else {
    }
    %c0 = arith.constant 0 : index
    %c0_1 = arith.constant 0 : index
    %3 = vector.load %arg5[%c0, %c0_1] : memref<8x512xf32, #tpu.memory_space<vmem>>, vector<8x512xf32>
    %c0_2 = arith.constant 0 : index
    %c0_3 = arith.constant 0 : index
    %4 = vector.load %arg3[%c0_2, %c0_3] : memref<8x512xbf16, #tpu.memory_space<vmem>>, vector<8x512xbf16>
    %c0_4 = arith.constant 0 : index
    %c0_5 = arith.constant 0 : index
    %5 = vector.load %arg4[%c0_4, %c0_5] : memref<512x512xbf16, #tpu.memory_space<vmem>>, vector<512x512xbf16>
    %cst = arith.constant dense<0.000000e+00> : vector<8x512xf32>
    %6 = tpu.matmul %4, %5, %cst {dimension_numbers = #tpu.dot_dimension_numbers<[1], [0], [0], [1], [0, 0, 1, 1], [], []>} : vector<8x512xbf16>, vector<512x512xbf16>, vector<8x512xf32> -> vector<8x512xf32>
    %7 = arith.addf %3, %6 : vector<8x512xf32>
    %c0_6 = arith.constant 0 : index
    %c0_7 = arith.constant 0 : index
    %8 = vector.load %arg5[%c0_6, %c0_7] : memref<8x512xf32, #tpu.memory_space<vmem>>, vector<8x512xf32>
    tpu.vector_store %arg5[%c0_6, %c0_7], %7 {strides = array<i32>} : memref<8x512xf32, #tpu.memory_space<vmem>>, vector<8x512xf32>,
    %c8_i32 = arith.constant 8 : i32
    %9 = arith.cmpi eq, %arg2, %c8_i32 : i32
    %10 = arith.extui %9 : i1 to i32
    %c0_i32_8 = arith.constant 0 : i32
    %11 = arith.cmpi ne, %10, %c0_i32_8 : i32
    scf.if %11 {
      %c0_9 = arith.constant 0 : index
      %c0_10 = arith.constant 0 : index
      %12 = vector.load %arg5[%c0_9, %c0_10] : memref<8x512xf32, #tpu.memory_space<vmem>>, vector<8x512xf32>
      %cst_11 = arith.constant dense<0.000000e+00> : vector<512xf32>
      %13 = vector.multi_reduction <add>, %12, %cst_11 [0] : vector<8x512xf32> to vector<512xf32>
      %14 = vector.shape_cast %13 : vector<512xf32> to vector<1x512xf32>
      %15 = arith.mulf %12, %12 : vector<8x512xf32>
      %cst_12 = arith.constant dense<0.000000e+00> : vector<512xf32>
      %16 = vector.multi_reduction <add>, %15, %cst_12 [0] : vector<8x512xf32> to vector<512xf32>
      %17 = vector.shape_cast %16 : vector<512xf32> to vector<1x512xf32>
      %18 = vector.shape_cast %14 : vector<1x512xf32> to vector<1x512xf32>
      %19 = vector.broadcast %18 : vector<1x512xf32> to vector<8x512xf32>
      %c0_13 = arith.constant 0 : index
      %c0_14 = arith.constant 0 : index
      %20 = vector.load %arg6[%c0_13, %c0_14] : memref<8x512xf32, #tpu.memory_space<vmem>>, vector<8x512xf32>
      tpu.vector_store %arg6[%c0_13, %c0_14], %19 {strides = array<i32>} : memref<8x512xf32, #tpu.memory_space<vmem>>, vector<8x512xf32>,
      %21 = vector.shape_cast %17 : vector<1x512xf32> to vector<1x512xf32>
      %22 = vector.broadcast %21 : vector<1x512xf32> to vector<8x512xf32>
      %c0_15 = arith.constant 0 : index
      %c0_16 = arith.constant 0 : index
      %23 = vector.load %arg7[%c0_15, %c0_16] : memref<8x512xf32, #tpu.memory_space<vmem>>, vector<8x512xf32>
      tpu.vector_store %arg7[%c0_15, %c0_16], %22 {strides = array<i32>} : memref<8x512xf32, #tpu.memory_space<vmem>>, vector<8x512xf32>,
    } else {
    }
    return
  }
  func.func @transform_0(%arg0: i32, %arg1: i32, %arg2: i32) -> (i32, i32) {
    %c0_i32 = arith.constant 0 : i32
    return %arg0, %arg2 : i32, i32
  }
  func.func @transform_1(%arg0: i32, %arg1: i32, %arg2: i32) -> (i32, i32) {
    %c0_i32 = arith.constant 0 : i32
    return %arg2, %arg1 : i32, i32
  }
  func.func @transform_2(%arg0: i32, %arg1: i32, %arg2: i32) -> (i32, i32) {
    %c0_i32 = arith.constant 0 : i32
    return %arg0, %arg1 : i32, i32
  }
  func.func @transform_3(%arg0: i32, %arg1: i32, %arg2: i32) -> (i32, i32) {
    %c0_i32 = arith.constant 0 : i32
    return %arg0, %arg1 : i32, i32
  }
  func.func @transform_4(%arg0: i32, %arg1: i32, %arg2: i32) -> (i32, i32) {
    %c0_i32 = arith.constant 0 : i32
    return %arg0, %arg1 : i32, i32
  }
}

module attributes {stable_mosaic.version = 11 : i64} {
  func.func @_matmul_stats_kernel(%arg0: i32, %arg1: i32, %arg2: i32, %arg3: memref<8x512xbf16, #tpu.memory_space<vmem>>, %arg4: memref<512x128xbf16, #tpu.memory_space<vmem>>, %arg5: memref<8x128xf32, #tpu.memory_space<vmem>>, %arg6: memref<8x128xf32, #tpu.memory_space<vmem>>, %arg7: memref<8x128xf32, #tpu.memory_space<vmem>>) attributes {dimension_semantics = [#tpu.dimension_semantics<parallel>, #tpu.dimension_semantics<parallel>, #tpu.dimension_semantics<arbitrary>], iteration_bounds = array<i64: 1, 1, 1>, scalar_prefetch = 0 : i64, scratch_operands = 0 : i64, tpu.core_type = #tpu.core_type<tc>, window_params = [{transform_indices = @transform_0, window_bounds = array<i64: 8, 512>}, {transform_indices = @transform_1, window_bounds = array<i64: 512, 128>}, {transform_indices = @transform_2, window_bounds = array<i64: 8, 128>}, {transform_indices = @transform_3, window_bounds = array<i64: 8, 128>}, {transform_indices = @transform_4, window_bounds = array<i64: 8, 128>}]} {
    %c0_i32 = arith.constant 0 : i32
    %0 = arith.cmpi eq, %arg2, %c0_i32 : i32
    %1 = arith.extui %0 : i1 to i32
    %c0_i32_0 = arith.constant 0 : i32
    %2 = arith.cmpi ne, %1, %c0_i32_0 : i32
    scf.if %2 {
      %cst_10 = arith.constant 0.000000e+00 : f32
      %12 = vector.broadcast %cst_10 : f32 to vector<8x128xf32>
      %c0_11 = arith.constant 0 : index
      %c0_12 = arith.constant 0 : index
      %13 = vector.load %arg5[%c0_11, %c0_12] : memref<8x128xf32, #tpu.memory_space<vmem>>, vector<8x128xf32>
      tpu.vector_store %arg5[%c0_11, %c0_12], %12 {strides = array<i32>} : memref<8x128xf32, #tpu.memory_space<vmem>>, vector<8x128xf32>,
    } else {
    }
    %c0 = arith.constant 0 : index
    %c0_1 = arith.constant 0 : index
    %3 = vector.load %arg5[%c0, %c0_1] : memref<8x128xf32, #tpu.memory_space<vmem>>, vector<8x128xf32>
    %c0_2 = arith.constant 0 : index
    %c0_3 = arith.constant 0 : index
    %4 = vector.load %arg3[%c0_2, %c0_3] : memref<8x512xbf16, #tpu.memory_space<vmem>>, vector<8x512xbf16>
    %c0_4 = arith.constant 0 : index
    %c0_5 = arith.constant 0 : index
    %5 = vector.load %arg4[%c0_4, %c0_5] : memref<512x128xbf16, #tpu.memory_space<vmem>>, vector<512x128xbf16>
    %cst = arith.constant dense<0.000000e+00> : vector<8x128xf32>
    %6 = tpu.matmul %4, %5, %cst {dimension_numbers = #tpu.dot_dimension_numbers<[1], [0], [0], [1], [0, 0, 1, 1], [], []>} : vector<8x512xbf16>, vector<512x128xbf16>, vector<8x128xf32> -> vector<8x128xf32>
    %7 = arith.addf %3, %6 : vector<8x128xf32>
    %c0_6 = arith.constant 0 : index
    %c0_7 = arith.constant 0 : index
    %8 = vector.load %arg5[%c0_6, %c0_7] : memref<8x128xf32, #tpu.memory_space<vmem>>, vector<8x128xf32>
    tpu.vector_store %arg5[%c0_6, %c0_7], %7 {strides = array<i32>} : memref<8x128xf32, #tpu.memory_space<vmem>>, vector<8x128xf32>,
    %c0_i32_8 = arith.constant 0 : i32
    %9 = arith.cmpi eq, %arg2, %c0_i32_8 : i32
    %10 = arith.extui %9 : i1 to i32
    %c0_i32_9 = arith.constant 0 : i32
    %11 = arith.cmpi ne, %10, %c0_i32_9 : i32
    scf.if %11 {
      %c0_10 = arith.constant 0 : index
      %c0_11 = arith.constant 0 : index
      %12 = vector.load %arg5[%c0_10, %c0_11] : memref<8x128xf32, #tpu.memory_space<vmem>>, vector<8x128xf32>
      %cst_12 = arith.constant dense<0.000000e+00> : vector<128xf32>
      %13 = vector.multi_reduction <add>, %12, %cst_12 [0] : vector<8x128xf32> to vector<128xf32>
      %14 = vector.shape_cast %13 : vector<128xf32> to vector<1x128xf32>
      %15 = arith.mulf %12, %12 : vector<8x128xf32>
      %cst_13 = arith.constant dense<0.000000e+00> : vector<128xf32>
      %16 = vector.multi_reduction <add>, %15, %cst_13 [0] : vector<8x128xf32> to vector<128xf32>
      %17 = vector.shape_cast %16 : vector<128xf32> to vector<1x128xf32>
      %18 = vector.shape_cast %14 : vector<1x128xf32> to vector<1x128xf32>
      %19 = vector.broadcast %18 : vector<1x128xf32> to vector<8x128xf32>
      %c0_14 = arith.constant 0 : index
      %c0_15 = arith.constant 0 : index
      %20 = vector.load %arg6[%c0_14, %c0_15] : memref<8x128xf32, #tpu.memory_space<vmem>>, vector<8x128xf32>
      tpu.vector_store %arg6[%c0_14, %c0_15], %19 {strides = array<i32>} : memref<8x128xf32, #tpu.memory_space<vmem>>, vector<8x128xf32>,
      %21 = vector.shape_cast %17 : vector<1x128xf32> to vector<1x128xf32>
      %22 = vector.broadcast %21 : vector<1x128xf32> to vector<8x128xf32>
      %c0_16 = arith.constant 0 : index
      %c0_17 = arith.constant 0 : index
      %23 = vector.load %arg7[%c0_16, %c0_17] : memref<8x128xf32, #tpu.memory_space<vmem>>, vector<8x128xf32>
      tpu.vector_store %arg7[%c0_16, %c0_17], %22 {strides = array<i32>} : memref<8x128xf32, #tpu.memory_space<vmem>>, vector<8x128xf32>,
    } else {
    }
    return
  }
  func.func @transform_0(%arg0: i32, %arg1: i32, %arg2: i32) -> (i32, i32) {
    %c0_i32 = arith.constant 0 : i32
    return %arg0, %arg2 : i32, i32
  }
  func.func @transform_1(%arg0: i32, %arg1: i32, %arg2: i32) -> (i32, i32) {
    %c0_i32 = arith.constant 0 : i32
    return %arg2, %arg1 : i32, i32
  }
  func.func @transform_2(%arg0: i32, %arg1: i32, %arg2: i32) -> (i32, i32) {
    %c0_i32 = arith.constant 0 : i32
    return %arg0, %arg1 : i32, i32
  }
  func.func @transform_3(%arg0: i32, %arg1: i32, %arg2: i32) -> (i32, i32) {
    %c0_i32 = arith.constant 0 : i32
    return %arg0, %arg1 : i32, i32
  }
  func.func @transform_4(%arg0: i32, %arg1: i32, %arg2: i32) -> (i32, i32) {
    %c0_i32 = arith.constant 0 : i32
    return %arg0, %arg1 : i32, i32
  }
}

module attributes {stable_mosaic.version = 11 : i64} {
  func.func @_sba_res_kernel(%arg0: i32, %arg1: i32, %arg2: memref<8x512xf32, #tpu.memory_space<vmem>>, %arg3: memref<1x512xf32, #tpu.memory_space<vmem>>, %arg4: memref<1x512xf32, #tpu.memory_space<vmem>>, %arg5: memref<8x512xf32, #tpu.memory_space<vmem>>, %arg6: memref<8x512xf32, #tpu.memory_space<vmem>>) attributes {dimension_semantics = [#tpu.dimension_semantics<parallel>, #tpu.dimension_semantics<parallel>], iteration_bounds = array<i64: 1, 1>, scalar_prefetch = 0 : i64, scratch_operands = 0 : i64, tpu.core_type = #tpu.core_type<tc>, window_params = [{transform_indices = @transform_0, window_bounds = array<i64: 8, 512>}, {transform_indices = @transform_1, window_bounds = array<i64: 1, 512>}, {transform_indices = @transform_2, window_bounds = array<i64: 1, 512>}, {transform_indices = @transform_3, window_bounds = array<i64: 8, 512>}, {transform_indices = @transform_4, window_bounds = array<i64: 8, 512>}]} {
    %c0 = arith.constant 0 : index
    %c0_0 = arith.constant 0 : index
    %0 = vector.load %arg2[%c0, %c0_0] : memref<8x512xf32, #tpu.memory_space<vmem>>, vector<8x512xf32>
    %c0_1 = arith.constant 0 : index
    %c0_2 = arith.constant 0 : index
    %1 = vector.load %arg3[%c0_1, %c0_2] : memref<1x512xf32, #tpu.memory_space<vmem>>, vector<1x512xf32>
    %2 = vector.broadcast %1 : vector<1x512xf32> to vector<8x512xf32>
    %3 = arith.mulf %0, %2 : vector<8x512xf32>
    %c0_3 = arith.constant 0 : index
    %c0_4 = arith.constant 0 : index
    %4 = vector.load %arg4[%c0_3, %c0_4] : memref<1x512xf32, #tpu.memory_space<vmem>>, vector<1x512xf32>
    %5 = vector.broadcast %4 : vector<1x512xf32> to vector<8x512xf32>
    %6 = arith.addf %3, %5 : vector<8x512xf32>
    %c0_5 = arith.constant 0 : index
    %c0_6 = arith.constant 0 : index
    %7 = vector.load %arg5[%c0_5, %c0_6] : memref<8x512xf32, #tpu.memory_space<vmem>>, vector<8x512xf32>
    %8 = arith.addf %6, %7 : vector<8x512xf32>
    %cst = arith.constant 0.000000e+00 : f32
    %9 = vector.broadcast %cst : f32 to vector<8x512xf32>
    %10 = arith.maximumf %8, %9 : vector<8x512xf32>
    %c0_7 = arith.constant 0 : index
    %c0_8 = arith.constant 0 : index
    %11 = vector.load %arg6[%c0_7, %c0_8] : memref<8x512xf32, #tpu.memory_space<vmem>>, vector<8x512xf32>
    tpu.vector_store %arg6[%c0_7, %c0_8], %10 {strides = array<i32>} : memref<8x512xf32, #tpu.memory_space<vmem>>, vector<8x512xf32>,
    return
  }
  func.func @transform_0(%arg0: i32, %arg1: i32) -> (i32, i32) {
    %c0_i32 = arith.constant 0 : i32
    return %arg0, %arg1 : i32, i32
  }
  func.func @transform_1(%arg0: i32, %arg1: i32) -> (i32, i32) {
    %c0_i32 = arith.constant 0 : i32
    %c0_i32_0 = arith.constant 0 : i32
    return %c0_i32, %arg1 : i32, i32
  }
  func.func @transform_2(%arg0: i32, %arg1: i32) -> (i32, i32) {
    %c0_i32 = arith.constant 0 : i32
    %c0_i32_0 = arith.constant 0 : i32
    return %c0_i32, %arg1 : i32, i32
  }
  func.func @transform_3(%arg0: i32, %arg1: i32) -> (i32, i32) {
    %c0_i32 = arith.constant 0 : i32
    return %arg0, %arg1 : i32, i32
  }
  func.func @transform_4(%arg0: i32, %arg1: i32) -> (i32, i32) {
    %c0_i32 = arith.constant 0 : i32
    return %arg0, %arg1 : i32, i32
  }
}

</mosaic_0001>

<bundles_post_ra>
// kernel: resnet_tpb_forward.42
= control target key start
LH: loop header
LB: loop body
LE: loop exit
PB: predicated region body
PF: predicated region fallthrough
CT: control target
= control target key end

     0   :  { %s592_s12 = smov 0   ;;  %s594_s13 = smov 0   ;;  %s767_s0 = inlined_call_operand.vmem [shape: f32[512,128], index: 0, kind: input, shape index: {}]   ;;  %s768_s1 = inlined_call_operand.vmem [shape: f32[1,128], index: 1, kind: input, shape index: {}]   ;;  %s769_s2 = inlined_call_operand.vmem [shape: f32[1,128], index: 2, kind: input, shape index: {}]   ;;  %s770_s3 = inlined_call_operand.vmem [shape: f32[512,128], index: 3, kind: output, shape index: {}]  }
   0x1   :  { %s596_s14 = smov 0  }
   0x2 LB: > { %s25_s15 = sadd.s32 1, %s566_s13  ;;  %p515_p0 = scmp.ge.s32.totalorder %s570_s14, 1  ;;  %s570_s14 = sphi %s596_s14, %s13_s14   ;;  %s566_s13 = sphi %s594_s13, %s772_s13   ;;  %s562_s12 = sphi %s592_s12, %s771_s12  }
   0x3   : > { %p27_p1 = scmp.ge.s32.totalorder %s25_s15, 2  ;;  %p173_p2 = scmp.lt.s32.totalorder %s570_s14, 3 }
   0x5   : > { %s774_s15 = smov (%p27_p1, %s25_s15), 0  ;;  %p174_p3 = pnand %p515_p0, %p173_p2 }
   0x6   : > { %s516_s16 = sshll.u32 (!%p174_p3), %s562_s12, 5  ;;  %v613_v0 = vld [vmem:[%s768_s1] ss:$0 sm:$0xff] (!%p174_p3) }
   0x7   : > { %177 = sbr.rel (%p174_p3) target bundleno = 47 (0x2f), region = 32  ;;  %p210_p4 = scmp.lt.s32.totalorder (!%p174_p3), %s516_s16, 63  ;;  %v623_v1 = vld [vmem:[%s769_s2] ss:$0 sm:$0xff] (!%p174_p3) }
   0xe   : > { %s776_s16 = smov (!%p210_p4, %s516_s16), 63 }
   0xf   : > { %s517_s17 = sshll.u32 %s776_s16, 3 }
  0x10   : > { %s618_s22 = scalar_lea.vmem %s767_s0, %s517_s17  ;;  %s646_s27 = scalar_lea.vmem %s770_s3, %s517_s17 }
  0x11   : > { %v233_v2 = vld [vmem:[%s618_s22] sm:$0xff]  ;;  %v234_v3 = vld [vmem:[%s618_s22 + $0x8] sm:$0xff]  ;;  %v235_v4 = vld [vmem:[%s618_s22 + $0x10] sm:$0xff] }
  0x12   : > { %v272_v5 = vmul.f32 %v613_v0, %v233_v2  ;;  %v273_v6 = vmul.f32 %v613_v0, %v234_v3  ;;  %v274_v7 = vmul.f32 %v613_v0, %v235_v4  ;;  %v236_v8 = vld [vmem:[%s618_s22 + $0x18] sm:$0xff]  ;;  %v237_v9 = vld [vmem:[%s618_s22 + $0x20] sm:$0xff]  ;;  %v238_v10 = vld [vmem:[%s618_s22 + $0x28] sm:$0xff] }
  0x13   : > { %v275_v11 = vmul.f32 %v613_v0, %v236_v8  ;;  %v276_v12 = vmul.f32 %v613_v0, %v237_v9  ;;  %v277_v13 = vmul.f32 %v613_v0, %v238_v10  ;;  %v239_v14 = vld [vmem:[%s618_s22 + $0x30] sm:$0xff]  ;;  %v240_v15 = vld [vmem:[%s618_s22 + $0x38] sm:$0xff]  ;;  %v241_v24 = vld [vmem:[%s618_s22 + $0x40] sm:$0xff] }
  0x14   : > { %v311_v16 = vadd.f32 %v623_v1, %v272_v5  ;;  %v312_v17 = vadd.f32 %v623_v1, %v273_v6  ;;  %v313_v18 = vadd.f32 %v623_v1, %v274_v7  ;;  %v278_v19 = vmul.f32 %v613_v0, %v239_v14  ;;  %v242_v25 = vld [vmem:[%s618_s22 + $0x48] sm:$0xff]  ;;  %v243_v26 = vld [vmem:[%s618_s22 + $0x50] sm:$0xff]  ;;  %v244_v31 = vld [vmem:[%s618_s22 + $0x58] sm:$0xff] }
  0x15   : > { %v314_v20 = vadd.f32 %v623_v1, %v275_v11  ;;  %v315_v21 = vadd.f32 %v623_v1, %v276_v12  ;;  %v316_v22 = vadd.f32 %v623_v1, %v277_v13  ;;  %v279_v23 = vmul.f32 %v613_v0, %v240_v15  ;;  %v245_v32 = vld [vmem:[%s618_s22 + $0x60] sm:$0xff]  ;;  %v246_v33 = vld [vmem:[%s618_s22 + $0x68] sm:$0xff]  ;;  %v247_v38 = vld [vmem:[%s618_s22 + $0x70] sm:$0xff] }
  0x16   : > { %v343_v27 = vmax.f32 %v311_v16, 0.0  ;;  %v344_v28 = vmax.f32 %v312_v17, 0.0  ;;  %v345_v29 = vmax.f32 %v313_v18, 0.0  ;;  %v317_v30 = vadd.f32 %v623_v1, %v278_v19  ;;  %v248_v43 = vld [vmem:[%s618_s22 + $0x78] sm:$0xff]  ;;  %v249_v56 = vld [vmem:[%s618_s22 + $0x80] sm:$0xff]  ;;  %v250_v57 = vld [vmem:[%s618_s22 + $0x88] sm:$0xff] }
  0x17   : > { %v346_v34 = vmax.f32 %v314_v20, 0.0  ;;  %v347_v35 = vmax.f32 %v315_v21, 0.0  ;;  %v348_v36 = vmax.f32 %v316_v22, 0.0  ;;  %v318_v37 = vadd.f32 %v623_v1, %v279_v23  ;;  %v251_v58 = vld [vmem:[%s618_s22 + $0x90] sm:$0xff]  ;;  %v252_v63 = vld [vmem:[%s618_s22 + $0x98] sm:$0xff]  ;;  %v253_v2 = vld [vmem:[%s618_s22 + $0xa0] sm:$0xff] }
  0x18   : > { %375 = vst [vmem:[%s646_s27] sm:$0xff] %v343_v27  ;;  %376 = vst [vmem:[%s646_s27 + $0x8] sm:$0xff] %v344_v28  ;;  %v349_v39 = vmax.f32 %v317_v30, 0.0  ;;  %v280_v40 = vmul.f32 %v613_v0, %v241_v24  ;;  %v281_v41 = vmul.f32 %v613_v0, %v242_v25  ;;  %v282_v42 = vmul.f32 %v613_v0, %v243_v26  ;;  %v254_v3 = vld [vmem:[%s618_s22 + $0xa8] sm:$0xff]  ;;  %v255_v8 = vld [vmem:[%s618_s22 + $0xb0] sm:$0xff] }
  0x19   : > { %377 = vst [vmem:[%s646_s27 + $0x10] sm:$0xff] %v345_v29  ;;  %378 = vst [vmem:[%s646_s27 + $0x18] sm:$0xff] %v346_v34  ;;  %v350_v44 = vmax.f32 %v318_v37, 0.0  ;;  %v283_v45 = vmul.f32 %v613_v0, %v244_v31  ;;  %v284_v46 = vmul.f32 %v613_v0, %v245_v32  ;;  %v285_v47 = vmul.f32 %v613_v0, %v246_v33  ;;  %v256_v13 = vld [vmem:[%s618_s22 + $0xb8] sm:$0xff]  ;;  %v257_v26 = vld [vmem:[%s618_s22 + $0xc0] sm:$0xff] }
  0x1a   : > { %379 = vst [vmem:[%s646_s27 + $0x20] sm:$0xff] %v347_v35  ;;  %380 = vst [vmem:[%s646_s27 + $0x28] sm:$0xff] %v348_v36  ;;  %v319_v48 = vadd.f32 %v623_v1, %v280_v40  ;;  %v320_v49 = vadd.f32 %v623_v1, %v281_v41  ;;  %v321_v50 = vadd.f32 %v623_v1, %v282_v42  ;;  %v258_v27 = vld [vmem:[%s618_s22 + $0xc8] sm:$0xff]  ;;  %v259_v28 = vld [vmem:[%s618_s22 + $0xd0] sm:$0xff] }
  0x1b   : > { %381 = vst [vmem:[%s646_s27 + $0x30] sm:$0xff] %v349_v39  ;;  %v286_v51 = vmul.f32 %v613_v0, %v247_v38  ;;  %382 = vst [vmem:[%s646_s27 + $0x38] sm:$0xff] %v350_v44  ;;  %v322_v52 = vadd.f32 %v623_v1, %v283_v45  ;;  %v323_v53 = vadd.f32 %v623_v1, %v284_v46  ;;  %v260_v33 = vld [vmem:[%s618_s22 + $0xd8] sm:$0xff]  ;;  %v261_v34 = vld [vmem:[%s618_s22 + $0xe0] sm:$0xff] }
  0x1c   : > { %v324_v54 = vadd.f32 %v623_v1, %v285_v47  ;;  %v287_v55 = vmul.f32 %v613_v0, %v248_v43  ;;  %v351_v59 = vmax.f32 %v319_v48, 0.0  ;;  %v352_v60 = vmax.f32 %v320_v49, 0.0  ;;  %v262_v35 = vld [vmem:[%s618_s22 + $0xe8] sm:$0xff]  ;;  %v263_v40 = vld [vmem:[%s618_s22 + $0xf0] sm:$0xff]  ;;  %v264_v45 = vld [vmem:[%s618_s22 + $0xf8] sm:$0xff] }
  0x1d   : > { %v353_v61 = vmax.f32 %v321_v50, 0.0  ;;  %v325_v62 = vadd.f32 %v623_v1, %v286_v51  ;;  %v354_v4 = vmax.f32 %v322_v52, 0.0  ;;  %v355_v5 = vmax.f32 %v323_v53, 0.0 }
  0x1e   : > { %v356_v6 = vmax.f32 %v324_v54, 0.0  ;;  %v326_v7 = vadd.f32 %v623_v1, %v287_v55  ;;  %383 = vst [vmem:[%s646_s27 + $0x40] sm:$0xff] %v351_v59  ;;  %384 = vst [vmem:[%s646_s27 + $0x48] sm:$0xff] %v352_v60  ;;  %v288_v10 = vmul.f32 %v613_v0, %v249_v56  ;;  %v289_v11 = vmul.f32 %v613_v0, %v250_v57 }
  0x1f   : > { %385 = vst [vmem:[%s646_s27 + $0x50] sm:$0xff] %v353_v61  ;;  %v357_v9 = vmax.f32 %v325_v62, 0.0  ;;  %v290_v12 = vmul.f32 %v613_v0, %v251_v58  ;;  %386 = vst [vmem:[%s646_s27 + $0x58] sm:$0xff] %v354_v4  ;;  %v291_v15 = vmul.f32 %v613_v0, %v252_v63  ;;  %v292_v16 = vmul.f32 %v613_v0, %v253_v2 }
  0x20   : > { %387 = vst [vmem:[%s646_s27 + $0x60] sm:$0xff] %v355_v5  ;;  %388 = vst [vmem:[%s646_s27 + $0x68] sm:$0xff] %v356_v6  ;;  %v358_v14 = vmax.f32 %v326_v7, 0.0  ;;  %v293_v17 = vmul.f32 %v613_v0, %v254_v3  ;;  %v327_v18 = vadd.f32 %v623_v1, %v288_v10  ;;  %v328_v19 = vadd.f32 %v623_v1, %v289_v11 }
  0x21   : > { %389 = vst [vmem:[%s646_s27 + $0x70] sm:$0xff] %v357_v9  ;;  %v329_v20 = vadd.f32 %v623_v1, %v290_v12  ;;  %v294_v21 = vmul.f32 %v613_v0, %v255_v8  ;;  %v330_v22 = vadd.f32 %v623_v1, %v291_v15  ;;  %v331_v23 = vadd.f32 %v623_v1, %v292_v16 }
  0x22   : > { %390 = vst [vmem:[%s646_s27 + $0x78] sm:$0xff] %v358_v14  ;;  %v332_v24 = vadd.f32 %v623_v1, %v293_v17  ;;  %v295_v25 = vmul.f32 %v613_v0, %v256_v13  ;;  %v359_v29 = vmax.f32 %v327_v18, 0.0  ;;  %v360_v30 = vmax.f32 %v328_v19, 0.0 }
  0x23   : > { %v361_v31 = vmax.f32 %v329_v20, 0.0  ;;  %v333_v32 = vadd.f32 %v623_v1, %v294_v21  ;;  %v362_v36 = vmax.f32 %v330_v22, 0.0  ;;  %v363_v37 = vmax.f32 %v331_v23, 0.0 }
  0x24   : > { %v364_v38 = vmax.f32 %v332_v24, 0.0  ;;  %v334_v39 = vadd.f32 %v623_v1, %v295_v25  ;;  %391 = vst [vmem:[%s646_s27 + $0x80] sm:$0xff] %v359_v29  ;;  %392 = vst [vmem:[%s646_s27 + $0x88] sm:$0xff] %v360_v30  ;;  %v296_v42 = vmul.f32 %v613_v0, %v257_v26  ;;  %v297_v43 = vmul.f32 %v613_v0, %v258_v27 }
  0x25   : > { %393 = vst [vmem:[%s646_s27 + $0x90] sm:$0xff] %v361_v31  ;;  %v365_v41 = vmax.f32 %v333_v32, 0.0  ;;  %v298_v44 = vmul.f32 %v613_v0, %v259_v28  ;;  %394 = vst [vmem:[%s646_s27 + $0x98] sm:$0xff] %v362_v36  ;;  %v299_v47 = vmul.f32 %v613_v0, %v260_v33  ;;  %v300_v48 = vmul.f32 %v613_v0, %v261_v34 }
  0x26   : > { %395 = vst [vmem:[%s646_s27 + $0xa0] sm:$0xff] %v363_v37  ;;  %396 = vst [vmem:[%s646_s27 + $0xa8] sm:$0xff] %v364_v38  ;;  %v366_v46 = vmax.f32 %v334_v39, 0.0  ;;  %v301_v49 = vmul.f32 %v613_v0, %v262_v35  ;;  %v335_v50 = vadd.f32 %v623_v1, %v296_v42  ;;  %v336_v51 = vadd.f32 %v623_v1, %v297_v43 }
  0x27   : > { %397 = vst [vmem:[%s646_s27 + $0xb0] sm:$0xff] %v365_v41  ;;  %v337_v52 = vadd.f32 %v623_v1, %v298_v44  ;;  %v302_v53 = vmul.f32 %v613_v0, %v263_v40  ;;  %v338_v54 = vadd.f32 %v623_v1, %v299_v47  ;;  %v339_v55 = vadd.f32 %v623_v1, %v300_v48 }
  0x28   : > { %398 = vst [vmem:[%s646_s27 + $0xb8] sm:$0xff] %v366_v46  ;;  %v340_v56 = vadd.f32 %v623_v1, %v301_v49  ;;  %v303_v57 = vmul.f32 %v613_v0, %v264_v45  ;;  %v367_v58 = vmax.f32 %v335_v50, 0.0  ;;  %v368_v59 = vmax.f32 %v336_v51, 0.0 }
  0x29   : > { %v369_v60 = vmax.f32 %v337_v52, 0.0  ;;  %v341_v61 = vadd.f32 %v623_v1, %v302_v53  ;;  %v370_v62 = vmax.f32 %v338_v54, 0.0  ;;  %v371_v63 = vmax.f32 %v339_v55, 0.0 }
  0x2a   : > { %v372_v2 = vmax.f32 %v340_v56, 0.0  ;;  %v342_v3 = vadd.f32 %v623_v1, %v303_v57  ;;  %399 = vst [vmem:[%s646_s27 + $0xc0] sm:$0xff] %v367_v58  ;;  %400 = vst [vmem:[%s646_s27 + $0xc8] sm:$0xff] %v368_v59 }
  0x2b   : > { %401 = vst [vmem:[%s646_s27 + $0xd0] sm:$0xff] %v369_v60  ;;  %v373_v4 = vmax.f32 %v341_v61, 0.0  ;;  %402 = vst [vmem:[%s646_s27 + $0xd8] sm:$0xff] %v370_v62 }
  0x2c   : > { %403 = vst [vmem:[%s646_s27 + $0xe0] sm:$0xff] %v371_v63  ;;  %404 = vst [vmem:[%s646_s27 + $0xe8] sm:$0xff] %v372_v2  ;;  %v374_v0 = vmax.f32 %v342_v3, 0.0 }
  0x2d   : > { %405 = vst [vmem:[%s646_s27 + $0xf0] sm:$0xff] %v373_v4 }
  0x2e   : > { %406 = vst [vmem:[%s646_s27 + $0xf8] sm:$0xff] %v374_v0 }
  0x2f PF: > { %s13_s14 = sadd.s32 1, %s570_s14   ;;  %s771_s12 = smov %s566_s13 }
  0x30   : > { %p10_p5 = scmp.ge.s32.totalorder %s13_s14, 4   ;;  %s772_s13 = smov %s774_s15 }
  0x32   :  { %12 = sbr.rel (!%p10_p5) target bundleno = 2 (0x2), region = 68 }

// kernel: resnet_tpb_forward.41
= control target key start
LH: loop header
LB: loop body
LE: loop exit
PB: predicated region body
PF: predicated region fallthrough
CT: control target
= control target key end

     0   :  { %s1588_s15 = smov 0   ;;  %s1590_s16 = smov 0   ;;  %s1839_s0 = inlined_call_operand.vmem [shape: bf16[512,256], index: 0, kind: input, shape index: {}]   ;;  %s1840_s1 = inlined_call_operand.vmem [shape: bf16[256,128], index: 1, kind: input, shape index: {}]   ;;  %s1841_s2 = inlined_call_operand.vmem [shape: f32[512,128], index: 2, kind: output, shape index: {0}]   ;;  %s1842_s3 = inlined_call_operand.vmem [shape: f32[16,128], index: 3, kind: output, shape index: {1}]   ;;  %s1843_s4 = inlined_call_operand.vmem [shape: f32[16,128], index: 4, kind: output, shape index: {2}]  }
   0x1   :  { %s1592_s17 = smov 0  }
   0x2 LB: > { %s34_s18 = sadd.s32 1, %s1557_s16  ;;  %p1263_p0 = scmp.ge.s32.totalorder %s1561_s17, 1  ;;  %s1561_s17 = sphi %s1592_s17, %s15_s17   ;;  %s1557_s16 = sphi %s1590_s16, %s1845_s16   ;;  %s1553_s15 = sphi %s1588_s15, %s1844_s15  }
   0x3   : > { %p36_p1 = scmp.ge.s32.totalorder %s34_s18, 2  ;;  %p217_p2 = scmp.lt.s32.totalorder %s1561_s17, 3 }
   0x5   : > { %s1847_s18 = smov (%p36_p1, %s34_s18), 0  ;;  %p218_p3 = pnand %p1263_p0, %p217_p2 }
   0x6   : > { %v1475_v0 = vld [vmem:[%s1840_s1 + $0x40] sm:$0xff] (!%p218_p3)   ;;  %s1264_s21 = sshll.u32 (!%p218_p3), %s1553_s15, 5  ;;  %v1477_v2 = vld [vmem:[%s1840_s1 + $0x48] sm:$0xff] (!%p218_p3)   ;;  %v1479_v4 = vld [vmem:[%s1840_s1 + $0x50] sm:$0xff] (!%p218_p3)   ;;  %p303_p5 = scmp.lt.s32.totalorder (!%p218_p3), %s1553_s15, 1 }
   0x7   : > { %221 = sbr.rel (%p218_p3) target bundleno = 361 (0x169), region = 28  ;;  %v1476_v1 = vld [vmem:[%s1840_s1] sm:$0xff] (!%p218_p3)   ;;  %1322 = vmatprep.subr.bf16.mxu0 (!%p218_p3), %v1475_v0  ;;  %1434 = vmatprep.subr.bf16.mxu1 (!%p218_p3), %v1475_v0  ;;  %v1478_v3 = vld [vmem:[%s1840_s1 + $0x8] sm:$0xff] (!%p218_p3)   ;;  %p275_p4 = scmp.lt.s32.totalorder (!%p218_p3), %s1264_s21, 63  ;;  %v1480_v5 = vld [vmem:[%s1840_s1 + $0x10] sm:$0xff] (!%p218_p3)  }
   0x8   : > { %1323 = vmatpush3.bf16.msra.mxu0 (!%p218_p3), %v1476_v1  ;;  %1442 = vmatpush3.bf16.msra.mxu1 (!%p218_p3), %v1476_v1  ;;  %v1481_v6 = vld [vmem:[%s1840_s1 + $0x58] sm:$0xff] (!%p218_p3)   ;;  %v1483_v8 = vld [vmem:[%s1840_s1 + $0x60] sm:$0xff] (!%p218_p3)   ;;  %v1485_v10 = vld [vmem:[%s1840_s1 + $0x68] sm:$0xff] (!%p218_p3)  }
   0x9   : > { %1324 = vmatprep.subr.bf16.mxu0 (!%p218_p3), %v1477_v2  ;;  %1435 = vmatprep.subr.bf16.mxu1 (!%p218_p3), %v1477_v2  ;;  %v1482_v7 = vld [vmem:[%s1840_s1 + $0x18] sm:$0xff] (!%p218_p3)   ;;  %v1484_v9 = vld [vmem:[%s1840_s1 + $0x20] sm:$0xff] (!%p218_p3)   ;;  %v1486_v12 = vld [vmem:[%s1840_s1 + $0x28] sm:$0xff] (!%p218_p3)  }
   0xa   : > { %v1487_v13 = vld [vmem:[%s1840_s1 + $0x70] sm:$0xff] (!%p218_p3)   ;;  %v1489_v16 = vld [vmem:[%s1840_s1 + $0x78] sm:$0xff] (!%p218_p3)  }
   0xb   : > { %v1488_v15 = vld [vmem:[%s1840_s1 + $0x30] sm:$0xff] (!%p218_p3)   ;;  %v1490_v17 = vld [vmem:[%s1840_s1 + $0x38] sm:$0xff] (!%p218_p3)  }
   0xc   : > { %1325 = vmatpush3.bf16.msra.mxu0 (!%p218_p3), %v1478_v3  ;;  %1443 = vmatpush3.bf16.msra.mxu1 (!%p218_p3), %v1478_v3 }
   0xd   : > { %1326 = vmatprep.subr.bf16.mxu0 (!%p218_p3), %v1479_v4  ;;  %1436 = vmatprep.subr.bf16.mxu1 (!%p218_p3), %v1479_v4 }
   0xe   : > { %s1849_s21 = smov (!%p275_p4, %s1264_s21), 63  ;;  %s1851_s15 = smov (!%p303_p5, %s1553_s15), 1 }
   0xf   : > { %s1321_s10 = sshll.u32 %s1849_s21, 3  ;;  %s1269_s21 = sshll.u32 %s1851_s15, 3 }
  0x10   : > { %1327 = vmatpush3.bf16.msra.mxu0 %v1480_v5  ;;  %1444 = vmatpush3.bf16.msra.mxu1 %v1480_v5  ;;  %s1644_s19 = scalar_lea.vmem %s1839_s0, %s1321_s10  ;;  %s1704_s12 = scalar_lea.vmem %s1841_s2, %s1321_s10 }
  0x11   : > { %1328 = vmatprep.subr.bf16.mxu0 %v1481_v6  ;;  %1437 = vmatprep.subr.bf16.mxu1 %v1481_v6  ;;  %v1493_v11 = vld [vmem:[%s1644_s19 + $0x4] ss:$8 sps:$4 sm:$0xff]   ;;  %v1491_v18 = vld [vmem:[%s1644_s19] ss:$8 sps:$4 sm:$0xff]   ;;  %v1494_v19 = vld [vmem:[%s1644_s19 + $0x14] ss:$8 sps:$4 sm:$0xff]   ;;  %s309_s14 = scalar_lea.vmem %s1842_s3, %s1269_s21  ;;  %s316_s22 = scalar_lea.vmem %s1843_s4, %s1269_s21 }
  0x12   : > { %738 = vmatprep.mubr.bf16.mxu0 %v1493_v11  ;;  %v1505_v14 = vld [vmem:[%s1644_s19 + $0x84] ss:$8 sps:$4 sm:$0xff]   ;;  %v1503_v20 = vld [vmem:[%s1644_s19 + $0x80] ss:$8 sps:$4 sm:$0xff]   ;;  %v1509_v21 = vld [vmem:[%s1644_s19 + $0x94] ss:$8 sps:$4 sm:$0xff]  }
  0x13   : > { %802 = vmatprep.mubr.bf16.mxu1 %v1505_v14  ;;  %v1496_v22 = vld [vmem:[%s1644_s19 + $0x10] ss:$8 sps:$4 sm:$0xff]   ;;  %v1497_v23 = vld [vmem:[%s1644_s19 + $0x24] ss:$8 sps:$4 sm:$0xff]   ;;  %v1499_v26 = vld [vmem:[%s1644_s19 + $0x20] ss:$8 sps:$4 sm:$0xff]  }
  0x14   : > { %1329 = vmatpush3.bf16.msra.mxu0 %v1482_v7  ;;  %1445 = vmatpush3.bf16.msra.mxu1 %v1482_v7  ;;  %v1511_v24 = vld [vmem:[%s1644_s19 + $0x90] ss:$8 sps:$4 sm:$0xff]   ;;  %v1515_v25 = vld [vmem:[%s1644_s19 + $0xa4] ss:$8 sps:$4 sm:$0xff]   ;;  %v1500_v27 = vld [vmem:[%s1644_s19 + $0x34] ss:$8 sps:$4 sm:$0xff]  }
  0x15   : > { %1330 = vmatprep.subr.bf16.mxu0 %v1483_v8  ;;  %1438 = vmatprep.subr.bf16.mxu1 %v1483_v8  ;;  %v1517_v28 = vld [vmem:[%s1644_s19 + $0xa0] ss:$8 sps:$4 sm:$0xff]   ;;  %v1521_v29 = vld [vmem:[%s1644_s19 + $0xb4] ss:$8 sps:$4 sm:$0xff]   ;;  %v1502_v30 = vld [vmem:[%s1644_s19 + $0x30] ss:$8 sps:$4 sm:$0xff]  }
  0x16   : > { %v1506_v31 = vld [vmem:[%s1644_s19 + $0x44] ss:$8 sps:$4 sm:$0xff]   ;;  %v1523_v32 = vld [vmem:[%s1644_s19 + $0xb0] ss:$8 sps:$4 sm:$0xff]   ;;  %v1508_v34 = vld [vmem:[%s1644_s19 + $0x40] ss:$8 sps:$4 sm:$0xff]  }
  0x17   : > { %v1527_v33 = vld [vmem:[%s1644_s19 + $0xc4] ss:$8 sps:$4 sm:$0xff]   ;;  %v1512_v35 = vld [vmem:[%s1644_s19 + $0x54] ss:$8 sps:$4 sm:$0xff]   ;;  %v1529_v36 = vld [vmem:[%s1644_s19 + $0xc0] ss:$8 sps:$4 sm:$0xff]  }
  0x18   : > { %1331 = vmatpush3.bf16.msra.mxu0 %v1484_v9  ;;  %1446 = vmatpush3.bf16.msra.mxu1 %v1484_v9  ;;  %v1530_v37 = vld [vmem:[%s1644_s19 + $0xd4] ss:$8 sps:$4 sm:$0xff]   ;;  %v1514_v38 = vld [vmem:[%s1644_s19 + $0x50] ss:$8 sps:$4 sm:$0xff]   ;;  %v1518_v39 = vld [vmem:[%s1644_s19 + $0x64] ss:$8 sps:$4 sm:$0xff]  }
  0x19   : > { %1332 = vmatprep.subr.bf16.mxu0 %v1485_v10  ;;  %1439 = vmatprep.subr.bf16.mxu1 %v1485_v10  ;;  %v1532_v40 = vld [vmem:[%s1644_s19 + $0xd0] ss:$8 sps:$4 sm:$0xff]   ;;  %v1533_v41 = vld [vmem:[%s1644_s19 + $0xe4] ss:$8 sps:$4 sm:$0xff]   ;;  %v1520_v42 = vld [vmem:[%s1644_s19 + $0x60] ss:$8 sps:$4 sm:$0xff]  }
  0x1a   : > { %v1524_v43 = vld [vmem:[%s1644_s19 + $0x74] ss:$8 sps:$4 sm:$0xff]   ;;  %v1535_v44 = vld [vmem:[%s1644_s19 + $0xe0] ss:$8 sps:$4 sm:$0xff]   ;;  %v1526_v46 = vld [vmem:[%s1644_s19 + $0x70] ss:$8 sps:$4 sm:$0xff]  }
  0x1b   : > { %v1536_v45 = vld [vmem:[%s1644_s19 + $0xf4] ss:$8 sps:$4 sm:$0xff]   ;;  %v1538_v47 = vld [vmem:[%s1644_s19 + $0xf0] ss:$8 sps:$4 sm:$0xff]  }
  0x1c   : > { %1333 = vmatpush3.bf16.msra.mxu0 %v1486_v12  ;;  %1447 = vmatpush3.bf16.msra.mxu1 %v1486_v12 }
  0x1d   : > { %1334 = vmatprep.subr.bf16.mxu0 %v1487_v13  ;;  %1440 = vmatprep.subr.bf16.mxu1 %v1487_v13 }
  0x20   : > { %1335 = vmatpush3.bf16.msra.mxu0 %v1488_v15  ;;  %1448 = vmatpush3.bf16.msra.mxu1 %v1488_v15 }
  0x21   : > { %1336 = vmatprep.subr.bf16.mxu0 %v1489_v16  ;;  %1441 = vmatprep.subr.bf16.mxu1 %v1489_v16 }
  0x24   : > { %1337 = vmatpush3.bf16.msra.mxu0 %v1490_v17  ;;  %1449 = vmatpush3.bf16.msra.mxu1 %v1490_v17 }
  0x27   : > { %739 = vmatmul.mubr.bf16.vlgmr.msra.gmra.mrb[0].mxu0 %v1491_v18  ;;  %803 = vmatmul.mubr.bf16.vlgmr.msra.gmra.mrb[0].mxu1 %v1503_v20 }
  0x28   : > { %746 = vmatprep.mubr.bf16.mxu0 %v1494_v19  ;;  %810 = vmatprep.mubr.bf16.mxu1 %v1509_v21 }
  0x2f   : > { %747 = vmatmul.mubr.bf16.gmra.mrb[4].mxu0 %v1496_v22  ;;  %811 = vmatmul.mubr.bf16.gmra.mrb[4].mxu1 %v1511_v24 }
  0x30   : > { %754 = vmatprep.mubr.bf16.mxu0 %v1497_v23  ;;  %818 = vmatprep.mubr.bf16.mxu1 %v1515_v25 }
  0x37   : > { %755 = vmatmul.mubr.bf16.gmra.mrb[8].mxu0 %v1499_v26  ;;  %819 = vmatmul.mubr.bf16.gmra.mrb[8].mxu1 %v1517_v28 }
  0x38   : > { %762 = vmatprep.mubr.bf16.mxu0 %v1500_v27  ;;  %826 = vmatprep.mubr.bf16.mxu1 %v1521_v29 }
  0x3f   : > { %763 = vmatmul.mubr.bf16.gmra.mrb[12].mxu0 %v1502_v30  ;;  %827 = vmatmul.mubr.bf16.gmra.mrb[12].mxu1 %v1523_v32 }
  0x40   : > { %770 = vmatprep.mubr.bf16.mxu0 %v1506_v31  ;;  %834 = vmatprep.mubr.bf16.mxu1 %v1527_v33 }
  0x47   : > { %771 = vmatmul.mubr.bf16.gmra.mrb[16].mxu0 %v1508_v34  ;;  %835 = vmatmul.mubr.bf16.gmra.mrb[16].mxu1 %v1529_v36 }
  0x48   : > { %778 = vmatprep.mubr.bf16.mxu0 %v1512_v35  ;;  %842 = vmatprep.mubr.bf16.mxu1 %v1530_v37 }
  0x4f   : > { %779 = vmatmul.mubr.bf16.gmra.mrb[20].mxu0 %v1514_v38  ;;  %843 = vmatmul.mubr.bf16.gmra.mrb[20].mxu1 %v1532_v40 }
  0x50   : > { %786 = vmatprep.mubr.bf16.mxu0 %v1518_v39  ;;  %850 = vmatprep.mubr.bf16.mxu1 %v1533_v41 }
  0x57   : > { %787 = vmatmul.mubr.bf16.gmra.mrb[24].mxu0 %v1520_v42  ;;  %851 = vmatmul.mubr.bf16.gmra.mrb[24].mxu1 %v1535_v44 }
  0x58   : > { %794 = vmatprep.mubr.bf16.mxu0 %v1524_v43  ;;  %858 = vmatprep.mubr.bf16.mxu1 %v1536_v45 }
  0x5f   : > { %795 = vmatmul.mubr.bf16.gmra.mrb[28].mxu0 %v1526_v46  ;;  %859 = vmatmul.mubr.bf16.gmra.mrb[28].mxu1 %v1538_v47 }
  0xfa   : > { %v1338_v48 = vpop.f32.mrb[0].mxu0  ;;  %v1386_v50 = vpop.f32.mrb[0].mxu1 }
  0xfb   : > { %v1339_v49 = vpop.f32.mrb[1].mxu0  ;;  %v1387_v53 = vpop.f32.mrb[1].mxu1 }
  0xfc   : > { %v1340_v51 = vadd.f32 %v1339_v49, %v1338_v48  ;;  %v1341_v52 = vpop.f32.mrb[2].mxu0  ;;  %v1706_v55 = vadd.f32 %v1387_v53, %v1386_v50  ;;  %v1389_v56 = vpop.f32.mrb[2].mxu1 }
  0xfd   : > { %v1342_v54 = vpop.f32.mrb[3].mxu0  ;;  %v1390_v58 = vpop.f32.mrb[3].mxu1 }
  0xfe   : > { %v1343_v57 = vadd.f32 %v1342_v54, %v1341_v52  ;;  %v1708_v59 = vadd.f32 %v1390_v58, %v1389_v56  ;;  %899 = vst [vmem:[%s1704_s12] sm:$0xff] %v1340_v51  ;;  %915 = vst [vmem:[%s1704_s12 + $0x80] sm:$0xff] %v1706_v55  ;;  %v1003_v60 = vmul.f32 %v1340_v51, %v1340_v51 }
 0x100   : > { %900 = vst [vmem:[%s1704_s12 + $0x8] sm:$0xff] %v1343_v57  ;;  %v966_v61 = vadd.f32 %v1343_v57, %v1340_v51  ;;  %v1004_v62 = vmul.f32 %v1343_v57, %v1343_v57  ;;  %916 = vst [vmem:[%s1704_s12 + $0x88] sm:$0xff] %v1708_v59 }
 0x102   : > { %v1344_v63 = vpop.f32.mrb[4].mxu0  ;;  %v1392_v1 = vpop.f32.mrb[4].mxu1  ;;  %v1035_v2 = vadd.f32 %v1004_v62, %v1003_v60 }
 0x103   : > { %v1345_v0 = vpop.f32.mrb[5].mxu0  ;;  %v1393_v5 = vpop.f32.mrb[5].mxu1 }
 0x104   : > { %v1346_v3 = vadd.f32 %v1345_v0, %v1344_v63  ;;  %v1347_v4 = vpop.f32.mrb[6].mxu0  ;;  %v1716_v7 = vadd.f32 %v1393_v5, %v1392_v1  ;;  %v1395_v8 = vpop.f32.mrb[6].mxu1 }
 0x105   : > { %v1348_v6 = vpop.f32.mrb[7].mxu0  ;;  %v1396_v10 = vpop.f32.mrb[7].mxu1 }
 0x106   : > { %v1349_v9 = vadd.f32 %v1348_v6, %v1347_v4  ;;  %v1718_v11 = vadd.f32 %v1396_v10, %v1395_v8  ;;  %901 = vst [vmem:[%s1704_s12 + $0x10] sm:$0xff] %v1346_v3  ;;  %v967_v12 = vadd.f32 %v1346_v3, %v966_v61  ;;  %v1005_v13 = vmul.f32 %v1346_v3, %v1346_v3 }
 0x107   : > { %917 = vst [vmem:[%s1704_s12 + $0x90] sm:$0xff] %v1716_v7 }
 0x108   : > { %v1036_v14 = vadd.f32 %v1035_v2, %v1005_v13  ;;  %902 = vst [vmem:[%s1704_s12 + $0x18] sm:$0xff] %v1349_v9  ;;  %v968_v15 = vadd.f32 %v1349_v9, %v967_v12  ;;  %v1006_v16 = vmul.f32 %v1349_v9, %v1349_v9  ;;  %918 = vst [vmem:[%s1704_s12 + $0x98] sm:$0xff] %v1718_v11 }
 0x10a   : > { %v1350_v17 = vpop.f32.mrb[8].mxu0  ;;  %v1398_v19 = vpop.f32.mrb[8].mxu1  ;;  %v1037_v20 = vadd.f32 %v1036_v14, %v1006_v16 }
 0x10b   : > { %v1351_v18 = vpop.f32.mrb[9].mxu0  ;;  %v1399_v23 = vpop.f32.mrb[9].mxu1 }
 0x10c   : > { %v1352_v21 = vadd.f32 %v1351_v18, %v1350_v17  ;;  %v1353_v22 = vpop.f32.mrb[10].mxu0  ;;  %v1726_v25 = vadd.f32 %v1399_v23, %v1398_v19  ;;  %v1401_v26 = vpop.f32.mrb[10].mxu1 }
 0x10d   : > { %v1354_v24 = vpop.f32.mrb[11].mxu0  ;;  %v1402_v28 = vpop.f32.mrb[11].mxu1 }
 0x10e   : > { %v1355_v27 = vadd.f32 %v1354_v24, %v1353_v22  ;;  %v1728_v29 = vadd.f32 %v1402_v28, %v1401_v26  ;;  %903 = vst [vmem:[%s1704_s12 + $0x20] sm:$0xff] %v1352_v21  ;;  %v969_v30 = vadd.f32 %v1352_v21, %v968_v15  ;;  %v1007_v31 = vmul.f32 %v1352_v21, %v1352_v21 }
 0x10f   : > { %919 = vst [vmem:[%s1704_s12 + $0xa0] sm:$0xff] %v1726_v25 }
 0x110   : > { %v1038_v32 = vadd.f32 %v1037_v20, %v1007_v31  ;;  %904 = vst [vmem:[%s1704_s12 + $0x28] sm:$0xff] %v1355_v27  ;;  %v970_v33 = vadd.f32 %v1355_v27, %v969_v30  ;;  %v1008_v34 = vmul.f32 %v1355_v27, %v1355_v27  ;;  %920 = vst [vmem:[%s1704_s12 + $0xa8] sm:$0xff] %v1728_v29 }
 0x112   : > { %v1356_v35 = vpop.f32.mrb[12].mxu0  ;;  %v1404_v37 = vpop.f32.mrb[12].mxu1  ;;  %v1039_v38 = vadd.f32 %v1038_v32, %v1008_v34 }
 0x113   : > { %v1357_v36 = vpop.f32.mrb[13].mxu0  ;;  %v1405_v41 = vpop.f32.mrb[13].mxu1 }
 0x114   : > { %v1358_v39 = vadd.f32 %v1357_v36, %v1356_v35  ;;  %v1359_v40 = vpop.f32.mrb[14].mxu0  ;;  %v1736_v43 = vadd.f32 %v1405_v41, %v1404_v37  ;;  %v1407_v44 = vpop.f32.mrb[14].mxu1 }
 0x115   : > { %v1360_v42 = vpop.f32.mrb[15].mxu0  ;;  %v1408_v46 = vpop.f32.mrb[15].mxu1 }
 0x116   : > { %v1361_v45 = vadd.f32 %v1360_v42, %v1359_v40  ;;  %v1738_v47 = vadd.f32 %v1408_v46, %v1407_v44  ;;  %905 = vst [vmem:[%s1704_s12 + $0x30] sm:$0xff] %v1358_v39  ;;  %v971_v48 = vadd.f32 %v1358_v39, %v970_v33  ;;  %v1009_v49 = vmul.f32 %v1358_v39, %v1358_v39 }
 0x117   : > { %921 = vst [vmem:[%s1704_s12 + $0xb0] sm:$0xff] %v1736_v43 }
 0x118   : > { %v1040_v50 = vadd.f32 %v1039_v38, %v1009_v49  ;;  %906 = vst [vmem:[%s1704_s12 + $0x38] sm:$0xff] %v1361_v45  ;;  %v972_v51 = vadd.f32 %v1361_v45, %v971_v48  ;;  %v1010_v52 = vmul.f32 %v1361_v45, %v1361_v45  ;;  %922 = vst [vmem:[%s1704_s12 + $0xb8] sm:$0xff] %v1738_v47 }
 0x11a   : > { %v1362_v53 = vpop.f32.mrb[16].mxu0  ;;  %v1410_v56 = vpop.f32.mrb[16].mxu1  ;;  %v1041_v57 = vadd.f32 %v1040_v50, %v1010_v52 }
 0x11b   : > { %v1363_v54 = vpop.f32.mrb[17].mxu0  ;;  %v1411_v61 = vpop.f32.mrb[17].mxu1 }
 0x11c   : > { %v1364_v58 = vadd.f32 %v1363_v54, %v1362_v53  ;;  %v1365_v60 = vpop.f32.mrb[18].mxu0  ;;  %v1746_v63 = vadd.f32 %v1411_v61, %v1410_v56  ;;  %v1413_v0 = vpop.f32.mrb[18].mxu1 }
 0x11d   : > { %v1366_v62 = vpop.f32.mrb[19].mxu0  ;;  %v1414_v2 = vpop.f32.mrb[19].mxu1 }
 0x11e   : > { %v1367_v1 = vadd.f32 %v1366_v62, %v1365_v60  ;;  %v1748_v3 = vadd.f32 %v1414_v2, %v1413_v0  ;;  %907 = vst [vmem:[%s1704_s12 + $0x40] sm:$0xff] %v1364_v58  ;;  %v973_v4 = vadd.f32 %v1364_v58, %v972_v51  ;;  %v1011_v5 = vmul.f32 %v1364_v58, %v1364_v58 }
 0x11f   : > { %923 = vst [vmem:[%s1704_s12 + $0xc0] sm:$0xff] %v1746_v63 }
 0x120   : > { %v1042_v6 = vadd.f32 %v1041_v57, %v1011_v5  ;;  %908 = vst [vmem:[%s1704_s12 + $0x48] sm:$0xff] %v1367_v1  ;;  %v974_v8 = vadd.f32 %v1367_v1, %v973_v4  ;;  %v1012_v9 = vmul.f32 %v1367_v1, %v1367_v1  ;;  %924 = vst [vmem:[%s1704_s12 + $0xc8] sm:$0xff] %v1748_v3 }
 0x122   : > { %v1368_v10 = vpop.f32.mrb[20].mxu0  ;;  %v1416_v13 = vpop.f32.mrb[20].mxu1  ;;  %v1043_v14 = vadd.f32 %v1042_v6, %v1012_v9 }
 0x123   : > { %v1369_v12 = vpop.f32.mrb[21].mxu0  ;;  %v1417_v17 = vpop.f32.mrb[21].mxu1 }
 0x124   : > { %v1370_v15 = vadd.f32 %v1369_v12, %v1368_v10  ;;  %v1371_v16 = vpop.f32.mrb[22].mxu0  ;;  %v1756_v19 = vadd.f32 %v1417_v17, %v1416_v13  ;;  %v1419_v20 = vpop.f32.mrb[22].mxu1  ;;  %v1019_v10 = vmul.f32 %v1706_v55, %v1706_v55  ;;  %v1021_v17 = vmul.f32 %v1716_v7, %v1716_v7 }
 0x125   : > { %v1372_v18 = vpop.f32.mrb[23].mxu0  ;;  %v1420_v22 = vpop.f32.mrb[23].mxu1 }
 0x126   : > { %v1373_v21 = vadd.f32 %v1372_v18, %v1371_v16  ;;  %v1758_v23 = vadd.f32 %v1420_v22, %v1419_v20  ;;  %909 = vst [vmem:[%s1704_s12 + $0x50] sm:$0xff] %v1370_v15  ;;  %v975_v24 = vadd.f32 %v1370_v15, %v974_v8  ;;  %v1013_v26 = vmul.f32 %v1370_v15, %v1370_v15 }
 0x127   : > { %925 = vst [vmem:[%s1704_s12 + $0xd0] sm:$0xff] %v1756_v19 }
 0x128   : > { %v1044_v27 = vadd.f32 %v1043_v14, %v1013_v26  ;;  %910 = vst [vmem:[%s1704_s12 + $0x58] sm:$0xff] %v1373_v21  ;;  %v976_v28 = vadd.f32 %v1373_v21, %v975_v24  ;;  %v1014_v30 = vmul.f32 %v1373_v21, %v1373_v21  ;;  %926 = vst [vmem:[%s1704_s12 + $0xd8] sm:$0xff] %v1758_v23 }
 0x129   : > { %v1020_v14 = vmul.f32 %v1708_v59, %v1708_v59  ;;  %v1022_v21 = vmul.f32 %v1718_v11, %v1718_v11 }
 0x12a   : > { %v1374_v31 = vpop.f32.mrb[24].mxu0  ;;  %v1422_v33 = vpop.f32.mrb[24].mxu1  ;;  %v1045_v34 = vadd.f32 %v1044_v27, %v1014_v30 }
 0x12b   : > { %v1375_v32 = vpop.f32.mrb[25].mxu0  ;;  %v1423_v37 = vpop.f32.mrb[25].mxu1 }
 0x12c   : > { %v1376_v35 = vadd.f32 %v1375_v32, %v1374_v31  ;;  %v1377_v36 = vpop.f32.mrb[26].mxu0  ;;  %v1766_v39 = vadd.f32 %v1423_v37, %v1422_v33  ;;  %v1425_v40 = vpop.f32.mrb[26].mxu1 }
 0x12d   : > { %v1378_v38 = vpop.f32.mrb[27].mxu0  ;;  %v1426_v42 = vpop.f32.mrb[27].mxu1 }
 0x12e   : > { %v1379_v41 = vadd.f32 %v1378_v38, %v1377_v36  ;;  %v1768_v44 = vadd.f32 %v1426_v42, %v1425_v40  ;;  %911 = vst [vmem:[%s1704_s12 + $0x60] sm:$0xff] %v1376_v35  ;;  %v977_v45 = vadd.f32 %v1376_v35, %v976_v28  ;;  %v1015_v46 = vmul.f32 %v1376_v35, %v1376_v35 }
 0x12f   : > { %927 = vst [vmem:[%s1704_s12 + $0xe0] sm:$0xff] %v1766_v39  ;;  %v1027_v35 = vmul.f32 %v1746_v63, %v1746_v63  ;;  %v1028_v38 = vmul.f32 %v1748_v3, %v1748_v3 }
 0x130   : > { %v1046_v48 = vadd.f32 %v1045_v34, %v1015_v46  ;;  %912 = vst [vmem:[%s1704_s12 + $0x68] sm:$0xff] %v1379_v41  ;;  %v978_v49 = vadd.f32 %v1379_v41, %v977_v45  ;;  %v1016_v50 = vmul.f32 %v1379_v41, %v1379_v41  ;;  %928 = vst [vmem:[%s1704_s12 + $0xe8] sm:$0xff] %v1768_v44 }
 0x132   : > { %v1380_v51 = vpop.f32.mrb[28].mxu0  ;;  %v1428_v53 = vpop.f32.mrb[28].mxu1  ;;  %v1047_v54 = vadd.f32 %v1046_v48, %v1016_v50  ;;  %v1032_v50 = vmul.f32 %v1768_v44, %v1768_v44 }
 0x133   : > { %v1381_v52 = vpop.f32.mrb[29].mxu0  ;;  %v1429_v58 = vpop.f32.mrb[29].mxu1 }
 0x134   : > { %v1382_v56 = vadd.f32 %v1381_v52, %v1380_v51  ;;  %v1383_v57 = vpop.f32.mrb[30].mxu0  ;;  %v1430_v61 = vadd.f32 %v1429_v58, %v1428_v53  ;;  %v1431_v62 = vpop.f32.mrb[30].mxu1 }
 0x135   : > { %v1384_v60 = vpop.f32.mrb[31].mxu0  ;;  %v1432_v1 = vpop.f32.mrb[31].mxu1 }
 0x136   : > { %v1385_v0 = vadd.f32 %v1384_v60, %v1383_v57  ;;  %v1433_v2 = vadd.f32 %v1432_v1, %v1431_v62  ;;  %913 = vst [vmem:[%s1704_s12 + $0x70] sm:$0xff] %v1382_v56  ;;  %v979_v4 = vadd.f32 %v1382_v56, %v978_v49  ;;  %v1017_v5 = vmul.f32 %v1382_v56, %v1382_v56 }
 0x137   : > { %929 = vst [vmem:[%s1704_s12 + $0xf0] sm:$0xff] %v1430_v61 }
 0x138   : > { %v1048_v6 = vadd.f32 %v1047_v54, %v1017_v5  ;;  %914 = vst [vmem:[%s1704_s12 + $0x78] sm:$0xff] %v1385_v0  ;;  %v980_v8 = vadd.f32 %v1385_v0, %v979_v4  ;;  %v1018_v9 = vmul.f32 %v1385_v0, %v1385_v0  ;;  %930 = vst [vmem:[%s1704_s12 + $0xf8] sm:$0xff] %v1433_v2 }
 0x13a   : > { %v981_v12 = vadd.f32 %v1706_v55, %v980_v8  ;;  %v1049_v13 = vadd.f32 %v1048_v6, %v1018_v9  ;;  %v1023_v55 = vmul.f32 %v1726_v25, %v1726_v25 }
 0x13c   : > { %v982_v15 = vadd.f32 %v1708_v59, %v981_v12  ;;  %v1050_v16 = vadd.f32 %v1049_v13, %v1019_v10  ;;  %v1024_v59 = vmul.f32 %v1728_v29, %v1728_v29 }
 0x13e   : > { %v983_v18 = vadd.f32 %v1716_v7, %v982_v15  ;;  %v1051_v20 = vadd.f32 %v1050_v16, %v1020_v14  ;;  %v1025_v7 = vmul.f32 %v1736_v43, %v1736_v43 }
 0x140   : > { %v984_v22 = vadd.f32 %v1718_v11, %v983_v18  ;;  %v1052_v24 = vadd.f32 %v1051_v20, %v1021_v17  ;;  %v1026_v11 = vmul.f32 %v1738_v47, %v1738_v47 }
 0x142   : > { %v1053_v26 = vadd.f32 %v1052_v24, %v1022_v21  ;;  %v985_v27 = vadd.f32 %v1726_v25, %v984_v22 }
 0x144   : > { %v986_v28 = vadd.f32 %v1728_v29, %v985_v27  ;;  %v1054_v30 = vadd.f32 %v1053_v26, %v1023_v55 }
 0x146   : > { %v987_v31 = vadd.f32 %v1736_v43, %v986_v28  ;;  %v1055_v32 = vadd.f32 %v1054_v30, %v1024_v59 }
 0x148   : > { %v988_v33 = vadd.f32 %v1738_v47, %v987_v31  ;;  %v1056_v34 = vadd.f32 %v1055_v32, %v1025_v7  ;;  %v1029_v47 = vmul.f32 %v1756_v19, %v1756_v19 }
 0x14a   : > { %v989_v25 = vadd.f32 %v1746_v63, %v988_v33  ;;  %v1057_v36 = vadd.f32 %v1056_v34, %v1026_v11  ;;  %v1030_v63 = vmul.f32 %v1758_v23, %v1758_v23 }
 0x14c   : > { %v1058_v29 = vadd.f32 %v1057_v36, %v1027_v35  ;;  %v990_v37 = vadd.f32 %v1748_v3, %v989_v25  ;;  %v1031_v3 = vmul.f32 %v1766_v39, %v1766_v39 }
 0x14e   : > { %v1059_v43 = vadd.f32 %v1058_v29, %v1028_v38  ;;  %v991_v40 = vadd.f32 %v1756_v19, %v990_v37  ;;  %v1033_v19 = vmul.f32 %v1430_v61, %v1430_v61 }
 0x150   : > { %v1060_v41 = vadd.f32 %v1059_v43, %v1029_v47  ;;  %v992_v42 = vadd.f32 %v1758_v23, %v991_v40  ;;  %v1034_v23 = vmul.f32 %v1433_v2, %v1433_v2 }
 0x152   : > { %v1061_v45 = vadd.f32 %v1060_v41, %v1030_v63  ;;  %v993_v46 = vadd.f32 %v1766_v39, %v992_v42 }
 0x154   : > { %v1062_v48 = vadd.f32 %v1061_v45, %v1031_v3  ;;  %v994_v49 = vadd.f32 %v1768_v44, %v993_v46 }
 0x156   : > { %v1063_v51 = vadd.f32 %v1062_v48, %v1032_v50  ;;  %v995_v52 = vadd.f32 %v1430_v61, %v994_v49 }
 0x158   : > { %v1064_v53 = vadd.f32 %v1063_v51, %v1033_v19  ;;  %v996_v54 = vadd.f32 %v1433_v2, %v995_v52 }
 0x15a   : > { %v997_v56 = vrot.slane %v996_v54, 4  ;;  %v1065_v57 = vadd.f32 %v1064_v53, %v1034_v23 }
 0x15c   : > { %v998_v58 = vadd.f32 %v997_v56, %v996_v54  ;;  %v1066_v60 = vrot.slane %v1065_v57, 4 }
 0x15e   : > { %v999_v62 = vrot.slane %v998_v58, 2  ;;  %v1067_v39 = vadd.f32 %v1066_v60, %v1065_v57 }
 0x160   : > { %v1000_v0 = vadd.f32 %v999_v62, %v998_v58  ;;  %v1068_v1 = vrot.slane %v1067_v39, 2 }
 0x162   : > { %v1001_v4 = vrot.slane %v1000_v0, 1  ;;  %v1069_v5 = vadd.f32 %v1068_v1, %v1067_v39 }
 0x164   : > { %v1002_v44 = vadd.f32 %v1001_v4, %v1000_v0  ;;  %v1070_v61 = vrot.slane %v1069_v5, 1 }
 0x166   : > { %v1071_v2 = vadd.f32 %v1070_v61, %v1069_v5  ;;  %1072 = vst [vmem:[%s309_s14] sm:$0xff] %v1002_v44 }
 0x168   : > { %1073 = vst [vmem:[%s316_s22] sm:$0xff] %v1071_v2 }
 0x169 PF: > { %s15_s17 = sadd.s32 1, %s1561_s17   ;;  %s1844_s15 = smov %s1557_s16 }
 0x16a   : > { %p12_p6 = scmp.ge.s32.totalorder %s15_s17, 4   ;;  %s1845_s16 = smov %s1847_s18 }
 0x16c   :  { %14 = sbr.rel (!%p12_p6) target bundleno = 2 (0x2), region = 93 }

// kernel: resnet_tpb_forward.44
= control target key start
LH: loop header
LB: loop body
LE: loop exit
PB: predicated region body
PF: predicated region fallthrough
CT: control target
= control target key end

     0   :  { %s254_s0 = inlined_call_operand.vmem [shape: f32[128,128], index: 0, kind: input, shape index: {}]   ;;  %s255_s1 = inlined_call_operand.vmem [shape: f32[1,128], index: 1, kind: input, shape index: {}]   ;;  %s256_s2 = inlined_call_operand.vmem [shape: f32[1,128], index: 2, kind: input, shape index: {}]   ;;  %s257_s3 = inlined_call_operand.vmem [shape: f32[128,128], index: 3, kind: output, shape index: {}]  }
   0x1   :  { %v14_v0 = vld [vmem:[%s254_s0] sm:$0xff]  ;;  %v15_v4 = vld [vmem:[%s254_s0 + $0x8] sm:$0xff]  ;;  %v16_v5 = vld [vmem:[%s254_s0 + $0x10] sm:$0xff] }
   0x2   :  { %v112_v1 = vld [vmem:[%s255_s1] ss:$0 sm:$0xff]  ;;  %v17_v6 = vld [vmem:[%s254_s0 + $0x18] sm:$0xff]  ;;  %v19_v11 = vld [vmem:[%s254_s0 + $0x28] sm:$0xff] }
   0x3   :  { %v143_v2 = vld [vmem:[%s256_s2] ss:$0 sm:$0xff]  ;;  %v37_v3 = vmul.f32 %v112_v1, %v14_v0  ;;  %v38_v7 = vmul.f32 %v112_v1, %v15_v4  ;;  %v39_v8 = vmul.f32 %v112_v1, %v16_v5  ;;  %v40_v9 = vmul.f32 %v112_v1, %v17_v6  ;;  %v20_v12 = vld [vmem:[%s254_s0 + $0x30] sm:$0xff]  ;;  %v21_v17 = vld [vmem:[%s254_s0 + $0x38] sm:$0xff] }
   0x4   :  { %v18_v10 = vld [vmem:[%s254_s0 + $0x20] sm:$0xff]  ;;  %v42_v15 = vmul.f32 %v112_v1, %v19_v11  ;;  %v43_v16 = vmul.f32 %v112_v1, %v20_v12  ;;  %v44_v21 = vmul.f32 %v112_v1, %v21_v17  ;;  %v23_v27 = vld [vmem:[%s254_s0 + $0x48] sm:$0xff]  ;;  %v24_v28 = vld [vmem:[%s254_s0 + $0x50] sm:$0xff] }
   0x5   :  { %v60_v13 = vadd.f32 %v143_v2, %v37_v3  ;;  %v41_v14 = vmul.f32 %v112_v1, %v18_v10  ;;  %v61_v18 = vadd.f32 %v143_v2, %v38_v7  ;;  %v62_v19 = vadd.f32 %v143_v2, %v39_v8  ;;  %v22_v22 = vld [vmem:[%s254_s0 + $0x40] sm:$0xff]  ;;  %v25_v29 = vld [vmem:[%s254_s0 + $0x58] sm:$0xff]  ;;  %v27_v35 = vld [vmem:[%s254_s0 + $0x68] sm:$0xff] }
   0x6   :  { %v63_v20 = vadd.f32 %v143_v2, %v40_v9  ;;  %v65_v25 = vadd.f32 %v143_v2, %v42_v15  ;;  %v66_v26 = vadd.f32 %v143_v2, %v43_v16  ;;  %v67_v33 = vadd.f32 %v143_v2, %v44_v21  ;;  %v26_v34 = vld [vmem:[%s254_s0 + $0x60] sm:$0xff]  ;;  %v28_v36 = vld [vmem:[%s254_s0 + $0x70] sm:$0xff]  ;;  %v29_v41 = vld [vmem:[%s254_s0 + $0x78] sm:$0xff] }
   0x7   :  { %v76_v23 = vmax.f32 %v60_v13, 0.0  ;;  %v64_v24 = vadd.f32 %v143_v2, %v41_v14  ;;  %v77_v30 = vmax.f32 %v61_v18, 0.0  ;;  %v78_v31 = vmax.f32 %v62_v19, 0.0 }
   0x8   :  { %v79_v32 = vmax.f32 %v63_v20, 0.0  ;;  %v81_v38 = vmax.f32 %v65_v25, 0.0  ;;  %v82_v39 = vmax.f32 %v66_v26, 0.0  ;;  %v45_v40 = vmul.f32 %v112_v1, %v22_v22 }
   0x9   :  { %92 = vst [vmem:[%s257_s3] sm:$0xff] %v76_v23  ;;  %v80_v37 = vmax.f32 %v64_v24, 0.0  ;;  %93 = vst [vmem:[%s257_s3 + $0x8] sm:$0xff] %v77_v30  ;;  %v83_v42 = vmax.f32 %v67_v33, 0.0  ;;  %v46_v43 = vmul.f32 %v112_v1, %v23_v27  ;;  %v47_v44 = vmul.f32 %v112_v1, %v24_v28 }
   0xa   :  { %94 = vst [vmem:[%s257_s3 + $0x10] sm:$0xff] %v78_v31  ;;  %95 = vst [vmem:[%s257_s3 + $0x18] sm:$0xff] %v79_v32  ;;  %v48_v45 = vmul.f32 %v112_v1, %v25_v29  ;;  %v68_v46 = vadd.f32 %v143_v2, %v45_v40  ;;  %v49_v47 = vmul.f32 %v112_v1, %v26_v34 }
   0xb   :  { %96 = vst [vmem:[%s257_s3 + $0x20] sm:$0xff] %v80_v37  ;;  %97 = vst [vmem:[%s257_s3 + $0x28] sm:$0xff] %v81_v38  ;;  %v50_v48 = vmul.f32 %v112_v1, %v27_v35  ;;  %v51_v49 = vmul.f32 %v112_v1, %v28_v36  ;;  %v69_v50 = vadd.f32 %v143_v2, %v46_v43 }
   0xc   :  { %98 = vst [vmem:[%s257_s3 + $0x30] sm:$0xff] %v82_v39  ;;  %99 = vst [vmem:[%s257_s3 + $0x38] sm:$0xff] %v83_v42  ;;  %v70_v51 = vadd.f32 %v143_v2, %v47_v44  ;;  %v71_v52 = vadd.f32 %v143_v2, %v48_v45  ;;  %v52_v53 = vmul.f32 %v112_v1, %v29_v41  ;;  %v84_v54 = vmax.f32 %v68_v46, 0.0 }
   0xd   :  { %v72_v55 = vadd.f32 %v143_v2, %v49_v47  ;;  %v73_v56 = vadd.f32 %v143_v2, %v50_v48  ;;  %v74_v57 = vadd.f32 %v143_v2, %v51_v49  ;;  %v85_v58 = vmax.f32 %v69_v50, 0.0 }
   0xe   :  { %v86_v59 = vmax.f32 %v70_v51, 0.0  ;;  %v87_v60 = vmax.f32 %v71_v52, 0.0  ;;  %v75_v61 = vadd.f32 %v143_v2, %v52_v53  ;;  %100 = vst [vmem:[%s257_s3 + $0x40] sm:$0xff] %v84_v54 }
   0xf   :  { %v88_v62 = vmax.f32 %v72_v55, 0.0  ;;  %v89_v63 = vmax.f32 %v73_v56, 0.0  ;;  %v90_v0 = vmax.f32 %v74_v57, 0.0  ;;  %101 = vst [vmem:[%s257_s3 + $0x48] sm:$0xff] %v85_v58 }
  0x10   :  { %102 = vst [vmem:[%s257_s3 + $0x50] sm:$0xff] %v86_v59  ;;  %103 = vst [vmem:[%s257_s3 + $0x58] sm:$0xff] %v87_v60  ;;  %v91_v1 = vmax.f32 %v75_v61, 0.0 }
  0x11   :  { %104 = vst [vmem:[%s257_s3 + $0x60] sm:$0xff] %v88_v62  ;;  %105 = vst [vmem:[%s257_s3 + $0x68] sm:$0xff] %v89_v63 }
  0x12   :  { %106 = vst [vmem:[%s257_s3 + $0x70] sm:$0xff] %v90_v0  ;;  %107 = vst [vmem:[%s257_s3 + $0x78] sm:$0xff] %v91_v1 }

// kernel: resnet_tpb_forward.46
= control target key start
LH: loop header
LB: loop body
LE: loop exit
PB: predicated region body
PF: predicated region fallthrough
CT: control target
= control target key end

     0   :  { %s360_s0 = inlined_call_operand.vmem [shape: f32[128,128], index: 0, kind: input, shape index: {}]   ;;  %s361_s1 = inlined_call_operand.vmem [shape: f32[1,128], index: 1, kind: input, shape index: {}]   ;;  %s362_s2 = inlined_call_operand.vmem [shape: f32[1,128], index: 2, kind: input, shape index: {}]   ;;  %s363_s3 = inlined_call_operand.vmem [shape: f32[128,128], index: 3, kind: input, shape index: {}]   ;;  %s364_s4 = inlined_call_operand.vmem [shape: f32[128,128], index: 4, kind: output, shape index: {}]  }
   0x1   :  { %v17_v0 = vld [vmem:[%s360_s0] sm:$0xff]  ;;  %v18_v4 = vld [vmem:[%s360_s0 + $0x8] sm:$0xff]  ;;  %v19_v7 = vld [vmem:[%s360_s0 + $0x10] sm:$0xff] }
   0x2   :  { %v180_v1 = vld [vmem:[%s361_s1] ss:$0 sm:$0xff]  ;;  %v20_v8 = vld [vmem:[%s360_s0 + $0x18] sm:$0xff]  ;;  %v80_v10 = vld [vmem:[%s363_s3 + $0x8] sm:$0xff] }
   0x3   :  { %v185_v2 = vld [vmem:[%s362_s2] ss:$0 sm:$0xff]  ;;  %v40_v3 = vmul.f32 %v180_v1, %v17_v0  ;;  %v41_v6 = vmul.f32 %v180_v1, %v18_v4  ;;  %v42_v11 = vmul.f32 %v180_v1, %v19_v7  ;;  %v81_v12 = vld [vmem:[%s363_s3 + $0x10] sm:$0xff]  ;;  %v43_v13 = vmul.f32 %v180_v1, %v20_v8  ;;  %v82_v16 = vld [vmem:[%s363_s3 + $0x18] sm:$0xff] }
   0x4   :  { %v79_v5 = vld [vmem:[%s363_s3] sm:$0xff]  ;;  %v22_v18 = vld [vmem:[%s360_s0 + $0x28] sm:$0xff]  ;;  %v23_v19 = vld [vmem:[%s360_s0 + $0x30] sm:$0xff] }
   0x5   :  { %v63_v9 = vadd.f32 %v185_v2, %v40_v3  ;;  %v21_v14 = vld [vmem:[%s360_s0 + $0x20] sm:$0xff]  ;;  %v64_v15 = vadd.f32 %v185_v2, %v41_v6  ;;  %v65_v21 = vadd.f32 %v185_v2, %v42_v11  ;;  %v66_v22 = vadd.f32 %v185_v2, %v43_v13  ;;  %v24_v25 = vld [vmem:[%s360_s0 + $0x38] sm:$0xff]  ;;  %v84_v28 = vld [vmem:[%s363_s3 + $0x28] sm:$0xff] }
   0x6   :  { %v44_v17 = vmul.f32 %v180_v1, %v21_v14  ;;  %v83_v23 = vld [vmem:[%s363_s3 + $0x20] sm:$0xff]  ;;  %v45_v24 = vmul.f32 %v180_v1, %v22_v18  ;;  %v46_v29 = vmul.f32 %v180_v1, %v23_v19  ;;  %v47_v30 = vmul.f32 %v180_v1, %v24_v25  ;;  %v85_v36 = vld [vmem:[%s363_s3 + $0x30] sm:$0xff]  ;;  %v86_v37 = vld [vmem:[%s363_s3 + $0x38] sm:$0xff] }
   0x7   :  { %v95_v20 = vadd.f32 %v79_v5, %v63_v9  ;;  %v96_v26 = vadd.f32 %v80_v10, %v64_v15  ;;  %v25_v31 = vld [vmem:[%s360_s0 + $0x40] sm:$0xff]  ;;  %v97_v33 = vadd.f32 %v81_v12, %v65_v21  ;;  %v98_v34 = vadd.f32 %v82_v16, %v66_v22  ;;  %v26_v38 = vld [vmem:[%s360_s0 + $0x48] sm:$0xff]  ;;  %v27_v43 = vld [vmem:[%s360_s0 + $0x50] sm:$0xff] }
   0x8   :  { %v67_v27 = vadd.f32 %v185_v2, %v44_v17  ;;  %v68_v35 = vadd.f32 %v185_v2, %v45_v24  ;;  %v69_v41 = vadd.f32 %v185_v2, %v46_v29  ;;  %v70_v42 = vadd.f32 %v185_v2, %v47_v30  ;;  %v28_v44 = vld [vmem:[%s360_s0 + $0x58] sm:$0xff]  ;;  %v29_v49 = vld [vmem:[%s360_s0 + $0x60] sm:$0xff]  ;;  %v30_v55 = vld [vmem:[%s360_s0 + $0x68] sm:$0xff] }
   0x9   :  { %v111_v32 = vmax.f32 %v95_v20, 0.0  ;;  %v112_v39 = vmax.f32 %v96_v26, 0.0  ;;  %v113_v45 = vmax.f32 %v97_v33, 0.0  ;;  %v114_v46 = vmax.f32 %v98_v34, 0.0  ;;  %v87_v53 = vld [vmem:[%s363_s3 + $0x40] sm:$0xff]  ;;  %v88_v58 = vld [vmem:[%s363_s3 + $0x48] sm:$0xff] }
   0xa   :  { %v99_v40 = vadd.f32 %v83_v23, %v67_v27  ;;  %v100_v47 = vadd.f32 %v84_v28, %v68_v35  ;;  %v48_v48 = vmul.f32 %v180_v1, %v25_v31  ;;  %v101_v51 = vadd.f32 %v85_v36, %v69_v41  ;;  %v31_v61 = vld [vmem:[%s360_s0 + $0x70] sm:$0xff]  ;;  %v32_v62 = vld [vmem:[%s360_s0 + $0x78] sm:$0xff]  ;;  %v91_v10 = vld [vmem:[%s363_s3 + $0x60] sm:$0xff] }
   0xb   :  { %127 = vst [vmem:[%s364_s4] sm:$0xff] %v111_v32  ;;  %128 = vst [vmem:[%s364_s4 + $0x8] sm:$0xff] %v112_v39  ;;  %v102_v52 = vadd.f32 %v86_v37, %v70_v42  ;;  %v49_v54 = vmul.f32 %v180_v1, %v26_v38  ;;  %v50_v59 = vmul.f32 %v180_v1, %v27_v43  ;;  %v89_v4 = vld [vmem:[%s363_s3 + $0x50] sm:$0xff]  ;;  %v90_v5 = vld [vmem:[%s363_s3 + $0x58] sm:$0xff] }
   0xc   :  { %v115_v50 = vmax.f32 %v99_v40, 0.0  ;;  %129 = vst [vmem:[%s364_s4 + $0x10] sm:$0xff] %v113_v45  ;;  %130 = vst [vmem:[%s364_s4 + $0x18] sm:$0xff] %v114_v46  ;;  %v116_v56 = vmax.f32 %v100_v47, 0.0  ;;  %v71_v57 = vadd.f32 %v185_v2, %v48_v48  ;;  %v51_v60 = vmul.f32 %v180_v1, %v28_v44  ;;  %v92_v14 = vld [vmem:[%s363_s3 + $0x68] sm:$0xff]  ;;  %v93_v21 = vld [vmem:[%s363_s3 + $0x70] sm:$0xff] }
   0xd   :  { %v117_v63 = vmax.f32 %v101_v51, 0.0  ;;  %v118_v0 = vmax.f32 %v102_v52, 0.0  ;;  %v72_v3 = vadd.f32 %v185_v2, %v49_v54  ;;  %v52_v6 = vmul.f32 %v180_v1, %v29_v49  ;;  %v94_v22 = vld [vmem:[%s363_s3 + $0x78] sm:$0xff] }
   0xe   :  { %131 = vst [vmem:[%s364_s4 + $0x20] sm:$0xff] %v115_v50  ;;  %132 = vst [vmem:[%s364_s4 + $0x28] sm:$0xff] %v116_v56  ;;  %v103_v7 = vadd.f32 %v87_v53, %v71_v57  ;;  %v73_v8 = vadd.f32 %v185_v2, %v50_v59  ;;  %v74_v9 = vadd.f32 %v185_v2, %v51_v60 }
   0xf   :  { %v53_v11 = vmul.f32 %v180_v1, %v30_v55  ;;  %133 = vst [vmem:[%s364_s4 + $0x30] sm:$0xff] %v117_v63  ;;  %134 = vst [vmem:[%s364_s4 + $0x38] sm:$0xff] %v118_v0  ;;  %v104_v12 = vadd.f32 %v88_v58, %v72_v3  ;;  %v75_v13 = vadd.f32 %v185_v2, %v52_v6 }
  0x10   :  { %v54_v15 = vmul.f32 %v180_v1, %v31_v61  ;;  %v55_v16 = vmul.f32 %v180_v1, %v32_v62  ;;  %v119_v17 = vmax.f32 %v103_v7, 0.0  ;;  %v105_v18 = vadd.f32 %v89_v4, %v73_v8 }
  0x11   :  { %v106_v19 = vadd.f32 %v90_v5, %v74_v9  ;;  %v76_v20 = vadd.f32 %v185_v2, %v53_v11  ;;  %v120_v23 = vmax.f32 %v104_v12, 0.0  ;;  %v107_v24 = vadd.f32 %v91_v10, %v75_v13 }
  0x12   :  { %v77_v25 = vadd.f32 %v185_v2, %v54_v15  ;;  %v78_v26 = vadd.f32 %v185_v2, %v55_v16  ;;  %135 = vst [vmem:[%s364_s4 + $0x40] sm:$0xff] %v119_v17  ;;  %v121_v1 = vmax.f32 %v105_v18, 0.0 }
  0x13   :  { %v122_v27 = vmax.f32 %v106_v19, 0.0  ;;  %v108_v28 = vadd.f32 %v92_v14, %v76_v20  ;;  %136 = vst [vmem:[%s364_s4 + $0x48] sm:$0xff] %v120_v23  ;;  %v123_v29 = vmax.f32 %v107_v24, 0.0 }
  0x14   :  { %v109_v30 = vadd.f32 %v93_v21, %v77_v25  ;;  %v110_v31 = vadd.f32 %v94_v22, %v78_v26  ;;  %137 = vst [vmem:[%s364_s4 + $0x50] sm:$0xff] %v121_v1 }
  0x15   :  { %138 = vst [vmem:[%s364_s4 + $0x58] sm:$0xff] %v122_v27  ;;  %v124_v2 = vmax.f32 %v108_v28, 0.0  ;;  %139 = vst [vmem:[%s364_s4 + $0x60] sm:$0xff] %v123_v29 }
  0x16   :  { %v125_v32 = vmax.f32 %v109_v30, 0.0  ;;  %v126_v33 = vmax.f32 %v110_v31, 0.0 }
  0x17   :  { %140 = vst [vmem:[%s364_s4 + $0x68] sm:$0xff] %v124_v2 }
  0x18   :  { %141 = vst [vmem:[%s364_s4 + $0x70] sm:$0xff] %v125_v32  ;;  %142 = vst [vmem:[%s364_s4 + $0x78] sm:$0xff] %v126_v33 }

// kernel: resnet_tpb_forward.43
= control target key start
LH: loop header
LB: loop body
LE: loop exit
PB: predicated region body
PF: predicated region fallthrough
CT: control target
= control target key end

     0   :  { %s1640_s15 = smov 0   ;;  %s1642_s16 = smov 0   ;;  %s2025_s0 = inlined_call_operand.vmem [shape: bf16[128,1152], index: 0, kind: input, shape index: {}]   ;;  %s2026_s1 = inlined_call_operand.vmem [shape: bf16[1152,128], index: 1, kind: input, shape index: {}]   ;;  %s2027_s2 = inlined_call_operand.vmem [shape: f32[128,128], index: 2, kind: output, shape index: {0}]   ;;  %s2028_s3 = inlined_call_operand.vmem [shape: f32[8,128], index: 3, kind: output, shape index: {1}]   ;;  %s2029_s4 = inlined_call_operand.vmem [shape: f32[8,128], index: 4, kind: output, shape index: {2}]  }
   0x1   :  { %s1644_s17 = smov 0   ;;  %s1646_s18 = smov 0  }
   0x2   :  { %s1648_s19 = smov 0  }
   0x3 LB: > { %s27_s20 = sadd.s32 1, %s1608_s18  ;;  %p50_p1 = scmp.ne.s32.totalorder %s1600_s16, %s1596_s15  ;;  %s1612_s19 = sphi %s1648_s19, %s15_s19   ;;  %s1608_s18 = sphi %s1646_s18, %s2033_s18   ;;  %s1604_s17 = sphi %s1644_s17, %s2032_s17   ;;  %s1600_s16 = sphi %s1642_s16, %s2031_s16   ;;  %s1596_s15 = sphi %s1640_s15, %s2030_s15  }
   0x4   : > { %p28_p0 = scmp.ge.s32.totalorder %s27_s20, 3  ;;  %p51_p2 = scmp.eq.s32.totalorder %s1612_s19, 0 }
   0x5   : > { %s43_s22 = sadd.s32 1, %s1600_s16  ;;  %p1270_p5 = scmp.ge.s32.totalorder %s1612_s19, 3 }
   0x6   : > { %s2035_s20 = smov (%p28_p0, %s27_s20), 0  ;;  %p52_p3 = por %p51_p2, %p50_p1 }
   0x7   : > { %s39_s21 = ssub.s32 %s1608_s18, %s2035_s20  ;;  %188 = sbr.rel (%p1270_p5) target bundleno = 37 (0x25), region = 16 }
   0x8   : > { %p41_p4 = scmp.eq.s32.totalorder %s39_s21, 0 }
   0xa   : > { %s1675_s23 = scalar_select %p41_p4, %s1600_s16, %s43_s22  }
   0xe   : > { %191 = sbr.rel (!%p52_p3) target bundleno = 37 (0x25), region = 20  ;;  %s193_s24 = sand.u32 (%p52_p3), 1, %s1600_s16  }
   0xf   : > { %s1362_s25 = smul.u32 (%p52_p3), 12, %s1608_s18 }
  0x10   : > { %s1475_s26 = smul.u32 (%p52_p3), 192, %s193_s24 }
  0x11   : > { %s1683_s29 = scalar_lea.vmem (%p52_p3), %s2025_s0, %s1362_s25 }
  0x12   : > { %v216_v0 = vld [vmem:[%s1683_s29] sm:$0xff] (%p52_p3)  ;;  %v220_v2 = vld [vmem:[%s1683_s29 + $0x48] sm:$0xff] (%p52_p3)  ;;  %s1688_s30 = scalar_lea.vmem (%p52_p3), [#allocation2], %s1475_s26  ;;  %v224_v4 = vld [vmem:[%s1683_s29 + $0x90] sm:$0xff] (%p52_p3) }
  0x13   : > { %v218_v1 = vld [vmem:[%s1683_s29 + $0x24] sm:$0xff] (%p52_p3)  ;;  %217 = vst [vmem:[%s1688_s30] sm:$0xff] (%p52_p3), %v216_v0  ;;  %221 = vst [vmem:[%s1688_s30 + $0x18] sm:$0xff] (%p52_p3), %v220_v2  ;;  %v222_v3 = vld [vmem:[%s1683_s29 + $0x6c] sm:$0xff] (%p52_p3) }
  0x14   : > { %219 = vst [vmem:[%s1688_s30 + $0xc] sm:$0xff] (%p52_p3), %v218_v1  ;;  %v226_v5 = vld [vmem:[%s1683_s29 + $0xb4] sm:$0xff] (%p52_p3)  ;;  %223 = vst [vmem:[%s1688_s30 + $0x24] sm:$0xff] (%p52_p3), %v222_v3  ;;  %v230_v7 = vld [vmem:[%s1683_s29 + $0xfc] sm:$0xff] (%p52_p3) }
  0x15   : > { %225 = vst [vmem:[%s1688_s30 + $0x30] sm:$0xff] %v224_v4  ;;  %227 = vst [vmem:[%s1688_s30 + $0x3c] sm:$0xff] %v226_v5  ;;  %v228_v6 = vld [vmem:[%s1683_s29 + $0xd8] sm:$0xff]  ;;  %v232_v8 = vld [vmem:[%s1683_s29 + $0x120] sm:$0xff] }
  0x16   : > { %229 = vst [vmem:[%s1688_s30 + $0x48] sm:$0xff] %v228_v6  ;;  %231 = vst [vmem:[%s1688_s30 + $0x54] sm:$0xff] %v230_v7  ;;  %v234_v9 = vld [vmem:[%s1683_s29 + $0x144] sm:$0xff]  ;;  %v238_v11 = vld [vmem:[%s1683_s29 + $0x18c] sm:$0xff] }
  0x17   : > { %233 = vst [vmem:[%s1688_s30 + $0x60] sm:$0xff] %v232_v8  ;;  %v236_v10 = vld [vmem:[%s1683_s29 + $0x168] sm:$0xff]  ;;  %235 = vst [vmem:[%s1688_s30 + $0x6c] sm:$0xff] %v234_v9  ;;  %v240_v12 = vld [vmem:[%s1683_s29 + $0x1b0] sm:$0xff] }
  0x18   : > { %237 = vst [vmem:[%s1688_s30 + $0x78] sm:$0xff] %v236_v10  ;;  %239 = vst [vmem:[%s1688_s30 + $0x84] sm:$0xff] %v238_v11  ;;  %v242_v13 = vld [vmem:[%s1683_s29 + $0x1d4] sm:$0xff]  ;;  %v246_v15 = vld [vmem:[%s1683_s29 + $0x21c] sm:$0xff] }
  0x19   : > { %v244_v14 = vld [vmem:[%s1683_s29 + $0x1f8] sm:$0xff]  ;;  %241 = vst [vmem:[%s1688_s30 + $0x90] sm:$0xff] %v240_v12  ;;  %243 = vst [vmem:[%s1688_s30 + $0x9c] sm:$0xff] %v242_v13  ;;  %v1272_v16 = vld [vmem:[%s1683_s29 + $0x8] sm:$0xf] }
  0x1a   : > { %245 = vst [vmem:[%s1688_s30 + $0xa8] sm:$0xff] %v244_v14  ;;  %v1274_v17 = vld [vmem:[%s1683_s29 + $0x2c] sm:$0xf]  ;;  %247 = vst [vmem:[%s1688_s30 + $0xb4] sm:$0xff] %v246_v15  ;;  %v1276_v18 = vld [vmem:[%s1683_s29 + $0x50] sm:$0xf] }
  0x1b   : > { %1273 = vst [vmem:[%s1688_s30 + $0x8] sm:$0xf] %v1272_v16  ;;  %1275 = vst [vmem:[%s1688_s30 + $0x14] sm:$0xf] %v1274_v17  ;;  %v1278_v19 = vld [vmem:[%s1683_s29 + $0x74] sm:$0xf] }
  0x1c   : > { %v1280_v20 = vld [vmem:[%s1683_s29 + $0x98] sm:$0xf]  ;;  %1277 = vst [vmem:[%s1688_s30 + $0x20] sm:$0xf] %v1276_v18  ;;  %1279 = vst [vmem:[%s1688_s30 + $0x2c] sm:$0xf] %v1278_v19 }
  0x1d   : > { %1281 = vst [vmem:[%s1688_s30 + $0x38] sm:$0xf] %v1280_v20  ;;  %v1282_v21 = vld [vmem:[%s1683_s29 + $0xbc] sm:$0xf]  ;;  %v1284_v22 = vld [vmem:[%s1683_s29 + $0xe0] sm:$0xf] }
  0x1e   : > { %v1286_v23 = vld [vmem:[%s1683_s29 + $0x104] sm:$0xf]  ;;  %1283 = vst [vmem:[%s1688_s30 + $0x44] sm:$0xf] %v1282_v21  ;;  %1285 = vst [vmem:[%s1688_s30 + $0x50] sm:$0xf] %v1284_v22 }
  0x1f   : > { %1287 = vst [vmem:[%s1688_s30 + $0x5c] sm:$0xf] %v1286_v23  ;;  %v1288_v24 = vld [vmem:[%s1683_s29 + $0x128] sm:$0xf]  ;;  %v1290_v25 = vld [vmem:[%s1683_s29 + $0x14c] sm:$0xf] }
  0x20   : > { %v1292_v26 = vld [vmem:[%s1683_s29 + $0x170] sm:$0xf]  ;;  %1289 = vst [vmem:[%s1688_s30 + $0x68] sm:$0xf] %v1288_v24  ;;  %1291 = vst [vmem:[%s1688_s30 + $0x74] sm:$0xf] %v1290_v25 }
  0x21   : > { %1293 = vst [vmem:[%s1688_s30 + $0x80] sm:$0xf] %v1292_v26  ;;  %v1294_v27 = vld [vmem:[%s1683_s29 + $0x194] sm:$0xf]  ;;  %v1296_v28 = vld [vmem:[%s1683_s29 + $0x1b8] sm:$0xf] }
  0x22   : > { %v1298_v29 = vld [vmem:[%s1683_s29 + $0x1dc] sm:$0xf]  ;;  %1295 = vst [vmem:[%s1688_s30 + $0x8c] sm:$0xf] %v1294_v27  ;;  %1297 = vst [vmem:[%s1688_s30 + $0x98] sm:$0xf] %v1296_v28 }
  0x23   : > { %1299 = vst [vmem:[%s1688_s30 + $0xa4] sm:$0xf] %v1298_v29  ;;  %v1300_v30 = vld [vmem:[%s1683_s29 + $0x200] sm:$0xf]  ;;  %v1302_v31 = vld [vmem:[%s1683_s29 + $0x224] sm:$0xf] }
  0x24   : > { %1301 = vst [vmem:[%s1688_s30 + $0xb0] sm:$0xf] %v1300_v30  ;;  %1303 = vst [vmem:[%s1688_s30 + $0xbc] sm:$0xf] %v1302_v31 }
  0x25 PF: > { %p1304_p6 = scmp.ge.s32.totalorder %s1612_s19, 1  ;;  %p303_p7 = scmp.lt.s32.totalorder %s1612_s19, 4 }
  0x27   : > { %p304_p8 = pnand %p1304_p6, %p303_p7 }
  0x28   : > { %s310_s5 = sand.u32 (!%p304_p8), 1, %s1596_s15   ;;  %s362_s6 = smul.u32 (!%p304_p8), 48, %s1604_s17 }
  0x29   : > { %307 = sbr.rel (%p304_p8) target bundleno = 405 (0x195), region = 50  ;;  %p1306_p10 = scmp.ne.s32.totalorder (!%p304_p8), %s1604_s17, 0 }
  0x2a   : > { %s1476_s7 = smul.u32 (!%p304_p8), 192, %s310_s5  ;;  %p363_p9 = scmp.lt.s32.totalorder (!%p304_p8), %s362_s6, 143 }
  0x2c   : > { %s1760_s12 = scalar_lea.vmem (!%p304_p8), [#allocation2], %s1476_s7 }
  0x30   : > { %s2037_s6 = smov (!%p363_p9, %s362_s6), 143  ;;  %398 = sbr.rel (%p1306_p10) target bundleno = 58 (0x3a), region = 58 }
  0x31   : > { %s1305_s8 = sshll.u32 %s2037_s6, 2  ;;  %v1614_v32 = vmov (!%p1306_p10), 0.0  }
  0x32   : > { %s1758_s11 = scalar_lea.vmem %s2026_s1, %s1305_s8  ;;  %399 = vst [vmem:[%s2027_s2] sm:$0xff] (!%p1306_p10), %v1614_v32  ;;  %400 = vst [vmem:[%s2027_s2 + $0x8] sm:$0xff] (!%p1306_p10), %v1614_v32 }
  0x33   : > { %401 = vst [vmem:[%s2027_s2 + $0x10] sm:$0xff] (!%p1306_p10), %v1614_v32  ;;  %402 = vst [vmem:[%s2027_s2 + $0x18] sm:$0xff] (!%p1306_p10), %v1614_v32 }
  0x34   : > { %403 = vst [vmem:[%s2027_s2 + $0x20] sm:$0xff] (!%p1306_p10), %v1614_v32  ;;  %404 = vst [vmem:[%s2027_s2 + $0x28] sm:$0xff] (!%p1306_p10), %v1614_v32 }
  0x35   : > { %405 = vst [vmem:[%s2027_s2 + $0x30] sm:$0xff] (!%p1306_p10), %v1614_v32  ;;  %406 = vst [vmem:[%s2027_s2 + $0x38] sm:$0xff] (!%p1306_p10), %v1614_v32 }
  0x36   : > { %407 = vst [vmem:[%s2027_s2 + $0x40] sm:$0xff] (!%p1306_p10), %v1614_v32  ;;  %408 = vst [vmem:[%s2027_s2 + $0x48] sm:$0xff] (!%p1306_p10), %v1614_v32 }
  0x37   : > { %409 = vst [vmem:[%s2027_s2 + $0x50] sm:$0xff] %v1614_v32  ;;  %410 = vst [vmem:[%s2027_s2 + $0x58] sm:$0xff] %v1614_v32 }
  0x38   : > { %411 = vst [vmem:[%s2027_s2 + $0x60] sm:$0xff] %v1614_v32  ;;  %412 = vst [vmem:[%s2027_s2 + $0x68] sm:$0xff] %v1614_v32 }
  0x39   : > { %413 = vst [vmem:[%s2027_s2 + $0x70] sm:$0xff] %v1614_v32  ;;  %414 = vst [vmem:[%s2027_s2 + $0x78] sm:$0xff] %v1614_v32 }
  0x3a PF: > { %v1518_v33 = vld [vmem:[%s1758_s11 + $0x40] sm:$0xff]   ;;  %v1521_v36 = vld [vmem:[%s1758_s11 + $0x48] sm:$0xff]   ;;  %v1524_v39 = vld [vmem:[%s1758_s11 + $0x50] sm:$0xff]   ;;  %p1355_p11 = scmp.ne.s32.totalorder %s1604_s17, 2 }
  0x3b   : > { %v1519_v34 = vld [vmem:[%s1758_s11] sm:$0xff]   ;;  %1363 = vmatprep.subr.bf16.mxu0 %v1518_v33  ;;  %v1522_v37 = vld [vmem:[%s1758_s11 + $0x8] sm:$0xff]   ;;  %v1525_v40 = vld [vmem:[%s1758_s11 + $0x10] sm:$0xff]  }
  0x3c   : > { %v1520_v35 = vld [vmem:[%s1758_s11 + $0x80] sm:$0xff]   ;;  %1364 = vmatpush3.bf16.msra.mxu0 %v1519_v34  ;;  %v1523_v38 = vld [vmem:[%s1758_s11 + $0x88] sm:$0xff]   ;;  %v1526_v41 = vld [vmem:[%s1758_s11 + $0x90] sm:$0xff]  }
  0x3d   : > { %1443 = vmatprep.subr.bf16.mxu1 %v1520_v35  ;;  %1365 = vmatprep.subr.bf16.mxu0 %v1521_v36  ;;  %v1527_v42 = vld [vmem:[%s1758_s11 + $0x58] sm:$0xff]   ;;  %v1530_v45 = vld [vmem:[%s1758_s11 + $0x60] sm:$0xff]   ;;  %v1533_v48 = vld [vmem:[%s1758_s11 + $0x68] sm:$0xff]  }
  0x3e   : > { %1444 = vmatpush3.bf16.msra.mxu1 %v1520_v35  ;;  %v1528_v43 = vld [vmem:[%s1758_s11 + $0x18] sm:$0xff]   ;;  %v1532_v46 = vld [vmem:[%s1758_s11 + $0xa0] sm:$0xff]   ;;  %v1535_v49 = vld [vmem:[%s1758_s11 + $0xa8] sm:$0xff]  }
  0x3f   : > { %1445 = vmatprep.subr.bf16.mxu1 %v1523_v38  ;;  %v1529_v44 = vld [vmem:[%s1758_s11 + $0x98] sm:$0xff]   ;;  %v1531_v47 = vld [vmem:[%s1758_s11 + $0x20] sm:$0xff]   ;;  %v1534_v50 = vld [vmem:[%s1758_s11 + $0x28] sm:$0xff]  }
  0x40   : > { %1366 = vmatpush3.bf16.msra.mxu0 %v1522_v37  ;;  %v1536_v51 = vld [vmem:[%s1758_s11 + $0x70] sm:$0xff]   ;;  %v1539_v54 = vld [vmem:[%s1758_s11 + $0x78] sm:$0xff]   ;;  %v1542_v59 = vld [vmem:[%s1760_s12] ss:$12 sps:$4 sm:$0xff]  }
  0x41   : > { %1367 = vmatprep.subr.bf16.mxu0 %v1524_v39  ;;  %v1537_v52 = vld [vmem:[%s1758_s11 + $0x30] sm:$0xff]   ;;  %v1541_v55 = vld [vmem:[%s1758_s11 + $0xb8] sm:$0xff]   ;;  %v1546_v61 = vld [vmem:[%s1760_s12 + $0x20] ss:$12 sps:$4 sm:$0xff]  }
  0x42   : > { %1446 = vmatpush3.bf16.msra.mxu1 %v1523_v38  ;;  %v1538_v53 = vld [vmem:[%s1758_s11 + $0xb0] sm:$0xff]   ;;  %v1540_v58 = vld [vmem:[%s1758_s11 + $0x38] sm:$0xff]   ;;  %v1562_v5 = vld [vmem:[%s1760_s12 + $0x80] ss:$12 sps:$4 sm:$0xff]  }
  0x43   : > { %1447 = vmatprep.subr.bf16.mxu1 %v1526_v41  ;;  %v1544_v56 = vld [vmem:[%s1760_s12 + $0x4] ss:$12 sps:$4 sm:$0xff]   ;;  %v1545_v57 = vld [vmem:[%s1760_s12 + $0x8] ss:$12 sps:$4 sm:$0xff]   ;;  %v1555_v4 = vld [vmem:[%s1760_s12 + $0x4c] ss:$12 sps:$4 sm:$0xff]  }
  0x44   : > { %1368 = vmatpush3.bf16.msra.mxu0 %v1525_v40  ;;  %815 = vmatprep.mubr.bf16.mxu0 %v1544_v56  ;;  %v1547_v60 = vld [vmem:[%s1760_s12 + $0x1c] ss:$12 sps:$4 sm:$0xff]   ;;  %v1553_v62 = vld [vmem:[%s1760_s12 + $0x38] ss:$12 sps:$4 sm:$0xff]   ;;  %v1550_v0 = vld [vmem:[%s1760_s12 + $0x34] ss:$12 sps:$4 sm:$0xff]  }
  0x45   : > { %1369 = vmatprep.subr.bf16.mxu0 %v1527_v42  ;;  %1459 = vmatprep.mubr.bf16.mxu1 %v1545_v57  ;;  %v1549_v63 = vld [vmem:[%s1760_s12 + $0x18] ss:$12 sps:$4 sm:$0xff]   ;;  %v1554_v1 = vld [vmem:[%s1760_s12 + $0x50] ss:$12 sps:$4 sm:$0xff]   ;;  %v1561_v2 = vld [vmem:[%s1760_s12 + $0x68] ss:$12 sps:$4 sm:$0xff]  }
  0x46   : > { %1448 = vmatpush3.bf16.msra.mxu1 %v1526_v41  ;;  %v1552_v3 = vld [vmem:[%s1760_s12 + $0x30] ss:$12 sps:$4 sm:$0xff]   ;;  %v1569_v6 = vld [vmem:[%s1760_s12 + $0x98] ss:$12 sps:$4 sm:$0xff]   ;;  %v1557_v7 = vld [vmem:[%s1760_s12 + $0x48] ss:$12 sps:$4 sm:$0xff]  }
  0x47   : > { %1449 = vmatprep.subr.bf16.mxu1 %v1529_v44  ;;  %v1558_v8 = vld [vmem:[%s1760_s12 + $0x64] ss:$12 sps:$4 sm:$0xff]   ;;  %v1560_v10 = vld [vmem:[%s1760_s12 + $0x60] ss:$12 sps:$4 sm:$0xff]   ;;  %v1563_v11 = vld [vmem:[%s1760_s12 + $0x7c] ss:$12 sps:$4 sm:$0xff]  }
  0x48   : > { %1370 = vmatpush3.bf16.msra.mxu0 %v1528_v43  ;;  %v1570_v9 = vld [vmem:[%s1760_s12 + $0xb0] ss:$12 sps:$4 sm:$0xff]   ;;  %v1565_v12 = vld [vmem:[%s1760_s12 + $0x78] ss:$12 sps:$4 sm:$0xff]   ;;  %v1566_v13 = vld [vmem:[%s1760_s12 + $0x94] ss:$12 sps:$4 sm:$0xff]  }
  0x49   : > { %1371 = vmatprep.subr.bf16.mxu0 %v1530_v45  ;;  %v1568_v14 = vld [vmem:[%s1760_s12 + $0x90] ss:$12 sps:$4 sm:$0xff]   ;;  %v1571_v15 = vld [vmem:[%s1760_s12 + $0xac] ss:$12 sps:$4 sm:$0xff]   ;;  %v1573_v16 = vld [vmem:[%s1760_s12 + $0xa8] ss:$12 sps:$4 sm:$0xff]  }
  0x4a   : > { %1450 = vmatpush3.bf16.msra.mxu1 %v1529_v44  ;;  %v415_v23 = vld [vmem:[%s2027_s2] sm:$0xff]  ;;  %v416_v28 = vld [vmem:[%s2027_s2 + $0x8] sm:$0xff]  ;;  %v417_v38 = vld [vmem:[%s2027_s2 + $0x10] sm:$0xff] }
  0x4b   : > { %1451 = vmatprep.subr.bf16.mxu1 %v1532_v46  ;;  %v418_v44 = vld [vmem:[%s2027_s2 + $0x18] sm:$0xff] }
  0x4c   : > { %1372 = vmatpush3.bf16.msra.mxu0 %v1531_v47 }
  0x4d   : > { %1373 = vmatprep.subr.bf16.mxu0 %v1533_v48 }
  0x4e   : > { %1452 = vmatpush3.bf16.msra.mxu1 %v1532_v46 }
  0x4f   : > { %1453 = vmatprep.subr.bf16.mxu1 %v1535_v49 }
  0x50   : > { %1374 = vmatpush3.bf16.msra.mxu0 %v1534_v50 }
  0x51   : > { %1375 = vmatprep.subr.bf16.mxu0 %v1536_v51 }
  0x52   : > { %1454 = vmatpush3.bf16.msra.mxu1 %v1535_v49 }
  0x53   : > { %1455 = vmatprep.subr.bf16.mxu1 %v1538_v53 }
  0x54   : > { %1376 = vmatpush3.bf16.msra.mxu0 %v1537_v52 }
  0x55   : > { %1377 = vmatprep.subr.bf16.mxu0 %v1539_v54 }
  0x56   : > { %1456 = vmatpush3.bf16.msra.mxu1 %v1538_v53 }
  0x57   : > { %1457 = vmatprep.subr.bf16.mxu1 %v1541_v55 }
  0x58   : > { %1378 = vmatpush3.bf16.msra.mxu0 %v1540_v58 }
  0x5a   : > { %1458 = vmatpush3.bf16.msra.mxu1 %v1541_v55  ;;  %v419_v55 = vld [vmem:[%s2027_s2 + $0x20] sm:$0xff] }
  0x5b   : > { %816 = vmatmul.mubr.bf16.vlgmr.msra.gmra.mrb[0].mxu0 %v1542_v59 }
  0x5c   : > { %823 = vmatprep.mubr.bf16.mxu0 %v1547_v60  ;;  %v420_v60 = vld [vmem:[%s2027_s2 + $0x28] sm:$0xff] }
  0x5d   : > { %1460 = vmatmul.mubr.bf16.vlgmr.msra.gmra.mrb[0].mxu1 %v1546_v61 }
  0x5e   : > { %1463 = vmatprep.mubr.bf16.mxu1 %v1553_v62 }
  0x63   : > { %824 = vmatmul.mubr.bf16.gmra.mrb[4].mxu0 %v1549_v63 }
  0x64   : > { %831 = vmatprep.mubr.bf16.mxu0 %v1550_v0 }
  0x65   : > { %1464 = vmatmul.mubr.bf16.gmra.mrb[4].mxu1 %v1554_v1 }
  0x66   : > { %1467 = vmatprep.mubr.bf16.mxu1 %v1561_v2 }
  0x6b   : > { %832 = vmatmul.mubr.bf16.gmra.mrb[8].mxu0 %v1552_v3 }
  0x6c   : > { %839 = vmatprep.mubr.bf16.mxu0 %v1555_v4 }
  0x6d   : > { %1468 = vmatmul.mubr.bf16.gmra.mrb[8].mxu1 %v1562_v5 }
  0x6e   : > { %1471 = vmatprep.mubr.bf16.mxu1 %v1569_v6  ;;  %v421_v6 = vld [vmem:[%s2027_s2 + $0x30] sm:$0xff] }
  0x73   : > { %840 = vmatmul.mubr.bf16.gmra.mrb[12].mxu0 %v1557_v7 }
  0x74   : > { %847 = vmatprep.mubr.bf16.mxu0 %v1558_v8 }
  0x75   : > { %1472 = vmatmul.mubr.bf16.gmra.mrb[12].mxu1 %v1570_v9 }
  0x7b   : > { %848 = vmatmul.mubr.bf16.gmra.mrb[16].mxu0 %v1560_v10 }
  0x7c   : > { %855 = vmatprep.mubr.bf16.mxu0 %v1563_v11 }
  0x83   : > { %856 = vmatmul.mubr.bf16.gmra.mrb[20].mxu0 %v1565_v12  ;;  %v422_v12 = vld [vmem:[%s2027_s2 + $0x38] sm:$0xff] }
  0x84   : > { %863 = vmatprep.mubr.bf16.mxu0 %v1566_v13 }
  0x8b   : > { %864 = vmatmul.mubr.bf16.gmra.mrb[24].mxu0 %v1568_v14 }
  0x8c   : > { %871 = vmatprep.mubr.bf16.mxu0 %v1571_v15 }
  0x93   : > { %872 = vmatmul.mubr.bf16.gmra.mrb[28].mxu0 %v1573_v16 }
 0x12e   : > { %v1379_v17 = vpop.f32.mrb[0].mxu0 }
 0x12f   : > { %v1380_v18 = vpop.f32.mrb[1].mxu0 }
 0x130   : > { %v1381_v19 = vadd.f32 %v1380_v18, %v1379_v17  ;;  %v1382_v20 = vpop.f32.mrb[2].mxu0  ;;  %v1461_v21 = vpop.f32.mrb[0].mxu1 }
 0x131   : > { %v1383_v22 = vpop.f32.mrb[3].mxu0  ;;  %v914_v24 = vpop.f32.mrb[1].mxu1 }
 0x132   : > { %v1384_v25 = vadd.f32 %v1383_v22, %v1382_v20  ;;  %v915_v26 = vadd.f32 %v1381_v19, %v914_v24  ;;  %v1462_v27 = vpop.f32.mrb[2].mxu1  ;;  %v423_v22 = vld [vmem:[%s2027_s2 + $0x40] sm:$0xff] }
 0x133   : > { %v917_v29 = vpop.f32.mrb[3].mxu1 }
 0x134   : > { %v977_v30 = vadd.f32 %v915_v26, %v415_v23  ;;  %v918_v31 = vadd.f32 %v1384_v25, %v917_v29  ;;  %v424_v25 = vld [vmem:[%s2027_s2 + $0x48] sm:$0xff] }
 0x136   : > { %993 = vst [vmem:[%s2027_s2] sm:$0xff] %v977_v30  ;;  %v978_v32 = vadd.f32 %v918_v31, %v416_v28  ;;  %v1385_v33 = vpop.f32.mrb[4].mxu0 }
 0x137   : > { %v1386_v34 = vpop.f32.mrb[5].mxu0 }
 0x138   : > { %994 = vst [vmem:[%s2027_s2 + $0x8] sm:$0xff] %v978_v32  ;;  %v1387_v35 = vadd.f32 %v1386_v34, %v1385_v33  ;;  %v1388_v36 = vpop.f32.mrb[6].mxu0  ;;  %v1465_v37 = vpop.f32.mrb[4].mxu1  ;;  %v425_v33 = vld [vmem:[%s2027_s2 + $0x50] sm:$0xff] }
 0x139   : > { %v1389_v39 = vpop.f32.mrb[7].mxu0  ;;  %v930_v40 = vpop.f32.mrb[5].mxu1 }
 0x13a   : > { %v923_v41 = vadd.f32 %v1461_v21, %v1387_v35  ;;  %v1390_v42 = vadd.f32 %v1389_v39, %v1388_v36  ;;  %v1466_v43 = vpop.f32.mrb[6].mxu1 }
 0x13b   : > { %v933_v45 = vpop.f32.mrb[7].mxu1 }
 0x13c   : > { %v979_v46 = vadd.f32 %v923_v41, %v417_v38  ;;  %v926_v47 = vadd.f32 %v1462_v27, %v1390_v42 }
 0x13e   : > { %995 = vst [vmem:[%s2027_s2 + $0x10] sm:$0xff] %v979_v46  ;;  %v980_v48 = vadd.f32 %v926_v47, %v418_v44  ;;  %v1391_v49 = vpop.f32.mrb[8].mxu0  ;;  %v427_v46 = vld [vmem:[%s2027_s2 + $0x60] sm:$0xff] }
 0x13f   : > { %v1392_v50 = vpop.f32.mrb[9].mxu0 }
 0x140   : > { %996 = vst [vmem:[%s2027_s2 + $0x18] sm:$0xff] %v980_v48  ;;  %v1393_v51 = vadd.f32 %v1392_v50, %v1391_v49  ;;  %v1394_v52 = vpop.f32.mrb[10].mxu0  ;;  %v1469_v53 = vpop.f32.mrb[8].mxu1  ;;  %v428_v49 = vld [vmem:[%s2027_s2 + $0x68] sm:$0xff] }
 0x141   : > { %v1395_v54 = vpop.f32.mrb[11].mxu0  ;;  %v946_v56 = vpop.f32.mrb[9].mxu1 }
 0x142   : > { %v1396_v57 = vadd.f32 %v1395_v54, %v1394_v52  ;;  %v931_v58 = vadd.f32 %v1393_v51, %v930_v40  ;;  %v1470_v59 = vpop.f32.mrb[10].mxu1 }
 0x143   : > { %v949_v61 = vpop.f32.mrb[11].mxu1 }
 0x144   : > { %v981_v62 = vadd.f32 %v931_v58, %v419_v55  ;;  %v934_v63 = vadd.f32 %v1396_v57, %v933_v45  ;;  %v429_v57 = vld [vmem:[%s2027_s2 + $0x70] sm:$0xff] }
 0x146   : > { %997 = vst [vmem:[%s2027_s2 + $0x20] sm:$0xff] %v981_v62  ;;  %v982_v0 = vadd.f32 %v934_v63, %v420_v60  ;;  %v1397_v1 = vpop.f32.mrb[12].mxu0 }
 0x147   : > { %v1398_v2 = vpop.f32.mrb[13].mxu0 }
 0x148   : > { %998 = vst [vmem:[%s2027_s2 + $0x28] sm:$0xff] %v982_v0  ;;  %v1399_v3 = vadd.f32 %v1398_v2, %v1397_v1  ;;  %v1400_v4 = vpop.f32.mrb[14].mxu0  ;;  %v1473_v5 = vpop.f32.mrb[12].mxu1  ;;  %v1013_v1 = vld [vmem:[%s2027_s2] sm:$0xff] (!%p1355_p11)  ;;  %v1014_v2 = vld [vmem:[%s2027_s2 + $0x8] sm:$0xff] (!%p1355_p11) }
 0x149   : > { %v1401_v7 = vpop.f32.mrb[15].mxu0  ;;  %v962_v8 = vpop.f32.mrb[13].mxu1 }
 0x14a   : > { %v939_v9 = vadd.f32 %v1465_v37, %v1399_v3  ;;  %v1402_v10 = vadd.f32 %v1401_v7, %v1400_v4  ;;  %v1474_v11 = vpop.f32.mrb[14].mxu1  ;;  %v426_v37 = vld [vmem:[%s2027_s2 + $0x58] sm:$0xff]  ;;  %v1015_v3 = vld [vmem:[%s2027_s2 + $0x10] sm:$0xff] (!%p1355_p11)  ;;  %v1051_v7 = vmul.f32 (!%p1355_p11), %v1014_v2, %v1014_v2 }
 0x14b   : > { %v965_v13 = vpop.f32.mrb[15].mxu1  ;;  %v1016_v4 = vld [vmem:[%s2027_s2 + $0x18] sm:$0xff] (!%p1355_p11) }
 0x14c   : > { %v983_v14 = vadd.f32 %v939_v9, %v421_v6  ;;  %v942_v15 = vadd.f32 %v1466_v43, %v1402_v10  ;;  %v1050_v6 = vmul.f32 (!%p1355_p11), %v1013_v1, %v1013_v1 }
 0x14d   : > { %v1017_v9 = vld [vmem:[%s2027_s2 + $0x20] sm:$0xff] (!%p1355_p11) }
 0x14e   : > { %999 = vst [vmem:[%s2027_s2 + $0x30] sm:$0xff] %v983_v14  ;;  %v984_v16 = vadd.f32 %v942_v15, %v422_v12  ;;  %v1403_v17 = vpop.f32.mrb[16].mxu0  ;;  %v1066_v12 = vadd.f32 (!%p1355_p11), %v1051_v7, %v1050_v6  ;;  %v1054_v15 = vmul.f32 (!%p1355_p11), %v1017_v9, %v1017_v9 }
 0x14f   : > { %v1404_v18 = vpop.f32.mrb[17].mxu0 }
 0x150   : > { %1000 = vst [vmem:[%s2027_s2 + $0x38] sm:$0xff] %v984_v16  ;;  %v1405_v19 = vadd.f32 %v1404_v18, %v1403_v17  ;;  %v1406_v20 = vpop.f32.mrb[18].mxu0 }
 0x151   : > { %v1407_v21 = vpop.f32.mrb[19].mxu0 }
 0x152   : > { %v1408_v23 = vadd.f32 %v1407_v21, %v1406_v20  ;;  %v947_v24 = vadd.f32 %v1405_v19, %v946_v56 }
 0x154   : > { %v985_v26 = vadd.f32 %v947_v24, %v423_v22  ;;  %v950_v27 = vadd.f32 %v1408_v23, %v949_v61  ;;  %v430_v61 = vld [vmem:[%s2027_s2 + $0x78] sm:$0xff] }
 0x155   : > { %v1019_v17 = vld [vmem:[%s2027_s2 + $0x30] sm:$0xff] (!%p1355_p11) }
 0x156   : > { %1001 = vst [vmem:[%s2027_s2 + $0x40] sm:$0xff] %v985_v26  ;;  %v986_v28 = vadd.f32 %v950_v27, %v424_v25  ;;  %v1409_v29 = vpop.f32.mrb[20].mxu0  ;;  %v1056_v23 = vmul.f32 (!%p1355_p11), %v1019_v17, %v1019_v17 }
 0x157   : > { %v1410_v30 = vpop.f32.mrb[21].mxu0  ;;  %v1020_v21 = vld [vmem:[%s2027_s2 + $0x38] sm:$0xff] (!%p1355_p11) }
 0x158   : > { %1002 = vst [vmem:[%s2027_s2 + $0x48] sm:$0xff] %v986_v28  ;;  %v1411_v31 = vadd.f32 %v1410_v30, %v1409_v29  ;;  %v1412_v32 = vpop.f32.mrb[22].mxu0  ;;  %v1057_v27 = vmul.f32 (!%p1355_p11), %v1020_v21, %v1020_v21 }
 0x159   : > { %v1413_v34 = vpop.f32.mrb[23].mxu0 }
 0x15a   : > { %v955_v35 = vadd.f32 %v1469_v53, %v1411_v31  ;;  %v1414_v36 = vadd.f32 %v1413_v34, %v1412_v32 }
 0x15c   : > { %v987_v38 = vadd.f32 %v955_v35, %v425_v33  ;;  %v958_v39 = vadd.f32 %v1470_v59, %v1414_v36 }
 0x15d   : > { %v1021_v25 = vld [vmem:[%s2027_s2 + $0x40] sm:$0xff] (!%p1355_p11) }
 0x15e   : > { %1003 = vst [vmem:[%s2027_s2 + $0x50] sm:$0xff] %v987_v38  ;;  %v988_v40 = vadd.f32 %v958_v39, %v426_v37  ;;  %v1415_v41 = vpop.f32.mrb[24].mxu0  ;;  %v1058_v31 = vmul.f32 (!%p1355_p11), %v1021_v25, %v1021_v25 }
 0x15f   : > { %v1416_v42 = vpop.f32.mrb[25].mxu0  ;;  %v1022_v29 = vld [vmem:[%s2027_s2 + $0x48] sm:$0xff] (!%p1355_p11) }
 0x160   : > { %1004 = vst [vmem:[%s2027_s2 + $0x58] sm:$0xff] %v988_v40  ;;  %v1417_v43 = vadd.f32 %v1416_v42, %v1415_v41  ;;  %v1418_v44 = vpop.f32.mrb[26].mxu0  ;;  %v1059_v35 = vmul.f32 (!%p1355_p11), %v1022_v29, %v1022_v29 }
 0x161   : > { %v1419_v45 = vpop.f32.mrb[27].mxu0 }
 0x162   : > { %v1420_v47 = vadd.f32 %v1419_v45, %v1418_v44  ;;  %v963_v48 = vadd.f32 %v1417_v43, %v962_v8  ;;  %v1052_v8 = vmul.f32 (!%p1355_p11), %v1015_v3, %v1015_v3 }
 0x164   : > { %v989_v50 = vadd.f32 %v963_v48, %v427_v46  ;;  %v966_v51 = vadd.f32 %v1420_v47, %v965_v13  ;;  %v1018_v13 = vld [vmem:[%s2027_s2 + $0x28] sm:$0xff] (!%p1355_p11)  ;;  %v1067_v16 = vadd.f32 (!%p1355_p11), %v1066_v12, %v1052_v8 }
 0x165   : > { %v1055_v19 = vmul.f32 (!%p1355_p11), %v1018_v13, %v1018_v13  ;;  %v1023_v33 = vld [vmem:[%s2027_s2 + $0x50] sm:$0xff] (!%p1355_p11) }
 0x166   : > { %1005 = vst [vmem:[%s2027_s2 + $0x60] sm:$0xff] %v989_v50  ;;  %v990_v52 = vadd.f32 %v966_v51, %v428_v49  ;;  %v1421_v53 = vpop.f32.mrb[28].mxu0  ;;  %v1060_v39 = vmul.f32 (!%p1355_p11), %v1023_v33, %v1023_v33 }
 0x167   : > { %v1422_v54 = vpop.f32.mrb[29].mxu0  ;;  %v1024_v37 = vld [vmem:[%s2027_s2 + $0x58] sm:$0xff] (!%p1355_p11) }
 0x168   : > { %1006 = vst [vmem:[%s2027_s2 + $0x68] sm:$0xff] %v990_v52  ;;  %v1423_v55 = vadd.f32 %v1422_v54, %v1421_v53  ;;  %v1424_v56 = vpop.f32.mrb[30].mxu0  ;;  %v1061_v43 = vmul.f32 (!%p1355_p11), %v1024_v37, %v1024_v37 }
 0x169   : > { %v1425_v58 = vpop.f32.mrb[31].mxu0 }
 0x16a   : > { %v971_v59 = vadd.f32 %v1473_v5, %v1423_v55  ;;  %v1426_v60 = vadd.f32 %v1425_v58, %v1424_v56  ;;  %1012 = sbr.rel (%p1355_p11) target bundleno = 405 (0x195), region = 62  ;;  %v1029_v5 = vadd.f32 (!%p1355_p11), %v1014_v2, %v1013_v1 }
 0x16c   : > { %v991_v62 = vadd.f32 %v971_v59, %v429_v57  ;;  %v974_v63 = vadd.f32 %v1474_v11, %v1426_v60  ;;  %v1030_v10 = vadd.f32 (!%p1355_p11), %v1029_v5, %v1015_v3  ;;  %v1053_v11 = vmul.f32 (!%p1355_p11), %v1016_v4, %v1016_v4 }
 0x16d   : > { %v1025_v41 = vld [vmem:[%s2027_s2 + $0x60] sm:$0xff] (!%p1355_p11) }
 0x16e   : > { %1007 = vst [vmem:[%s2027_s2 + $0x70] sm:$0xff] %v991_v62  ;;  %v992_v0 = vadd.f32 %v974_v63, %v430_v61  ;;  %v1031_v14 = vadd.f32 (!%p1355_p11), %v1030_v10, %v1016_v4  ;;  %v1068_v20 = vadd.f32 (!%p1355_p11), %v1067_v16, %v1053_v11  ;;  %v1062_v47 = vmul.f32 (!%p1355_p11), %v1025_v41, %v1025_v41 }
 0x16f   : > { %v1026_v45 = vld [vmem:[%s2027_s2 + $0x68] sm:$0xff] (!%p1355_p11) }
 0x170   : > { %1008 = vst [vmem:[%s2027_s2 + $0x78] sm:$0xff] %v992_v0  ;;  %v1032_v18 = vadd.f32 (!%p1355_p11), %v1031_v14, %v1017_v9  ;;  %v1069_v24 = vadd.f32 (!%p1355_p11), %v1068_v20, %v1054_v15  ;;  %v1063_v51 = vmul.f32 (!%p1355_p11), %v1026_v45, %v1026_v45 }
 0x172   : > { %v1033_v22 = vadd.f32 %v1032_v18, %v1018_v13  ;;  %v1070_v28 = vadd.f32 %v1069_v24, %v1055_v19 }
 0x174   : > { %v1034_v26 = vadd.f32 %v1033_v22, %v1019_v17  ;;  %v1071_v32 = vadd.f32 %v1070_v28, %v1056_v23 }
 0x175   : > { %v1027_v49 = vld [vmem:[%s2027_s2 + $0x70] sm:$0xff] }
 0x176   : > { %v1035_v30 = vadd.f32 %v1034_v26, %v1020_v21  ;;  %v1072_v36 = vadd.f32 %v1071_v32, %v1057_v27  ;;  %v1064_v55 = vmul.f32 %v1027_v49, %v1027_v49 }
 0x177   : > { %v1028_v53 = vld [vmem:[%s2027_s2 + $0x78] sm:$0xff] }
 0x178   : > { %v1036_v34 = vadd.f32 %v1035_v30, %v1021_v25  ;;  %v1073_v40 = vadd.f32 %v1072_v36, %v1058_v31  ;;  %v1065_v58 = vmul.f32 %v1028_v53, %v1028_v53 }
 0x17a   : > { %v1037_v38 = vadd.f32 %v1036_v34, %v1022_v29  ;;  %v1074_v44 = vadd.f32 %v1073_v40, %v1059_v35 }
 0x17c   : > { %v1038_v42 = vadd.f32 %v1037_v38, %v1023_v33  ;;  %v1075_v48 = vadd.f32 %v1074_v44, %v1060_v39 }
 0x17e   : > { %v1039_v46 = vadd.f32 %v1038_v42, %v1024_v37  ;;  %v1076_v52 = vadd.f32 %v1075_v48, %v1061_v43 }
 0x180   : > { %v1040_v50 = vadd.f32 %v1039_v46, %v1025_v41  ;;  %v1077_v56 = vadd.f32 %v1076_v52, %v1062_v47 }
 0x182   : > { %v1041_v54 = vadd.f32 %v1040_v50, %v1026_v45  ;;  %v1078_v59 = vadd.f32 %v1077_v56, %v1063_v51 }
 0x184   : > { %v1042_v57 = vadd.f32 %v1041_v54, %v1027_v49  ;;  %v1079_v61 = vadd.f32 %v1078_v59, %v1064_v55 }
 0x186   : > { %v1043_v60 = vadd.f32 %v1042_v57, %v1028_v53  ;;  %v1080_v63 = vadd.f32 %v1079_v61, %v1065_v58 }
 0x188   : > { %v1044_v62 = vrot.slane %v1043_v60, 4  ;;  %v1081_v1 = vrot.slane %v1080_v63, 4 }
 0x18a   : > { %v1045_v0 = vadd.f32 %v1044_v62, %v1043_v60  ;;  %v1082_v3 = vadd.f32 %v1081_v1, %v1080_v63 }
 0x18c   : > { %v1046_v2 = vrot.slane %v1045_v0, 2  ;;  %v1083_v5 = vrot.slane %v1082_v3, 2 }
 0x18e   : > { %v1047_v4 = vadd.f32 %v1046_v2, %v1045_v0  ;;  %v1084_v7 = vadd.f32 %v1083_v5, %v1082_v3 }
 0x190   : > { %v1048_v6 = vrot.slane %v1047_v4, 1  ;;  %v1085_v9 = vrot.slane %v1084_v7, 1 }
 0x192   : > { %v1049_v8 = vadd.f32 %v1048_v6, %v1047_v4  ;;  %v1086_v10 = vadd.f32 %v1085_v9, %v1084_v7 }
 0x194   : > { %1087 = vst [vmem:[%s2028_s3] sm:$0xff] %v1049_v8  ;;  %1088 = vst [vmem:[%s2029_s4] sm:$0xff] %v1086_v10 }
 0x195 PF: > { %s15_s19 = sadd.s32 1, %s1612_s19   ;;  %s2030_s15 = smov %s1600_s16 }
 0x196   : > { %p12_p12 = scmp.ge.s32.totalorder %s15_s19, 5   ;;  %s2031_s16 = smov %s1675_s23 }
 0x197   : > { %s2032_s17 = smov %s1608_s18  ;;  %s2033_s18 = smov %s2035_s20 }
 0x198   :  { %14 = sbr.rel (!%p12_p12) target bundleno = 3 (0x3), region = 130 }

// kernel: resnet_tpb_forward.54
= control target key start
LH: loop header
LB: loop body
LE: loop exit
PB: predicated region body
PF: predicated region fallthrough
CT: control target
= control target key end

     0   :  { %s331_s1 = inlined_call_operand.vmem [shape: bf16[128,128], index: 1, kind: input, shape index: {}]   ;;  %s332_s0 = inlined_call_operand.vmem [shape: bf16[32,128], index: 0, kind: input, shape index: {}]   ;;  %s333_s2 = inlined_call_operand.vmem [shape: f32[32,128], index: 2, kind: output, shape index: {0}]   ;;  %s334_s3 = inlined_call_operand.vmem [shape: f32[8,128], index: 3, kind: output, shape index: {1}]   ;;  %s335_s4 = inlined_call_operand.vmem [shape: f32[8,128], index: 4, kind: output, shape index: {2}]  }
   0x1   :  { %v248_v0 = vld [vmem:[%s331_s1] sm:$0xff]   ;;  %v249_v1 = vld [vmem:[%s331_s1 + $0x8] sm:$0xff]   ;;  %v250_v2 = vld [vmem:[%s331_s1 + $0x10] sm:$0xff]  }
   0x2   :  { %227 = vmatprep.subr.bf16.mxu0 %v248_v0  ;;  %v251_v3 = vld [vmem:[%s331_s1 + $0x18] sm:$0xff]   ;;  %v256_v4 = vld [vmem:[%s332_s0] sm:$0xff]   ;;  %v253_v6 = vld [vmem:[%s331_s1 + $0x28] sm:$0xff]  }
   0x3   :  { %228 = vmatpush3.bf16.msra.mxu0 %v248_v0  ;;  %243 = vmatprep.mubr.bf16.mxu0 %v256_v4  ;;  %v252_v5 = vld [vmem:[%s331_s1 + $0x20] sm:$0xff]   ;;  %v254_v7 = vld [vmem:[%s331_s1 + $0x30] sm:$0xff]   ;;  %v255_v8 = vld [vmem:[%s331_s1 + $0x38] sm:$0xff]  }
   0x4   :  { %229 = vmatprep.subr.bf16.mxu0 %v249_v1  ;;  %v257_v9 = vld [vmem:[%s332_s0 + $0x8] sm:$0xff]  }
   0x7   :  { %230 = vmatpush3.bf16.msra.mxu0 %v249_v1 }
   0x8   :  { %231 = vmatprep.subr.bf16.mxu0 %v250_v2 }
   0xb   :  { %232 = vmatpush3.bf16.msra.mxu0 %v250_v2 }
   0xc   :  { %233 = vmatprep.subr.bf16.mxu0 %v251_v3 }
   0xf   :  { %234 = vmatpush3.bf16.msra.mxu0 %v251_v3 }
  0x10   :  { %235 = vmatprep.subr.bf16.mxu0 %v252_v5 }
  0x13   :  { %236 = vmatpush3.bf16.msra.mxu0 %v252_v5 }
  0x14   :  { %237 = vmatprep.subr.bf16.mxu0 %v253_v6 }
  0x17   :  { %238 = vmatpush3.bf16.msra.mxu0 %v253_v6 }
  0x18   :  { %239 = vmatprep.subr.bf16.mxu0 %v254_v7 }
  0x1b   :  { %240 = vmatpush3.bf16.msra.mxu0 %v254_v7 }
  0x1c   :  { %241 = vmatprep.subr.bf16.mxu0 %v255_v8 }
  0x1f   :  { %242 = vmatpush3.bf16.msra.mxu0 %v255_v8 }
  0x22   :  { %244 = vmatmul.mubr.bf16.vlgmr.msra.gmra.mrb[0].mxu0 %v257_v9 }
  0xf5   :  { %v245_v10 = vpop.f32.mrb[0].mxu0 }
  0xf6   :  { %v141_v11 = vpop.f32.mrb[1].mxu0  ;;  %162 = vst [vmem:[%s333_s2 + $0x10] sm:$0xff] %v245_v10  ;;  %v182_v17 = vmul.f32 %v245_v10, %v245_v10 }
  0xf7   :  { %v246_v12 = vpop.f32.mrb[2].mxu0  ;;  %160 = vst [vmem:[%s333_s2] sm:$0xff] %v141_v11  ;;  %v180_v14 = vmul.f32 %v141_v11, %v141_v11 }
  0xf8   :  { %v144_v13 = vpop.f32.mrb[3].mxu0  ;;  %163 = vst [vmem:[%s333_s2 + $0x18] sm:$0xff] %v246_v12  ;;  %v183_v20 = vmul.f32 %v246_v12, %v246_v12 }
  0xf9   :  { %161 = vst [vmem:[%s333_s2 + $0x8] sm:$0xff] %v144_v13  ;;  %v171_v15 = vadd.f32 %v144_v13, %v141_v11  ;;  %v181_v16 = vmul.f32 %v144_v13, %v144_v13 }
  0xfb   :  { %v172_v18 = vadd.f32 %v245_v10, %v171_v15  ;;  %v184_v19 = vadd.f32 %v181_v16, %v180_v14 }
  0xfd   :  { %v173_v21 = vadd.f32 %v246_v12, %v172_v18  ;;  %v185_v22 = vadd.f32 %v184_v19, %v182_v17 }
  0xff   :  { %v174_v23 = vrot.slane %v173_v21, 4  ;;  %v186_v24 = vadd.f32 %v185_v22, %v183_v20 }
 0x101   :  { %v175_v25 = vadd.f32 %v174_v23, %v173_v21  ;;  %v187_v26 = vrot.slane %v186_v24, 4 }
 0x103   :  { %v176_v27 = vrot.slane %v175_v25, 2  ;;  %v188_v28 = vadd.f32 %v187_v26, %v186_v24 }
 0x105   :  { %v177_v29 = vadd.f32 %v176_v27, %v175_v25  ;;  %v189_v30 = vrot.slane %v188_v28, 2 }
 0x107   :  { %v178_v31 = vrot.slane %v177_v29, 1  ;;  %v190_v32 = vadd.f32 %v189_v30, %v188_v28 }
 0x109   :  { %v179_v33 = vadd.f32 %v178_v31, %v177_v29  ;;  %v191_v34 = vrot.slane %v190_v32, 1 }
 0x10b   :  { %v192_v35 = vadd.f32 %v191_v34, %v190_v32  ;;  %193 = vst [vmem:[%s334_s3] sm:$0xff] %v179_v33 }
 0x10d   :  { %194 = vst [vmem:[%s335_s4] sm:$0xff] %v192_v35 }

// kernel: resnet_tpb_forward.55
= control target key start
LH: loop header
LB: loop body
LE: loop exit
PB: predicated region body
PF: predicated region fallthrough
CT: control target
= control target key end

     0   :  { %s100_s0 = inlined_call_operand.vmem [shape: f32[32,128], index: 0, kind: input, shape index: {}]   ;;  %s101_s1 = inlined_call_operand.vmem [shape: f32[1,128], index: 1, kind: input, shape index: {}]   ;;  %s102_s2 = inlined_call_operand.vmem [shape: f32[1,128], index: 2, kind: input, shape index: {}]   ;;  %s103_s3 = inlined_call_operand.vmem [shape: f32[32,128], index: 3, kind: output, shape index: {}]  }
   0x1   :  { %v14_v0 = vld [vmem:[%s100_s0] sm:$0xff]  ;;  %v15_v4 = vld [vmem:[%s100_s0 + $0x8] sm:$0xff]  ;;  %v16_v5 = vld [vmem:[%s100_s0 + $0x10] sm:$0xff] }
   0x2   :  { %v48_v1 = vld [vmem:[%s101_s1] ss:$0 sm:$0xff]  ;;  %v17_v6 = vld [vmem:[%s100_s0 + $0x18] sm:$0xff] }
   0x3   :  { %v49_v2 = vld [vmem:[%s102_s2] ss:$0 sm:$0xff]  ;;  %v25_v3 = vmul.f32 %v48_v1, %v14_v0  ;;  %v26_v7 = vmul.f32 %v48_v1, %v15_v4  ;;  %v27_v8 = vmul.f32 %v48_v1, %v16_v5  ;;  %v28_v9 = vmul.f32 %v48_v1, %v17_v6 }
   0x5   :  { %v36_v10 = vadd.f32 %v49_v2, %v25_v3  ;;  %v37_v11 = vadd.f32 %v49_v2, %v26_v7  ;;  %v38_v12 = vadd.f32 %v49_v2, %v27_v8  ;;  %v39_v13 = vadd.f32 %v49_v2, %v28_v9 }
   0x7   :  { %40 = vst [vmem:[%s103_s3] sm:$0xff] %v36_v10  ;;  %41 = vst [vmem:[%s103_s3 + $0x8] sm:$0xff] %v37_v11 }
   0x8   :  { %42 = vst [vmem:[%s103_s3 + $0x10] sm:$0xff] %v38_v12  ;;  %43 = vst [vmem:[%s103_s3 + $0x18] sm:$0xff] %v39_v13 }

// kernel: resnet_tpb_forward.52
= control target key start
LH: loop header
LB: loop body
LE: loop exit
PB: predicated region body
PF: predicated region fallthrough
CT: control target
= control target key end

     0   :  { %s104_s0 = inlined_call_operand.vmem [shape: f32[32,128], index: 0, kind: input, shape index: {}]   ;;  %s105_s1 = inlined_call_operand.vmem [shape: f32[1,128], index: 1, kind: input, shape index: {}]   ;;  %s106_s2 = inlined_call_operand.vmem [shape: f32[1,128], index: 2, kind: input, shape index: {}]   ;;  %s107_s3 = inlined_call_operand.vmem [shape: f32[32,128], index: 3, kind: output, shape index: {}]  }
   0x1   :  { %v14_v0 = vld [vmem:[%s104_s0] sm:$0xff]  ;;  %v15_v4 = vld [vmem:[%s104_s0 + $0x8] sm:$0xff]  ;;  %v16_v5 = vld [vmem:[%s104_s0 + $0x10] sm:$0xff] }
   0x2   :  { %v52_v1 = vld [vmem:[%s105_s1] ss:$0 sm:$0xff]  ;;  %v17_v6 = vld [vmem:[%s104_s0 + $0x18] sm:$0xff] }
   0x3   :  { %v53_v2 = vld [vmem:[%s106_s2] ss:$0 sm:$0xff]  ;;  %v25_v3 = vmul.f32 %v52_v1, %v14_v0  ;;  %v26_v7 = vmul.f32 %v52_v1, %v15_v4  ;;  %v27_v8 = vmul.f32 %v52_v1, %v16_v5  ;;  %v28_v9 = vmul.f32 %v52_v1, %v17_v6 }
   0x5   :  { %v36_v10 = vadd.f32 %v53_v2, %v25_v3  ;;  %v37_v11 = vadd.f32 %v53_v2, %v26_v7  ;;  %v38_v12 = vadd.f32 %v53_v2, %v27_v8  ;;  %v39_v13 = vadd.f32 %v53_v2, %v28_v9 }
   0x7   :  { %v40_v14 = vmax.f32 %v36_v10, 0.0  ;;  %v41_v15 = vmax.f32 %v37_v11, 0.0  ;;  %v42_v16 = vmax.f32 %v38_v12, 0.0  ;;  %v43_v17 = vmax.f32 %v39_v13, 0.0 }
   0x9   :  { %44 = vst [vmem:[%s107_s3] sm:$0xff] %v40_v14  ;;  %45 = vst [vmem:[%s107_s3 + $0x8] sm:$0xff] %v41_v15 }
   0xa   :  { %46 = vst [vmem:[%s107_s3 + $0x10] sm:$0xff] %v42_v16  ;;  %47 = vst [vmem:[%s107_s3 + $0x18] sm:$0xff] %v43_v17 }

// kernel: resnet_tpb_forward.51
= control target key start
LH: loop header
LB: loop body
LE: loop exit
PB: predicated region body
PF: predicated region fallthrough
CT: control target
= control target key end

     0   :  { %s1160_s15 = smov 0   ;;  %s1162_s16 = smov 0   ;;  %s1315_s0 = inlined_call_operand.vmem [shape: bf16[32,1152], index: 0, kind: input, shape index: {}]   ;;  %s1316_s1 = inlined_call_operand.vmem [shape: bf16[1152,128], index: 1, kind: input, shape index: {}]   ;;  %s1317_s2 = inlined_call_operand.vmem [shape: f32[32,128], index: 2, kind: output, shape index: {0}]   ;;  %s1318_s3 = inlined_call_operand.vmem [shape: f32[8,128], index: 3, kind: output, shape index: {1}]   ;;  %s1319_s4 = inlined_call_operand.vmem [shape: f32[8,128], index: 4, kind: output, shape index: {2}]  }
   0x1   :  { %s1164_s17 = smov 0   ;;  %s1166_s18 = smov 0  }
   0x2   :  { %s1168_s19 = smov 0  }
   0x3 LB: > { %s27_s20 = sadd.s32 1, %s1128_s18  ;;  %p50_p1 = scmp.ne.s32.totalorder %s1120_s16, %s1116_s15  ;;  %s1132_s19 = sphi %s1168_s19, %s15_s19   ;;  %s1128_s18 = sphi %s1166_s18, %s1323_s18   ;;  %s1124_s17 = sphi %s1164_s17, %s1322_s17   ;;  %s1120_s16 = sphi %s1162_s16, %s1321_s16   ;;  %s1116_s15 = sphi %s1160_s15, %s1320_s15  }
   0x4   : > { %p28_p0 = scmp.ge.s32.totalorder %s27_s20, 3  ;;  %p51_p2 = scmp.eq.s32.totalorder %s1132_s19, 0 }
   0x5   : > { %s43_s22 = sadd.s32 1, %s1120_s16  ;;  %p910_p5 = scmp.ge.s32.totalorder %s1132_s19, 3 }
   0x6   : > { %s1325_s20 = smov (%p28_p0, %s27_s20), 0  ;;  %p52_p3 = por %p51_p2, %p50_p1 }
   0x7   : > { %s39_s21 = ssub.s32 %s1128_s18, %s1325_s20  ;;  %188 = sbr.rel (%p910_p5) target bundleno = 23 (0x17), region = 16 }
   0x8   : > { %p41_p4 = scmp.eq.s32.totalorder %s39_s21, 0 }
   0xa   : > { %s1195_s23 = scalar_select %p41_p4, %s1120_s16, %s43_s22  }
   0xe   : > { %191 = sbr.rel (!%p52_p3) target bundleno = 23 (0x17), region = 20  ;;  %s193_s24 = sand.u32 (%p52_p3), 1, %s1120_s16  }
   0xf   : > { %s960_s25 = smul.u32 (%p52_p3), 12, %s1128_s18 }
  0x10   : > { %s1019_s26 = smul.u32 (%p52_p3), 48, %s193_s24 }
  0x11   : > { %s201_s29 = scalar_lea.vmem (%p52_p3), %s1315_s0, %s960_s25 }
  0x12   : > { %v216_v0 = vld [vmem:[%s201_s29] sm:$0xff] (%p52_p3)  ;;  %v220_v2 = vld [vmem:[%s201_s29 + $0x48] sm:$0xff] (%p52_p3)  ;;  %s195_s30 = scalar_lea.vmem (%p52_p3), [#allocation2], %s1019_s26  ;;  %v916_v6 = vld [vmem:[%s201_s29 + $0x50] sm:$0xf] (%p52_p3) }
  0x13   : > { %v218_v1 = vld [vmem:[%s201_s29 + $0x24] sm:$0xff] (%p52_p3)  ;;  %217 = vst [vmem:[%s195_s30] sm:$0xff] (%p52_p3), %v216_v0  ;;  %221 = vst [vmem:[%s195_s30 + $0x18] sm:$0xff] (%p52_p3), %v220_v2  ;;  %v222_v3 = vld [vmem:[%s201_s29 + $0x6c] sm:$0xff] (%p52_p3) }
  0x14   : > { %219 = vst [vmem:[%s195_s30 + $0xc] sm:$0xff] (%p52_p3), %v218_v1  ;;  %v912_v4 = vld [vmem:[%s201_s29 + $0x8] sm:$0xf] (%p52_p3)  ;;  %v914_v5 = vld [vmem:[%s201_s29 + $0x2c] sm:$0xf] (%p52_p3)  ;;  %223 = vst [vmem:[%s195_s30 + $0x24] sm:$0xff] (%p52_p3), %v222_v3 }
  0x15   : > { %913 = vst [vmem:[%s195_s30 + $0x8] sm:$0xf] %v912_v4  ;;  %915 = vst [vmem:[%s195_s30 + $0x14] sm:$0xf] %v914_v5  ;;  %v918_v7 = vld [vmem:[%s201_s29 + $0x74] sm:$0xf] }
  0x16   : > { %917 = vst [vmem:[%s195_s30 + $0x20] sm:$0xf] %v916_v6  ;;  %919 = vst [vmem:[%s195_s30 + $0x2c] sm:$0xf] %v918_v7 }
  0x17 PF: > { %p920_p6 = scmp.ge.s32.totalorder %s1132_s19, 1  ;;  %p255_p7 = scmp.lt.s32.totalorder %s1132_s19, 4 }
  0x19   : > { %p256_p8 = pnand %p920_p6, %p255_p7 }
  0x1a   : > { %s262_s5 = sand.u32 (!%p256_p8), 1, %s1116_s15   ;;  %s314_s6 = smul.u32 (!%p256_p8), 48, %s1124_s17 }
  0x1b   : > { %259 = sbr.rel (%p256_p8) target bundleno = 328 (0x148), region = 50  ;;  %p922_p10 = scmp.ne.s32.totalorder (!%p256_p8), %s1124_s17, 0 }
  0x1c   : > { %s1020_s7 = smul.u32 (!%p256_p8), 48, %s262_s5  ;;  %p315_p9 = scmp.lt.s32.totalorder (!%p256_p8), %s314_s6, 143 }
  0x1e   : > { %s1212_s12 = scalar_lea.vmem (!%p256_p8), [#allocation2], %s1020_s7 }
  0x22   : > { %s1327_s6 = smov (!%p315_p9, %s314_s6), 143  ;;  %350 = sbr.rel (%p922_p10) target bundleno = 41 (0x29), region = 58 }
  0x23   : > { %s921_s8 = sshll.u32 %s1327_s6, 2  ;;  %v1134_v8 = vmov (!%p922_p10), 0.0  }
  0x24   : > { %s1210_s11 = scalar_lea.vmem %s1316_s1, %s921_s8  ;;  %351 = vst [vmem:[%s1317_s2] sm:$0xff] (!%p922_p10), %v1134_v8  ;;  %352 = vst [vmem:[%s1317_s2 + $0x8] sm:$0xff] (!%p922_p10), %v1134_v8 }
  0x25   : > { %353 = vst [vmem:[%s1317_s2 + $0x10] sm:$0xff] (!%p922_p10), %v1134_v8  ;;  %354 = vst [vmem:[%s1317_s2 + $0x18] sm:$0xff] (!%p922_p10), %v1134_v8 }
  0x29 PF: > { %v1062_v9 = vld [vmem:[%s1210_s11 + $0x40] sm:$0xff]   ;;  %v1065_v12 = vld [vmem:[%s1210_s11 + $0x48] sm:$0xff]   ;;  %v1068_v15 = vld [vmem:[%s1210_s11 + $0x50] sm:$0xff]   ;;  %p953_p11 = scmp.ne.s32.totalorder %s1124_s17, 2 }
  0x2a   : > { %v1063_v10 = vld [vmem:[%s1210_s11] sm:$0xff]   ;;  %961 = vmatprep.subr.bf16.mxu0 %v1062_v9  ;;  %v1066_v13 = vld [vmem:[%s1210_s11 + $0x8] sm:$0xff]   ;;  %v1069_v16 = vld [vmem:[%s1210_s11 + $0x10] sm:$0xff]  }
  0x2b   : > { %v1064_v11 = vld [vmem:[%s1210_s11 + $0x80] sm:$0xff]   ;;  %962 = vmatpush3.bf16.msra.mxu0 %v1063_v10  ;;  %v1067_v14 = vld [vmem:[%s1210_s11 + $0x88] sm:$0xff]   ;;  %v1070_v17 = vld [vmem:[%s1210_s11 + $0x90] sm:$0xff]  }
  0x2c   : > { %999 = vmatprep.subr.bf16.mxu1 %v1064_v11  ;;  %963 = vmatprep.subr.bf16.mxu0 %v1065_v12  ;;  %v1071_v18 = vld [vmem:[%s1210_s11 + $0x58] sm:$0xff]   ;;  %v1074_v21 = vld [vmem:[%s1210_s11 + $0x60] sm:$0xff]   ;;  %v1077_v24 = vld [vmem:[%s1210_s11 + $0x68] sm:$0xff]  }
  0x2d   : > { %1000 = vmatpush3.bf16.msra.mxu1 %v1064_v11  ;;  %v1072_v19 = vld [vmem:[%s1210_s11 + $0x18] sm:$0xff]   ;;  %v1076_v22 = vld [vmem:[%s1210_s11 + $0xa0] sm:$0xff]   ;;  %v1079_v25 = vld [vmem:[%s1210_s11 + $0xa8] sm:$0xff]  }
  0x2e   : > { %1001 = vmatprep.subr.bf16.mxu1 %v1067_v14  ;;  %v1073_v20 = vld [vmem:[%s1210_s11 + $0x98] sm:$0xff]   ;;  %v1075_v23 = vld [vmem:[%s1210_s11 + $0x20] sm:$0xff]   ;;  %v1078_v26 = vld [vmem:[%s1210_s11 + $0x28] sm:$0xff]  }
  0x2f   : > { %964 = vmatpush3.bf16.msra.mxu0 %v1066_v13  ;;  %v1080_v27 = vld [vmem:[%s1210_s11 + $0x70] sm:$0xff]   ;;  %v1083_v30 = vld [vmem:[%s1210_s11 + $0x78] sm:$0xff]   ;;  %v355_v45 = vld [vmem:[%s1317_s2] sm:$0xff] }
  0x30   : > { %965 = vmatprep.subr.bf16.mxu0 %v1068_v15  ;;  %v1081_v28 = vld [vmem:[%s1210_s11 + $0x30] sm:$0xff]   ;;  %v1085_v31 = vld [vmem:[%s1210_s11 + $0xb8] sm:$0xff]   ;;  %v356_v50 = vld [vmem:[%s1317_s2 + $0x8] sm:$0xff] }
  0x31   : > { %1002 = vmatpush3.bf16.msra.mxu1 %v1067_v14  ;;  %v1082_v29 = vld [vmem:[%s1210_s11 + $0xb0] sm:$0xff]   ;;  %v1084_v34 = vld [vmem:[%s1210_s11 + $0x38] sm:$0xff]  }
  0x32   : > { %1003 = vmatprep.subr.bf16.mxu1 %v1070_v17  ;;  %v1088_v32 = vld [vmem:[%s1212_s12 + $0x4] ss:$12 sps:$4 sm:$0xff]   ;;  %v1089_v33 = vld [vmem:[%s1212_s12 + $0x8] ss:$12 sps:$4 sm:$0xff]   ;;  %v1086_v35 = vld [vmem:[%s1212_s12] ss:$12 sps:$4 sm:$0xff]  }
  0x33   : > { %966 = vmatpush3.bf16.msra.mxu0 %v1069_v16  ;;  %623 = vmatprep.mubr.bf16.mxu0 %v1088_v32  ;;  %v1091_v36 = vld [vmem:[%s1212_s12 + $0x1c] ss:$12 sps:$4 sm:$0xff]   ;;  %v1090_v37 = vld [vmem:[%s1212_s12 + $0x20] ss:$12 sps:$4 sm:$0xff]   ;;  %v1093_v38 = vld [vmem:[%s1212_s12 + $0x18] ss:$12 sps:$4 sm:$0xff]  }
  0x34   : > { %967 = vmatprep.subr.bf16.mxu0 %v1071_v18  ;;  %1015 = vmatprep.mubr.bf16.mxu1 %v1089_v33  ;;  %v357_v59 = vld [vmem:[%s1317_s2 + $0x10] sm:$0xff]  ;;  %v358_v63 = vld [vmem:[%s1317_s2 + $0x18] sm:$0xff] }
  0x35   : > { %1004 = vmatpush3.bf16.msra.mxu1 %v1070_v17 }
  0x36   : > { %1005 = vmatprep.subr.bf16.mxu1 %v1073_v20 }
  0x37   : > { %968 = vmatpush3.bf16.msra.mxu0 %v1072_v19 }
  0x38   : > { %969 = vmatprep.subr.bf16.mxu0 %v1074_v21 }
  0x39   : > { %1006 = vmatpush3.bf16.msra.mxu1 %v1073_v20 }
  0x3a   : > { %1007 = vmatprep.subr.bf16.mxu1 %v1076_v22 }
  0x3b   : > { %970 = vmatpush3.bf16.msra.mxu0 %v1075_v23 }
  0x3c   : > { %971 = vmatprep.subr.bf16.mxu0 %v1077_v24 }
  0x3d   : > { %1008 = vmatpush3.bf16.msra.mxu1 %v1076_v22 }
  0x3e   : > { %1009 = vmatprep.subr.bf16.mxu1 %v1079_v25 }
  0x3f   : > { %972 = vmatpush3.bf16.msra.mxu0 %v1078_v26 }
  0x40   : > { %973 = vmatprep.subr.bf16.mxu0 %v1080_v27 }
  0x41   : > { %1010 = vmatpush3.bf16.msra.mxu1 %v1079_v25 }
  0x42   : > { %1011 = vmatprep.subr.bf16.mxu1 %v1082_v29 }
  0x43   : > { %974 = vmatpush3.bf16.msra.mxu0 %v1081_v28 }
  0x44   : > { %975 = vmatprep.subr.bf16.mxu0 %v1083_v30 }
  0x45   : > { %1012 = vmatpush3.bf16.msra.mxu1 %v1082_v29 }
  0x46   : > { %1013 = vmatprep.subr.bf16.mxu1 %v1085_v31 }
  0x47   : > { %976 = vmatpush3.bf16.msra.mxu0 %v1084_v34 }
  0x49   : > { %1014 = vmatpush3.bf16.msra.mxu1 %v1085_v31 }
  0x4a   : > { %624 = vmatmul.mubr.bf16.vlgmr.msra.gmra.mrb[0].mxu0 %v1086_v35 }
  0x4b   : > { %631 = vmatprep.mubr.bf16.mxu0 %v1091_v36 }
  0x4c   : > { %1016 = vmatmul.mubr.bf16.vlgmr.msra.gmra.mrb[0].mxu1 %v1090_v37 }
  0x52   : > { %632 = vmatmul.mubr.bf16.gmra.mrb[4].mxu0 %v1093_v38 }
 0x11d   : > { %v977_v39 = vpop.f32.mrb[0].mxu0 }
 0x11e   : > { %v978_v40 = vpop.f32.mrb[1].mxu0 }
 0x11f   : > { %v979_v41 = vadd.f32 %v978_v40, %v977_v39  ;;  %v980_v42 = vpop.f32.mrb[2].mxu0  ;;  %v1017_v43 = vpop.f32.mrb[0].mxu1 }
 0x120   : > { %v981_v44 = vpop.f32.mrb[3].mxu0  ;;  %v674_v46 = vpop.f32.mrb[1].mxu1 }
 0x121   : > { %v982_v47 = vadd.f32 %v981_v44, %v980_v42  ;;  %v675_v48 = vadd.f32 %v979_v41, %v674_v46  ;;  %v1018_v49 = vpop.f32.mrb[2].mxu1 }
 0x122   : > { %v677_v51 = vpop.f32.mrb[3].mxu1 }
 0x123   : > { %v689_v52 = vadd.f32 %v675_v48, %v355_v45  ;;  %v678_v53 = vadd.f32 %v982_v47, %v677_v51 }
 0x125   : > { %693 = vst [vmem:[%s1317_s2] sm:$0xff] %v689_v52  ;;  %v690_v54 = vadd.f32 %v678_v53, %v356_v50  ;;  %v983_v55 = vpop.f32.mrb[4].mxu0 }
 0x126   : > { %v984_v56 = vpop.f32.mrb[5].mxu0 }
 0x127   : > { %694 = vst [vmem:[%s1317_s2 + $0x8] sm:$0xff] %v690_v54  ;;  %v985_v57 = vadd.f32 %v984_v56, %v983_v55  ;;  %v986_v58 = vpop.f32.mrb[6].mxu0 }
 0x128   : > { %v987_v60 = vpop.f32.mrb[7].mxu0 }
 0x129   : > { %v683_v61 = vadd.f32 %v1017_v43, %v985_v57  ;;  %v988_v62 = vadd.f32 %v987_v60, %v986_v58  ;;  %700 = sbr.rel (%p953_p11) target bundleno = 328 (0x148), region = 62 }
 0x12b   : > { %v691_v0 = vadd.f32 %v683_v61, %v357_v59  ;;  %v686_v1 = vadd.f32 %v1018_v49, %v988_v62 }
 0x12c   : > { %v701_v3 = vld [vmem:[%s1317_s2] sm:$0xff] (!%p953_p11) }
 0x12d   : > { %695 = vst [vmem:[%s1317_s2 + $0x10] sm:$0xff] %v691_v0  ;;  %v692_v2 = vadd.f32 %v686_v1, %v358_v63  ;;  %v714_v8 = vmul.f32 (!%p953_p11), %v701_v3, %v701_v3 }
 0x12e   : > { %v702_v4 = vld [vmem:[%s1317_s2 + $0x8] sm:$0xff] (!%p953_p11) }
 0x12f   : > { %696 = vst [vmem:[%s1317_s2 + $0x18] sm:$0xff] %v692_v2  ;;  %v705_v7 = vadd.f32 (!%p953_p11), %v702_v4, %v701_v3  ;;  %v715_v9 = vmul.f32 (!%p953_p11), %v702_v4, %v702_v4 }
 0x131   : > { %v718_v13 = vadd.f32 %v715_v9, %v714_v8 }
 0x134   : > { %v703_v5 = vld [vmem:[%s1317_s2 + $0x10] sm:$0xff] }
 0x135   : > { %v716_v10 = vmul.f32 %v703_v5, %v703_v5  ;;  %v706_v11 = vadd.f32 %v705_v7, %v703_v5 }
 0x136   : > { %v704_v6 = vld [vmem:[%s1317_s2 + $0x18] sm:$0xff] }
 0x137   : > { %v717_v12 = vmul.f32 %v704_v6, %v704_v6  ;;  %v707_v14 = vadd.f32 %v706_v11, %v704_v6  ;;  %v719_v15 = vadd.f32 %v718_v13, %v716_v10 }
 0x139   : > { %v708_v16 = vrot.slane %v707_v14, 4  ;;  %v720_v17 = vadd.f32 %v719_v15, %v717_v12 }
 0x13b   : > { %v709_v18 = vadd.f32 %v708_v16, %v707_v14  ;;  %v721_v19 = vrot.slane %v720_v17, 4 }
 0x13d   : > { %v710_v20 = vrot.slane %v709_v18, 2  ;;  %v722_v21 = vadd.f32 %v721_v19, %v720_v17 }
 0x13f   : > { %v711_v22 = vadd.f32 %v710_v20, %v709_v18  ;;  %v723_v23 = vrot.slane %v722_v21, 2 }
 0x141   : > { %v712_v24 = vrot.slane %v711_v22, 1  ;;  %v724_v25 = vadd.f32 %v723_v23, %v722_v21 }
 0x143   : > { %v713_v26 = vadd.f32 %v712_v24, %v711_v22  ;;  %v725_v27 = vrot.slane %v724_v25, 1 }
 0x145   : > { %727 = vst [vmem:[%s1318_s3] sm:$0xff] %v713_v26  ;;  %v726_v28 = vadd.f32 %v725_v27, %v724_v25 }
 0x147   : > { %728 = vst [vmem:[%s1319_s4] sm:$0xff] %v726_v28 }
 0x148 PF: > { %s15_s19 = sadd.s32 1, %s1132_s19   ;;  %s1320_s15 = smov %s1120_s16 }
 0x149   : > { %p12_p12 = scmp.ge.s32.totalorder %s15_s19, 5   ;;  %s1321_s16 = smov %s1195_s23 }
 0x14a   : > { %s1322_s17 = smov %s1128_s18  ;;  %s1323_s18 = smov %s1325_s20 }
 0x14b   :  { %14 = sbr.rel (!%p12_p12) target bundleno = 3 (0x3), region = 130 }

// kernel: resnet_tpb_forward.56
= control target key start
LH: loop header
LB: loop body
LE: loop exit
PB: predicated region body
PF: predicated region fallthrough
CT: control target
= control target key end

     0   :  { %s132_s0 = inlined_call_operand.vmem [shape: f32[32,128], index: 0, kind: input, shape index: {}]   ;;  %s133_s1 = inlined_call_operand.vmem [shape: f32[1,128], index: 1, kind: input, shape index: {}]   ;;  %s134_s2 = inlined_call_operand.vmem [shape: f32[1,128], index: 2, kind: input, shape index: {}]   ;;  %s135_s3 = inlined_call_operand.vmem [shape: f32[32,128], index: 3, kind: input, shape index: {}]   ;;  %s136_s4 = inlined_call_operand.vmem [shape: f32[32,128], index: 4, kind: output, shape index: {}]  }
   0x1   :  { %v17_v0 = vld [vmem:[%s132_s0] sm:$0xff]  ;;  %v18_v4 = vld [vmem:[%s132_s0 + $0x8] sm:$0xff]  ;;  %v19_v7 = vld [vmem:[%s132_s0 + $0x10] sm:$0xff] }
   0x2   :  { %v63_v1 = vld [vmem:[%s133_s1] ss:$0 sm:$0xff]  ;;  %v20_v8 = vld [vmem:[%s132_s0 + $0x18] sm:$0xff]  ;;  %v44_v10 = vld [vmem:[%s135_s3 + $0x8] sm:$0xff] }
   0x3   :  { %v64_v2 = vld [vmem:[%s134_s2] ss:$0 sm:$0xff]  ;;  %v28_v3 = vmul.f32 %v63_v1, %v17_v0  ;;  %v29_v6 = vmul.f32 %v63_v1, %v18_v4  ;;  %v30_v11 = vmul.f32 %v63_v1, %v19_v7  ;;  %v31_v12 = vmul.f32 %v63_v1, %v20_v8  ;;  %v45_v14 = vld [vmem:[%s135_s3 + $0x10] sm:$0xff]  ;;  %v46_v15 = vld [vmem:[%s135_s3 + $0x18] sm:$0xff] }
   0x4   :  { %v43_v5 = vld [vmem:[%s135_s3] sm:$0xff] }
   0x5   :  { %v39_v9 = vadd.f32 %v64_v2, %v28_v3  ;;  %v40_v13 = vadd.f32 %v64_v2, %v29_v6  ;;  %v41_v17 = vadd.f32 %v64_v2, %v30_v11  ;;  %v42_v18 = vadd.f32 %v64_v2, %v31_v12 }
   0x7   :  { %v47_v16 = vadd.f32 %v43_v5, %v39_v9  ;;  %v48_v19 = vadd.f32 %v44_v10, %v40_v13  ;;  %v49_v21 = vadd.f32 %v45_v14, %v41_v17  ;;  %v50_v22 = vadd.f32 %v46_v15, %v42_v18 }
   0x9   :  { %v51_v20 = vmax.f32 %v47_v16, 0.0  ;;  %v52_v23 = vmax.f32 %v48_v19, 0.0  ;;  %v53_v24 = vmax.f32 %v49_v21, 0.0  ;;  %v54_v25 = vmax.f32 %v50_v22, 0.0 }
   0xb   :  { %55 = vst [vmem:[%s136_s4] sm:$0xff] %v51_v20  ;;  %56 = vst [vmem:[%s136_s4 + $0x8] sm:$0xff] %v52_v23 }
   0xc   :  { %57 = vst [vmem:[%s136_s4 + $0x10] sm:$0xff] %v53_v24  ;;  %58 = vst [vmem:[%s136_s4 + $0x18] sm:$0xff] %v54_v25 }

// kernel: resnet_tpb_forward.64
= control target key start
LH: loop header
LB: loop body
LE: loop exit
PB: predicated region body
PF: predicated region fallthrough
CT: control target
= control target key end

     0   :  { %v254_v1 = vmov 0   ;;  %s349_s1 = inlined_call_operand.vmem [shape: bf16[128,256], index: 1, kind: input, shape index: {}]   ;;  %s350_s0 = inlined_call_operand.vmem [shape: bf16[8,128], index: 0, kind: input, shape index: {}]   ;;  %s351_s2 = inlined_call_operand.vmem [shape: f32[8,256], index: 2, kind: output, shape index: {0}]   ;;  %s352_s3 = inlined_call_operand.vmem [shape: f32[8,256], index: 3, kind: output, shape index: {1}]   ;;  %s353_s4 = inlined_call_operand.vmem [shape: f32[8,256], index: 4, kind: output, shape index: {2}]  }
   0x1   :  { %v230_v0 = vld [vmem:[%s349_s1 + $0x4] ss:$8 sps:$4 sm:$0xff]   ;;  %152 = vmatprep.mubr.bf16.mxu0 %v254_v1  ;;  %v232_v2 = vld [vmem:[%s349_s1] ss:$8 sps:$4 sm:$0xff]   ;;  %v233_v3 = vld [vmem:[%s349_s1 + $0x14] ss:$8 sps:$4 sm:$0xff]  }
   0x2   :  { %120 = vmatprep.subr.bf16.mxu0 %v230_v0  ;;  %v235_v4 = vld [vmem:[%s349_s1 + $0x10] ss:$8 sps:$4 sm:$0xff]   ;;  %v236_v5 = vld [vmem:[%s349_s1 + $0x24] ss:$8 sps:$4 sm:$0xff]   ;;  %v238_v6 = vld [vmem:[%s349_s1 + $0x20] ss:$8 sps:$4 sm:$0xff]  }
   0x3   :  { %121 = vmatpush1.bf16.msra.mxu0 %v232_v2  ;;  %v239_v7 = vld [vmem:[%s349_s1 + $0x34] ss:$8 sps:$4 sm:$0xff]   ;;  %v241_v8 = vld [vmem:[%s349_s1 + $0x30] ss:$8 sps:$4 sm:$0xff]   ;;  %v242_v9 = vld [vmem:[%s349_s1 + $0x44] ss:$8 sps:$4 sm:$0xff]  }
   0x4   :  { %122 = vmatprep.subr.bf16.mxu0 %v233_v3  ;;  %v244_v10 = vld [vmem:[%s349_s1 + $0x40] ss:$8 sps:$4 sm:$0xff]   ;;  %v245_v11 = vld [vmem:[%s349_s1 + $0x54] ss:$8 sps:$4 sm:$0xff]   ;;  %v247_v12 = vld [vmem:[%s349_s1 + $0x50] ss:$8 sps:$4 sm:$0xff]  }
   0x5   :  { %v248_v13 = vld [vmem:[%s349_s1 + $0x64] ss:$8 sps:$4 sm:$0xff]   ;;  %v250_v14 = vld [vmem:[%s349_s1 + $0x60] ss:$8 sps:$4 sm:$0xff]   ;;  %v251_v15 = vld [vmem:[%s349_s1 + $0x74] ss:$8 sps:$4 sm:$0xff]  }
   0x6   :  { %v253_v16 = vld [vmem:[%s349_s1 + $0x70] ss:$8 sps:$4 sm:$0xff]   ;;  %v23_v17 = vld [vmem:[%s350_s0] sm:$0xf] }
   0x7   :  { %123 = vmatpush1.bf16.msra.mxu0 %v235_v4 }
   0x8   :  { %124 = vmatprep.subr.bf16.mxu0 %v236_v5 }
   0xb   :  { %125 = vmatpush1.bf16.msra.mxu0 %v238_v6 }
   0xc   :  { %126 = vmatprep.subr.bf16.mxu0 %v239_v7 }
   0xf   :  { %127 = vmatpush1.bf16.msra.mxu0 %v241_v8 }
  0x10   :  { %128 = vmatprep.subr.bf16.mxu0 %v242_v9 }
  0x13   :  { %129 = vmatpush1.bf16.msra.mxu0 %v244_v10 }
  0x14   :  { %130 = vmatprep.subr.bf16.mxu0 %v245_v11 }
  0x17   :  { %131 = vmatpush1.bf16.msra.mxu0 %v247_v12 }
  0x18   :  { %132 = vmatprep.subr.bf16.mxu0 %v248_v13 }
  0x1b   :  { %133 = vmatpush1.bf16.msra.mxu0 %v250_v14 }
  0x1c   :  { %134 = vmatprep.subr.bf16.mxu0 %v251_v15 }
  0x1f   :  { %135 = vmatpush1.bf16.msra.mxu0 %v253_v16 }
  0x22   :  { %153 = vmatmul.mubr.bf16.vlgmr.msra.gmra.mrb[0].mxu0 %v23_v17 }
  0xf5   :  { %v154_v18 = vpop.f32.mrb[0].mxu0 }
  0xf6   :  { %v156_v19 = vpop.f32.mrb[1].mxu0  ;;  %163 = vst [vmem:[%s351_s2] sm:$0xff] %v154_v18  ;;  %v170_v21 = vrot.slane %v154_v18, 4  ;;  %v182_v22 = vmul.f32 %v154_v18, %v154_v18 }
  0xf7   :  { %v158_v20 = vpop.f32.mrb[2].mxu0  ;;  %164 = vst [vmem:[%s351_s2 + $0x8] sm:$0xff] %v156_v19  ;;  %v176_v24 = vrot.slane %v156_v19, 4  ;;  %v183_v25 = vmul.f32 %v156_v19, %v156_v19 }
  0xf8   :  { %v159_v23 = vpop.f32.mrb[3].mxu0  ;;  %v171_v26 = vadd.f32 %v170_v21, %v154_v18  ;;  %v184_v27 = vrot.slane %v182_v22, 4 }
  0xf9   :  { %v177_v28 = vadd.f32 %v176_v24, %v156_v19  ;;  %v190_v29 = vrot.slane %v183_v25, 4 }
  0xfa   :  { %v172_v30 = vrot.slane %v171_v26, 2  ;;  %v185_v31 = vadd.f32 %v184_v27, %v182_v22 }
  0xfb   :  { %v178_v32 = vrot.slane %v177_v28, 2  ;;  %v191_v33 = vadd.f32 %v190_v29, %v183_v25 }
  0xfc   :  { %v173_v34 = vadd.f32 %v172_v30, %v171_v26  ;;  %v186_v35 = vrot.slane %v185_v31, 2 }
  0xfd   :  { %v179_v36 = vadd.f32 %v178_v32, %v177_v28  ;;  %v192_v37 = vrot.slane %v191_v33, 2 }
  0xfe   :  { %v174_v38 = vrot.slane %v173_v34, 1  ;;  %v187_v39 = vadd.f32 %v186_v35, %v185_v31 }
  0xff   :  { %v180_v40 = vrot.slane %v179_v36, 1  ;;  %v193_v41 = vadd.f32 %v192_v37, %v191_v33 }
 0x100   :  { %v175_v42 = vadd.f32 %v174_v38, %v173_v34  ;;  %v188_v43 = vrot.slane %v187_v39, 1 }
 0x101   :  { %v181_v44 = vadd.f32 %v180_v40, %v179_v36  ;;  %v194_v45 = vrot.slane %v193_v41, 1 }
 0x102   :  { %v189_v46 = vadd.f32 %v188_v43, %v187_v39  ;;  %196 = vst [vmem:[%s352_s3] sm:$0xff] %v175_v42 }
 0x103   :  { %v195_v47 = vadd.f32 %v194_v45, %v193_v41  ;;  %197 = vst [vmem:[%s352_s3 + $0x8] sm:$0xff] %v181_v44 }
 0x104   :  { %198 = vst [vmem:[%s353_s4] sm:$0xff] %v189_v46 }
 0x105   :  { %199 = vst [vmem:[%s353_s4 + $0x8] sm:$0xff] %v195_v47 }

// kernel: resnet_tpb_forward.65
= control target key start
LH: loop header
LB: loop body
LE: loop exit
PB: predicated region body
PF: predicated region fallthrough
CT: control target
= control target key end

     0   :  { %v18_v0 = vlaneseq  ;;  %s88_s1 = inlined_call_operand.vmem [shape: f32[1,256], index: 1, kind: input, shape index: {}]   ;;  %s89_s2 = inlined_call_operand.vmem [shape: f32[1,256], index: 2, kind: input, shape index: {}]   ;;  %s90_s0 = inlined_call_operand.vmem [shape: f32[8,256], index: 0, kind: input, shape index: {}]   ;;  %s91_s3 = inlined_call_operand.vmem [shape: f32[8,256], index: 3, kind: output, shape index: {}]  }
   0x1   :  { %v16_v2 = vld [vmem:[%s88_s1] sm:$0x3]  ;;  %v15_v7 = vld [vmem:[%s90_s0 + $0x8] sm:$0xff] }
   0x2   :  { %v19_v1 = vshrl.u32 %v18_v0, 7  ;;  %v30_v3 = vld [vmem:[%s89_s2] sm:$0x3] }
   0x3   :  { %v14_v6 = vld [vmem:[%s90_s0] sm:$0xff] }
   0x4   :  { %v20_v4 = vsub.s32 0, %v19_v1  ;;  %v24_v5 = vsub.s32 1, %v19_v1 }
   0x6   :  { %v21_v8 = vrot.slane %v16_v2, %v20_v4  ;;  %v35_v9 = vrot.slane %v30_v3, %v20_v4  ;;  %v25_v10 = vrot.slane %v16_v2, %v24_v5  ;;  %v39_v11 = vrot.slane %v30_v3, %v24_v5 }
   0x8   :  { %v28_v12 = vmul.f32 %v21_v8, %v14_v6  ;;  %v29_v13 = vmul.f32 %v25_v10, %v15_v7 }
   0xa   :  { %v42_v14 = vadd.f32 %v35_v9, %v28_v12  ;;  %v43_v15 = vadd.f32 %v39_v11, %v29_v13 }
   0xc   :  { %44 = vst [vmem:[%s91_s3] sm:$0xff] %v42_v14  ;;  %45 = vst [vmem:[%s91_s3 + $0x8] sm:$0xff] %v43_v15 }

// kernel: resnet_tpb_forward.62
= control target key start
LH: loop header
LB: loop body
LE: loop exit
PB: predicated region body
PF: predicated region fallthrough
CT: control target
= control target key end

     0   :  { %v18_v0 = vlaneseq  ;;  %s90_s1 = inlined_call_operand.vmem [shape: f32[1,256], index: 1, kind: input, shape index: {}]   ;;  %s91_s2 = inlined_call_operand.vmem [shape: f32[1,256], index: 2, kind: input, shape index: {}]   ;;  %s92_s0 = inlined_call_operand.vmem [shape: f32[8,256], index: 0, kind: input, shape index: {}]   ;;  %s93_s3 = inlined_call_operand.vmem [shape: f32[8,256], index: 3, kind: output, shape index: {}]  }
   0x1   :  { %v16_v2 = vld [vmem:[%s90_s1] sm:$0x3]  ;;  %v15_v7 = vld [vmem:[%s92_s0 + $0x8] sm:$0xff] }
   0x2   :  { %v19_v1 = vshrl.u32 %v18_v0, 7  ;;  %v30_v3 = vld [vmem:[%s91_s2] sm:$0x3] }
   0x3   :  { %v14_v6 = vld [vmem:[%s92_s0] sm:$0xff] }
   0x4   :  { %v20_v4 = vsub.s32 0, %v19_v1  ;;  %v24_v5 = vsub.s32 1, %v19_v1 }
   0x6   :  { %v21_v8 = vrot.slane %v16_v2, %v20_v4  ;;  %v35_v9 = vrot.slane %v30_v3, %v20_v4  ;;  %v25_v10 = vrot.slane %v16_v2, %v24_v5  ;;  %v39_v11 = vrot.slane %v30_v3, %v24_v5 }
   0x8   :  { %v28_v12 = vmul.f32 %v21_v8, %v14_v6  ;;  %v29_v13 = vmul.f32 %v25_v10, %v15_v7 }
   0xa   :  { %v42_v14 = vadd.f32 %v35_v9, %v28_v12  ;;  %v43_v15 = vadd.f32 %v39_v11, %v29_v13 }
   0xc   :  { %v44_v16 = vmax.f32 %v42_v14, 0.0  ;;  %v45_v17 = vmax.f32 %v43_v15, 0.0 }
   0xe   :  { %46 = vst [vmem:[%s93_s3] sm:$0xff] %v44_v16  ;;  %47 = vst [vmem:[%s93_s3 + $0x8] sm:$0xff] %v45_v17 }

// kernel: resnet_tpb_forward.61
= control target key start
LH: loop header
LB: loop body
LE: loop exit
PB: predicated region body
PF: predicated region fallthrough
CT: control target
= control target key end

     0   :  { %s1184_s15 = smov 0   ;;  %s1186_s16 = smov 0   ;;  %s1313_s0 = inlined_call_operand.vmem [shape: bf16[8,1152], index: 0, kind: input, shape index: {}]   ;;  %s1314_s1 = inlined_call_operand.vmem [shape: bf16[1152,256], index: 1, kind: input, shape index: {}]   ;;  %s1315_s2 = inlined_call_operand.vmem [shape: f32[8,256], index: 2, kind: output, shape index: {0}]   ;;  %s1316_s3 = inlined_call_operand.vmem [shape: f32[8,256], index: 3, kind: output, shape index: {1}]   ;;  %s1317_s4 = inlined_call_operand.vmem [shape: f32[8,256], index: 4, kind: output, shape index: {2}]  }
   0x1   :  { %s1188_s17 = smov 0  }
   0x2 LB: > { %s27_s18 = sadd.s32 1, %s1151_s16  ;;  %p966_p0 = scmp.ge.s32.totalorder %s1155_s17, 1  ;;  %s1155_s17 = sphi %s1188_s17, %s15_s17   ;;  %s1151_s16 = sphi %s1186_s16, %s1319_s16   ;;  %s1147_s15 = sphi %s1184_s15, %s1318_s15  }
   0x3   : > { %p28_p1 = scmp.ge.s32.totalorder %s27_s18, 3  ;;  %p218_p2 = scmp.lt.s32.totalorder %s1155_s17, 4 }
   0x5   : > { %s1321_s18 = smov (%p28_p1, %s27_s18), 0  ;;  %p219_p3 = pnand %p966_p0, %p218_p2 }
   0x6   : > { %s280_s19 = smul.u32 (!%p219_p3), 3, %s1147_s15  ;;  %p970_p6 = scmp.ne.s32.totalorder (!%p219_p3), %s1147_s15, 0 }
   0x7   : > { %222 = sbr.rel (%p219_p3) target bundleno = 329 (0x149), region = 28 }
   0x8   : > { %s290_s20 = smul.u32 (!%p219_p3), 48, %s1147_s15  ;;  %p283_p4 = scmp.lt.s32.totalorder (!%p219_p3), %s280_s19, 8 }
   0xa   : > { %p292_p5 = scmp.lt.s32.totalorder (!%p219_p3), %s290_s20, 143 }
   0xe   : > { %s1323_s19 = smov (!%p283_p4, %s280_s19), 8  ;;  %s1325_s20 = smov (!%p292_p5, %s290_s20), 143 }
   0xf   : > { %s967_s21 = sshll.u32 %s1323_s19, 2  ;;  %s1031_s25 = sshll.u32 %s1325_s20, 3  ;;  %v1157_v0 = vmov (!%p970_p6), 0.0  }
  0x10   : > { %s1209_s24 = scalar_lea.vmem %s1313_s0, %s967_s21  ;;  %s1214_s28 = scalar_lea.vmem %s1314_s1, %s1031_s25  ;;  %337 = vst [vmem:[%s1315_s2] sm:$0xff] (!%p970_p6), %v1157_v0  ;;  %338 = vst [vmem:[%s1315_s2 + $0x8] sm:$0xff] (!%p970_p6), %v1157_v0 }
  0x11   : > { %336 = sbr.rel (%p970_p6) target bundleno = 24 (0x18), region = 32 }
  0x18 PF: > { %v1058_v1 = vld [vmem:[%s1214_s28 + $0x4] ss:$8 sps:$4 sm:$0xff]   ;;  %v1060_v2 = vld [vmem:[%s1214_s28] ss:$8 sps:$4 sm:$0xff]   ;;  %v1158_v3 = vmov 0   ;;  %p1022_p7 = scmp.ne.s32.totalorder %s1147_s15, 2 }
  0x19   : > { %715 = vmatprep.mubr.bf16.mxu1 %v1158_v3  ;;  %642 = vmatprep.subr.bf16.mxu0 %v1058_v1  ;;  %v1061_v4 = vld [vmem:[%s1214_s28 + $0x14] ss:$8 sps:$4 sm:$0xff]   ;;  %v1063_v5 = vld [vmem:[%s1214_s28 + $0x10] ss:$8 sps:$4 sm:$0xff]   ;;  %v1064_v6 = vld [vmem:[%s1214_s28 + $0x24] ss:$8 sps:$4 sm:$0xff]  }
  0x1a   : > { %643 = vmatpush1.bf16.msra.mxu0 %v1060_v2  ;;  %v1066_v7 = vld [vmem:[%s1214_s28 + $0x20] ss:$8 sps:$4 sm:$0xff]   ;;  %v1067_v8 = vld [vmem:[%s1214_s28 + $0x34] ss:$8 sps:$4 sm:$0xff]   ;;  %v1069_v9 = vld [vmem:[%s1214_s28 + $0x30] ss:$8 sps:$4 sm:$0xff]  }
  0x1b   : > { %644 = vmatprep.subr.bf16.mxu0 %v1061_v4  ;;  %v1082_v10 = vld [vmem:[%s1214_s28 + $0x104] ss:$8 sps:$4 sm:$0xff]   ;;  %v1084_v11 = vld [vmem:[%s1214_s28 + $0x100] ss:$8 sps:$4 sm:$0xff]   ;;  %v1088_v13 = vld [vmem:[%s1214_s28 + $0x114] ss:$8 sps:$4 sm:$0xff]  }
  0x1c   : > { %v1070_v12 = vld [vmem:[%s1214_s28 + $0x44] ss:$8 sps:$4 sm:$0xff]   ;;  %683 = vmatprep.subr.bf16.mxu1 %v1082_v10  ;;  %v1090_v14 = vld [vmem:[%s1214_s28 + $0x110] ss:$8 sps:$4 sm:$0xff]   ;;  %v1072_v15 = vld [vmem:[%s1214_s28 + $0x40] ss:$8 sps:$4 sm:$0xff]  }
  0x1d   : > { %684 = vmatpush1.bf16.msra.mxu1 %v1084_v11  ;;  %v1073_v16 = vld [vmem:[%s1214_s28 + $0x54] ss:$8 sps:$4 sm:$0xff]   ;;  %v1094_v17 = vld [vmem:[%s1214_s28 + $0x124] ss:$8 sps:$4 sm:$0xff]   ;;  %v1096_v18 = vld [vmem:[%s1214_s28 + $0x120] ss:$8 sps:$4 sm:$0xff]  }
  0x1e   : > { %645 = vmatpush1.bf16.msra.mxu0 %v1063_v5  ;;  %685 = vmatprep.subr.bf16.mxu1 %v1088_v13  ;;  %v1075_v19 = vld [vmem:[%s1214_s28 + $0x50] ss:$8 sps:$4 sm:$0xff]   ;;  %v1100_v20 = vld [vmem:[%s1214_s28 + $0x134] ss:$8 sps:$4 sm:$0xff]   ;;  %v1076_v21 = vld [vmem:[%s1214_s28 + $0x64] ss:$8 sps:$4 sm:$0xff]  }
  0x1f   : > { %646 = vmatprep.subr.bf16.mxu0 %v1064_v6  ;;  %v1102_v22 = vld [vmem:[%s1214_s28 + $0x130] ss:$8 sps:$4 sm:$0xff]   ;;  %v1078_v23 = vld [vmem:[%s1214_s28 + $0x60] ss:$8 sps:$4 sm:$0xff]   ;;  %v1106_v24 = vld [vmem:[%s1214_s28 + $0x144] ss:$8 sps:$4 sm:$0xff]  }
  0x20   : > { %v1079_v25 = vld [vmem:[%s1214_s28 + $0x74] ss:$8 sps:$4 sm:$0xff]   ;;  %v1108_v26 = vld [vmem:[%s1214_s28 + $0x140] ss:$8 sps:$4 sm:$0xff]   ;;  %v1081_v27 = vld [vmem:[%s1214_s28 + $0x70] ss:$8 sps:$4 sm:$0xff]  }
  0x21   : > { %686 = vmatpush1.bf16.msra.mxu1 %v1090_v14  ;;  %v1112_v28 = vld [vmem:[%s1214_s28 + $0x154] ss:$8 sps:$4 sm:$0xff]   ;;  %v1085_v29 = vld [vmem:[%s1214_s28 + $0x84] ss:$8 sps:$4 sm:$0xff]   ;;  %v1114_v30 = vld [vmem:[%s1214_s28 + $0x150] ss:$8 sps:$4 sm:$0xff]  }
  0x22   : > { %647 = vmatpush1.bf16.msra.mxu0 %v1066_v7  ;;  %687 = vmatprep.subr.bf16.mxu1 %v1094_v17  ;;  %v1087_v31 = vld [vmem:[%s1214_s28 + $0x80] ss:$8 sps:$4 sm:$0xff]   ;;  %v1118_v32 = vld [vmem:[%s1214_s28 + $0x164] ss:$8 sps:$4 sm:$0xff]   ;;  %v1091_v33 = vld [vmem:[%s1214_s28 + $0x94] ss:$8 sps:$4 sm:$0xff]  }
  0x23   : > { %648 = vmatprep.subr.bf16.mxu0 %v1067_v8  ;;  %v341_v34 = vld [vmem:[%s1209_s24] sm:$0xff]  ;;  %v1093_v37 = vld [vmem:[%s1214_s28 + $0x90] ss:$8 sps:$4 sm:$0xff]   ;;  %v1124_v38 = vld [vmem:[%s1214_s28 + $0x174] ss:$8 sps:$4 sm:$0xff]  }
  0x24   : > { %v972_v35 = vcombine.high %v341_v34, %v341_v34  ;;  %v1120_v36 = vld [vmem:[%s1214_s28 + $0x160] ss:$8 sps:$4 sm:$0xff]   ;;  %v1097_v39 = vld [vmem:[%s1214_s28 + $0xa4] ss:$8 sps:$4 sm:$0xff]   ;;  %v1126_v40 = vld [vmem:[%s1214_s28 + $0x170] ss:$8 sps:$4 sm:$0xff]   ;;  %v971_v53 = vcombine.low %v341_v34, %v341_v34 }
  0x25   : > { %688 = vmatpush1.bf16.msra.mxu1 %v1096_v18  ;;  %v1099_v41 = vld [vmem:[%s1214_s28 + $0xa0] ss:$8 sps:$4 sm:$0xff]   ;;  %v1103_v42 = vld [vmem:[%s1214_s28 + $0xb4] ss:$8 sps:$4 sm:$0xff]   ;;  %v1105_v44 = vld [vmem:[%s1214_s28 + $0xb0] ss:$8 sps:$4 sm:$0xff]  }
  0x26   : > { %649 = vmatpush1.bf16.msra.mxu0 %v1069_v9  ;;  %689 = vmatprep.subr.bf16.mxu1 %v1100_v20  ;;  %v1130_v43 = vld [vmem:[%s1209_s24 + $0x8] ss:$0 sps:$4 sm:$0xff]   ;;  %v1109_v45 = vld [vmem:[%s1214_s28 + $0xc4] ss:$8 sps:$4 sm:$0xff]   ;;  %v1115_v47 = vld [vmem:[%s1214_s28 + $0xd4] ss:$8 sps:$4 sm:$0xff]  }
  0x27   : > { %650 = vmatprep.subr.bf16.mxu0 %v1070_v12  ;;  %674 = vmatprep.mubr.bf16.mxu0 %v972_v35  ;;  %v1111_v46 = vld [vmem:[%s1214_s28 + $0xc0] ss:$8 sps:$4 sm:$0xff]   ;;  %v1117_v48 = vld [vmem:[%s1214_s28 + $0xd0] ss:$8 sps:$4 sm:$0xff]   ;;  %v1121_v49 = vld [vmem:[%s1214_s28 + $0xe4] ss:$8 sps:$4 sm:$0xff]  }
  0x28   : > { %v1123_v50 = vld [vmem:[%s1214_s28 + $0xe0] ss:$8 sps:$4 sm:$0xff]   ;;  %v1127_v51 = vld [vmem:[%s1214_s28 + $0xf4] ss:$8 sps:$4 sm:$0xff]   ;;  %v1129_v52 = vld [vmem:[%s1214_s28 + $0xf0] ss:$8 sps:$4 sm:$0xff]  }
  0x29   : > { %690 = vmatpush1.bf16.msra.mxu1 %v1102_v22  ;;  %v339_v58 = vld [vmem:[%s1315_s2] sm:$0xff]  ;;  %v340_v61 = vld [vmem:[%s1315_s2 + $0x8] sm:$0xff] }
  0x2a   : > { %651 = vmatpush1.bf16.msra.mxu0 %v1072_v15  ;;  %691 = vmatprep.subr.bf16.mxu1 %v1106_v24 }
  0x2b   : > { %652 = vmatprep.subr.bf16.mxu0 %v1073_v16 }
  0x2d   : > { %692 = vmatpush1.bf16.msra.mxu1 %v1108_v26 }
  0x2e   : > { %653 = vmatpush1.bf16.msra.mxu0 %v1075_v19  ;;  %693 = vmatprep.subr.bf16.mxu1 %v1112_v28 }
  0x2f   : > { %654 = vmatprep.subr.bf16.mxu0 %v1076_v21 }
  0x31   : > { %694 = vmatpush1.bf16.msra.mxu1 %v1114_v30 }
  0x32   : > { %655 = vmatpush1.bf16.msra.mxu0 %v1078_v23  ;;  %695 = vmatprep.subr.bf16.mxu1 %v1118_v32 }
  0x33   : > { %656 = vmatprep.subr.bf16.mxu0 %v1079_v25 }
  0x35   : > { %696 = vmatpush1.bf16.msra.mxu1 %v1120_v36 }
  0x36   : > { %657 = vmatpush1.bf16.msra.mxu0 %v1081_v27  ;;  %697 = vmatprep.subr.bf16.mxu1 %v1124_v38 }
  0x37   : > { %658 = vmatprep.subr.bf16.mxu0 %v1085_v29 }
  0x39   : > { %698 = vmatpush1.bf16.msra.mxu1 %v1126_v40 }
  0x3a   : > { %659 = vmatpush1.bf16.msra.mxu0 %v1087_v31 }
  0x3b   : > { %660 = vmatprep.subr.bf16.mxu0 %v1091_v33 }
  0x3c   : > { %716 = vmatmul.mubr.bf16.vlgmr.msra.gmra.mrb[0].mxu1 %v1130_v43 }
  0x3e   : > { %661 = vmatpush1.bf16.msra.mxu0 %v1093_v37 }
  0x3f   : > { %662 = vmatprep.subr.bf16.mxu0 %v1097_v39 }
  0x42   : > { %663 = vmatpush1.bf16.msra.mxu0 %v1099_v41 }
  0x43   : > { %664 = vmatprep.subr.bf16.mxu0 %v1103_v42 }
  0x46   : > { %665 = vmatpush1.bf16.msra.mxu0 %v1105_v44 }
  0x47   : > { %666 = vmatprep.subr.bf16.mxu0 %v1109_v45 }
  0x4a   : > { %667 = vmatpush1.bf16.msra.mxu0 %v1111_v46 }
  0x4b   : > { %668 = vmatprep.subr.bf16.mxu0 %v1115_v47 }
  0x4e   : > { %669 = vmatpush1.bf16.msra.mxu0 %v1117_v48 }
  0x4f   : > { %670 = vmatprep.subr.bf16.mxu0 %v1121_v49 }
  0x52   : > { %671 = vmatpush1.bf16.msra.mxu0 %v1123_v50 }
  0x53   : > { %672 = vmatprep.subr.bf16.mxu0 %v1127_v51 }
  0x56   : > { %673 = vmatpush1.bf16.msra.mxu0 %v1129_v52 }
  0x59   : > { %675 = vmatmul.mubr.bf16.vlgmr.msra.gmra.mrb[0].mxu0 %v971_v53 }
 0x10f   : > { %v717_v54 = vpop.f32.mrb[0].mxu1 }
 0x110   : > { %v719_v55 = vpop.f32.mrb[1].mxu1 }
 0x111   : > { %v721_v56 = vpop.f32.mrb[2].mxu1 }
 0x112   : > { %v722_v57 = vpop.f32.mrb[3].mxu1 }
 0x12c   : > { %v676_v59 = vpop.f32.mrb[0].mxu0  ;;  %731 = sbr.rel (%p1022_p7) target bundleno = 329 (0x149), region = 36 }
 0x12d   : > { %v718_v60 = vadd.f32 %v717_v54, %v676_v59  ;;  %v678_v62 = vpop.f32.mrb[1].mxu0 }
 0x12e   : > { %v720_v63 = vadd.f32 %v719_v55, %v678_v62  ;;  %v680_v0 = vpop.f32.mrb[2].mxu0 }
 0x12f   : > { %v724_v1 = vadd.f32 %v718_v60, %v339_v58  ;;  %v681_v2 = vpop.f32.mrb[3].mxu0 }
 0x130   : > { %v725_v3 = vadd.f32 %v720_v63, %v340_v61 }
 0x131   : > { %726 = vst [vmem:[%s1315_s2] sm:$0xff] %v724_v1 }
 0x132   : > { %727 = vst [vmem:[%s1315_s2 + $0x8] sm:$0xff] %v725_v3 }
 0x138   : > { %v732_v4 = vld [vmem:[%s1315_s2] sm:$0xff] }
 0x139   : > { %v733_v5 = vld [vmem:[%s1315_s2 + $0x8] sm:$0xff]  ;;  %v734_v6 = vrot.slane %v732_v4, 4  ;;  %v746_v8 = vmul.f32 %v732_v4, %v732_v4 }
 0x13a   : > { %v740_v7 = vrot.slane %v733_v5, 4  ;;  %v747_v9 = vmul.f32 %v733_v5, %v733_v5 }
 0x13b   : > { %v735_v10 = vadd.f32 %v734_v6, %v732_v4  ;;  %v748_v12 = vrot.slane %v746_v8, 4 }
 0x13c   : > { %v741_v11 = vadd.f32 %v740_v7, %v733_v5  ;;  %v754_v13 = vrot.slane %v747_v9, 4 }
 0x13d   : > { %v736_v14 = vrot.slane %v735_v10, 2  ;;  %v749_v16 = vadd.f32 %v748_v12, %v746_v8 }
 0x13e   : > { %v742_v15 = vrot.slane %v741_v11, 2  ;;  %v755_v17 = vadd.f32 %v754_v13, %v747_v9 }
 0x13f   : > { %v737_v18 = vadd.f32 %v736_v14, %v735_v10  ;;  %v750_v20 = vrot.slane %v749_v16, 2 }
 0x140   : > { %v743_v19 = vadd.f32 %v742_v15, %v741_v11  ;;  %v756_v21 = vrot.slane %v755_v17, 2 }
 0x141   : > { %v738_v22 = vrot.slane %v737_v18, 1  ;;  %v751_v24 = vadd.f32 %v750_v20, %v749_v16 }
 0x142   : > { %v744_v23 = vrot.slane %v743_v19, 1  ;;  %v757_v25 = vadd.f32 %v756_v21, %v755_v17 }
 0x143   : > { %v739_v26 = vadd.f32 %v738_v22, %v737_v18  ;;  %v752_v28 = vrot.slane %v751_v24, 1 }
 0x144   : > { %v745_v27 = vadd.f32 %v744_v23, %v743_v19  ;;  %v758_v29 = vrot.slane %v757_v25, 1 }
 0x145   : > { %760 = vst [vmem:[%s1316_s3] sm:$0xff] %v739_v26  ;;  %v753_v30 = vadd.f32 %v752_v28, %v751_v24 }
 0x146   : > { %761 = vst [vmem:[%s1316_s3 + $0x8] sm:$0xff] %v745_v27  ;;  %v759_v31 = vadd.f32 %v758_v29, %v757_v25 }
 0x147   : > { %762 = vst [vmem:[%s1317_s4] sm:$0xff] %v753_v30 }
 0x148   : > { %763 = vst [vmem:[%s1317_s4 + $0x8] sm:$0xff] %v759_v31 }
 0x149 PF: > { %s15_s17 = sadd.s32 1, %s1155_s17   ;;  %s1318_s15 = smov %s1151_s16 }
 0x14a   : > { %p12_p8 = scmp.ge.s32.totalorder %s15_s17, 5   ;;  %s1319_s16 = smov %s1321_s18 }
 0x14c   :  { %14 = sbr.rel (!%p12_p8) target bundleno = 2 (0x2), region = 93 }

// kernel: resnet_tpb_forward.66
= control target key start
LH: loop header
LB: loop body
LE: loop exit
PB: predicated region body
PF: predicated region fallthrough
CT: control target
= control target key end

     0   :  { %v21_v0 = vlaneseq  ;;  %s108_s1 = inlined_call_operand.vmem [shape: f32[1,256], index: 1, kind: input, shape index: {}]   ;;  %s109_s2 = inlined_call_operand.vmem [shape: f32[1,256], index: 2, kind: input, shape index: {}]   ;;  %s110_s0 = inlined_call_operand.vmem [shape: f32[8,256], index: 0, kind: input, shape index: {}]   ;;  %s111_s3 = inlined_call_operand.vmem [shape: f32[8,256], index: 3, kind: input, shape index: {}]   ;;  %s112_s4 = inlined_call_operand.vmem [shape: f32[8,256], index: 4, kind: output, shape index: {}]  }
   0x1   :  { %v19_v2 = vld [vmem:[%s108_s1] sm:$0x3]  ;;  %v18_v7 = vld [vmem:[%s110_s0 + $0x8] sm:$0xff] }
   0x2   :  { %v22_v1 = vshrl.u32 %v21_v0, 7  ;;  %v33_v3 = vld [vmem:[%s109_s2] sm:$0x3]  ;;  %v48_v15 = vld [vmem:[%s111_s3 + $0x8] sm:$0xff] }
   0x3   :  { %v17_v6 = vld [vmem:[%s110_s0] sm:$0xff] }
   0x4   :  { %v23_v4 = vsub.s32 0, %v22_v1  ;;  %v27_v5 = vsub.s32 1, %v22_v1  ;;  %v47_v14 = vld [vmem:[%s111_s3] sm:$0xff] }
   0x6   :  { %v24_v8 = vrot.slane %v19_v2, %v23_v4  ;;  %v38_v9 = vrot.slane %v33_v3, %v23_v4  ;;  %v28_v10 = vrot.slane %v19_v2, %v27_v5  ;;  %v42_v11 = vrot.slane %v33_v3, %v27_v5 }
   0x8   :  { %v31_v12 = vmul.f32 %v24_v8, %v17_v6  ;;  %v32_v13 = vmul.f32 %v28_v10, %v18_v7 }
   0xa   :  { %v45_v16 = vadd.f32 %v38_v9, %v31_v12  ;;  %v46_v17 = vadd.f32 %v42_v11, %v32_v13 }
   0xc   :  { %v49_v18 = vadd.f32 %v47_v14, %v45_v16  ;;  %v50_v19 = vadd.f32 %v48_v15, %v46_v17 }
   0xe   :  { %v51_v20 = vmax.f32 %v49_v18, 0.0  ;;  %v52_v21 = vmax.f32 %v50_v19, 0.0 }
  0x10   :  { %53 = vst [vmem:[%s112_s4] sm:$0xff] %v51_v20  ;;  %54 = vst [vmem:[%s112_s4 + $0x8] sm:$0xff] %v52_v21 }

// kernel: resnet_tpb_forward.63
= control target key start
LH: loop header
LB: loop body
LE: loop exit
PB: predicated region body
PF: predicated region fallthrough
CT: control target
= control target key end

     0   :  { %s1184_s15 = smov 0   ;;  %s1186_s16 = smov 0   ;;  %s1313_s0 = inlined_call_operand.vmem [shape: bf16[8,2304], index: 0, kind: input, shape index: {}]   ;;  %s1314_s1 = inlined_call_operand.vmem [shape: bf16[2304,256], index: 1, kind: input, shape index: {}]   ;;  %s1315_s2 = inlined_call_operand.vmem [shape: f32[8,256], index: 2, kind: output, shape index: {0}]   ;;  %s1316_s3 = inlined_call_operand.vmem [shape: f32[8,256], index: 3, kind: output, shape index: {1}]   ;;  %s1317_s4 = inlined_call_operand.vmem [shape: f32[8,256], index: 4, kind: output, shape index: {2}]  }
   0x1   :  { %s1188_s17 = smov 0  }
   0x2 LB: > { %s27_s18 = sadd.s32 1, %s1151_s16  ;;  %p966_p0 = scmp.ge.s32.totalorder %s1155_s17, 1  ;;  %s1155_s17 = sphi %s1188_s17, %s15_s17   ;;  %s1151_s16 = sphi %s1186_s16, %s1319_s16   ;;  %s1147_s15 = sphi %s1184_s15, %s1318_s15  }
   0x3   : > { %p28_p1 = scmp.ge.s32.totalorder %s27_s18, 6  ;;  %p218_p2 = scmp.lt.s32.totalorder %s1155_s17, 7 }
   0x5   : > { %s1321_s18 = smov (%p28_p1, %s27_s18), 0  ;;  %p219_p3 = pnand %p966_p0, %p218_p2 }
   0x6   : > { %s280_s19 = smul.u32 (!%p219_p3), 3, %s1147_s15  ;;  %p970_p6 = scmp.ne.s32.totalorder (!%p219_p3), %s1147_s15, 0 }
   0x7   : > { %222 = sbr.rel (%p219_p3) target bundleno = 329 (0x149), region = 28 }
   0x8   : > { %s290_s20 = smul.u32 (!%p219_p3), 48, %s1147_s15  ;;  %p283_p4 = scmp.lt.s32.totalorder (!%p219_p3), %s280_s19, 17 }
   0xa   : > { %p292_p5 = scmp.lt.s32.totalorder (!%p219_p3), %s290_s20, 287 }
   0xe   : > { %s1323_s19 = smov (!%p283_p4, %s280_s19), 17  ;;  %s1325_s20 = smov (!%p292_p5, %s290_s20), 287 }
   0xf   : > { %s967_s21 = sshll.u32 %s1323_s19, 2  ;;  %s1031_s25 = sshll.u32 %s1325_s20, 3  ;;  %v1157_v0 = vmov (!%p970_p6), 0.0  }
  0x10   : > { %s1209_s24 = scalar_lea.vmem %s1313_s0, %s967_s21  ;;  %s1214_s28 = scalar_lea.vmem %s1314_s1, %s1031_s25  ;;  %337 = vst [vmem:[%s1315_s2] sm:$0xff] (!%p970_p6), %v1157_v0  ;;  %338 = vst [vmem:[%s1315_s2 + $0x8] sm:$0xff] (!%p970_p6), %v1157_v0 }
  0x11   : > { %336 = sbr.rel (%p970_p6) target bundleno = 24 (0x18), region = 32 }
  0x18 PF: > { %v1058_v1 = vld [vmem:[%s1214_s28 + $0x4] ss:$8 sps:$4 sm:$0xff]   ;;  %v1060_v2 = vld [vmem:[%s1214_s28] ss:$8 sps:$4 sm:$0xff]   ;;  %v1158_v3 = vmov 0   ;;  %p1022_p7 = scmp.ne.s32.totalorder %s1147_s15, 5 }
  0x19   : > { %715 = vmatprep.mubr.bf16.mxu1 %v1158_v3  ;;  %642 = vmatprep.subr.bf16.mxu0 %v1058_v1  ;;  %v1061_v4 = vld [vmem:[%s1214_s28 + $0x14] ss:$8 sps:$4 sm:$0xff]   ;;  %v1063_v5 = vld [vmem:[%s1214_s28 + $0x10] ss:$8 sps:$4 sm:$0xff]   ;;  %v1064_v6 = vld [vmem:[%s1214_s28 + $0x24] ss:$8 sps:$4 sm:$0xff]  }
  0x1a   : > { %643 = vmatpush1.bf16.msra.mxu0 %v1060_v2  ;;  %v1066_v7 = vld [vmem:[%s1214_s28 + $0x20] ss:$8 sps:$4 sm:$0xff]   ;;  %v1067_v8 = vld [vmem:[%s1214_s28 + $0x34] ss:$8 sps:$4 sm:$0xff]   ;;  %v1069_v9 = vld [vmem:[%s1214_s28 + $0x30] ss:$8 sps:$4 sm:$0xff]  }
  0x1b   : > { %644 = vmatprep.subr.bf16.mxu0 %v1061_v4  ;;  %v1082_v10 = vld [vmem:[%s1214_s28 + $0x104] ss:$8 sps:$4 sm:$0xff]   ;;  %v1084_v11 = vld [vmem:[%s1214_s28 + $0x100] ss:$8 sps:$4 sm:$0xff]   ;;  %v1088_v13 = vld [vmem:[%s1214_s28 + $0x114] ss:$8 sps:$4 sm:$0xff]  }
  0x1c   : > { %v1070_v12 = vld [vmem:[%s1214_s28 + $0x44] ss:$8 sps:$4 sm:$0xff]   ;;  %683 = vmatprep.subr.bf16.mxu1 %v1082_v10  ;;  %v1090_v14 = vld [vmem:[%s1214_s28 + $0x110] ss:$8 sps:$4 sm:$0xff]   ;;  %v1072_v15 = vld [vmem:[%s1214_s28 + $0x40] ss:$8 sps:$4 sm:$0xff]  }
  0x1d   : > { %684 = vmatpush1.bf16.msra.mxu1 %v1084_v11  ;;  %v1073_v16 = vld [vmem:[%s1214_s28 + $0x54] ss:$8 sps:$4 sm:$0xff]   ;;  %v1094_v17 = vld [vmem:[%s1214_s28 + $0x124] ss:$8 sps:$4 sm:$0xff]   ;;  %v1096_v18 = vld [vmem:[%s1214_s28 + $0x120] ss:$8 sps:$4 sm:$0xff]  }
  0x1e   : > { %645 = vmatpush1.bf16.msra.mxu0 %v1063_v5  ;;  %685 = vmatprep.subr.bf16.mxu1 %v1088_v13  ;;  %v1075_v19 = vld [vmem:[%s1214_s28 + $0x50] ss:$8 sps:$4 sm:$0xff]   ;;  %v1100_v20 = vld [vmem:[%s1214_s28 + $0x134] ss:$8 sps:$4 sm:$0xff]   ;;  %v1076_v21 = vld [vmem:[%s1214_s28 + $0x64] ss:$8 sps:$4 sm:$0xff]  }
  0x1f   : > { %646 = vmatprep.subr.bf16.mxu0 %v1064_v6  ;;  %v1102_v22 = vld [vmem:[%s1214_s28 + $0x130] ss:$8 sps:$4 sm:$0xff]   ;;  %v1078_v23 = vld [vmem:[%s1214_s28 + $0x60] ss:$8 sps:$4 sm:$0xff]   ;;  %v1106_v24 = vld [vmem:[%s1214_s28 + $0x144] ss:$8 sps:$4 sm:$0xff]  }
  0x20   : > { %v1079_v25 = vld [vmem:[%s1214_s28 + $0x74] ss:$8 sps:$4 sm:$0xff]   ;;  %v1108_v26 = vld [vmem:[%s1214_s28 + $0x140] ss:$8 sps:$4 sm:$0xff]   ;;  %v1081_v27 = vld [vmem:[%s1214_s28 + $0x70] ss:$8 sps:$4 sm:$0xff]  }
  0x21   : > { %686 = vmatpush1.bf16.msra.mxu1 %v1090_v14  ;;  %v1112_v28 = vld [vmem:[%s1214_s28 + $0x154] ss:$8 sps:$4 sm:$0xff]   ;;  %v1085_v29 = vld [vmem:[%s1214_s28 + $0x84] ss:$8 sps:$4 sm:$0xff]   ;;  %v1114_v30 = vld [vmem:[%s1214_s28 + $0x150] ss:$8 sps:$4 sm:$0xff]  }
  0x22   : > { %647 = vmatpush1.bf16.msra.mxu0 %v1066_v7  ;;  %687 = vmatprep.subr.bf16.mxu1 %v1094_v17  ;;  %v1087_v31 = vld [vmem:[%s1214_s28 + $0x80] ss:$8 sps:$4 sm:$0xff]   ;;  %v1118_v32 = vld [vmem:[%s1214_s28 + $0x164] ss:$8 sps:$4 sm:$0xff]   ;;  %v1091_v33 = vld [vmem:[%s1214_s28 + $0x94] ss:$8 sps:$4 sm:$0xff]  }
  0x23   : > { %648 = vmatprep.subr.bf16.mxu0 %v1067_v8  ;;  %v341_v34 = vld [vmem:[%s1209_s24] sm:$0xff]  ;;  %v1093_v37 = vld [vmem:[%s1214_s28 + $0x90] ss:$8 sps:$4 sm:$0xff]   ;;  %v1124_v38 = vld [vmem:[%s1214_s28 + $0x174] ss:$8 sps:$4 sm:$0xff]  }
  0x24   : > { %v972_v35 = vcombine.high %v341_v34, %v341_v34  ;;  %v1120_v36 = vld [vmem:[%s1214_s28 + $0x160] ss:$8 sps:$4 sm:$0xff]   ;;  %v1097_v39 = vld [vmem:[%s1214_s28 + $0xa4] ss:$8 sps:$4 sm:$0xff]   ;;  %v1126_v40 = vld [vmem:[%s1214_s28 + $0x170] ss:$8 sps:$4 sm:$0xff]   ;;  %v971_v53 = vcombine.low %v341_v34, %v341_v34 }
  0x25   : > { %688 = vmatpush1.bf16.msra.mxu1 %v1096_v18  ;;  %v1099_v41 = vld [vmem:[%s1214_s28 + $0xa0] ss:$8 sps:$4 sm:$0xff]   ;;  %v1103_v42 = vld [vmem:[%s1214_s28 + $0xb4] ss:$8 sps:$4 sm:$0xff]   ;;  %v1105_v44 = vld [vmem:[%s1214_s28 + $0xb0] ss:$8 sps:$4 sm:$0xff]  }
  0x26   : > { %649 = vmatpush1.bf16.msra.mxu0 %v1069_v9  ;;  %689 = vmatprep.subr.bf16.mxu1 %v1100_v20  ;;  %v1130_v43 = vld [vmem:[%s1209_s24 + $0x8] ss:$0 sps:$4 sm:$0xff]   ;;  %v1109_v45 = vld [vmem:[%s1214_s28 + $0xc4] ss:$8 sps:$4 sm:$0xff]   ;;  %v1115_v47 = vld [vmem:[%s1214_s28 + $0xd4] ss:$8 sps:$4 sm:$0xff]  }
  0x27   : > { %650 = vmatprep.subr.bf16.mxu0 %v1070_v12  ;;  %674 = vmatprep.mubr.bf16.mxu0 %v972_v35  ;;  %v1111_v46 = vld [vmem:[%s1214_s28 + $0xc0] ss:$8 sps:$4 sm:$0xff]   ;;  %v1117_v48 = vld [vmem:[%s1214_s28 + $0xd0] ss:$8 sps:$4 sm:$0xff]   ;;  %v1121_v49 = vld [vmem:[%s1214_s28 + $0xe4] ss:$8 sps:$4 sm:$0xff]  }
  0x28   : > { %v1123_v50 = vld [vmem:[%s1214_s28 + $0xe0] ss:$8 sps:$4 sm:$0xff]   ;;  %v1127_v51 = vld [vmem:[%s1214_s28 + $0xf4] ss:$8 sps:$4 sm:$0xff]   ;;  %v1129_v52 = vld [vmem:[%s1214_s28 + $0xf0] ss:$8 sps:$4 sm:$0xff]  }
  0x29   : > { %690 = vmatpush1.bf16.msra.mxu1 %v1102_v22  ;;  %v339_v58 = vld [vmem:[%s1315_s2] sm:$0xff]  ;;  %v340_v61 = vld [vmem:[%s1315_s2 + $0x8] sm:$0xff] }
  0x2a   : > { %651 = vmatpush1.bf16.msra.mxu0 %v1072_v15  ;;  %691 = vmatprep.subr.bf16.mxu1 %v1106_v24 }
  0x2b   : > { %652 = vmatprep.subr.bf16.mxu0 %v1073_v16 }
  0x2d   : > { %692 = vmatpush1.bf16.msra.mxu1 %v1108_v26 }
  0x2e   : > { %653 = vmatpush1.bf16.msra.mxu0 %v1075_v19  ;;  %693 = vmatprep.subr.bf16.mxu1 %v1112_v28 }
  0x2f   : > { %654 = vmatprep.subr.bf16.mxu0 %v1076_v21 }
  0x31   : > { %694 = vmatpush1.bf16.msra.mxu1 %v1114_v30 }
  0x32   : > { %655 = vmatpush1.bf16.msra.mxu0 %v1078_v23  ;;  %695 = vmatprep.subr.bf16.mxu1 %v1118_v32 }
  0x33   : > { %656 = vmatprep.subr.bf16.mxu0 %v1079_v25 }
  0x35   : > { %696 = vmatpush1.bf16.msra.mxu1 %v1120_v36 }
  0x36   : > { %657 = vmatpush1.bf16.msra.mxu0 %v1081_v27  ;;  %697 = vmatprep.subr.bf16.mxu1 %v1124_v38 }
  0x37   : > { %658 = vmatprep.subr.bf16.mxu0 %v1085_v29 }
  0x39   : > { %698 = vmatpush1.bf16.msra.mxu1 %v1126_v40 }
  0x3a   : > { %659 = vmatpush1.bf16.msra.mxu0 %v1087_v31 }
  0x3b   : > { %660 = vmatprep.subr.bf16.mxu0 %v1091_v33 }
  0x3c   : > { %716 = vmatmul.mubr.bf16.vlgmr.msra.gmra.mrb[0].mxu1 %v1130_v43 }
  0x3e   : > { %661 = vmatpush1.bf16.msra.mxu0 %v1093_v37 }
  0x3f   : > { %662 = vmatprep.subr.bf16.mxu0 %v1097_v39 }
  0x42   : > { %663 = vmatpush1.bf16.msra.mxu0 %v1099_v41 }
  0x43   : > { %664 = vmatprep.subr.bf16.mxu0 %v1103_v42 }
  0x46   : > { %665 = vmatpush1.bf16.msra.mxu0 %v1105_v44 }
  0x47   : > { %666 = vmatprep.subr.bf16.mxu0 %v1109_v45 }
  0x4a   : > { %667 = vmatpush1.bf16.msra.mxu0 %v1111_v46 }
  0x4b   : > { %668 = vmatprep.subr.bf16.mxu0 %v1115_v47 }
  0x4e   : > { %669 = vmatpush1.bf16.msra.mxu0 %v1117_v48 }
  0x4f   : > { %670 = vmatprep.subr.bf16.mxu0 %v1121_v49 }
  0x52   : > { %671 = vmatpush1.bf16.msra.mxu0 %v1123_v50 }
  0x53   : > { %672 = vmatprep.subr.bf16.mxu0 %v1127_v51 }
  0x56   : > { %673 = vmatpush1.bf16.msra.mxu0 %v1129_v52 }
  0x59   : > { %675 = vmatmul.mubr.bf16.vlgmr.msra.gmra.mrb[0].mxu0 %v971_v53 }
 0x10f   : > { %v717_v54 = vpop.f32.mrb[0].mxu1 }
 0x110   : > { %v719_v55 = vpop.f32.mrb[1].mxu1 }
 0x111   : > { %v721_v56 = vpop.f32.mrb[2].mxu1 }
 0x112   : > { %v722_v57 = vpop.f32.mrb[3].mxu1 }
 0x12c   : > { %v676_v59 = vpop.f32.mrb[0].mxu0  ;;  %731 = sbr.rel (%p1022_p7) target bundleno = 329 (0x149), region = 36 }
 0x12d   : > { %v718_v60 = vadd.f32 %v717_v54, %v676_v59  ;;  %v678_v62 = vpop.f32.mrb[1].mxu0 }
 0x12e   : > { %v720_v63 = vadd.f32 %v719_v55, %v678_v62  ;;  %v680_v0 = vpop.f32.mrb[2].mxu0 }
 0x12f   : > { %v724_v1 = vadd.f32 %v718_v60, %v339_v58  ;;  %v681_v2 = vpop.f32.mrb[3].mxu0 }
 0x130   : > { %v725_v3 = vadd.f32 %v720_v63, %v340_v61 }
 0x131   : > { %726 = vst [vmem:[%s1315_s2] sm:$0xff] %v724_v1 }
 0x132   : > { %727 = vst [vmem:[%s1315_s2 + $0x8] sm:$0xff] %v725_v3 }
 0x138   : > { %v732_v4 = vld [vmem:[%s1315_s2] sm:$0xff] }
 0x139   : > { %v733_v5 = vld [vmem:[%s1315_s2 + $0x8] sm:$0xff]  ;;  %v734_v6 = vrot.slane %v732_v4, 4  ;;  %v746_v8 = vmul.f32 %v732_v4, %v732_v4 }
 0x13a   : > { %v740_v7 = vrot.slane %v733_v5, 4  ;;  %v747_v9 = vmul.f32 %v733_v5, %v733_v5 }
 0x13b   : > { %v735_v10 = vadd.f32 %v734_v6, %v732_v4  ;;  %v748_v12 = vrot.slane %v746_v8, 4 }
 0x13c   : > { %v741_v11 = vadd.f32 %v740_v7, %v733_v5  ;;  %v754_v13 = vrot.slane %v747_v9, 4 }
 0x13d   : > { %v736_v14 = vrot.slane %v735_v10, 2  ;;  %v749_v16 = vadd.f32 %v748_v12, %v746_v8 }
 0x13e   : > { %v742_v15 = vrot.slane %v741_v11, 2  ;;  %v755_v17 = vadd.f32 %v754_v13, %v747_v9 }
 0x13f   : > { %v737_v18 = vadd.f32 %v736_v14, %v735_v10  ;;  %v750_v20 = vrot.slane %v749_v16, 2 }
 0x140   : > { %v743_v19 = vadd.f32 %v742_v15, %v741_v11  ;;  %v756_v21 = vrot.slane %v755_v17, 2 }
 0x141   : > { %v738_v22 = vrot.slane %v737_v18, 1  ;;  %v751_v24 = vadd.f32 %v750_v20, %v749_v16 }
 0x142   : > { %v744_v23 = vrot.slane %v743_v19, 1  ;;  %v757_v25 = vadd.f32 %v756_v21, %v755_v17 }
 0x143   : > { %v739_v26 = vadd.f32 %v738_v22, %v737_v18  ;;  %v752_v28 = vrot.slane %v751_v24, 1 }
 0x144   : > { %v745_v27 = vadd.f32 %v744_v23, %v743_v19  ;;  %v758_v29 = vrot.slane %v757_v25, 1 }
 0x145   : > { %760 = vst [vmem:[%s1316_s3] sm:$0xff] %v739_v26  ;;  %v753_v30 = vadd.f32 %v752_v28, %v751_v24 }
 0x146   : > { %761 = vst [vmem:[%s1316_s3 + $0x8] sm:$0xff] %v745_v27  ;;  %v759_v31 = vadd.f32 %v758_v29, %v757_v25 }
 0x147   : > { %762 = vst [vmem:[%s1317_s4] sm:$0xff] %v753_v30 }
 0x148   : > { %763 = vst [vmem:[%s1317_s4 + $0x8] sm:$0xff] %v759_v31 }
 0x149 PF: > { %s15_s17 = sadd.s32 1, %s1155_s17   ;;  %s1318_s15 = smov %s1151_s16 }
 0x14a   : > { %p12_p8 = scmp.ge.s32.totalorder %s15_s17, 8   ;;  %s1319_s16 = smov %s1321_s18 }
 0x14c   :  { %14 = sbr.rel (!%p12_p8) target bundleno = 2 (0x2), region = 93 }

// kernel: resnet_tpb_forward.74
= control target key start
LH: loop header
LB: loop body
LE: loop exit
PB: predicated region body
PF: predicated region fallthrough
CT: control target
= control target key end

     0   :  { %s1008_s1 = inlined_call_operand.vmem [shape: bf16[256,512], index: 1, kind: input, shape index: {}]   ;;  %s1009_s0 = inlined_call_operand.vmem [shape: bf16[8,256], index: 0, kind: input, shape index: {}]   ;;  %s1010_s2 = inlined_call_operand.vmem [shape: f32[8,512], index: 2, kind: output, shape index: {0}]   ;;  %s1011_s3 = inlined_call_operand.vmem [shape: f32[8,512], index: 3, kind: output, shape index: {1}]   ;;  %s1012_s4 = inlined_call_operand.vmem [shape: f32[8,512], index: 4, kind: output, shape index: {2}]  }
   0x1   :  { %v654_v0 = vld [vmem:[%s1008_s1 + $0x4] ss:$16 sps:$4 sm:$0xff]   ;;  %v656_v1 = vld [vmem:[%s1008_s1 + $0xc] ss:$16 sps:$4 sm:$0xff]   ;;  %v658_v2 = vld [vmem:[%s1008_s1] ss:$16 sps:$4 sm:$0xff]  }
   0x2   :  { %418 = vmatprep.subr.bf16.mxu0 %v654_v0  ;;  %v659_v3 = vld [vmem:[%s1008_s1 + $0x8] ss:$16 sps:$4 sm:$0xff]   ;;  %459 = vmatprep.subr.bf16.mxu1 %v656_v1  ;;  %v660_v4 = vld [vmem:[%s1008_s1 + $0x24] ss:$16 sps:$4 sm:$0xff]   ;;  %v662_v5 = vld [vmem:[%s1008_s1 + $0x2c] ss:$16 sps:$4 sm:$0xff]  }
   0x3   :  { %419 = vmatpush1.bf16.msra.mxu0 %v658_v2  ;;  %460 = vmatpush1.bf16.msra.mxu1 %v659_v3  ;;  %v664_v6 = vld [vmem:[%s1008_s1 + $0x20] ss:$16 sps:$4 sm:$0xff]   ;;  %v665_v7 = vld [vmem:[%s1008_s1 + $0x28] ss:$16 sps:$4 sm:$0xff]   ;;  %v666_v8 = vld [vmem:[%s1008_s1 + $0x44] ss:$16 sps:$4 sm:$0xff]  }
   0x4   :  { %420 = vmatprep.subr.bf16.mxu0 %v660_v4  ;;  %461 = vmatprep.subr.bf16.mxu1 %v662_v5  ;;  %v668_v9 = vld [vmem:[%s1008_s1 + $0x4c] ss:$16 sps:$4 sm:$0xff]   ;;  %v670_v10 = vld [vmem:[%s1008_s1 + $0x40] ss:$16 sps:$4 sm:$0xff]   ;;  %v671_v11 = vld [vmem:[%s1008_s1 + $0x48] ss:$16 sps:$4 sm:$0xff]  }
   0x5   :  { %v672_v12 = vld [vmem:[%s1008_s1 + $0x64] ss:$16 sps:$4 sm:$0xff]   ;;  %v674_v13 = vld [vmem:[%s1008_s1 + $0x6c] ss:$16 sps:$4 sm:$0xff]   ;;  %v676_v14 = vld [vmem:[%s1008_s1 + $0x60] ss:$16 sps:$4 sm:$0xff]  }
   0x6   :  { %v677_v15 = vld [vmem:[%s1008_s1 + $0x68] ss:$16 sps:$4 sm:$0xff]   ;;  %v678_v16 = vld [vmem:[%s1008_s1 + $0x84] ss:$16 sps:$4 sm:$0xff]   ;;  %v680_v17 = vld [vmem:[%s1008_s1 + $0x8c] ss:$16 sps:$4 sm:$0xff]  }
   0x7   :  { %421 = vmatpush1.bf16.msra.mxu0 %v664_v6  ;;  %462 = vmatpush1.bf16.msra.mxu1 %v665_v7  ;;  %v682_v18 = vld [vmem:[%s1008_s1 + $0x80] ss:$16 sps:$4 sm:$0xff]   ;;  %v683_v19 = vld [vmem:[%s1008_s1 + $0x88] ss:$16 sps:$4 sm:$0xff]   ;;  %v684_v20 = vld [vmem:[%s1008_s1 + $0xa4] ss:$16 sps:$4 sm:$0xff]  }
   0x8   :  { %422 = vmatprep.subr.bf16.mxu0 %v666_v8  ;;  %463 = vmatprep.subr.bf16.mxu1 %v668_v9  ;;  %v686_v21 = vld [vmem:[%s1008_s1 + $0xac] ss:$16 sps:$4 sm:$0xff]   ;;  %v688_v22 = vld [vmem:[%s1008_s1 + $0xa0] ss:$16 sps:$4 sm:$0xff]   ;;  %v689_v23 = vld [vmem:[%s1008_s1 + $0xa8] ss:$16 sps:$4 sm:$0xff]  }
   0x9   :  { %v690_v24 = vld [vmem:[%s1008_s1 + $0xc4] ss:$16 sps:$4 sm:$0xff]   ;;  %v692_v25 = vld [vmem:[%s1008_s1 + $0xcc] ss:$16 sps:$4 sm:$0xff]   ;;  %v694_v26 = vld [vmem:[%s1008_s1 + $0xc0] ss:$16 sps:$4 sm:$0xff]  }
   0xa   :  { %v695_v27 = vld [vmem:[%s1008_s1 + $0xc8] ss:$16 sps:$4 sm:$0xff]   ;;  %v696_v28 = vld [vmem:[%s1008_s1 + $0xe4] ss:$16 sps:$4 sm:$0xff]   ;;  %v698_v29 = vld [vmem:[%s1008_s1 + $0xec] ss:$16 sps:$4 sm:$0xff]  }
   0xb   :  { %423 = vmatpush1.bf16.msra.mxu0 %v670_v10  ;;  %464 = vmatpush1.bf16.msra.mxu1 %v671_v11  ;;  %v700_v30 = vld [vmem:[%s1008_s1 + $0xe0] ss:$16 sps:$4 sm:$0xff]   ;;  %v701_v31 = vld [vmem:[%s1008_s1 + $0xe8] ss:$16 sps:$4 sm:$0xff]   ;;  %v702_v32 = vld [vmem:[%s1008_s1 + $0x104] ss:$16 sps:$4 sm:$0xff]  }
   0xc   :  { %424 = vmatprep.subr.bf16.mxu0 %v672_v12  ;;  %465 = vmatprep.subr.bf16.mxu1 %v674_v13  ;;  %v704_v33 = vld [vmem:[%s1008_s1 + $0x10c] ss:$16 sps:$4 sm:$0xff]   ;;  %v706_v34 = vld [vmem:[%s1008_s1 + $0x100] ss:$16 sps:$4 sm:$0xff]   ;;  %v707_v35 = vld [vmem:[%s1008_s1 + $0x108] ss:$16 sps:$4 sm:$0xff]  }
   0xd   :  { %v708_v36 = vld [vmem:[%s1008_s1 + $0x124] ss:$16 sps:$4 sm:$0xff]   ;;  %v710_v37 = vld [vmem:[%s1008_s1 + $0x12c] ss:$16 sps:$4 sm:$0xff]   ;;  %v712_v38 = vld [vmem:[%s1008_s1 + $0x120] ss:$16 sps:$4 sm:$0xff]  }
   0xe   :  { %v713_v39 = vld [vmem:[%s1008_s1 + $0x128] ss:$16 sps:$4 sm:$0xff]   ;;  %v714_v40 = vld [vmem:[%s1008_s1 + $0x144] ss:$16 sps:$4 sm:$0xff]   ;;  %v716_v41 = vld [vmem:[%s1008_s1 + $0x14c] ss:$16 sps:$4 sm:$0xff]  }
   0xf   :  { %425 = vmatpush1.bf16.msra.mxu0 %v676_v14  ;;  %466 = vmatpush1.bf16.msra.mxu1 %v677_v15  ;;  %v718_v42 = vld [vmem:[%s1008_s1 + $0x140] ss:$16 sps:$4 sm:$0xff]   ;;  %v719_v43 = vld [vmem:[%s1008_s1 + $0x148] ss:$16 sps:$4 sm:$0xff]   ;;  %v720_v44 = vld [vmem:[%s1008_s1 + $0x164] ss:$16 sps:$4 sm:$0xff]  }
  0x10   :  { %426 = vmatprep.subr.bf16.mxu0 %v678_v16  ;;  %467 = vmatprep.subr.bf16.mxu1 %v680_v17  ;;  %v722_v45 = vld [vmem:[%s1008_s1 + $0x16c] ss:$16 sps:$4 sm:$0xff]   ;;  %v26_v46 = vld [vmem:[%s1009_s0] sm:$0xff]  ;;  %v725_v49 = vld [vmem:[%s1008_s1 + $0x168] ss:$16 sps:$4 sm:$0xff]  }
  0x11   :  { %v588_v47 = vcombine.high %v26_v46, %v26_v46  ;;  %v724_v48 = vld [vmem:[%s1008_s1 + $0x160] ss:$16 sps:$4 sm:$0xff]   ;;  %v726_v50 = vld [vmem:[%s1008_s1 + $0x184] ss:$16 sps:$4 sm:$0xff]   ;;  %v728_v51 = vld [vmem:[%s1008_s1 + $0x18c] ss:$16 sps:$4 sm:$0xff]   ;;  %v587_v2 = vcombine.low %v26_v46, %v26_v46 }
  0x12   :  { %v730_v52 = vld [vmem:[%s1008_s1 + $0x180] ss:$16 sps:$4 sm:$0xff]   ;;  %v731_v53 = vld [vmem:[%s1008_s1 + $0x188] ss:$16 sps:$4 sm:$0xff]   ;;  %v732_v54 = vld [vmem:[%s1008_s1 + $0x1a4] ss:$16 sps:$4 sm:$0xff]  }
  0x13   :  { %427 = vmatpush1.bf16.msra.mxu0 %v682_v18  ;;  %468 = vmatpush1.bf16.msra.mxu1 %v683_v19  ;;  %v734_v55 = vld [vmem:[%s1008_s1 + $0x1ac] ss:$16 sps:$4 sm:$0xff]   ;;  %v736_v56 = vld [vmem:[%s1008_s1 + $0x1a0] ss:$16 sps:$4 sm:$0xff]   ;;  %v737_v57 = vld [vmem:[%s1008_s1 + $0x1a8] ss:$16 sps:$4 sm:$0xff]  }
  0x14   :  { %428 = vmatprep.subr.bf16.mxu0 %v684_v20  ;;  %469 = vmatprep.subr.bf16.mxu1 %v686_v21  ;;  %v738_v58 = vld [vmem:[%s1008_s1 + $0x1c4] ss:$16 sps:$4 sm:$0xff]   ;;  %v740_v59 = vld [vmem:[%s1008_s1 + $0x1cc] ss:$16 sps:$4 sm:$0xff]   ;;  %v742_v60 = vld [vmem:[%s1008_s1 + $0x1c0] ss:$16 sps:$4 sm:$0xff]  }
  0x15   :  { %450 = vmatprep.mubr.bf16.mxu0 %v588_v47  ;;  %491 = vmatprep.mubr.bf16.mxu1 %v588_v47  ;;  %v743_v61 = vld [vmem:[%s1008_s1 + $0x1c8] ss:$16 sps:$4 sm:$0xff]   ;;  %v744_v62 = vld [vmem:[%s1008_s1 + $0x1e4] ss:$16 sps:$4 sm:$0xff]   ;;  %v746_v63 = vld [vmem:[%s1008_s1 + $0x1ec] ss:$16 sps:$4 sm:$0xff]  }
  0x16   :  { %v748_v0 = vld [vmem:[%s1008_s1 + $0x1e0] ss:$16 sps:$4 sm:$0xff]   ;;  %v749_v1 = vld [vmem:[%s1008_s1 + $0x1e8] ss:$16 sps:$4 sm:$0xff]  }
  0x17   :  { %429 = vmatpush1.bf16.msra.mxu0 %v688_v22  ;;  %470 = vmatpush1.bf16.msra.mxu1 %v689_v23 }
  0x18   :  { %430 = vmatprep.subr.bf16.mxu0 %v690_v24  ;;  %471 = vmatprep.subr.bf16.mxu1 %v692_v25 }
  0x1b   :  { %431 = vmatpush1.bf16.msra.mxu0 %v694_v26  ;;  %472 = vmatpush1.bf16.msra.mxu1 %v695_v27 }
  0x1c   :  { %432 = vmatprep.subr.bf16.mxu0 %v696_v28  ;;  %473 = vmatprep.subr.bf16.mxu1 %v698_v29 }
  0x1f   :  { %433 = vmatpush1.bf16.msra.mxu0 %v700_v30  ;;  %474 = vmatpush1.bf16.msra.mxu1 %v701_v31 }
  0x20   :  { %434 = vmatprep.subr.bf16.mxu0 %v702_v32  ;;  %475 = vmatprep.subr.bf16.mxu1 %v704_v33 }
  0x23   :  { %435 = vmatpush1.bf16.msra.mxu0 %v706_v34  ;;  %476 = vmatpush1.bf16.msra.mxu1 %v707_v35 }
  0x24   :  { %436 = vmatprep.subr.bf16.mxu0 %v708_v36  ;;  %477 = vmatprep.subr.bf16.mxu1 %v710_v37 }
  0x27   :  { %437 = vmatpush1.bf16.msra.mxu0 %v712_v38  ;;  %478 = vmatpush1.bf16.msra.mxu1 %v713_v39 }
  0x28   :  { %438 = vmatprep.subr.bf16.mxu0 %v714_v40  ;;  %479 = vmatprep.subr.bf16.mxu1 %v716_v41 }
  0x2b   :  { %439 = vmatpush1.bf16.msra.mxu0 %v718_v42  ;;  %480 = vmatpush1.bf16.msra.mxu1 %v719_v43 }
  0x2c   :  { %440 = vmatprep.subr.bf16.mxu0 %v720_v44  ;;  %481 = vmatprep.subr.bf16.mxu1 %v722_v45 }
  0x2f   :  { %441 = vmatpush1.bf16.msra.mxu0 %v724_v48  ;;  %482 = vmatpush1.bf16.msra.mxu1 %v725_v49 }
  0x30   :  { %442 = vmatprep.subr.bf16.mxu0 %v726_v50  ;;  %483 = vmatprep.subr.bf16.mxu1 %v728_v51 }
  0x33   :  { %443 = vmatpush1.bf16.msra.mxu0 %v730_v52  ;;  %484 = vmatpush1.bf16.msra.mxu1 %v731_v53 }
  0x34   :  { %444 = vmatprep.subr.bf16.mxu0 %v732_v54  ;;  %485 = vmatprep.subr.bf16.mxu1 %v734_v55 }
  0x37   :  { %445 = vmatpush1.bf16.msra.mxu0 %v736_v56  ;;  %486 = vmatpush1.bf16.msra.mxu1 %v737_v57 }
  0x38   :  { %446 = vmatprep.subr.bf16.mxu0 %v738_v58  ;;  %487 = vmatprep.subr.bf16.mxu1 %v740_v59 }
  0x3b   :  { %447 = vmatpush1.bf16.msra.mxu0 %v742_v60  ;;  %488 = vmatpush1.bf16.msra.mxu1 %v743_v61 }
  0x3c   :  { %448 = vmatprep.subr.bf16.mxu0 %v744_v62  ;;  %489 = vmatprep.subr.bf16.mxu1 %v746_v63 }
  0x3f   :  { %449 = vmatpush1.bf16.msra.mxu0 %v748_v0  ;;  %490 = vmatpush1.bf16.msra.mxu1 %v749_v1 }
  0x42   :  { %451 = vmatmul.mubr.bf16.vlgmr.msra.gmra.mrb[0].mxu0 %v587_v2  ;;  %492 = vmatmul.mubr.bf16.vlgmr.msra.gmra.mrb[0].mxu1 %v587_v2 }
 0x115   :  { %v452_v3 = vpop.f32.mrb[0].mxu0  ;;  %v493_v4 = vpop.f32.mrb[0].mxu1 }
 0x116   :  { %v454_v5 = vpop.f32.mrb[1].mxu0  ;;  %v495_v6 = vpop.f32.mrb[1].mxu1  ;;  %504 = vst [vmem:[%s1010_s2] sm:$0xff] %v452_v3  ;;  %v515_v9 = vrot.slane %v452_v3, 4  ;;  %v539_v10 = vmul.f32 %v452_v3, %v452_v3  ;;  %506 = vst [vmem:[%s1010_s2 + $0x10] sm:$0xff] %v493_v4  ;;  %v527_v11 = vrot.slane %v493_v4, 4  ;;  %v541_v12 = vmul.f32 %v493_v4, %v493_v4 }
 0x117   :  { %v456_v7 = vpop.f32.mrb[2].mxu0  ;;  %v497_v8 = vpop.f32.mrb[2].mxu1  ;;  %505 = vst [vmem:[%s1010_s2 + $0x8] sm:$0xff] %v454_v5  ;;  %v521_v15 = vrot.slane %v454_v5, 4  ;;  %v540_v16 = vmul.f32 %v454_v5, %v454_v5  ;;  %507 = vst [vmem:[%s1010_s2 + $0x18] sm:$0xff] %v495_v6  ;;  %v533_v17 = vrot.slane %v495_v6, 4  ;;  %v542_v18 = vmul.f32 %v495_v6, %v495_v6 }
 0x118   :  { %v457_v13 = vpop.f32.mrb[3].mxu0  ;;  %v498_v14 = vpop.f32.mrb[3].mxu1  ;;  %v516_v19 = vadd.f32 %v515_v9, %v452_v3  ;;  %v543_v20 = vrot.slane %v539_v10, 4  ;;  %v528_v21 = vadd.f32 %v527_v11, %v493_v4  ;;  %v555_v22 = vrot.slane %v541_v12, 4 }
 0x119   :  { %v522_v23 = vadd.f32 %v521_v15, %v454_v5  ;;  %v549_v24 = vrot.slane %v540_v16, 4  ;;  %v534_v25 = vadd.f32 %v533_v17, %v495_v6  ;;  %v561_v26 = vrot.slane %v542_v18, 4 }
 0x11a   :  { %v517_v27 = vrot.slane %v516_v19, 2  ;;  %v544_v28 = vadd.f32 %v543_v20, %v539_v10  ;;  %v529_v29 = vrot.slane %v528_v21, 2  ;;  %v556_v30 = vadd.f32 %v555_v22, %v541_v12 }
 0x11b   :  { %v523_v31 = vrot.slane %v522_v23, 2  ;;  %v550_v32 = vadd.f32 %v549_v24, %v540_v16  ;;  %v535_v33 = vrot.slane %v534_v25, 2  ;;  %v562_v34 = vadd.f32 %v561_v26, %v542_v18 }
 0x11c   :  { %v518_v35 = vadd.f32 %v517_v27, %v516_v19  ;;  %v545_v36 = vrot.slane %v544_v28, 2  ;;  %v530_v37 = vadd.f32 %v529_v29, %v528_v21  ;;  %v557_v38 = vrot.slane %v556_v30, 2 }
 0x11d   :  { %v524_v39 = vadd.f32 %v523_v31, %v522_v23  ;;  %v551_v40 = vrot.slane %v550_v32, 2  ;;  %v536_v41 = vadd.f32 %v535_v33, %v534_v25  ;;  %v563_v42 = vrot.slane %v562_v34, 2 }
 0x11e   :  { %v519_v43 = vrot.slane %v518_v35, 1  ;;  %v546_v44 = vadd.f32 %v545_v36, %v544_v28  ;;  %v531_v45 = vrot.slane %v530_v37, 1  ;;  %v558_v46 = vadd.f32 %v557_v38, %v556_v30 }
 0x11f   :  { %v525_v47 = vrot.slane %v524_v39, 1  ;;  %v552_v48 = vadd.f32 %v551_v40, %v550_v32  ;;  %v537_v49 = vrot.slane %v536_v41, 1  ;;  %v564_v50 = vadd.f32 %v563_v42, %v562_v34 }
 0x120   :  { %v520_v51 = vadd.f32 %v519_v43, %v518_v35  ;;  %v547_v52 = vrot.slane %v546_v44, 1  ;;  %v532_v53 = vadd.f32 %v531_v45, %v530_v37  ;;  %v559_v54 = vrot.slane %v558_v46, 1 }
 0x121   :  { %v526_v55 = vadd.f32 %v525_v47, %v524_v39  ;;  %v553_v56 = vrot.slane %v552_v48, 1  ;;  %v538_v57 = vadd.f32 %v537_v49, %v536_v41  ;;  %v565_v58 = vrot.slane %v564_v50, 1 }
 0x122   :  { %v548_v59 = vadd.f32 %v547_v52, %v546_v44  ;;  %567 = vst [vmem:[%s1011_s3] sm:$0xff] %v520_v51  ;;  %v560_v60 = vadd.f32 %v559_v54, %v558_v46  ;;  %569 = vst [vmem:[%s1011_s3 + $0x10] sm:$0xff] %v532_v53 }
 0x123   :  { %v554_v61 = vadd.f32 %v553_v56, %v552_v48  ;;  %568 = vst [vmem:[%s1011_s3 + $0x8] sm:$0xff] %v526_v55  ;;  %v566_v62 = vadd.f32 %v565_v58, %v564_v50  ;;  %570 = vst [vmem:[%s1011_s3 + $0x18] sm:$0xff] %v538_v57 }
 0x124   :  { %571 = vst [vmem:[%s1012_s4] sm:$0xff] %v548_v59  ;;  %573 = vst [vmem:[%s1012_s4 + $0x10] sm:$0xff] %v560_v60 }
 0x125   :  { %572 = vst [vmem:[%s1012_s4 + $0x8] sm:$0xff] %v554_v61  ;;  %574 = vst [vmem:[%s1012_s4 + $0x18] sm:$0xff] %v566_v62 }

// kernel: resnet_tpb_forward.75
= control target key start
LH: loop header
LB: loop body
LE: loop exit
PB: predicated region body
PF: predicated region fallthrough
CT: control target
= control target key end

     0   :  { %v20_v0 = vlaneseq  ;;  %s128_s1 = inlined_call_operand.vmem [shape: f32[1,512], index: 1, kind: input, shape index: {}]   ;;  %s129_s2 = inlined_call_operand.vmem [shape: f32[1,512], index: 2, kind: input, shape index: {}]   ;;  %s130_s0 = inlined_call_operand.vmem [shape: f32[8,512], index: 0, kind: input, shape index: {}]   ;;  %s131_s3 = inlined_call_operand.vmem [shape: f32[8,512], index: 3, kind: output, shape index: {}]  }
   0x1   :  { %v18_v2 = vld [vmem:[%s128_s1] sm:$0xf]  ;;  %v15_v9 = vld [vmem:[%s130_s0 + $0x8] sm:$0xff]  ;;  %v16_v14 = vld [vmem:[%s130_s0 + $0x10] sm:$0xff] }
   0x2   :  { %v21_v1 = vshrl.u32 %v20_v0, 7  ;;  %v44_v3 = vld [vmem:[%s129_s2] sm:$0xf]  ;;  %v17_v15 = vld [vmem:[%s130_s0 + $0x18] sm:$0xff] }
   0x3   :  { %v14_v8 = vld [vmem:[%s130_s0] sm:$0xff] }
   0x4   :  { %v22_v4 = vsub.s32 0, %v21_v1  ;;  %v26_v5 = vsub.s32 1, %v21_v1  ;;  %v30_v6 = vsub.s32 2, %v21_v1  ;;  %v34_v7 = vsub.s32 3, %v21_v1 }
   0x6   :  { %v23_v10 = vrot.slane %v18_v2, %v22_v4  ;;  %v49_v11 = vrot.slane %v44_v3, %v22_v4  ;;  %v27_v12 = vrot.slane %v18_v2, %v26_v5  ;;  %v53_v13 = vrot.slane %v44_v3, %v26_v5 }
   0x7   :  { %v31_v16 = vrot.slane %v18_v2, %v30_v6  ;;  %v57_v17 = vrot.slane %v44_v3, %v30_v6  ;;  %v35_v18 = vrot.slane %v18_v2, %v34_v7  ;;  %v61_v19 = vrot.slane %v44_v3, %v34_v7 }
   0x8   :  { %v40_v20 = vmul.f32 %v23_v10, %v14_v8  ;;  %v41_v21 = vmul.f32 %v27_v12, %v15_v9 }
   0x9   :  { %v42_v22 = vmul.f32 %v31_v16, %v16_v14  ;;  %v43_v23 = vmul.f32 %v35_v18, %v17_v15 }
   0xa   :  { %v66_v24 = vadd.f32 %v49_v11, %v40_v20  ;;  %v67_v25 = vadd.f32 %v53_v13, %v41_v21 }
   0xb   :  { %v68_v26 = vadd.f32 %v57_v17, %v42_v22  ;;  %v69_v27 = vadd.f32 %v61_v19, %v43_v23 }
   0xc   :  { %70 = vst [vmem:[%s131_s3] sm:$0xff] %v66_v24  ;;  %71 = vst [vmem:[%s131_s3 + $0x8] sm:$0xff] %v67_v25 }
   0xd   :  { %72 = vst [vmem:[%s131_s3 + $0x10] sm:$0xff] %v68_v26  ;;  %73 = vst [vmem:[%s131_s3 + $0x18] sm:$0xff] %v69_v27 }

// kernel: resnet_tpb_forward.72
= control target key start
LH: loop header
LB: loop body
LE: loop exit
PB: predicated region body
PF: predicated region fallthrough
CT: control target
= control target key end

     0   :  { %v20_v0 = vlaneseq  ;;  %s132_s1 = inlined_call_operand.vmem [shape: f32[1,512], index: 1, kind: input, shape index: {}]   ;;  %s133_s2 = inlined_call_operand.vmem [shape: f32[1,512], index: 2, kind: input, shape index: {}]   ;;  %s134_s0 = inlined_call_operand.vmem [shape: f32[8,512], index: 0, kind: input, shape index: {}]   ;;  %s135_s3 = inlined_call_operand.vmem [shape: f32[8,512], index: 3, kind: output, shape index: {}]  }
   0x1   :  { %v18_v2 = vld [vmem:[%s132_s1] sm:$0xf]  ;;  %v15_v9 = vld [vmem:[%s134_s0 + $0x8] sm:$0xff]  ;;  %v16_v14 = vld [vmem:[%s134_s0 + $0x10] sm:$0xff] }
   0x2   :  { %v21_v1 = vshrl.u32 %v20_v0, 7  ;;  %v44_v3 = vld [vmem:[%s133_s2] sm:$0xf]  ;;  %v17_v15 = vld [vmem:[%s134_s0 + $0x18] sm:$0xff] }
   0x3   :  { %v14_v8 = vld [vmem:[%s134_s0] sm:$0xff] }
   0x4   :  { %v22_v4 = vsub.s32 0, %v21_v1  ;;  %v26_v5 = vsub.s32 1, %v21_v1  ;;  %v30_v6 = vsub.s32 2, %v21_v1  ;;  %v34_v7 = vsub.s32 3, %v21_v1 }
   0x6   :  { %v23_v10 = vrot.slane %v18_v2, %v22_v4  ;;  %v49_v11 = vrot.slane %v44_v3, %v22_v4  ;;  %v27_v12 = vrot.slane %v18_v2, %v26_v5  ;;  %v53_v13 = vrot.slane %v44_v3, %v26_v5 }
   0x7   :  { %v31_v16 = vrot.slane %v18_v2, %v30_v6  ;;  %v57_v17 = vrot.slane %v44_v3, %v30_v6  ;;  %v35_v18 = vrot.slane %v18_v2, %v34_v7  ;;  %v61_v19 = vrot.slane %v44_v3, %v34_v7 }
   0x8   :  { %v40_v20 = vmul.f32 %v23_v10, %v14_v8  ;;  %v41_v21 = vmul.f32 %v27_v12, %v15_v9 }
   0x9   :  { %v42_v22 = vmul.f32 %v31_v16, %v16_v14  ;;  %v43_v23 = vmul.f32 %v35_v18, %v17_v15 }
   0xa   :  { %v66_v24 = vadd.f32 %v49_v11, %v40_v20  ;;  %v67_v25 = vadd.f32 %v53_v13, %v41_v21 }
   0xb   :  { %v68_v26 = vadd.f32 %v57_v17, %v42_v22  ;;  %v69_v27 = vadd.f32 %v61_v19, %v43_v23 }
   0xc   :  { %v70_v28 = vmax.f32 %v66_v24, 0.0  ;;  %v71_v29 = vmax.f32 %v67_v25, 0.0 }
   0xd   :  { %v72_v30 = vmax.f32 %v68_v26, 0.0  ;;  %v73_v31 = vmax.f32 %v69_v27, 0.0 }
   0xe   :  { %74 = vst [vmem:[%s135_s3] sm:$0xff] %v70_v28  ;;  %75 = vst [vmem:[%s135_s3 + $0x8] sm:$0xff] %v71_v29 }
   0xf   :  { %76 = vst [vmem:[%s135_s3 + $0x10] sm:$0xff] %v72_v30  ;;  %77 = vst [vmem:[%s135_s3 + $0x18] sm:$0xff] %v73_v31 }

// kernel: resnet_tpb_forward.73
= control target key start
LH: loop header
LB: loop body
LE: loop exit
PB: predicated region body
PF: predicated region fallthrough
CT: control target
= control target key end

     0   :  { %s1990_s15 = smov 0   ;;  %s1992_s16 = smov 0   ;;  %s2247_s0 = inlined_call_operand.vmem [shape: bf16[8,4608], index: 0, kind: input, shape index: {}]   ;;  %s2248_s1 = inlined_call_operand.vmem [shape: bf16[4608,512], index: 1, kind: input, shape index: {}]   ;;  %s2249_s2 = inlined_call_operand.vmem [shape: f32[8,512], index: 2, kind: output, shape index: {0}]   ;;  %s2250_s3 = inlined_call_operand.vmem [shape: f32[8,512], index: 3, kind: output, shape index: {1}]   ;;  %s2251_s4 = inlined_call_operand.vmem [shape: f32[8,512], index: 4, kind: output, shape index: {2}]  }
   0x1   :  { %s1994_s17 = smov 0  }
   0x2 LB: > { %s27_s18 = sadd.s32 1, %s1958_s16  ;;  %p1570_p0 = scmp.ge.s32.totalorder %s1962_s17, 1  ;;  %s1962_s17 = sphi %s1994_s17, %s15_s17   ;;  %s1958_s16 = sphi %s1992_s16, %s2253_s16   ;;  %s1954_s15 = sphi %s1990_s15, %s2252_s15  }
   0x3   : > { %p28_p1 = scmp.ge.s32.totalorder %s27_s18, 9  ;;  %p218_p2 = scmp.lt.s32.totalorder %s1962_s17, 10 }
   0x5   : > { %s2255_s18 = smov (%p28_p1, %s27_s18), 0  ;;  %p219_p3 = pnand %p1570_p0, %p218_p2 }
   0x6   : > { %s1571_s19 = sshll.u32 (!%p219_p3), %s1954_s15, 2  ;;  %s1573_s20 = sshll.u32 (!%p219_p3), %s1954_s15, 6 }
   0x7   : > { %222 = sbr.rel (%p219_p3) target bundleno = 394 (0x18a), region = 28  ;;  %p283_p4 = scmp.lt.s32.totalorder (!%p219_p3), %s1571_s19, 35 }
   0x8   : > { %p292_p5 = scmp.lt.s32.totalorder (!%p219_p3), %s1573_s20, 575  ;;  %p1576_p6 = scmp.ne.s32.totalorder (!%p219_p3), %s1954_s15, 0 }
   0xe   : > { %s2257_s19 = smov (!%p283_p4, %s1571_s19), 35  ;;  %s2259_s20 = smov (!%p292_p5, %s1573_s20), 575 }
   0xf   : > { %s1572_s21 = sshll.u32 %s2257_s19, 2  ;;  %s1718_s25 = sshll.u32 %s2259_s20, 4  ;;  %v1964_v0 = vmov (!%p1576_p6), 0.0  }
  0x10   : > { %s2015_s24 = scalar_lea.vmem %s2247_s0, %s1572_s21  ;;  %s2020_s28 = scalar_lea.vmem %s2248_s1, %s1718_s25  ;;  %336 = vst [vmem:[%s2249_s2] sm:$0xff] (!%p1576_p6), %v1964_v0  ;;  %337 = vst [vmem:[%s2249_s2 + $0x8] sm:$0xff] (!%p1576_p6), %v1964_v0 }
  0x11   : > { %335 = sbr.rel (%p1576_p6) target bundleno = 24 (0x18), region = 32  ;;  %338 = vst [vmem:[%s2249_s2 + $0x10] sm:$0xff] (!%p1576_p6), %v1964_v0  ;;  %339 = vst [vmem:[%s2249_s2 + $0x18] sm:$0xff] (!%p1576_p6), %v1964_v0 }
  0x18 PF: > { %v1744_v1 = vld [vmem:[%s2020_s28 + $0x4] ss:$16 sps:$4 sm:$0xff]   ;;  %v1748_v3 = vld [vmem:[%s2020_s28] ss:$16 sps:$4 sm:$0xff]   ;;  %v345_v49 = vld [vmem:[%s2015_s24 + $0x8] sm:$0xff]  ;;  %p1709_p7 = scmp.ne.s32.totalorder %s1954_s15, 8 }
  0x19   : > { %v1746_v2 = vld [vmem:[%s2020_s28 + $0x204] ss:$16 sps:$4 sm:$0xff]   ;;  %1128 = vmatprep.subr.bf16.mxu0 %v1744_v1  ;;  %v1749_v4 = vld [vmem:[%s2020_s28 + $0x200] ss:$16 sps:$4 sm:$0xff]   ;;  %v1580_v52 = vcombine.high %v345_v49, %v345_v49 }
  0x1a   : > { %1169 = vmatprep.subr.bf16.mxu1 %v1746_v2  ;;  %v1750_v5 = vld [vmem:[%s2020_s28 + $0x24] ss:$16 sps:$4 sm:$0xff]   ;;  %1129 = vmatpush1.bf16.msra.mxu0 %v1748_v3  ;;  %v1754_v7 = vld [vmem:[%s2020_s28 + $0x20] ss:$16 sps:$4 sm:$0xff]  }
  0x1b   : > { %1170 = vmatpush1.bf16.msra.mxu1 %v1749_v4  ;;  %v1752_v6 = vld [vmem:[%s2020_s28 + $0x224] ss:$16 sps:$4 sm:$0xff]   ;;  %1130 = vmatprep.subr.bf16.mxu0 %v1750_v5  ;;  %v1755_v8 = vld [vmem:[%s2020_s28 + $0x220] ss:$16 sps:$4 sm:$0xff]   ;;  %v1846_v5 = vld [vmem:[%s2020_s28 + $0xc] ss:$16 sps:$4 sm:$0xff]  }
  0x1c   : > { %1171 = vmatprep.subr.bf16.mxu1 %v1752_v6  ;;  %v1756_v9 = vld [vmem:[%s2020_s28 + $0x44] ss:$16 sps:$4 sm:$0xff]   ;;  %v1760_v11 = vld [vmem:[%s2020_s28 + $0x40] ss:$16 sps:$4 sm:$0xff]   ;;  %1201 = vmatprep.mubr.bf16.mxu1 %v1580_v52  ;;  %v1849_v6 = vld [vmem:[%s2020_s28 + $0x20c] ss:$16 sps:$4 sm:$0xff]  }
  0x1d   : > { %v1758_v10 = vld [vmem:[%s2020_s28 + $0x244] ss:$16 sps:$4 sm:$0xff]   ;;  %v1761_v12 = vld [vmem:[%s2020_s28 + $0x240] ss:$16 sps:$4 sm:$0xff]  }
  0x1e   : > { %1131 = vmatpush1.bf16.msra.mxu0 %v1754_v7  ;;  %v1762_v13 = vld [vmem:[%s2020_s28 + $0x64] ss:$16 sps:$4 sm:$0xff]   ;;  %v1766_v15 = vld [vmem:[%s2020_s28 + $0x60] ss:$16 sps:$4 sm:$0xff]  }
  0x1f   : > { %1172 = vmatpush1.bf16.msra.mxu1 %v1755_v8  ;;  %1132 = vmatprep.subr.bf16.mxu0 %v1756_v9  ;;  %v1764_v14 = vld [vmem:[%s2020_s28 + $0x264] ss:$16 sps:$4 sm:$0xff]   ;;  %v1767_v16 = vld [vmem:[%s2020_s28 + $0x260] ss:$16 sps:$4 sm:$0xff]   ;;  %v2108_v8 = vcombine.low %v345_v49, %v345_v49  ;;  %v1844_v9 = vld [vmem:[%s2020_s28 + $0x8] ss:$16 sps:$4 sm:$0xff]  }
  0x20   : > { %1173 = vmatprep.subr.bf16.mxu1 %v1758_v10  ;;  %v1768_v17 = vld [vmem:[%s2020_s28 + $0x84] ss:$16 sps:$4 sm:$0xff]   ;;  %v1772_v19 = vld [vmem:[%s2020_s28 + $0x80] ss:$16 sps:$4 sm:$0xff]   ;;  %v1847_v10 = vld [vmem:[%s2020_s28 + $0x208] ss:$16 sps:$4 sm:$0xff]  }
  0x21   : > { %v1770_v18 = vld [vmem:[%s2020_s28 + $0x284] ss:$16 sps:$4 sm:$0xff]   ;;  %v1773_v20 = vld [vmem:[%s2020_s28 + $0x280] ss:$16 sps:$4 sm:$0xff]   ;;  %v1904_v49 = vld [vmem:[%s2020_s28 + $0x148] ss:$16 sps:$4 sm:$0xff]  }
  0x22   : > { %1133 = vmatpush1.bf16.msra.mxu0 %v1760_v11  ;;  %v1774_v21 = vld [vmem:[%s2020_s28 + $0xa4] ss:$16 sps:$4 sm:$0xff]   ;;  %v1778_v23 = vld [vmem:[%s2020_s28 + $0xa0] ss:$16 sps:$4 sm:$0xff]   ;;  %v1852_v11 = vld [vmem:[%s2020_s28 + $0x2c] ss:$16 sps:$4 sm:$0xff]  }
  0x23   : > { %1174 = vmatpush1.bf16.msra.mxu1 %v1761_v12  ;;  %1134 = vmatprep.subr.bf16.mxu0 %v1762_v13  ;;  %v1776_v22 = vld [vmem:[%s2020_s28 + $0x2a4] ss:$16 sps:$4 sm:$0xff]   ;;  %v1779_v24 = vld [vmem:[%s2020_s28 + $0x2a0] ss:$16 sps:$4 sm:$0xff]   ;;  %v1855_v12 = vld [vmem:[%s2020_s28 + $0x22c] ss:$16 sps:$4 sm:$0xff]  }
  0x24   : > { %1175 = vmatprep.subr.bf16.mxu1 %v1764_v14  ;;  %v1780_v25 = vld [vmem:[%s2020_s28 + $0xc4] ss:$16 sps:$4 sm:$0xff]   ;;  %v1784_v27 = vld [vmem:[%s2020_s28 + $0xc0] ss:$16 sps:$4 sm:$0xff]   ;;  %v1850_v13 = vld [vmem:[%s2020_s28 + $0x28] ss:$16 sps:$4 sm:$0xff]  }
  0x25   : > { %v1782_v26 = vld [vmem:[%s2020_s28 + $0x2c4] ss:$16 sps:$4 sm:$0xff]   ;;  %v1785_v28 = vld [vmem:[%s2020_s28 + $0x2c0] ss:$16 sps:$4 sm:$0xff]   ;;  %v1853_v14 = vld [vmem:[%s2020_s28 + $0x228] ss:$16 sps:$4 sm:$0xff]  }
  0x26   : > { %1135 = vmatpush1.bf16.msra.mxu0 %v1766_v15  ;;  %v1786_v29 = vld [vmem:[%s2020_s28 + $0xe4] ss:$16 sps:$4 sm:$0xff]   ;;  %v1790_v31 = vld [vmem:[%s2020_s28 + $0xe0] ss:$16 sps:$4 sm:$0xff]   ;;  %v1858_v15 = vld [vmem:[%s2020_s28 + $0x4c] ss:$16 sps:$4 sm:$0xff]  }
  0x27   : > { %1176 = vmatpush1.bf16.msra.mxu1 %v1767_v16  ;;  %1136 = vmatprep.subr.bf16.mxu0 %v1768_v17  ;;  %v1788_v30 = vld [vmem:[%s2020_s28 + $0x2e4] ss:$16 sps:$4 sm:$0xff]   ;;  %v1791_v32 = vld [vmem:[%s2020_s28 + $0x2e0] ss:$16 sps:$4 sm:$0xff]   ;;  %v1861_v16 = vld [vmem:[%s2020_s28 + $0x24c] ss:$16 sps:$4 sm:$0xff]  }
  0x28   : > { %1177 = vmatprep.subr.bf16.mxu1 %v1770_v18  ;;  %v1792_v33 = vld [vmem:[%s2020_s28 + $0x104] ss:$16 sps:$4 sm:$0xff]   ;;  %v1796_v35 = vld [vmem:[%s2020_s28 + $0x100] ss:$16 sps:$4 sm:$0xff]   ;;  %v1856_v17 = vld [vmem:[%s2020_s28 + $0x48] ss:$16 sps:$4 sm:$0xff]  }
  0x29   : > { %v1794_v34 = vld [vmem:[%s2020_s28 + $0x304] ss:$16 sps:$4 sm:$0xff]   ;;  %v1797_v36 = vld [vmem:[%s2020_s28 + $0x300] ss:$16 sps:$4 sm:$0xff]   ;;  %v1859_v18 = vld [vmem:[%s2020_s28 + $0x248] ss:$16 sps:$4 sm:$0xff]  }
  0x2a   : > { %1137 = vmatpush1.bf16.msra.mxu0 %v1772_v19  ;;  %v1798_v37 = vld [vmem:[%s2020_s28 + $0x124] ss:$16 sps:$4 sm:$0xff]   ;;  %v1802_v39 = vld [vmem:[%s2020_s28 + $0x120] ss:$16 sps:$4 sm:$0xff]   ;;  %v1864_v19 = vld [vmem:[%s2020_s28 + $0x6c] ss:$16 sps:$4 sm:$0xff]  }
  0x2b   : > { %1178 = vmatpush1.bf16.msra.mxu1 %v1773_v20  ;;  %1138 = vmatprep.subr.bf16.mxu0 %v1774_v21  ;;  %v1800_v38 = vld [vmem:[%s2020_s28 + $0x324] ss:$16 sps:$4 sm:$0xff]   ;;  %v1803_v40 = vld [vmem:[%s2020_s28 + $0x320] ss:$16 sps:$4 sm:$0xff]   ;;  %v1867_v20 = vld [vmem:[%s2020_s28 + $0x26c] ss:$16 sps:$4 sm:$0xff]  }
  0x2c   : > { %1179 = vmatprep.subr.bf16.mxu1 %v1776_v22  ;;  %v1804_v41 = vld [vmem:[%s2020_s28 + $0x144] ss:$16 sps:$4 sm:$0xff]   ;;  %v1808_v43 = vld [vmem:[%s2020_s28 + $0x140] ss:$16 sps:$4 sm:$0xff]   ;;  %v1862_v21 = vld [vmem:[%s2020_s28 + $0x68] ss:$16 sps:$4 sm:$0xff]  }
  0x2d   : > { %v1806_v42 = vld [vmem:[%s2020_s28 + $0x344] ss:$16 sps:$4 sm:$0xff]   ;;  %v1809_v44 = vld [vmem:[%s2020_s28 + $0x340] ss:$16 sps:$4 sm:$0xff]   ;;  %v1865_v22 = vld [vmem:[%s2020_s28 + $0x268] ss:$16 sps:$4 sm:$0xff]  }
  0x2e   : > { %1139 = vmatpush1.bf16.msra.mxu0 %v1778_v23  ;;  %v1810_v45 = vld [vmem:[%s2020_s28 + $0x164] ss:$16 sps:$4 sm:$0xff]   ;;  %v1814_v50 = vld [vmem:[%s2020_s28 + $0x160] ss:$16 sps:$4 sm:$0xff]   ;;  %v1870_v23 = vld [vmem:[%s2020_s28 + $0x8c] ss:$16 sps:$4 sm:$0xff]  }
  0x2f   : > { %1180 = vmatpush1.bf16.msra.mxu1 %v1779_v24  ;;  %1140 = vmatprep.subr.bf16.mxu0 %v1780_v25  ;;  %v1812_v46 = vld [vmem:[%s2020_s28 + $0x364] ss:$16 sps:$4 sm:$0xff]   ;;  %v1815_v51 = vld [vmem:[%s2020_s28 + $0x360] ss:$16 sps:$4 sm:$0xff]   ;;  %v1873_v24 = vld [vmem:[%s2020_s28 + $0x28c] ss:$16 sps:$4 sm:$0xff]  }
  0x30   : > { %1181 = vmatprep.subr.bf16.mxu1 %v1782_v26  ;;  %v344_v47 = vld [vmem:[%s2015_s24] sm:$0xff]  ;;  %v1868_v25 = vld [vmem:[%s2020_s28 + $0x88] ss:$16 sps:$4 sm:$0xff]  }
  0x31   : > { %v2082_v48 = vcombine.high %v344_v47, %v344_v47  ;;  %v1816_v53 = vld [vmem:[%s2020_s28 + $0x184] ss:$16 sps:$4 sm:$0xff]   ;;  %v1820_v55 = vld [vmem:[%s2020_s28 + $0x180] ss:$16 sps:$4 sm:$0xff]   ;;  %v2106_v7 = vcombine.low %v344_v47, %v344_v47  ;;  %v1871_v26 = vld [vmem:[%s2020_s28 + $0x288] ss:$16 sps:$4 sm:$0xff]  }
  0x32   : > { %1141 = vmatpush1.bf16.msra.mxu0 %v1784_v27  ;;  %v1818_v54 = vld [vmem:[%s2020_s28 + $0x384] ss:$16 sps:$4 sm:$0xff]   ;;  %v1821_v56 = vld [vmem:[%s2020_s28 + $0x380] ss:$16 sps:$4 sm:$0xff]   ;;  %v1876_v27 = vld [vmem:[%s2020_s28 + $0xac] ss:$16 sps:$4 sm:$0xff]  }
  0x33   : > { %1182 = vmatpush1.bf16.msra.mxu1 %v1785_v28  ;;  %1142 = vmatprep.subr.bf16.mxu0 %v1786_v29  ;;  %v1822_v57 = vld [vmem:[%s2020_s28 + $0x1a4] ss:$16 sps:$4 sm:$0xff]   ;;  %v1826_v59 = vld [vmem:[%s2020_s28 + $0x1a0] ss:$16 sps:$4 sm:$0xff]   ;;  %v1879_v28 = vld [vmem:[%s2020_s28 + $0x2ac] ss:$16 sps:$4 sm:$0xff]  }
  0x34   : > { %1183 = vmatprep.subr.bf16.mxu1 %v1788_v30  ;;  %1160 = vmatprep.mubr.bf16.mxu0 %v2082_v48  ;;  %v1824_v58 = vld [vmem:[%s2020_s28 + $0x3a4] ss:$16 sps:$4 sm:$0xff]   ;;  %v1827_v60 = vld [vmem:[%s2020_s28 + $0x3a0] ss:$16 sps:$4 sm:$0xff]   ;;  %v1874_v29 = vld [vmem:[%s2020_s28 + $0xa8] ss:$16 sps:$4 sm:$0xff]  }
  0x35   : > { %v1828_v61 = vld [vmem:[%s2020_s28 + $0x1c4] ss:$16 sps:$4 sm:$0xff]   ;;  %v1832_v63 = vld [vmem:[%s2020_s28 + $0x1c0] ss:$16 sps:$4 sm:$0xff]   ;;  %v1877_v30 = vld [vmem:[%s2020_s28 + $0x2a8] ss:$16 sps:$4 sm:$0xff]  }
  0x36   : > { %1143 = vmatpush1.bf16.msra.mxu0 %v1790_v31  ;;  %v1830_v62 = vld [vmem:[%s2020_s28 + $0x3c4] ss:$16 sps:$4 sm:$0xff]   ;;  %v1833_v0 = vld [vmem:[%s2020_s28 + $0x3c0] ss:$16 sps:$4 sm:$0xff]   ;;  %v1882_v31 = vld [vmem:[%s2020_s28 + $0xcc] ss:$16 sps:$4 sm:$0xff]  }
  0x37   : > { %1184 = vmatpush1.bf16.msra.mxu1 %v1791_v32  ;;  %1144 = vmatprep.subr.bf16.mxu0 %v1792_v33  ;;  %v1834_v1 = vld [vmem:[%s2020_s28 + $0x1e4] ss:$16 sps:$4 sm:$0xff]   ;;  %v1838_v3 = vld [vmem:[%s2020_s28 + $0x1e0] ss:$16 sps:$4 sm:$0xff]   ;;  %v1885_v32 = vld [vmem:[%s2020_s28 + $0x2cc] ss:$16 sps:$4 sm:$0xff]  }
  0x38   : > { %1185 = vmatprep.subr.bf16.mxu1 %v1794_v34  ;;  %v1836_v2 = vld [vmem:[%s2020_s28 + $0x3e4] ss:$16 sps:$4 sm:$0xff]   ;;  %v1839_v4 = vld [vmem:[%s2020_s28 + $0x3e0] ss:$16 sps:$4 sm:$0xff]   ;;  %v1880_v33 = vld [vmem:[%s2020_s28 + $0xc8] ss:$16 sps:$4 sm:$0xff]  }
  0x39   : > { %v1883_v34 = vld [vmem:[%s2020_s28 + $0x2c8] ss:$16 sps:$4 sm:$0xff]   ;;  %v1906_v47 = vld [vmem:[%s2020_s28 + $0x14c] ss:$16 sps:$4 sm:$0xff]  }
  0x3a   : > { %1145 = vmatpush1.bf16.msra.mxu0 %v1796_v35  ;;  %v1888_v35 = vld [vmem:[%s2020_s28 + $0xec] ss:$16 sps:$4 sm:$0xff]  }
  0x3b   : > { %1186 = vmatpush1.bf16.msra.mxu1 %v1797_v36  ;;  %1146 = vmatprep.subr.bf16.mxu0 %v1798_v37  ;;  %v1891_v36 = vld [vmem:[%s2020_s28 + $0x2ec] ss:$16 sps:$4 sm:$0xff]   ;;  %v1886_v37 = vld [vmem:[%s2020_s28 + $0xe8] ss:$16 sps:$4 sm:$0xff]  }
  0x3c   : > { %1187 = vmatprep.subr.bf16.mxu1 %v1800_v38  ;;  %v1889_v38 = vld [vmem:[%s2020_s28 + $0x2e8] ss:$16 sps:$4 sm:$0xff]  }
  0x3e   : > { %1147 = vmatpush1.bf16.msra.mxu0 %v1802_v39  ;;  %v1894_v39 = vld [vmem:[%s2020_s28 + $0x10c] ss:$16 sps:$4 sm:$0xff]  }
  0x3f   : > { %1188 = vmatpush1.bf16.msra.mxu1 %v1803_v40  ;;  %1148 = vmatprep.subr.bf16.mxu0 %v1804_v41  ;;  %v1897_v40 = vld [vmem:[%s2020_s28 + $0x30c] ss:$16 sps:$4 sm:$0xff]   ;;  %v1892_v41 = vld [vmem:[%s2020_s28 + $0x108] ss:$16 sps:$4 sm:$0xff]  }
  0x40   : > { %1189 = vmatprep.subr.bf16.mxu1 %v1806_v42  ;;  %v1895_v42 = vld [vmem:[%s2020_s28 + $0x308] ss:$16 sps:$4 sm:$0xff]  }
  0x42   : > { %1149 = vmatpush1.bf16.msra.mxu0 %v1808_v43  ;;  %v1900_v43 = vld [vmem:[%s2020_s28 + $0x12c] ss:$16 sps:$4 sm:$0xff]  }
  0x43   : > { %1190 = vmatpush1.bf16.msra.mxu1 %v1809_v44  ;;  %1150 = vmatprep.subr.bf16.mxu0 %v1810_v45  ;;  %v1903_v44 = vld [vmem:[%s2020_s28 + $0x32c] ss:$16 sps:$4 sm:$0xff]   ;;  %v1898_v45 = vld [vmem:[%s2020_s28 + $0x128] ss:$16 sps:$4 sm:$0xff]  }
  0x44   : > { %1191 = vmatprep.subr.bf16.mxu1 %v1812_v46  ;;  %v1901_v46 = vld [vmem:[%s2020_s28 + $0x328] ss:$16 sps:$4 sm:$0xff]  }
  0x46   : > { %1151 = vmatpush1.bf16.msra.mxu0 %v1814_v50  ;;  %v1907_v50 = vld [vmem:[%s2020_s28 + $0x348] ss:$16 sps:$4 sm:$0xff]  }
  0x47   : > { %1192 = vmatpush1.bf16.msra.mxu1 %v1815_v51  ;;  %1152 = vmatprep.subr.bf16.mxu0 %v1816_v53  ;;  %v1912_v51 = vld [vmem:[%s2020_s28 + $0x16c] ss:$16 sps:$4 sm:$0xff]   ;;  %v1910_v53 = vld [vmem:[%s2020_s28 + $0x168] ss:$16 sps:$4 sm:$0xff]  }
  0x48   : > { %1193 = vmatprep.subr.bf16.mxu1 %v1818_v54  ;;  %v1913_v54 = vld [vmem:[%s2020_s28 + $0x368] ss:$16 sps:$4 sm:$0xff]  }
  0x4a   : > { %1153 = vmatpush1.bf16.msra.mxu0 %v1820_v55  ;;  %v1918_v55 = vld [vmem:[%s2020_s28 + $0x18c] ss:$16 sps:$4 sm:$0xff]  }
  0x4b   : > { %1194 = vmatpush1.bf16.msra.mxu1 %v1821_v56  ;;  %1154 = vmatprep.subr.bf16.mxu0 %v1822_v57  ;;  %v1921_v56 = vld [vmem:[%s2020_s28 + $0x38c] ss:$16 sps:$4 sm:$0xff]   ;;  %v1916_v57 = vld [vmem:[%s2020_s28 + $0x188] ss:$16 sps:$4 sm:$0xff]  }
  0x4c   : > { %1195 = vmatprep.subr.bf16.mxu1 %v1824_v58  ;;  %v1919_v58 = vld [vmem:[%s2020_s28 + $0x388] ss:$16 sps:$4 sm:$0xff]  }
  0x4e   : > { %1155 = vmatpush1.bf16.msra.mxu0 %v1826_v59  ;;  %v1924_v59 = vld [vmem:[%s2020_s28 + $0x1ac] ss:$16 sps:$4 sm:$0xff]  }
  0x4f   : > { %1196 = vmatpush1.bf16.msra.mxu1 %v1827_v60  ;;  %1156 = vmatprep.subr.bf16.mxu0 %v1828_v61  ;;  %v1927_v60 = vld [vmem:[%s2020_s28 + $0x3ac] ss:$16 sps:$4 sm:$0xff]   ;;  %v1922_v61 = vld [vmem:[%s2020_s28 + $0x1a8] ss:$16 sps:$4 sm:$0xff]  }
  0x50   : > { %1197 = vmatprep.subr.bf16.mxu1 %v1830_v62  ;;  %v1925_v62 = vld [vmem:[%s2020_s28 + $0x3a8] ss:$16 sps:$4 sm:$0xff]  }
  0x52   : > { %1157 = vmatpush1.bf16.msra.mxu0 %v1832_v63  ;;  %v1930_v63 = vld [vmem:[%s2020_s28 + $0x1cc] ss:$16 sps:$4 sm:$0xff]  }
  0x53   : > { %1198 = vmatpush1.bf16.msra.mxu1 %v1833_v0  ;;  %1158 = vmatprep.subr.bf16.mxu0 %v1834_v1  ;;  %v1933_v0 = vld [vmem:[%s2020_s28 + $0x3cc] ss:$16 sps:$4 sm:$0xff]   ;;  %v1928_v1 = vld [vmem:[%s2020_s28 + $0x1c8] ss:$16 sps:$4 sm:$0xff]  }
  0x54   : > { %1199 = vmatprep.subr.bf16.mxu1 %v1836_v2  ;;  %v1931_v2 = vld [vmem:[%s2020_s28 + $0x3c8] ss:$16 sps:$4 sm:$0xff]  }
  0x56   : > { %1159 = vmatpush1.bf16.msra.mxu0 %v1838_v3  ;;  %v1936_v3 = vld [vmem:[%s2020_s28 + $0x1ec] ss:$16 sps:$4 sm:$0xff]  }
  0x57   : > { %1200 = vmatpush1.bf16.msra.mxu1 %v1839_v4  ;;  %1210 = vmatprep.subr.bf16.mxu0 %v1846_v5  ;;  %v1939_v4 = vld [vmem:[%s2020_s28 + $0x3ec] ss:$16 sps:$4 sm:$0xff]   ;;  %v1934_v5 = vld [vmem:[%s2020_s28 + $0x1e8] ss:$16 sps:$4 sm:$0xff]  }
  0x58   : > { %1251 = vmatprep.subr.bf16.mxu1 %v1849_v6  ;;  %v1937_v6 = vld [vmem:[%s2020_s28 + $0x3e8] ss:$16 sps:$4 sm:$0xff]  }
  0x59   : > { %1161 = vmatmul.mubr.bf16.vlgmr.msra.gmra.mrb[0].mxu0 %v2106_v7 }
  0x5a   : > { %1202 = vmatmul.mubr.bf16.vlgmr.msra.gmra.mrb[0].mxu1 %v2108_v8  ;;  %1211 = vmatpush1.bf16.msra.mxu0 %v1844_v9 }
  0x5b   : > { %1252 = vmatpush1.bf16.msra.mxu1 %v1847_v10  ;;  %1212 = vmatprep.subr.bf16.mxu0 %v1852_v11  ;;  %v340_v10 = vld [vmem:[%s2249_s2] sm:$0xff] }
  0x5c   : > { %1253 = vmatprep.subr.bf16.mxu1 %v1855_v12  ;;  %1242 = vmatprep.mubr.bf16.mxu0 %v2082_v48  ;;  %v1909_v48 = vld [vmem:[%s2020_s28 + $0x34c] ss:$16 sps:$4 sm:$0xff]  }
  0x5d   : > { %1283 = vmatprep.mubr.bf16.mxu1 %v1580_v52  ;;  %v1915_v52 = vld [vmem:[%s2020_s28 + $0x36c] ss:$16 sps:$4 sm:$0xff]  }
  0x5e   : > { %1213 = vmatpush1.bf16.msra.mxu0 %v1850_v13 }
  0x5f   : > { %1254 = vmatpush1.bf16.msra.mxu1 %v1853_v14  ;;  %1214 = vmatprep.subr.bf16.mxu0 %v1858_v15  ;;  %v341_v14 = vld [vmem:[%s2249_s2 + $0x8] sm:$0xff] }
  0x60   : > { %1255 = vmatprep.subr.bf16.mxu1 %v1861_v16 }
  0x62   : > { %1215 = vmatpush1.bf16.msra.mxu0 %v1856_v17 }
  0x63   : > { %1256 = vmatpush1.bf16.msra.mxu1 %v1859_v18  ;;  %1216 = vmatprep.subr.bf16.mxu0 %v1864_v19 }
  0x64   : > { %1257 = vmatprep.subr.bf16.mxu1 %v1867_v20 }
  0x66   : > { %1217 = vmatpush1.bf16.msra.mxu0 %v1862_v21 }
  0x67   : > { %1258 = vmatpush1.bf16.msra.mxu1 %v1865_v22  ;;  %1218 = vmatprep.subr.bf16.mxu0 %v1870_v23  ;;  %v342_v22 = vld [vmem:[%s2249_s2 + $0x10] sm:$0xff] }
  0x68   : > { %1259 = vmatprep.subr.bf16.mxu1 %v1873_v24 }
  0x6a   : > { %1219 = vmatpush1.bf16.msra.mxu0 %v1868_v25 }
  0x6b   : > { %1260 = vmatpush1.bf16.msra.mxu1 %v1871_v26  ;;  %1220 = vmatprep.subr.bf16.mxu0 %v1876_v27  ;;  %v343_v26 = vld [vmem:[%s2249_s2 + $0x18] sm:$0xff] }
  0x6c   : > { %1261 = vmatprep.subr.bf16.mxu1 %v1879_v28 }
  0x6e   : > { %1221 = vmatpush1.bf16.msra.mxu0 %v1874_v29 }
  0x6f   : > { %1262 = vmatpush1.bf16.msra.mxu1 %v1877_v30  ;;  %1222 = vmatprep.subr.bf16.mxu0 %v1882_v31 }
  0x70   : > { %1263 = vmatprep.subr.bf16.mxu1 %v1885_v32 }
  0x72   : > { %1223 = vmatpush1.bf16.msra.mxu0 %v1880_v33 }
  0x73   : > { %1264 = vmatpush1.bf16.msra.mxu1 %v1883_v34  ;;  %1224 = vmatprep.subr.bf16.mxu0 %v1888_v35 }
  0x74   : > { %1265 = vmatprep.subr.bf16.mxu1 %v1891_v36 }
  0x76   : > { %1225 = vmatpush1.bf16.msra.mxu0 %v1886_v37 }
  0x77   : > { %1266 = vmatpush1.bf16.msra.mxu1 %v1889_v38  ;;  %1226 = vmatprep.subr.bf16.mxu0 %v1894_v39 }
  0x78   : > { %1267 = vmatprep.subr.bf16.mxu1 %v1897_v40 }
  0x7a   : > { %1227 = vmatpush1.bf16.msra.mxu0 %v1892_v41 }
  0x7b   : > { %1268 = vmatpush1.bf16.msra.mxu1 %v1895_v42  ;;  %1228 = vmatprep.subr.bf16.mxu0 %v1900_v43 }
  0x7c   : > { %1269 = vmatprep.subr.bf16.mxu1 %v1903_v44 }
  0x7e   : > { %1229 = vmatpush1.bf16.msra.mxu0 %v1898_v45 }
  0x7f   : > { %1270 = vmatpush1.bf16.msra.mxu1 %v1901_v46  ;;  %1230 = vmatprep.subr.bf16.mxu0 %v1906_v47 }
  0x80   : > { %1271 = vmatprep.subr.bf16.mxu1 %v1909_v48 }
  0x82   : > { %1231 = vmatpush1.bf16.msra.mxu0 %v1904_v49 }
  0x83   : > { %1272 = vmatpush1.bf16.msra.mxu1 %v1907_v50  ;;  %1232 = vmatprep.subr.bf16.mxu0 %v1912_v51 }
  0x84   : > { %1273 = vmatprep.subr.bf16.mxu1 %v1915_v52 }
  0x86   : > { %1233 = vmatpush1.bf16.msra.mxu0 %v1910_v53 }
  0x87   : > { %1274 = vmatpush1.bf16.msra.mxu1 %v1913_v54  ;;  %1234 = vmatprep.subr.bf16.mxu0 %v1918_v55 }
  0x88   : > { %1275 = vmatprep.subr.bf16.mxu1 %v1921_v56 }
  0x8a   : > { %1235 = vmatpush1.bf16.msra.mxu0 %v1916_v57 }
  0x8b   : > { %1276 = vmatpush1.bf16.msra.mxu1 %v1919_v58  ;;  %1236 = vmatprep.subr.bf16.mxu0 %v1924_v59 }
  0x8c   : > { %1277 = vmatprep.subr.bf16.mxu1 %v1927_v60 }
  0x8e   : > { %1237 = vmatpush1.bf16.msra.mxu0 %v1922_v61 }
  0x8f   : > { %1278 = vmatpush1.bf16.msra.mxu1 %v1925_v62  ;;  %1238 = vmatprep.subr.bf16.mxu0 %v1930_v63 }
  0x90   : > { %1279 = vmatprep.subr.bf16.mxu1 %v1933_v0 }
  0x92   : > { %1239 = vmatpush1.bf16.msra.mxu0 %v1928_v1 }
  0x93   : > { %1280 = vmatpush1.bf16.msra.mxu1 %v1931_v2  ;;  %1240 = vmatprep.subr.bf16.mxu0 %v1936_v3 }
  0x94   : > { %1281 = vmatprep.subr.bf16.mxu1 %v1939_v4 }
  0x96   : > { %1241 = vmatpush1.bf16.msra.mxu0 %v1934_v5 }
  0x97   : > { %1282 = vmatpush1.bf16.msra.mxu1 %v1937_v6 }
  0x99   : > { %1243 = vmatmul.mubr.bf16.vlgmr.msra.gmra.mrb[4].mxu0 %v2106_v7 }
  0x9a   : > { %1284 = vmatmul.mubr.bf16.vlgmr.msra.gmra.mrb[4].mxu1 %v2108_v8 }
 0x12c   : > { %v1162_v9 = vpop.f32.mrb[0].mxu0 }
 0x12d   : > { %v1203_v11 = vpop.f32.mrb[0].mxu1  ;;  %v1164_v13 = vpop.f32.mrb[1].mxu0 }
 0x12e   : > { %v1204_v12 = vadd.f32 %v1203_v11, %v1162_v9  ;;  %v1205_v15 = vpop.f32.mrb[1].mxu1  ;;  %v1166_v17 = vpop.f32.mrb[2].mxu0 }
 0x12f   : > { %v1206_v16 = vadd.f32 %v1205_v15, %v1164_v13  ;;  %v1207_v18 = vpop.f32.mrb[2].mxu1  ;;  %v1167_v7 = vpop.f32.mrb[3].mxu0 }
 0x130   : > { %v1292_v19 = vadd.f32 %v1204_v12, %v340_v10  ;;  %v1208_v20 = vpop.f32.mrb[3].mxu1 }
 0x131   : > { %v1293_v8 = vadd.f32 %v1206_v16, %v341_v14 }
 0x132   : > { %1296 = vst [vmem:[%s2249_s2] sm:$0xff] %v1292_v19 }
 0x133   : > { %1297 = vst [vmem:[%s2249_s2 + $0x8] sm:$0xff] %v1293_v8 }
 0x139   : > { %v1304_v35 = vld [vmem:[%s2249_s2] sm:$0xff] (!%p1709_p7) }
 0x13a   : > { %v1305_v36 = vld [vmem:[%s2249_s2 + $0x8] sm:$0xff] (!%p1709_p7)  ;;  %v1308_v38 = vrot.slane (!%p1709_p7), %v1304_v35, 4  ;;  %v1332_v42 = vmul.f32 (!%p1709_p7), %v1304_v35, %v1304_v35 }
 0x13b   : > { %v1314_v39 = vrot.slane (!%p1709_p7), %v1305_v36, 4  ;;  %v1333_v44 = vmul.f32 (!%p1709_p7), %v1305_v36, %v1305_v36 }
 0x13c   : > { %v1309_v47 = vadd.f32 (!%p1709_p7), %v1308_v38, %v1304_v35  ;;  %v1336_v50 = vrot.slane (!%p1709_p7), %v1332_v42, 4 }
 0x13d   : > { %v1315_v48 = vadd.f32 (!%p1709_p7), %v1314_v39, %v1305_v36  ;;  %v1342_v52 = vrot.slane (!%p1709_p7), %v1333_v44, 4 }
 0x13e   : > { %v1310_v55 = vrot.slane (!%p1709_p7), %v1309_v47, 2  ;;  %v1337_v58 = vadd.f32 (!%p1709_p7), %v1336_v50, %v1332_v42 }
 0x13f   : > { %v1316_v56 = vrot.slane (!%p1709_p7), %v1315_v48, 2  ;;  %v1343_v60 = vadd.f32 (!%p1709_p7), %v1342_v52, %v1333_v44 }
 0x140   : > { %v1311_v63 = vadd.f32 (!%p1709_p7), %v1310_v55, %v1309_v47  ;;  %v1338_v2 = vrot.slane (!%p1709_p7), %v1337_v58, 2 }
 0x141   : > { %v1317_v0 = vadd.f32 (!%p1709_p7), %v1316_v56, %v1315_v48  ;;  %v1344_v4 = vrot.slane (!%p1709_p7), %v1343_v60, 2 }
 0x142   : > { %v1312_v9 = vrot.slane (!%p1709_p7), %v1311_v63, 1  ;;  %v1339_v12 = vadd.f32 (!%p1709_p7), %v1338_v2, %v1337_v58 }
 0x143   : > { %v1318_v10 = vrot.slane (!%p1709_p7), %v1317_v0, 1  ;;  %v1345_v14 = vadd.f32 (!%p1709_p7), %v1344_v4, %v1343_v60 }
 0x144   : > { %v1313_v17 = vadd.f32 (!%p1709_p7), %v1312_v9, %v1311_v63  ;;  %v1340_v7 = vrot.slane (!%p1709_p7), %v1339_v12, 1 }
 0x145   : > { %v1319_v18 = vadd.f32 (!%p1709_p7), %v1318_v10, %v1317_v0  ;;  %v1346_v8 = vrot.slane (!%p1709_p7), %v1345_v14, 1 }
 0x146   : > { %1360 = vst [vmem:[%s2250_s3] sm:$0xff] (!%p1709_p7), %v1313_v17 }
 0x147   : > { %1361 = vst [vmem:[%s2250_s3 + $0x8] sm:$0xff] (!%p1709_p7), %v1319_v18 }
 0x16c   : > { %v1244_v21 = vpop.f32.mrb[4].mxu0 }
 0x16d   : > { %v1285_v23 = vpop.f32.mrb[4].mxu1  ;;  %v1246_v25 = vpop.f32.mrb[5].mxu0  ;;  %1303 = sbr.rel (%p1709_p7) target bundleno = 394 (0x18a), region = 36 }
 0x16e   : > { %v1286_v24 = vadd.f32 %v1285_v23, %v1244_v21  ;;  %v1287_v27 = vpop.f32.mrb[5].mxu1  ;;  %v1248_v29 = vpop.f32.mrb[6].mxu0  ;;  %v1341_v23 = vadd.f32 (!%p1709_p7), %v1340_v7, %v1339_v12 }
 0x16f   : > { %v1288_v28 = vadd.f32 %v1287_v27, %v1246_v25  ;;  %v1289_v30 = vpop.f32.mrb[6].mxu1  ;;  %v1249_v32 = vpop.f32.mrb[7].mxu0 }
 0x170   : > { %v1294_v31 = vadd.f32 %v1286_v24, %v342_v22  ;;  %v1290_v33 = vpop.f32.mrb[7].mxu1  ;;  %v1347_v24 = vadd.f32 (!%p1709_p7), %v1346_v8, %v1345_v14  ;;  %1364 = vst [vmem:[%s2251_s4] sm:$0xff] (!%p1709_p7), %v1341_v23 }
 0x171   : > { %v1295_v34 = vadd.f32 %v1288_v28, %v343_v26 }
 0x172   : > { %1298 = vst [vmem:[%s2249_s2 + $0x10] sm:$0xff] %v1294_v31  ;;  %1365 = vst [vmem:[%s2251_s4 + $0x8] sm:$0xff] (!%p1709_p7), %v1347_v24 }
 0x173   : > { %1299 = vst [vmem:[%s2249_s2 + $0x18] sm:$0xff] %v1295_v34 }
 0x179   : > { %v1306_v37 = vld [vmem:[%s2249_s2 + $0x10] sm:$0xff] }
 0x17a   : > { %v1320_v40 = vrot.slane %v1306_v37, 4  ;;  %v1307_v41 = vld [vmem:[%s2249_s2 + $0x18] sm:$0xff]  ;;  %v1334_v45 = vmul.f32 %v1306_v37, %v1306_v37 }
 0x17b   : > { %v1326_v43 = vrot.slane %v1307_v41, 4  ;;  %v1335_v46 = vmul.f32 %v1307_v41, %v1307_v41 }
 0x17c   : > { %v1321_v49 = vadd.f32 %v1320_v40, %v1306_v37  ;;  %v1348_v53 = vrot.slane %v1334_v45, 4 }
 0x17d   : > { %v1327_v51 = vadd.f32 %v1326_v43, %v1307_v41  ;;  %v1354_v54 = vrot.slane %v1335_v46, 4 }
 0x17e   : > { %v1322_v57 = vrot.slane %v1321_v49, 2  ;;  %v1349_v61 = vadd.f32 %v1348_v53, %v1334_v45 }
 0x17f   : > { %v1328_v59 = vrot.slane %v1327_v51, 2  ;;  %v1355_v62 = vadd.f32 %v1354_v54, %v1335_v46 }
 0x180   : > { %v1323_v1 = vadd.f32 %v1322_v57, %v1321_v49  ;;  %v1350_v5 = vrot.slane %v1349_v61, 2 }
 0x181   : > { %v1329_v3 = vadd.f32 %v1328_v59, %v1327_v51  ;;  %v1356_v6 = vrot.slane %v1355_v62, 2 }
 0x182   : > { %v1324_v11 = vrot.slane %v1323_v1, 1  ;;  %v1351_v15 = vadd.f32 %v1350_v5, %v1349_v61 }
 0x183   : > { %v1330_v13 = vrot.slane %v1329_v3, 1  ;;  %v1357_v16 = vadd.f32 %v1356_v6, %v1355_v62 }
 0x184   : > { %v1325_v19 = vadd.f32 %v1324_v11, %v1323_v1  ;;  %v1352_v21 = vrot.slane %v1351_v15, 1 }
 0x185   : > { %v1331_v20 = vadd.f32 %v1330_v13, %v1329_v3  ;;  %v1358_v22 = vrot.slane %v1357_v16, 1 }
 0x186   : > { %1362 = vst [vmem:[%s2250_s3 + $0x10] sm:$0xff] %v1325_v19  ;;  %v1353_v25 = vadd.f32 %v1352_v21, %v1351_v15 }
 0x187   : > { %1363 = vst [vmem:[%s2250_s3 + $0x18] sm:$0xff] %v1331_v20  ;;  %v1359_v26 = vadd.f32 %v1358_v22, %v1357_v16 }
 0x188   : > { %1366 = vst [vmem:[%s2251_s4 + $0x10] sm:$0xff] %v1353_v25 }
 0x189   : > { %1367 = vst [vmem:[%s2251_s4 + $0x18] sm:$0xff] %v1359_v26 }
 0x18a PF: > { %s15_s17 = sadd.s32 1, %s1962_s17   ;;  %s2252_s15 = smov %s1958_s16 }
 0x18b   : > { %p12_p8 = scmp.ge.s32.totalorder %s15_s17, 11   ;;  %s2253_s16 = smov %s2255_s18 }
 0x18d   :  { %14 = sbr.rel (!%p12_p8) target bundleno = 2 (0x2), region = 93 }

// kernel: resnet_tpb_forward.71
= control target key start
LH: loop header
LB: loop body
LE: loop exit
PB: predicated region body
PF: predicated region fallthrough
CT: control target
= control target key end

     0   :  { %s1714_s15 = smov 0   ;;  %s1716_s16 = smov 0   ;;  %s1937_s0 = inlined_call_operand.vmem [shape: bf16[8,2304], index: 0, kind: input, shape index: {}]   ;;  %s1938_s1 = inlined_call_operand.vmem [shape: bf16[2304,512], index: 1, kind: input, shape index: {}]   ;;  %s1939_s2 = inlined_call_operand.vmem [shape: f32[8,512], index: 2, kind: output, shape index: {0}]   ;;  %s1940_s3 = inlined_call_operand.vmem [shape: f32[8,512], index: 3, kind: output, shape index: {1}]   ;;  %s1941_s4 = inlined_call_operand.vmem [shape: f32[8,512], index: 4, kind: output, shape index: {2}]  }
   0x1   :  { %s1718_s17 = smov 0  }
   0x2 LB: > { %s27_s18 = sadd.s32 1, %s1681_s16  ;;  %p1376_p0 = scmp.ge.s32.totalorder %s1685_s17, 1  ;;  %s1685_s17 = sphi %s1718_s17, %s15_s17   ;;  %s1681_s16 = sphi %s1716_s16, %s1943_s16   ;;  %s1677_s15 = sphi %s1714_s15, %s1942_s15  }
   0x3   : > { %p28_p1 = scmp.ge.s32.totalorder %s27_s18, 6  ;;  %p218_p2 = scmp.lt.s32.totalorder %s1685_s17, 7 }
   0x5   : > { %s1945_s18 = smov (%p28_p1, %s27_s18), 0  ;;  %p219_p3 = pnand %p1376_p0, %p218_p2 }
   0x6   : > { %s280_s19 = smul.u32 (!%p219_p3), 3, %s1677_s15  ;;  %p1380_p6 = scmp.ne.s32.totalorder (!%p219_p3), %s1677_s15, 0 }
   0x7   : > { %222 = sbr.rel (%p219_p3) target bundleno = 362 (0x16a), region = 28 }
   0x8   : > { %s290_s20 = smul.u32 (!%p219_p3), 48, %s1677_s15  ;;  %p283_p4 = scmp.lt.s32.totalorder (!%p219_p3), %s280_s19, 17 }
   0xa   : > { %p292_p5 = scmp.lt.s32.totalorder (!%p219_p3), %s290_s20, 287 }
   0xe   : > { %s1947_s19 = smov (!%p283_p4, %s280_s19), 17  ;;  %s1949_s20 = smov (!%p292_p5, %s290_s20), 287 }
   0xf   : > { %s1377_s21 = sshll.u32 %s1947_s19, 2  ;;  %s1489_s25 = sshll.u32 %s1949_s20, 4  ;;  %v1687_v0 = vmov (!%p1380_p6), 0.0  }
  0x10   : > { %s1739_s24 = scalar_lea.vmem %s1937_s0, %s1377_s21  ;;  %s1744_s28 = scalar_lea.vmem %s1938_s1, %s1489_s25  ;;  %337 = vst [vmem:[%s1939_s2] sm:$0xff] (!%p1380_p6), %v1687_v0  ;;  %338 = vst [vmem:[%s1939_s2 + $0x8] sm:$0xff] (!%p1380_p6), %v1687_v0 }
  0x11   : > { %336 = sbr.rel (%p1380_p6) target bundleno = 24 (0x18), region = 32  ;;  %339 = vst [vmem:[%s1939_s2 + $0x10] sm:$0xff] (!%p1380_p6), %v1687_v0  ;;  %340 = vst [vmem:[%s1939_s2 + $0x18] sm:$0xff] (!%p1380_p6), %v1687_v0 }
  0x18 PF: > { %v1516_v1 = vld [vmem:[%s1744_s28 + $0x4] ss:$16 sps:$4 sm:$0xff]   ;;  %v1688_v3 = vmov 0   ;;  %v1520_v4 = vld [vmem:[%s1744_s28] ss:$16 sps:$4 sm:$0xff]   ;;  %p1480_p7 = scmp.ne.s32.totalorder %s1677_s15, 5 }
  0x19   : > { %v1518_v2 = vld [vmem:[%s1744_s28 + $0x204] ss:$16 sps:$4 sm:$0xff]   ;;  %1007 = vmatprep.mubr.bf16.mxu1 %v1688_v3  ;;  %934 = vmatprep.subr.bf16.mxu0 %v1516_v1  ;;  %v1521_v5 = vld [vmem:[%s1744_s28 + $0x200] ss:$16 sps:$4 sm:$0xff]   ;;  %v1569_v35 = vld [vmem:[%s1744_s28 + $0xc] ss:$16 sps:$4 sm:$0xff]  }
  0x1a   : > { %975 = vmatprep.subr.bf16.mxu1 %v1518_v2  ;;  %v1522_v6 = vld [vmem:[%s1744_s28 + $0x24] ss:$16 sps:$4 sm:$0xff]   ;;  %935 = vmatpush1.bf16.msra.mxu0 %v1520_v4  ;;  %v1526_v8 = vld [vmem:[%s1744_s28 + $0x20] ss:$16 sps:$4 sm:$0xff]   ;;  %v1795_v36 = vld [vmem:[%s1739_s24 + $0x8] ss:$0 sps:$4 sm:$0xff]  }
  0x1b   : > { %976 = vmatpush1.bf16.msra.mxu1 %v1521_v5  ;;  %v1524_v7 = vld [vmem:[%s1744_s28 + $0x224] ss:$16 sps:$4 sm:$0xff]   ;;  %936 = vmatprep.subr.bf16.mxu0 %v1522_v6  ;;  %v1527_v9 = vld [vmem:[%s1744_s28 + $0x220] ss:$16 sps:$4 sm:$0xff]   ;;  %v1567_v37 = vld [vmem:[%s1744_s28 + $0x8] ss:$16 sps:$4 sm:$0xff]  }
  0x1c   : > { %977 = vmatprep.subr.bf16.mxu1 %v1524_v7  ;;  %v1528_v10 = vld [vmem:[%s1744_s28 + $0x44] ss:$16 sps:$4 sm:$0xff]   ;;  %v1532_v12 = vld [vmem:[%s1744_s28 + $0x40] ss:$16 sps:$4 sm:$0xff]   ;;  %v1575_v40 = vld [vmem:[%s1744_s28 + $0x2c] ss:$16 sps:$4 sm:$0xff]  }
  0x1d   : > { %v1530_v11 = vld [vmem:[%s1744_s28 + $0x244] ss:$16 sps:$4 sm:$0xff]   ;;  %v1533_v13 = vld [vmem:[%s1744_s28 + $0x240] ss:$16 sps:$4 sm:$0xff]   ;;  %v1573_v41 = vld [vmem:[%s1744_s28 + $0x28] ss:$16 sps:$4 sm:$0xff]  }
  0x1e   : > { %937 = vmatpush1.bf16.msra.mxu0 %v1526_v8  ;;  %v1534_v14 = vld [vmem:[%s1744_s28 + $0x64] ss:$16 sps:$4 sm:$0xff]   ;;  %v1538_v16 = vld [vmem:[%s1744_s28 + $0x60] ss:$16 sps:$4 sm:$0xff]   ;;  %v1581_v44 = vld [vmem:[%s1744_s28 + $0x4c] ss:$16 sps:$4 sm:$0xff]  }
  0x1f   : > { %978 = vmatpush1.bf16.msra.mxu1 %v1527_v9  ;;  %938 = vmatprep.subr.bf16.mxu0 %v1528_v10  ;;  %v1536_v15 = vld [vmem:[%s1744_s28 + $0x264] ss:$16 sps:$4 sm:$0xff]   ;;  %v1539_v17 = vld [vmem:[%s1744_s28 + $0x260] ss:$16 sps:$4 sm:$0xff]   ;;  %v1579_v45 = vld [vmem:[%s1744_s28 + $0x48] ss:$16 sps:$4 sm:$0xff]  }
  0x20   : > { %979 = vmatprep.subr.bf16.mxu1 %v1530_v11  ;;  %v1540_v18 = vld [vmem:[%s1744_s28 + $0x84] ss:$16 sps:$4 sm:$0xff]   ;;  %v1544_v20 = vld [vmem:[%s1744_s28 + $0x80] ss:$16 sps:$4 sm:$0xff]   ;;  %v1587_v48 = vld [vmem:[%s1744_s28 + $0x6c] ss:$16 sps:$4 sm:$0xff]  }
  0x21   : > { %v1542_v19 = vld [vmem:[%s1744_s28 + $0x284] ss:$16 sps:$4 sm:$0xff]   ;;  %v1545_v21 = vld [vmem:[%s1744_s28 + $0x280] ss:$16 sps:$4 sm:$0xff]   ;;  %v1585_v49 = vld [vmem:[%s1744_s28 + $0x68] ss:$16 sps:$4 sm:$0xff]  }
  0x22   : > { %939 = vmatpush1.bf16.msra.mxu0 %v1532_v12  ;;  %v1546_v22 = vld [vmem:[%s1744_s28 + $0xa4] ss:$16 sps:$4 sm:$0xff]   ;;  %v1550_v24 = vld [vmem:[%s1744_s28 + $0xa0] ss:$16 sps:$4 sm:$0xff]   ;;  %v1593_v54 = vld [vmem:[%s1744_s28 + $0x8c] ss:$16 sps:$4 sm:$0xff]  }
  0x23   : > { %980 = vmatpush1.bf16.msra.mxu1 %v1533_v13  ;;  %940 = vmatprep.subr.bf16.mxu0 %v1534_v14  ;;  %v1548_v23 = vld [vmem:[%s1744_s28 + $0x2a4] ss:$16 sps:$4 sm:$0xff]   ;;  %v1551_v25 = vld [vmem:[%s1744_s28 + $0x2a0] ss:$16 sps:$4 sm:$0xff]   ;;  %v1591_v55 = vld [vmem:[%s1744_s28 + $0x88] ss:$16 sps:$4 sm:$0xff]  }
  0x24   : > { %981 = vmatprep.subr.bf16.mxu1 %v1536_v15  ;;  %v1552_v26 = vld [vmem:[%s1744_s28 + $0xc4] ss:$16 sps:$4 sm:$0xff]   ;;  %v1556_v28 = vld [vmem:[%s1744_s28 + $0xc0] ss:$16 sps:$4 sm:$0xff]   ;;  %v1599_v58 = vld [vmem:[%s1744_s28 + $0xac] ss:$16 sps:$4 sm:$0xff]  }
  0x25   : > { %v1554_v27 = vld [vmem:[%s1744_s28 + $0x2c4] ss:$16 sps:$4 sm:$0xff]   ;;  %v1557_v29 = vld [vmem:[%s1744_s28 + $0x2c0] ss:$16 sps:$4 sm:$0xff]   ;;  %v1597_v59 = vld [vmem:[%s1744_s28 + $0xa8] ss:$16 sps:$4 sm:$0xff]  }
  0x26   : > { %941 = vmatpush1.bf16.msra.mxu0 %v1538_v16  ;;  %v1558_v30 = vld [vmem:[%s1744_s28 + $0xe4] ss:$16 sps:$4 sm:$0xff]   ;;  %v1562_v32 = vld [vmem:[%s1744_s28 + $0xe0] ss:$16 sps:$4 sm:$0xff]   ;;  %v1605_v62 = vld [vmem:[%s1744_s28 + $0xcc] ss:$16 sps:$4 sm:$0xff]  }
  0x27   : > { %982 = vmatpush1.bf16.msra.mxu1 %v1539_v17  ;;  %942 = vmatprep.subr.bf16.mxu0 %v1540_v18  ;;  %v1560_v31 = vld [vmem:[%s1744_s28 + $0x2e4] ss:$16 sps:$4 sm:$0xff]   ;;  %v1563_v33 = vld [vmem:[%s1744_s28 + $0x2e0] ss:$16 sps:$4 sm:$0xff]   ;;  %v1603_v63 = vld [vmem:[%s1744_s28 + $0xc8] ss:$16 sps:$4 sm:$0xff]  }
  0x28   : > { %983 = vmatprep.subr.bf16.mxu1 %v1542_v19  ;;  %v1564_v34 = vld [vmem:[%s1744_s28 + $0x104] ss:$16 sps:$4 sm:$0xff]   ;;  %v1570_v38 = vld [vmem:[%s1744_s28 + $0x100] ss:$16 sps:$4 sm:$0xff]   ;;  %v1611_v2 = vld [vmem:[%s1744_s28 + $0xec] ss:$16 sps:$4 sm:$0xff]  }
  0x29   : > { %v1571_v39 = vld [vmem:[%s1744_s28 + $0x124] ss:$16 sps:$4 sm:$0xff]   ;;  %v1576_v42 = vld [vmem:[%s1744_s28 + $0x120] ss:$16 sps:$4 sm:$0xff]   ;;  %v1609_v4 = vld [vmem:[%s1744_s28 + $0xe8] ss:$16 sps:$4 sm:$0xff]  }
  0x2a   : > { %943 = vmatpush1.bf16.msra.mxu0 %v1544_v20  ;;  %v1577_v43 = vld [vmem:[%s1744_s28 + $0x144] ss:$16 sps:$4 sm:$0xff]   ;;  %v1582_v46 = vld [vmem:[%s1744_s28 + $0x140] ss:$16 sps:$4 sm:$0xff]   ;;  %v1617_v6 = vld [vmem:[%s1744_s28 + $0x10c] ss:$16 sps:$4 sm:$0xff]  }
  0x2b   : > { %984 = vmatpush1.bf16.msra.mxu1 %v1545_v21  ;;  %944 = vmatprep.subr.bf16.mxu0 %v1546_v22  ;;  %v1583_v47 = vld [vmem:[%s1744_s28 + $0x164] ss:$16 sps:$4 sm:$0xff]   ;;  %v1588_v51 = vld [vmem:[%s1744_s28 + $0x160] ss:$16 sps:$4 sm:$0xff]   ;;  %v1620_v7 = vld [vmem:[%s1744_s28 + $0x20c] ss:$16 sps:$4 sm:$0xff]  }
  0x2c   : > { %985 = vmatprep.subr.bf16.mxu1 %v1548_v23  ;;  %v345_v50 = vld [vmem:[%s1739_s24] sm:$0xff]  ;;  %v1615_v9 = vld [vmem:[%s1744_s28 + $0x108] ss:$16 sps:$4 sm:$0xff]   ;;  %v1623_v11 = vld [vmem:[%s1744_s28 + $0x12c] ss:$16 sps:$4 sm:$0xff]  }
  0x2d   : > { %v1589_v52 = vld [vmem:[%s1744_s28 + $0x184] ss:$16 sps:$4 sm:$0xff]   ;;  %v1382_v53 = vcombine.high %v345_v50, %v345_v50  ;;  %v1594_v56 = vld [vmem:[%s1744_s28 + $0x180] ss:$16 sps:$4 sm:$0xff]   ;;  %v1831_v8 = vcombine.low %v345_v50, %v345_v50  ;;  %v1618_v10 = vld [vmem:[%s1744_s28 + $0x208] ss:$16 sps:$4 sm:$0xff]  }
  0x2e   : > { %945 = vmatpush1.bf16.msra.mxu0 %v1550_v24  ;;  %v1595_v57 = vld [vmem:[%s1744_s28 + $0x1a4] ss:$16 sps:$4 sm:$0xff]   ;;  %v1600_v60 = vld [vmem:[%s1744_s28 + $0x1a0] ss:$16 sps:$4 sm:$0xff]   ;;  %v1626_v12 = vld [vmem:[%s1744_s28 + $0x22c] ss:$16 sps:$4 sm:$0xff]  }
  0x2f   : > { %986 = vmatpush1.bf16.msra.mxu1 %v1551_v25  ;;  %946 = vmatprep.subr.bf16.mxu0 %v1552_v26  ;;  %v1601_v61 = vld [vmem:[%s1744_s28 + $0x1c4] ss:$16 sps:$4 sm:$0xff]   ;;  %v1606_v0 = vld [vmem:[%s1744_s28 + $0x1c0] ss:$16 sps:$4 sm:$0xff]   ;;  %v1621_v13 = vld [vmem:[%s1744_s28 + $0x128] ss:$16 sps:$4 sm:$0xff]  }
  0x30   : > { %987 = vmatprep.subr.bf16.mxu1 %v1554_v27  ;;  %966 = vmatprep.mubr.bf16.mxu0 %v1382_v53  ;;  %v1607_v1 = vld [vmem:[%s1744_s28 + $0x1e4] ss:$16 sps:$4 sm:$0xff]   ;;  %v1612_v5 = vld [vmem:[%s1744_s28 + $0x1e0] ss:$16 sps:$4 sm:$0xff]   ;;  %v1624_v14 = vld [vmem:[%s1744_s28 + $0x228] ss:$16 sps:$4 sm:$0xff]  }
  0x31   : > { %v1629_v15 = vld [vmem:[%s1744_s28 + $0x14c] ss:$16 sps:$4 sm:$0xff]   ;;  %v1627_v17 = vld [vmem:[%s1744_s28 + $0x148] ss:$16 sps:$4 sm:$0xff]  }
  0x32   : > { %947 = vmatpush1.bf16.msra.mxu0 %v1556_v28  ;;  %v1632_v16 = vld [vmem:[%s1744_s28 + $0x24c] ss:$16 sps:$4 sm:$0xff]   ;;  %v1630_v18 = vld [vmem:[%s1744_s28 + $0x248] ss:$16 sps:$4 sm:$0xff]  }
  0x33   : > { %988 = vmatpush1.bf16.msra.mxu1 %v1557_v29  ;;  %948 = vmatprep.subr.bf16.mxu0 %v1558_v30  ;;  %v1635_v19 = vld [vmem:[%s1744_s28 + $0x16c] ss:$16 sps:$4 sm:$0xff]   ;;  %v1633_v21 = vld [vmem:[%s1744_s28 + $0x168] ss:$16 sps:$4 sm:$0xff]  }
  0x34   : > { %989 = vmatprep.subr.bf16.mxu1 %v1560_v31  ;;  %v1638_v20 = vld [vmem:[%s1744_s28 + $0x26c] ss:$16 sps:$4 sm:$0xff]   ;;  %v1636_v22 = vld [vmem:[%s1744_s28 + $0x268] ss:$16 sps:$4 sm:$0xff]  }
  0x35   : > { %v1644_v23 = vld [vmem:[%s1744_s28 + $0x28c] ss:$16 sps:$4 sm:$0xff]   ;;  %v1639_v24 = vld [vmem:[%s1744_s28 + $0x188] ss:$16 sps:$4 sm:$0xff]  }
  0x36   : > { %949 = vmatpush1.bf16.msra.mxu0 %v1562_v32  ;;  %v1642_v25 = vld [vmem:[%s1744_s28 + $0x288] ss:$16 sps:$4 sm:$0xff]   ;;  %v1647_v26 = vld [vmem:[%s1744_s28 + $0x1ac] ss:$16 sps:$4 sm:$0xff]  }
  0x37   : > { %990 = vmatpush1.bf16.msra.mxu1 %v1563_v33  ;;  %950 = vmatprep.subr.bf16.mxu0 %v1564_v34  ;;  %v1650_v27 = vld [vmem:[%s1744_s28 + $0x2ac] ss:$16 sps:$4 sm:$0xff]   ;;  %v1645_v28 = vld [vmem:[%s1744_s28 + $0x1a8] ss:$16 sps:$4 sm:$0xff]  }
  0x38   : > { %1016 = vmatprep.subr.bf16.mxu1 %v1569_v35  ;;  %v1648_v29 = vld [vmem:[%s1744_s28 + $0x2a8] ss:$16 sps:$4 sm:$0xff]   ;;  %v1653_v30 = vld [vmem:[%s1744_s28 + $0x1cc] ss:$16 sps:$4 sm:$0xff]  }
  0x39   : > { %v1656_v31 = vld [vmem:[%s1744_s28 + $0x2cc] ss:$16 sps:$4 sm:$0xff]   ;;  %v1651_v32 = vld [vmem:[%s1744_s28 + $0x1c8] ss:$16 sps:$4 sm:$0xff]  }
  0x3a   : > { %1008 = vmatmul.mubr.bf16.vlgmr.msra.gmra.mrb[0].mxu1 %v1795_v36  ;;  %951 = vmatpush1.bf16.msra.mxu0 %v1570_v38  ;;  %v1654_v33 = vld [vmem:[%s1744_s28 + $0x2c8] ss:$16 sps:$4 sm:$0xff]   ;;  %v1659_v34 = vld [vmem:[%s1744_s28 + $0x1ec] ss:$16 sps:$4 sm:$0xff]  }
  0x3b   : > { %1017 = vmatpush1.bf16.msra.mxu1 %v1567_v37  ;;  %952 = vmatprep.subr.bf16.mxu0 %v1571_v39  ;;  %v1662_v35 = vld [vmem:[%s1744_s28 + $0x2ec] ss:$16 sps:$4 sm:$0xff]   ;;  %v1657_v37 = vld [vmem:[%s1744_s28 + $0x1e8] ss:$16 sps:$4 sm:$0xff]  }
  0x3c   : > { %1018 = vmatprep.subr.bf16.mxu1 %v1575_v40  ;;  %1048 = vmatprep.mubr.bf16.mxu1 %v1382_v53  ;;  %v1660_v38 = vld [vmem:[%s1744_s28 + $0x2e8] ss:$16 sps:$4 sm:$0xff]   ;;  %v343_v53 = vld [vmem:[%s1939_s2 + $0x10] sm:$0xff] }
  0x3e   : > { %953 = vmatpush1.bf16.msra.mxu0 %v1576_v42 }
  0x3f   : > { %1019 = vmatpush1.bf16.msra.mxu1 %v1573_v41  ;;  %954 = vmatprep.subr.bf16.mxu0 %v1577_v43  ;;  %v341_v43 = vld [vmem:[%s1939_s2] sm:$0xff] }
  0x40   : > { %1020 = vmatprep.subr.bf16.mxu1 %v1581_v44 }
  0x42   : > { %955 = vmatpush1.bf16.msra.mxu0 %v1582_v46  ;;  %v342_v46 = vld [vmem:[%s1939_s2 + $0x8] sm:$0xff] }
  0x43   : > { %1021 = vmatpush1.bf16.msra.mxu1 %v1579_v45  ;;  %956 = vmatprep.subr.bf16.mxu0 %v1583_v47 }
  0x44   : > { %1022 = vmatprep.subr.bf16.mxu1 %v1587_v48 }
  0x46   : > { %957 = vmatpush1.bf16.msra.mxu0 %v1588_v51 }
  0x47   : > { %1023 = vmatpush1.bf16.msra.mxu1 %v1585_v49  ;;  %958 = vmatprep.subr.bf16.mxu0 %v1589_v52 }
  0x48   : > { %1024 = vmatprep.subr.bf16.mxu1 %v1593_v54 }
  0x4a   : > { %959 = vmatpush1.bf16.msra.mxu0 %v1594_v56 }
  0x4b   : > { %1025 = vmatpush1.bf16.msra.mxu1 %v1591_v55  ;;  %960 = vmatprep.subr.bf16.mxu0 %v1595_v57  ;;  %v344_v57 = vld [vmem:[%s1939_s2 + $0x18] sm:$0xff] }
  0x4c   : > { %1026 = vmatprep.subr.bf16.mxu1 %v1599_v58 }
  0x4e   : > { %961 = vmatpush1.bf16.msra.mxu0 %v1600_v60 }
  0x4f   : > { %1027 = vmatpush1.bf16.msra.mxu1 %v1597_v59  ;;  %962 = vmatprep.subr.bf16.mxu0 %v1601_v61 }
  0x50   : > { %1028 = vmatprep.subr.bf16.mxu1 %v1605_v62 }
  0x52   : > { %963 = vmatpush1.bf16.msra.mxu0 %v1606_v0 }
  0x53   : > { %1029 = vmatpush1.bf16.msra.mxu1 %v1603_v63  ;;  %964 = vmatprep.subr.bf16.mxu0 %v1607_v1 }
  0x54   : > { %1030 = vmatprep.subr.bf16.mxu1 %v1611_v2 }
  0x56   : > { %965 = vmatpush1.bf16.msra.mxu0 %v1612_v5 }
  0x57   : > { %1031 = vmatpush1.bf16.msra.mxu1 %v1609_v4  ;;  %1057 = vmatprep.subr.bf16.mxu0 %v1620_v7 }
  0x58   : > { %1032 = vmatprep.subr.bf16.mxu1 %v1617_v6 }
  0x59   : > { %967 = vmatmul.mubr.bf16.vlgmr.msra.gmra.mrb[0].mxu0 %v1831_v8 }
  0x5a   : > { %1058 = vmatpush1.bf16.msra.mxu0 %v1618_v10  ;;  %1089 = vmatprep.mubr.bf16.mxu0 %v1688_v3  ;;  %v1641_v3 = vld [vmem:[%s1744_s28 + $0x18c] ss:$16 sps:$4 sm:$0xff]  }
  0x5b   : > { %1033 = vmatpush1.bf16.msra.mxu1 %v1615_v9  ;;  %1059 = vmatprep.subr.bf16.mxu0 %v1626_v12 }
  0x5c   : > { %1034 = vmatprep.subr.bf16.mxu1 %v1623_v11 }
  0x5e   : > { %1060 = vmatpush1.bf16.msra.mxu0 %v1624_v14 }
  0x5f   : > { %1035 = vmatpush1.bf16.msra.mxu1 %v1621_v13  ;;  %1061 = vmatprep.subr.bf16.mxu0 %v1632_v16 }
  0x60   : > { %1036 = vmatprep.subr.bf16.mxu1 %v1629_v15 }
  0x62   : > { %1062 = vmatpush1.bf16.msra.mxu0 %v1630_v18 }
  0x63   : > { %1037 = vmatpush1.bf16.msra.mxu1 %v1627_v17  ;;  %1063 = vmatprep.subr.bf16.mxu0 %v1638_v20 }
  0x64   : > { %1038 = vmatprep.subr.bf16.mxu1 %v1635_v19 }
  0x66   : > { %1064 = vmatpush1.bf16.msra.mxu0 %v1636_v22 }
  0x67   : > { %1039 = vmatpush1.bf16.msra.mxu1 %v1633_v21  ;;  %1065 = vmatprep.subr.bf16.mxu0 %v1644_v23 }
  0x68   : > { %1040 = vmatprep.subr.bf16.mxu1 %v1641_v3 }
  0x6a   : > { %1066 = vmatpush1.bf16.msra.mxu0 %v1642_v25 }
  0x6b   : > { %1041 = vmatpush1.bf16.msra.mxu1 %v1639_v24  ;;  %1067 = vmatprep.subr.bf16.mxu0 %v1650_v27 }
  0x6c   : > { %1042 = vmatprep.subr.bf16.mxu1 %v1647_v26 }
  0x6e   : > { %1068 = vmatpush1.bf16.msra.mxu0 %v1648_v29 }
  0x6f   : > { %1043 = vmatpush1.bf16.msra.mxu1 %v1645_v28  ;;  %1069 = vmatprep.subr.bf16.mxu0 %v1656_v31 }
  0x70   : > { %1044 = vmatprep.subr.bf16.mxu1 %v1653_v30 }
  0x72   : > { %1070 = vmatpush1.bf16.msra.mxu0 %v1654_v33 }
  0x73   : > { %1045 = vmatpush1.bf16.msra.mxu1 %v1651_v32  ;;  %1071 = vmatprep.subr.bf16.mxu0 %v1662_v35 }
  0x74   : > { %1046 = vmatprep.subr.bf16.mxu1 %v1659_v34 }
  0x76   : > { %1072 = vmatpush1.bf16.msra.mxu0 %v1660_v38 }
  0x77   : > { %1047 = vmatpush1.bf16.msra.mxu1 %v1657_v37 }
  0x79   : > { %1090 = vmatmul.mubr.bf16.vlgmr.msra.gmra.mrb[4].mxu0 %v1795_v36 }
  0x7a   : > { %1049 = vmatmul.mubr.bf16.vlgmr.msra.gmra.mrb[4].mxu1 %v1831_v8 }
 0x10d   : > { %v1009_v39 = vpop.f32.mrb[0].mxu1 }
 0x10e   : > { %v1011_v40 = vpop.f32.mrb[1].mxu1 }
 0x10f   : > { %v1013_v41 = vpop.f32.mrb[2].mxu1 }
 0x110   : > { %v1014_v42 = vpop.f32.mrb[3].mxu1 }
 0x12c   : > { %v968_v44 = vpop.f32.mrb[0].mxu0 }
 0x12d   : > { %v1010_v45 = vadd.f32 %v1009_v39, %v968_v44  ;;  %v970_v47 = vpop.f32.mrb[1].mxu0 }
 0x12e   : > { %v1012_v48 = vadd.f32 %v1011_v40, %v970_v47  ;;  %v972_v49 = vpop.f32.mrb[2].mxu0 }
 0x12f   : > { %v1098_v50 = vadd.f32 %v1010_v45, %v341_v43  ;;  %v973_v51 = vpop.f32.mrb[3].mxu0 }
 0x130   : > { %v1099_v36 = vadd.f32 %v1012_v48, %v342_v46 }
 0x131   : > { %1102 = vst [vmem:[%s1939_s2] sm:$0xff] %v1098_v50 }
 0x132   : > { %1103 = vst [vmem:[%s1939_s2 + $0x8] sm:$0xff] %v1099_v36 }
 0x138   : > { %v1110_v2 = vld [vmem:[%s1939_s2] sm:$0xff] (!%p1480_p7) }
 0x139   : > { %v1111_v4 = vld [vmem:[%s1939_s2 + $0x8] sm:$0xff] (!%p1480_p7)  ;;  %v1114_v6 = vrot.slane (!%p1480_p7), %v1110_v2, 4  ;;  %v1138_v10 = vmul.f32 (!%p1480_p7), %v1110_v2, %v1110_v2 }
 0x13a   : > { %v1120_v7 = vrot.slane (!%p1480_p7), %v1111_v4, 4  ;;  %v1139_v12 = vmul.f32 (!%p1480_p7), %v1111_v4, %v1111_v4 }
 0x13b   : > { %v1115_v15 = vadd.f32 (!%p1480_p7), %v1114_v6, %v1110_v2  ;;  %v1142_v18 = vrot.slane (!%p1480_p7), %v1138_v10, 4 }
 0x13c   : > { %v1121_v16 = vadd.f32 (!%p1480_p7), %v1120_v7, %v1111_v4  ;;  %v1148_v20 = vrot.slane (!%p1480_p7), %v1139_v12, 4 }
 0x13d   : > { %v1116_v3 = vrot.slane (!%p1480_p7), %v1115_v15, 2  ;;  %v1143_v25 = vadd.f32 (!%p1480_p7), %v1142_v18, %v1138_v10 }
 0x13e   : > { %v1122_v23 = vrot.slane (!%p1480_p7), %v1121_v16, 2  ;;  %v1149_v27 = vadd.f32 (!%p1480_p7), %v1148_v20, %v1139_v12 }
 0x13f   : > { %v1117_v30 = vadd.f32 (!%p1480_p7), %v1116_v3, %v1115_v15  ;;  %v1144_v33 = vrot.slane (!%p1480_p7), %v1143_v25, 2 }
 0x140   : > { %v1123_v31 = vadd.f32 (!%p1480_p7), %v1122_v23, %v1121_v16  ;;  %v1150_v35 = vrot.slane (!%p1480_p7), %v1149_v27, 2 }
 0x141   : > { %v1118_v39 = vrot.slane (!%p1480_p7), %v1117_v30, 1  ;;  %v1145_v42 = vadd.f32 (!%p1480_p7), %v1144_v33, %v1143_v25 }
 0x142   : > { %v1124_v40 = vrot.slane (!%p1480_p7), %v1123_v31, 1  ;;  %v1151_v44 = vadd.f32 (!%p1480_p7), %v1150_v35, %v1149_v27 }
 0x143   : > { %v1119_v47 = vadd.f32 (!%p1480_p7), %v1118_v39, %v1117_v30  ;;  %v1146_v50 = vrot.slane (!%p1480_p7), %v1145_v42, 1 }
 0x144   : > { %v1125_v48 = vadd.f32 (!%p1480_p7), %v1124_v40, %v1123_v31  ;;  %v1152_v36 = vrot.slane (!%p1480_p7), %v1151_v44, 1 }
 0x145   : > { %1166 = vst [vmem:[%s1940_s3] sm:$0xff] (!%p1480_p7), %v1119_v47 }
 0x146   : > { %1167 = vst [vmem:[%s1940_s3 + $0x8] sm:$0xff] (!%p1480_p7), %v1125_v48 }
 0x14c   : > { %v1091_v54 = vpop.f32.mrb[4].mxu0 }
 0x14d   : > { %v1050_v52 = vpop.f32.mrb[4].mxu1  ;;  %v1093_v58 = vpop.f32.mrb[5].mxu0  ;;  %1109 = sbr.rel (%p1480_p7) target bundleno = 362 (0x16a), region = 36 }
 0x14e   : > { %v1092_v55 = vadd.f32 %v1091_v54, %v1050_v52  ;;  %v1052_v56 = vpop.f32.mrb[5].mxu1  ;;  %v1095_v61 = vpop.f32.mrb[6].mxu0  ;;  %v1147_v54 = vadd.f32 (!%p1480_p7), %v1146_v50, %v1145_v42 }
 0x14f   : > { %v1094_v59 = vadd.f32 %v1093_v58, %v1052_v56  ;;  %v1054_v60 = vpop.f32.mrb[6].mxu1  ;;  %v1096_v0 = vpop.f32.mrb[7].mxu0 }
 0x150   : > { %v1100_v62 = vadd.f32 %v1092_v55, %v343_v53  ;;  %v1055_v63 = vpop.f32.mrb[7].mxu1  ;;  %v1153_v55 = vadd.f32 (!%p1480_p7), %v1152_v36, %v1151_v44  ;;  %1170 = vst [vmem:[%s1941_s4] sm:$0xff] (!%p1480_p7), %v1147_v54 }
 0x151   : > { %v1101_v1 = vadd.f32 %v1094_v59, %v344_v57 }
 0x152   : > { %1104 = vst [vmem:[%s1939_s2 + $0x10] sm:$0xff] %v1100_v62  ;;  %1171 = vst [vmem:[%s1941_s4 + $0x8] sm:$0xff] (!%p1480_p7), %v1153_v55 }
 0x153   : > { %1105 = vst [vmem:[%s1939_s2 + $0x18] sm:$0xff] %v1101_v1 }
 0x159   : > { %v1112_v5 = vld [vmem:[%s1939_s2 + $0x10] sm:$0xff] }
 0x15a   : > { %v1126_v8 = vrot.slane %v1112_v5, 4  ;;  %v1113_v9 = vld [vmem:[%s1939_s2 + $0x18] sm:$0xff]  ;;  %v1140_v13 = vmul.f32 %v1112_v5, %v1112_v5 }
 0x15b   : > { %v1132_v11 = vrot.slane %v1113_v9, 4  ;;  %v1141_v14 = vmul.f32 %v1113_v9, %v1113_v9 }
 0x15c   : > { %v1127_v17 = vadd.f32 %v1126_v8, %v1112_v5  ;;  %v1154_v21 = vrot.slane %v1140_v13, 4 }
 0x15d   : > { %v1133_v19 = vadd.f32 %v1132_v11, %v1113_v9  ;;  %v1160_v22 = vrot.slane %v1141_v14, 4 }
 0x15e   : > { %v1128_v24 = vrot.slane %v1127_v17, 2  ;;  %v1155_v28 = vadd.f32 %v1154_v21, %v1140_v13 }
 0x15f   : > { %v1134_v26 = vrot.slane %v1133_v19, 2  ;;  %v1161_v29 = vadd.f32 %v1160_v22, %v1141_v14 }
 0x160   : > { %v1129_v32 = vadd.f32 %v1128_v24, %v1127_v17  ;;  %v1156_v37 = vrot.slane %v1155_v28, 2 }
 0x161   : > { %v1135_v34 = vadd.f32 %v1134_v26, %v1133_v19  ;;  %v1162_v38 = vrot.slane %v1161_v29, 2 }
 0x162   : > { %v1130_v41 = vrot.slane %v1129_v32, 1  ;;  %v1157_v45 = vadd.f32 %v1156_v37, %v1155_v28 }
 0x163   : > { %v1136_v43 = vrot.slane %v1135_v34, 1  ;;  %v1163_v46 = vadd.f32 %v1162_v38, %v1161_v29 }
 0x164   : > { %v1131_v49 = vadd.f32 %v1130_v41, %v1129_v32  ;;  %v1158_v52 = vrot.slane %v1157_v45, 1 }
 0x165   : > { %v1137_v51 = vadd.f32 %v1136_v43, %v1135_v34  ;;  %v1164_v53 = vrot.slane %v1163_v46, 1 }
 0x166   : > { %1168 = vst [vmem:[%s1940_s3 + $0x10] sm:$0xff] %v1131_v49  ;;  %v1159_v56 = vadd.f32 %v1158_v52, %v1157_v45 }
 0x167   : > { %1169 = vst [vmem:[%s1940_s3 + $0x18] sm:$0xff] %v1137_v51  ;;  %v1165_v57 = vadd.f32 %v1164_v53, %v1163_v46 }
 0x168   : > { %1172 = vst [vmem:[%s1941_s4 + $0x10] sm:$0xff] %v1159_v56 }
 0x169   : > { %1173 = vst [vmem:[%s1941_s4 + $0x18] sm:$0xff] %v1165_v57 }
 0x16a PF: > { %s15_s17 = sadd.s32 1, %s1685_s17   ;;  %s1942_s15 = smov %s1681_s16 }
 0x16b   : > { %p12_p8 = scmp.ge.s32.totalorder %s15_s17, 8   ;;  %s1943_s16 = smov %s1945_s18 }
 0x16d   :  { %14 = sbr.rel (!%p12_p8) target bundleno = 2 (0x2), region = 93 }

// kernel: resnet_tpb_forward.76
= control target key start
LH: loop header
LB: loop body
LE: loop exit
PB: predicated region body
PF: predicated region fallthrough
CT: control target
= control target key end

     0   :  { %v23_v0 = vlaneseq  ;;  %s160_s1 = inlined_call_operand.vmem [shape: f32[1,512], index: 1, kind: input, shape index: {}]   ;;  %s161_s2 = inlined_call_operand.vmem [shape: f32[1,512], index: 2, kind: input, shape index: {}]   ;;  %s162_s0 = inlined_call_operand.vmem [shape: f32[8,512], index: 0, kind: input, shape index: {}]   ;;  %s163_s3 = inlined_call_operand.vmem [shape: f32[8,512], index: 3, kind: input, shape index: {}]   ;;  %s164_s4 = inlined_call_operand.vmem [shape: f32[8,512], index: 4, kind: output, shape index: {}]  }
   0x1   :  { %v21_v2 = vld [vmem:[%s160_s1] sm:$0xf]  ;;  %v18_v9 = vld [vmem:[%s162_s0 + $0x8] sm:$0xff]  ;;  %v19_v14 = vld [vmem:[%s162_s0 + $0x10] sm:$0xff] }
   0x2   :  { %v24_v1 = vshrl.u32 %v23_v0, 7  ;;  %v47_v3 = vld [vmem:[%s161_s2] sm:$0xf]  ;;  %v20_v15 = vld [vmem:[%s162_s0 + $0x18] sm:$0xff]  ;;  %v74_v23 = vld [vmem:[%s163_s3 + $0x8] sm:$0xff] }
   0x3   :  { %v17_v8 = vld [vmem:[%s162_s0] sm:$0xff]  ;;  %v75_v28 = vld [vmem:[%s163_s3 + $0x10] sm:$0xff]  ;;  %v76_v29 = vld [vmem:[%s163_s3 + $0x18] sm:$0xff] }
   0x4   :  { %v25_v4 = vsub.s32 0, %v24_v1  ;;  %v29_v5 = vsub.s32 1, %v24_v1  ;;  %v33_v6 = vsub.s32 2, %v24_v1  ;;  %v37_v7 = vsub.s32 3, %v24_v1  ;;  %v73_v22 = vld [vmem:[%s163_s3] sm:$0xff] }
   0x6   :  { %v26_v10 = vrot.slane %v21_v2, %v25_v4  ;;  %v52_v11 = vrot.slane %v47_v3, %v25_v4  ;;  %v30_v12 = vrot.slane %v21_v2, %v29_v5  ;;  %v56_v13 = vrot.slane %v47_v3, %v29_v5 }
   0x7   :  { %v34_v16 = vrot.slane %v21_v2, %v33_v6  ;;  %v60_v17 = vrot.slane %v47_v3, %v33_v6  ;;  %v38_v18 = vrot.slane %v21_v2, %v37_v7  ;;  %v64_v19 = vrot.slane %v47_v3, %v37_v7 }
   0x8   :  { %v43_v20 = vmul.f32 %v26_v10, %v17_v8  ;;  %v44_v21 = vmul.f32 %v30_v12, %v18_v9 }
   0x9   :  { %v45_v24 = vmul.f32 %v34_v16, %v19_v14  ;;  %v46_v25 = vmul.f32 %v38_v18, %v20_v15 }
   0xa   :  { %v69_v26 = vadd.f32 %v52_v11, %v43_v20  ;;  %v70_v27 = vadd.f32 %v56_v13, %v44_v21 }
   0xb   :  { %v71_v30 = vadd.f32 %v60_v17, %v45_v24  ;;  %v72_v31 = vadd.f32 %v64_v19, %v46_v25 }
   0xc   :  { %v77_v32 = vadd.f32 %v73_v22, %v69_v26  ;;  %v78_v33 = vadd.f32 %v74_v23, %v70_v27 }
   0xd   :  { %v79_v34 = vadd.f32 %v75_v28, %v71_v30  ;;  %v80_v35 = vadd.f32 %v76_v29, %v72_v31 }
   0xe   :  { %v81_v36 = vmax.f32 %v77_v32, 0.0  ;;  %v82_v37 = vmax.f32 %v78_v33, 0.0 }
   0xf   :  { %v83_v38 = vmax.f32 %v79_v34, 0.0  ;;  %v84_v39 = vmax.f32 %v80_v35, 0.0 }
  0x10   :  { %85 = vst [vmem:[%s164_s4] sm:$0xff] %v81_v36  ;;  %86 = vst [vmem:[%s164_s4 + $0x8] sm:$0xff] %v82_v37 }
  0x11   :  { %87 = vst [vmem:[%s164_s4 + $0x10] sm:$0xff] %v83_v38  ;;  %88 = vst [vmem:[%s164_s4 + $0x18] sm:$0xff] %v84_v39 }

// kernel: resnet_tpb_forward.81
= control target key start
LH: loop header
LB: loop body
LE: loop exit
PB: predicated region body
PF: predicated region fallthrough
CT: control target
= control target key end

     0   :  { %10 = vsyncpa [#allocation3], 0  ;;  %s751_s0 = inlined_call_operand.vmem [shape: bf16[8,512], index: 0, kind: input, shape index: {}]   ;;  %s752_s1 = inlined_call_operand.vmem [shape: bf16[512,128], index: 1, kind: input, shape index: {}]   ;;  %s753_s2 = inlined_call_operand.vmem [shape: f32[8,128], index: 2, kind: output, shape index: {0}]   ;;  %s754_s3 = inlined_call_operand.hbm [shape: f32[8,128], index: 3, kind: output, shape index: {1}]   ;;  %s755_s4 = inlined_call_operand.hbm [shape: f32[8,128], index: 4, kind: output, shape index: {2}]  }
   0x1   :  { %v511_v0 = vld [vmem:[%s752_s1 + $0x40] sm:$0xff]   ;;  %v515_v4 = vld [vmem:[%s752_s1 + $0x48] sm:$0xff]   ;;  %v519_v8 = vld [vmem:[%s752_s1 + $0x50] sm:$0xff]  }
   0x2   :  { %v512_v1 = vld [vmem:[%s752_s1 + $0xc0] sm:$0xff]   ;;  %464 = vmatprep.subr.bf16.mxu0 %v511_v0  ;;  %v516_v5 = vld [vmem:[%s752_s1 + $0xc8] sm:$0xff]   ;;  %v520_v9 = vld [vmem:[%s752_s1 + $0xd0] sm:$0xff]  }
   0x3   :  { %v513_v2 = vld [vmem:[%s752_s1] sm:$0xff]   ;;  %486 = vmatprep.subr.bf16.mxu1 %v512_v1  ;;  %v517_v6 = vld [vmem:[%s752_s1 + $0x8] sm:$0xff]   ;;  %v521_v10 = vld [vmem:[%s752_s1 + $0x10] sm:$0xff]  }
   0x4   :  { %v514_v3 = vld [vmem:[%s752_s1 + $0x80] sm:$0xff]   ;;  %465 = vmatpush3.bf16.msra.mxu0 %v513_v2  ;;  %v518_v7 = vld [vmem:[%s752_s1 + $0x88] sm:$0xff]   ;;  %v522_v11 = vld [vmem:[%s752_s1 + $0x90] sm:$0xff]  }
   0x5   :  { %487 = vmatpush3.bf16.msra.mxu1 %v514_v3  ;;  %466 = vmatprep.subr.bf16.mxu0 %v515_v4  ;;  %v523_v12 = vld [vmem:[%s752_s1 + $0x58] sm:$0xff]   ;;  %v527_v16 = vld [vmem:[%s752_s1 + $0x60] sm:$0xff]   ;;  %v531_v20 = vld [vmem:[%s752_s1 + $0x68] sm:$0xff]  }
   0x6   :  { %488 = vmatprep.subr.bf16.mxu1 %v516_v5  ;;  %v524_v13 = vld [vmem:[%s752_s1 + $0xd8] sm:$0xff]   ;;  %v528_v17 = vld [vmem:[%s752_s1 + $0xe0] sm:$0xff]   ;;  %v532_v21 = vld [vmem:[%s752_s1 + $0xe8] sm:$0xff]  }
   0x7   :  { %v525_v14 = vld [vmem:[%s752_s1 + $0x18] sm:$0xff]   ;;  %v529_v18 = vld [vmem:[%s752_s1 + $0x20] sm:$0xff]   ;;  %v533_v22 = vld [vmem:[%s752_s1 + $0x28] sm:$0xff]  }
   0x8   :  { %467 = vmatpush3.bf16.msra.mxu0 %v517_v6  ;;  %v526_v15 = vld [vmem:[%s752_s1 + $0x98] sm:$0xff]   ;;  %v530_v19 = vld [vmem:[%s752_s1 + $0xa0] sm:$0xff]   ;;  %v534_v23 = vld [vmem:[%s752_s1 + $0xa8] sm:$0xff]  }
   0x9   :  { %489 = vmatpush3.bf16.msra.mxu1 %v518_v7  ;;  %468 = vmatprep.subr.bf16.mxu0 %v519_v8  ;;  %v535_v24 = vld [vmem:[%s752_s1 + $0x70] sm:$0xff]   ;;  %v539_v28 = vld [vmem:[%s752_s1 + $0x78] sm:$0xff]   ;;  %v23_v32 = vld [vmem:[%s751_s0] sm:$0xff] }
   0xa   :  { %490 = vmatprep.subr.bf16.mxu1 %v520_v9  ;;  %v536_v25 = vld [vmem:[%s752_s1 + $0xf0] sm:$0xff]   ;;  %v540_v29 = vld [vmem:[%s752_s1 + $0xf8] sm:$0xff]   ;;  %v24_v33 = vld [vmem:[%s751_s0 + $0x8] sm:$0xff] }
   0xb   :  { %v537_v26 = vld [vmem:[%s752_s1 + $0x30] sm:$0xff]   ;;  %v541_v30 = vld [vmem:[%s752_s1 + $0x38] sm:$0xff]  }
   0xc   :  { %469 = vmatpush3.bf16.msra.mxu0 %v521_v10  ;;  %v538_v27 = vld [vmem:[%s752_s1 + $0xb0] sm:$0xff]   ;;  %v542_v31 = vld [vmem:[%s752_s1 + $0xb8] sm:$0xff]  }
   0xd   :  { %491 = vmatpush3.bf16.msra.mxu1 %v522_v11  ;;  %470 = vmatprep.subr.bf16.mxu0 %v523_v12 }
   0xe   :  { %492 = vmatprep.subr.bf16.mxu1 %v524_v13 }
  0x10   :  { %471 = vmatpush3.bf16.msra.mxu0 %v525_v14 }
  0x11   :  { %493 = vmatpush3.bf16.msra.mxu1 %v526_v15  ;;  %472 = vmatprep.subr.bf16.mxu0 %v527_v16 }
  0x12   :  { %494 = vmatprep.subr.bf16.mxu1 %v528_v17 }
  0x14   :  { %473 = vmatpush3.bf16.msra.mxu0 %v529_v18 }
  0x15   :  { %495 = vmatpush3.bf16.msra.mxu1 %v530_v19  ;;  %474 = vmatprep.subr.bf16.mxu0 %v531_v20 }
  0x16   :  { %496 = vmatprep.subr.bf16.mxu1 %v532_v21 }
  0x18   :  { %475 = vmatpush3.bf16.msra.mxu0 %v533_v22 }
  0x19   :  { %497 = vmatpush3.bf16.msra.mxu1 %v534_v23  ;;  %476 = vmatprep.subr.bf16.mxu0 %v535_v24 }
  0x1a   :  { %498 = vmatprep.subr.bf16.mxu1 %v536_v25 }
  0x1c   :  { %477 = vmatpush3.bf16.msra.mxu0 %v537_v26 }
  0x1d   :  { %499 = vmatpush3.bf16.msra.mxu1 %v538_v27  ;;  %478 = vmatprep.subr.bf16.mxu0 %v539_v28 }
  0x1e   :  { %500 = vmatprep.subr.bf16.mxu1 %v540_v29 }
  0x20   :  { %479 = vmatpush3.bf16.msra.mxu0 %v541_v30 }
  0x21   :  { %11 = vsyncpa [#allocation5], 0  ;;  %501 = vmatpush3.bf16.msra.mxu1 %v542_v31  ;;  %v428_v34 = vcombine.low %v23_v32, %v23_v32  ;;  %v429_v35 = vcombine.high %v23_v32, %v23_v32  ;;  %v430_v36 = vcombine.low %v24_v33, %v24_v33  ;;  %v431_v37 = vcombine.high %v24_v33, %v24_v33  ;;  %s595_s5 = smov [#allocation2]   ;;  %s596_s7 = smov [#allocation4]  }
  0x22   :  { %s404_s6 = sshll.u32 %s595_s5, 4  ;;  %s414_s8 = sshll.u32 %s596_s7, 4  ;;  %s405_s6 = int_to_ptr.vmem [resolvable:$true] %s404_s6  ;;  %s415_s8 = int_to_ptr.vmem [resolvable:$true] %s414_s8 }
  0x23   :  { %327 = vmatprep.mubr.bf16.mxu0 %v429_v35  ;;  %367 = vmatprep.mubr.bf16.mxu1 %v431_v37  ;;  %p552_p1 = scmp.lt.s32.totalorder %s405_s6, %s405_s6 }
  0x24   :  { %328 = vmatmul.mubr.bf16.vlgmr.msra.gmra.mrb[0].mxu0 %v428_v34  ;;  %368 = vmatmul.mubr.bf16.vlgmr.msra.gmra.mrb[0].mxu1 %v430_v36 }
  0xf7   :  { %v480_v38 = vpop.f32.mrb[0].mxu0  ;;  %v502_v39 = vpop.f32.mrb[0].mxu1 }
  0xf8   :  { %v481_v40 = vpop.f32.mrb[1].mxu0  ;;  %v503_v41 = vpop.f32.mrb[1].mxu1 }
  0xf9   :  { %v482_v42 = vadd.f32 %v481_v40, %v480_v38  ;;  %v504_v43 = vadd.f32 %v503_v41, %v502_v39  ;;  %v483_v44 = vpop.f32.mrb[2].mxu0  ;;  %v505_v45 = vpop.f32.mrb[2].mxu1 }
  0xfa   :  { %v484_v46 = vpop.f32.mrb[3].mxu0  ;;  %v506_v47 = vpop.f32.mrb[3].mxu1 }
  0xfb   :  { %v370_v48 = vadd.f32 %v504_v43, %v482_v42 }
  0xfd   :  { %376 = vst [vmem:[%s753_s2] sm:$0xff] %v370_v48  ;;  %v381_v49 = vrot.slane %v370_v48, 4  ;;  %v387_v50 = vmul.f32 %v370_v48, %v370_v48  ;;  %s547_s2 = scalar_lea.vmem %s405_s6, 128 }
  0xfe   :  { %p548_p0 = scmp.ne.s32.totalorder %s405_s6, %s547_s2  ;;  %p553_p2 = scmp.lt.s32.totalorder %s547_s2, %s547_s2 }
  0xff   :  { %v382_v51 = vadd.f32 %v381_v49, %v370_v48  ;;  %v388_v52 = vrot.slane %v387_v50, 4 }
 0x100   :  { %p554_p3 = por %p553_p2, %p552_p1 }
 0x101   :  { %v383_v53 = vrot.slane %v382_v51, 2  ;;  %v389_v54 = vadd.f32 %v388_v52, %v387_v50 }
 0x102   :  { %p555_p4 = pnand %p554_p3, %p548_p0 }
 0x103   :  { %v384_v55 = vadd.f32 %v383_v53, %v382_v51  ;;  %v390_v56 = vrot.slane %v389_v54, 2 }
 0x105   :  { %v385_v57 = vrot.slane %v384_v55, 1  ;;  %v391_v58 = vadd.f32 %v390_v56, %v389_v54 }
 0x107   :  { %v386_v59 = vadd.f32 %v385_v57, %v384_v55  ;;  %v392_v60 = vrot.slane %v391_v58, 1 }
 0x109   :  { %394 = vst [vmem:[#allocation2] sm:$0xff] %v386_v59  ;;  %v393_v61 = vadd.f32 %v392_v60, %v391_v58 }
 0x10a   :  { %558 = shalt.err (!%p555_p4)
}
 0x10b   :  { %s559_s11 = scalar_lea.hbm %s754_s3, 128 }
 0x10c   :  { %p560_p5 = scmp.ne.s32.totalorder %s754_s3, %s559_s11  ;;  %p563_p6 = scmp.lt.u32.totalorder %s559_s11, %s754_s3 }
 0x10e   :  { %p565_p7 = pnand %p563_p6, %p560_p5 }
 0x110   :  { %568 = shalt.err (!%p565_p7)
}
 0x111   :  { %407 = dma.vmem_to_hbm [thread:$0]  %s405_s6, 128, %s754_s3, [#allocation3]   ;;  %395 = vst [vmem:[#allocation4] sm:$0xff] %v393_v61 }
 0x112   :  { %s569_s18 = scalar_lea.vmem %s415_s8, 128  ;;  %p574_p9 = scmp.lt.s32.totalorder %s415_s8, %s415_s8 }
 0x113   :  { %p570_p8 = scmp.ne.s32.totalorder %s415_s8, %s569_s18  ;;  %p575_p10 = scmp.lt.s32.totalorder %s569_s18, %s569_s18 }
 0x115   :  { %p576_p11 = por %p575_p10, %p574_p9 }
 0x117   :  { %p577_p12 = pnand %p576_p11, %p570_p8 }
 0x119   :  { %580 = shalt.err (!%p577_p12)
}
 0x11a   :  { %s581_s21 = scalar_lea.hbm %s755_s4, 128 }
 0x11b   :  { %p582_p13 = scmp.ne.s32.totalorder %s755_s4, %s581_s21  ;;  %p585_p0 = scmp.lt.u32.totalorder %s581_s21, %s755_s4 }
 0x11d   :  { %p587_p1 = pnand %p585_p0, %p582_p13 }
 0x11f   :  { %590 = shalt.err (!%p587_p1)
}
 0x120   :  { %417 = dma.vmem_to_hbm [thread:$0]  %s415_s8, 128, %s755_s4, [#allocation5]  }
 0x121   :  { %591 = dma.done.wait [#allocation3], 128  }
 0x122   :  { %592 = vsyncadd [#allocation3], 4294967168 }
 0x123   :  { %593 = dma.done.wait [#allocation5], 128  }
 0x124   :  { %594 = vsyncadd [#allocation5], 4294967168 }
 0x125   :  { %426 = vsyncpa [#allocation3], 1 }
 0x126   :  { %427 = vsyncpa [#allocation5], 1 }

</bundles_post_ra>
